<compile_context>
chip_gen: v7x
topology: tpu7x:2x2x1
jax: 0.10.0
libtpu: 0.0.40
codegen_flags: <defaults>
</compile_context>

<pallas_src>
import functools

import numpy as np
import jax
import jax.numpy as jnp
from jax.experimental import pallas as pl
from jax.experimental.pallas import tpu as pltpu


# ----------------------------- fused Pallas kernel ------------------------- #

def _fused_dqn_kernel(p1_ref, w1_ref, b1_ref,
                      g2_ref, w2_ref, b2_ref,
                      g3_ref, w3_ref, b3_ref,
                      wh1_ref, bh1_ref, wh2_ref, bh2_ref,
                      out_ref, *, n_tap2, n_tap3, rows2, rows3):
    f32 = jnp.float32

    # conv1: relu(P1 @ W1 + b1)                                  -> (Bt*64, 32)
    h1 = jnp.dot(p1_ref[...], w1_ref[...], preferred_element_type=f32)
    h1 = jnp.maximum(h1 + b1_ref[...], 0.0)

    # conv2 (4x4, stride 2): ONE stacked gather matmul pulls every
    # (position, tap) patch row of the whole batch tile at once, then one
    # small weight matmul per tap accumulates into a single f32 accumulator.
    # Bias is added once after the loop, fused with the ReLU.
    p2 = jnp.dot(g2_ref[...], h1, preferred_element_type=f32)   # (16*rows2, 32)
    acc2 = jnp.dot(p2[:rows2, :], w2_ref[0], preferred_element_type=f32)
    for t in range(1, n_tap2):
        acc2 = acc2 + jnp.dot(p2[t * rows2:(t + 1) * rows2, :], w2_ref[t],
                              preferred_element_type=f32)
    h2 = jnp.maximum(acc2 + b2_ref[...], 0.0)                   # (rows2, 64)

    # conv3 (3x3, stride 1, final spatial 1x1) the same way; the result rows
    # are directly the per-image flattened features (Bt, 64).
    p3 = jnp.dot(g3_ref[...], h2, preferred_element_type=f32)   # (9*rows3, 64)
    acc3 = jnp.dot(p3[:rows3, :], w3_ref[0], preferred_element_type=f32)
    for t in range(1, n_tap3):
        acc3 = acc3 + jnp.dot(p3[t * rows3:(t + 1) * rows3, :], w3_ref[t],
                              preferred_element_type=f32)
    feats = jnp.maximum(acc3 + b3_ref[...], 0.0)                # (Bt, 64)

    # dueling heads, fully fused:
    #   first layers share the LHS -> one (64, 256) matmul,
    #   second layers -> one block-diagonal (256, 128) matmul whose lane-dense
    #   128-wide output slab holds [ V | A | zero-pad ].
    hid = jnp.dot(feats, wh1_ref[...], preferred_element_type=f32)
    hid = jnp.maximum(hid + bh1_ref[...], 0.0)                  # (Bt, 256)
    out_ref[...] = (jnp.dot(hid, wh2_ref[...], preferred_element_type=f32)
                    + bh2_ref[...])                             # (Bt, 128)


# ------------------------------- wrapper glue ------------------------------- #

_TILE_B = 8  # images per grid step; keeps every row count a multiple of 8


def _conv_out(n, k, s):
    return (n - k) // s + 1


def _round_up(n, m):
    return ((n + m - 1) // m) * m


def _im2col(x, k, s):
    """x: (B, C, H, W) -> (B*OH*OW, C*k*k); column order (c, ki, kj)."""
    b, c, h, w = x.shape
    oh, ow = _conv_out(h, k, s), _conv_out(w, k, s)
    cols = []
    for i in range(k):
        for j in range(k):
            cols.append(x[:, :, i:i + s * oh:s, j:j + s * ow:s])   # (B,C,OH,OW)
    col = jnp.stack(cols, axis=2).reshape(b, c, k, k, oh, ow)
    col = col.transpose(0, 4, 5, 1, 2, 3).reshape(b * oh * ow, c * k * k)
    return col, oh, ow


def _stacked_gather(bt, ih, iw, k, s):
    """Constant 0/1 stacked-gather matrix for one batch TILE (block-diagonal
    across the bt images of the tile, shared by every grid step).

    Shape (k*k * bt * oh*ow, bt * ih*iw); row order (tap, b, pos), so the
    tap-t block of (G @ H) holds, for every (b, pos), the input row that
    kernel tap t of output position pos reads.
    """
    oh, ow = _conv_out(ih, k, s), _conv_out(iw, k, s)
    n_out, m_in = oh * ow, ih * iw
    g = np.zeros((k * k * bt * n_out, bt * m_in), np.float32)
    for ki in range(k):
        for kj in range(k):
            tap = ki * k + kj
            for b in range(bt):
                for y in range(oh):
                    for z in range(ow):
                        row = tap * bt * n_out + b * n_out + y * ow + z
                        src = b * m_in + (s * y + ki) * iw + (s * z + kj)
                        g[row, src] = 1.0
    return g


def conv_dueling_dqn_forward(params, x):
    """ConvDuelingDQN forward; conv stack + heads in one fused Pallas kernel."""
    batch, chans, _, _ = x.shape
    out_dim = params["a2_w"].shape[1]
    hidden = params["v1_w"].shape[1]            # 128
    assert out_dim + 1 <= 128

    bt = _TILE_B
    bp = _round_up(batch, bt)                   # batch padded to the tile

    # conv1 patches: one wrapper-side im2col pass over the raw input only.
    p1, oh1, ow1 = _im2col(x, 8, 4)                           # (B*oh1*ow1, C*64)
    m1 = oh1 * ow1
    if bp != batch:
        p1 = jnp.pad(p1, ((0, (bp - batch) * m1), (0, 0)))

    # static conv-stack geometry
    oh2, ow2 = _conv_out(oh1, 4, 2), _conv_out(ow1, 4, 2)
    oh3, ow3 = _conv_out(oh2, 3, 1), _conv_out(ow2, 3, 1)
    n2 = oh2 * ow2
    # TODO(synk): the fused kernel assumes the conv stack reduces spatial to
    # 1x1 (true for this input size); >1x1 final spatial would need an extra
    # in-kernel flatten of (Bt*oh3*ow3, 64) -> (Bt, 64*oh3*ow3).
    assert oh3 == 1 and ow3 == 1, (oh3, ow3)
    assert params["v1_w"].shape[0] == 64 * oh3 * ow3
    assert (bt * m1) % 8 == 0 and (bt * n2) % 8 == 0 and bt % 8 == 0

    # per-tile block-diagonal stacked-gather constants (O(tile^2), not O(B^2))
    g2s = _stacked_gather(bt, oh1, ow1, 4, 2)     # (16*bt*n2, bt*m1)
    g3s = _stacked_gather(bt, oh2, ow2, 3, 1)     # (9*bt,     bt*n2)

    # conv weights: conv1 as an im2col matmul weight, conv2/conv3 per tap
    w1m = params["c1_w"].reshape(32, chans * 8 * 8).T          # (C*64, 32)
    w2s = params["c2_w"].transpose(2, 3, 1, 0).reshape(16, 32, 64)
    w3s = params["c3_w"].transpose(2, 3, 1, 0).reshape(9, 64, 64)

    # fused dueling heads
    wh1 = jnp.concatenate([params["v1_w"], params["a1_w"]], axis=1)   # (64, 256)
    bh1 = jnp.concatenate([params["v1_b"], params["a1_b"]]).reshape(1, -1)
    wh2 = jnp.zeros((2 * hidden, 128), jnp.float32)           # block-diagonal
    wh2 = wh2.at[:hidden, 0:1].set(params["v2_w"])
    wh2 = wh2.at[hidden:, 1:1 + out_dim].set(params["a2_w"])
    bh2 = jnp.zeros((1, 128), jnp.float32)
    bh2 = bh2.at[0, 0].set(params["v2_b"][0])
    bh2 = bh2.at[0, 1:1 + out_dim].set(params["a2_b"])

    rows1, rows2, rows3 = bt * m1, bt * n2, bt
    n_steps = bp // bt

    kernel = functools.partial(_fused_dqn_kernel, n_tap2=16, n_tap3=9,
                               rows2=rows2, rows3=rows3)

    # advisory cost estimate so XLA schedules the surrounding ops sensibly
    macs_per_step = (rows1 * (chans * 64) * 32
                     + g2s.shape[0] * g2s.shape[1] * 32 + 16 * rows2 * 32 * 64
                     + g3s.shape[0] * g3s.shape[1] * 64 + 9 * rows3 * 64 * 64
                     + rows3 * 64 * (2 * hidden) + rows3 * (2 * hidden) * 128)
    const_bytes = 4 * (w1m.size + 32 + g2s.size + w2s.size + 64
                       + g3s.size + w3s.size + 64
                       + wh1.size + 2 * hidden + wh2.size + 128)
    cost = pl.CostEstimate(flops=2 * macs_per_step * n_steps,
                           transcendentals=0,
                           bytes_accessed=4 * (p1.size + bp * 128) + const_bytes)

    grid_spec = pltpu.PrefetchScalarGridSpec(
        num_scalar_prefetch=0,
        grid=(n_steps,),
        in_specs=[
            pl.BlockSpec((rows1, chans * 8 * 8), lambda i: (i, 0)),   # p1 tile
            pl.BlockSpec(w1m.shape, lambda i: (0, 0)),
            pl.BlockSpec((1, 32), lambda i: (0, 0)),
            pl.BlockSpec(g2s.shape, lambda i: (0, 0)),
            pl.BlockSpec(w2s.shape, lambda i: (0, 0, 0)),
            pl.BlockSpec((1, 64), lambda i: (0, 0)),
            pl.BlockSpec(g3s.shape, lambda i: (0, 0)),
            pl.BlockSpec(w3s.shape, lambda i: (0, 0, 0)),
            pl.BlockSpec((1, 64), lambda i: (0, 0)),
            pl.BlockSpec(wh1.shape, lambda i: (0, 0)),
            pl.BlockSpec((1, 2 * hidden), lambda i: (0, 0)),
            pl.BlockSpec(wh2.shape, lambda i: (0, 0)),
            pl.BlockSpec((1, 128), lambda i: (0, 0)),
        ],
        out_specs=pl.BlockSpec((bt, 128), lambda i: (i, 0)),          # V|A slab
    )

    slab = pl.pallas_call(
        kernel,
        out_shape=jax.ShapeDtypeStruct((bp, 128), jnp.float32),
        grid_spec=grid_spec,
        compiler_params=pltpu.CompilerParams(
            dimension_semantics=("parallel",),
            vmem_limit_bytes=32 * 1024 * 1024),
        cost_estimate=cost,
    )(p1, w1m, params["c1_b"].reshape(1, -1),
      jnp.asarray(g2s), w2s, params["c2_b"].reshape(1, -1),
      jnp.asarray(g3s), w3s, params["c3_b"].reshape(1, -1),
      wh1, bh1, wh2, bh2)

    # final combine uses the module's GLOBAL advantage mean -> cross-batch
    # reduction, done on the tiny (B, out) result so the grid stays parallel.
    v = slab[:batch, 0:1]
    a = slab[:batch, 1:1 + out_dim]
    return v + (a - jnp.mean(a))


# ------------------------------- reference ---------------------------------- #

def reference_forward(params, x):
    def conv(y, w, b, s):
        z = jax.lax.conv_general_dilated(
            y, w, (s, s), "VALID", dimension_numbers=("NCHW", "OIHW", "NCHW"))
        return jax.nn.relu(z + b.reshape(1, -1, 1, 1))

    h = conv(x, params["c1_w"], params["c1_b"], 4)
    h = conv(h, params["c2_w"], params["c2_b"], 2)
    h = conv(h, params["c3_w"], params["c3_b"], 1)
    f = h.reshape(h.shape[0], -1)
    hv = jax.nn.relu(f @ params["v1_w"] + params["v1_b"])
    v = hv @ params["v2_w"] + params["v2_b"]
    ha = jax.nn.relu(f @ params["a1_w"] + params["a1_b"])
    a = ha @ params["a2_w"] + params["a2_b"]
    return v + (a - a.mean())


# --------------------------------- params ----------------------------------- #

def init_params(key, in_channels, fc_input_dim, output_dim):
    ks = jax.random.split(key, 14)

    def w(k, shape, fan_in):
        return (jax.random.normal(k, shape, jnp.float32)
                / jnp.sqrt(fan_in)).astype(jnp.float32)

    return {
        # conv weights in PyTorch OIHW layout
        "c1_w": w(ks[0], (32, in_channels, 8, 8), in_channels * 64),
        "c1_b": w(ks[1], (32,), 32),
        "c2_w": w(ks[2], (64, 32, 4, 4), 32 * 16),
        "c2_b": w(ks[3], (64,), 64),
        "c3_w": w(ks[4], (64, 64, 3, 3), 64 * 9),
        "c3_b": w(ks[5], (64,), 64),
        # linear weights stored as (in, out)
        "v1_w": w(ks[6], (fc_input_dim, 128), fc_input_dim),
        "v1_b": w(ks[7], (128,), 128),
        "v2_w": w(ks[8], (128, 1), 128),
        "v2_b": w(ks[9], (1,), 1),
        "a1_w": w(ks[10], (fc_input_dim, 128), fc_input_dim),
        "a1_b": w(ks[11], (128,), 128),
        "a2_w": w(ks[12], (128, output_dim), 128),
        "a2_b": w(ks[13], (output_dim,), output_dim),
    }


# ----------------------------------- main ------------------------------------ #

if __name__ == "__main__":
    # batch=2, channels=4, spatial=36 (smallest that survives the
    # 8/4 -> 4/2 -> 3/1 conv stack: 36 -> 8 -> 3 -> 1), output_dim=6.
    batch, channels, spatial, output_dim = 2, 4, 36, 6
    fc_input_dim = 64 * 1 * 1  # 64 channels x 1 x 1 spatial after the convs

    key = jax.random.PRNGKey(0)
    k_params, k_x = jax.random.split(key)
    params = init_params(k_params, channels, fc_input_dim, output_dim)
    x = jax.random.normal(k_x, (batch, channels, spatial, spatial), jnp.float32)

    fwd = jax.jit(conv_dueling_dqn_forward)
    q = jax.block_until_ready(fwd(params, x))
    q_ref = jax.block_until_ready(reference_forward(params, x))

    assert q.shape == (batch, output_dim), q.shape
    assert jnp.allclose(q, q_ref, atol=1e-3, rtol=1e-3), (q, q_ref)
    print("KERNEL_OK")
</pallas_src>

<mosaic_0001>
module attributes {stable_mosaic.version = 11 : i64} {
  func.func @_fused_dqn_kernel(%arg0: i32, %arg1: memref<512x256xf32, #tpu.memory_space<vmem>>, %arg2: memref<256x32xf32, #tpu.memory_space<vmem>>, %arg3: memref<1x32xf32, #tpu.memory_space<vmem>>, %arg4: memref<1152x512xf32, #tpu.memory_space<vmem>>, %arg5: memref<16x32x64xf32, #tpu.memory_space<vmem>>, %arg6: memref<1x64xf32, #tpu.memory_space<vmem>>, %arg7: memref<72x72xf32, #tpu.memory_space<vmem>>, %arg8: memref<9x64x64xf32, #tpu.memory_space<vmem>>, %arg9: memref<1x64xf32, #tpu.memory_space<vmem>>, %arg10: memref<64x256xf32, #tpu.memory_space<vmem>>, %arg11: memref<1x256xf32, #tpu.memory_space<vmem>>, %arg12: memref<256x128xf32, #tpu.memory_space<vmem>>, %arg13: memref<1x128xf32, #tpu.memory_space<vmem>>, %arg14: memref<8x128xf32, #tpu.memory_space<vmem>>) attributes {dimension_semantics = [#tpu.dimension_semantics<parallel>], iteration_bounds = array<i64: 1>, scalar_prefetch = 0 : i64, scratch_operands = 0 : i64, tpu.core_type = #tpu.core_type<tc>, window_params = [{transform_indices = @transform_0, window_bounds = array<i64: 512, 256>}, {pipeline_mode = #tpu.pipeline_mode<synchronous>, transform_indices = @transform_1, window_bounds = array<i64: 256, 32>}, {pipeline_mode = #tpu.pipeline_mode<synchronous>, transform_indices = @transform_2, window_bounds = array<i64: 1, 32>}, {pipeline_mode = #tpu.pipeline_mode<synchronous>, transform_indices = @transform_3, window_bounds = array<i64: 1152, 512>}, {pipeline_mode = #tpu.pipeline_mode<synchronous>, transform_indices = @transform_4, window_bounds = array<i64: 16, 32, 64>}, {pipeline_mode = #tpu.pipeline_mode<synchronous>, transform_indices = @transform_5, window_bounds = array<i64: 1, 64>}, {pipeline_mode = #tpu.pipeline_mode<synchronous>, transform_indices = @transform_6, window_bounds = array<i64: 72, 72>}, {pipeline_mode = #tpu.pipeline_mode<synchronous>, transform_indices = @transform_7, window_bounds = array<i64: 9, 64, 64>}, {pipeline_mode = #tpu.pipeline_mode<synchronous>, transform_indices = @transform_8, window_bounds = array<i64: 1, 64>}, {pipeline_mode = #tpu.pipeline_mode<synchronous>, transform_indices = @transform_9, window_bounds = array<i64: 64, 256>}, {pipeline_mode = #tpu.pipeline_mode<synchronous>, transform_indices = @transform_10, window_bounds = array<i64: 1, 256>}, {pipeline_mode = #tpu.pipeline_mode<synchronous>, transform_indices = @transform_11, window_bounds = array<i64: 256, 128>}, {pipeline_mode = #tpu.pipeline_mode<synchronous>, transform_indices = @transform_12, window_bounds = array<i64: 1, 128>}, {transform_indices = @transform_13, window_bounds = array<i64: 8, 128>}]} {
    %c0 = arith.constant 0 : index
    %c0_0 = arith.constant 0 : index
    %0 = vector.load %arg1[%c0, %c0_0] : memref<512x256xf32, #tpu.memory_space<vmem>>, vector<512x256xf32>
    %c0_1 = arith.constant 0 : index
    %c0_2 = arith.constant 0 : index
    %1 = vector.load %arg2[%c0_1, %c0_2] : memref<256x32xf32, #tpu.memory_space<vmem>>, vector<256x32xf32>
    %cst = arith.constant dense<0.000000e+00> : vector<512x32xf32>
    %2 = tpu.matmul %0, %1, %cst {dimension_numbers = #tpu.dot_dimension_numbers<[1], [0], [0], [1], [0, 0, 1, 1], [], []>} : vector<512x256xf32>, vector<256x32xf32>, vector<512x32xf32> -> vector<512x32xf32>
    %c0_3 = arith.constant 0 : index
    %c0_4 = arith.constant 0 : index
    %3 = vector.load %arg3[%c0_3, %c0_4] : memref<1x32xf32, #tpu.memory_space<vmem>>, vector<1x32xf32>
    %4 = vector.broadcast %3 : vector<1x32xf32> to vector<512x32xf32>
    %5 = arith.addf %2, %4 : vector<512x32xf32>
    %cst_5 = arith.constant 0.000000e+00 : f32
    %6 = vector.broadcast %cst_5 : f32 to vector<512x32xf32>
    %7 = arith.maximumf %5, %6 : vector<512x32xf32>
    %c0_6 = arith.constant 0 : index
    %c0_7 = arith.constant 0 : index
    %8 = vector.load %arg4[%c0_6, %c0_7] : memref<1152x512xf32, #tpu.memory_space<vmem>>, vector<1152x512xf32>
    %cst_8 = arith.constant dense<0.000000e+00> : vector<1152x32xf32>
    %9 = tpu.matmul %8, %7, %cst_8 {dimension_numbers = #tpu.dot_dimension_numbers<[1], [0], [0], [1], [0, 0, 1, 1], [], []>} : vector<1152x512xf32>, vector<512x32xf32>, vector<1152x32xf32> -> vector<1152x32xf32>
    %10 = vector.extract_strided_slice %9 {offsets = [0, 0], sizes = [72, 32], strides = [1, 1]} : vector<1152x32xf32> to vector<72x32xf32>
    %c0_9 = arith.constant 0 : index
    %c0_10 = arith.constant 0 : index
    %c0_11 = arith.constant 0 : index
    %11 = vector.load %arg5[%c0_9, %c0_10, %c0_11] : memref<16x32x64xf32, #tpu.memory_space<vmem>>, vector<1x32x64xf32>
    %12 = vector.shape_cast %11 : vector<1x32x64xf32> to vector<32x64xf32>
    %cst_12 = arith.constant dense<0.000000e+00> : vector<72x64xf32>
    %13 = tpu.matmul %10, %12, %cst_12 {dimension_numbers = #tpu.dot_dimension_numbers<[1], [0], [0], [1], [0, 0, 1, 1], [], []>} : vector<72x32xf32>, vector<32x64xf32>, vector<72x64xf32> -> vector<72x64xf32>
    %14 = vector.extract_strided_slice %9 {offsets = [72, 0], sizes = [72, 32], strides = [1, 1]} : vector<1152x32xf32> to vector<72x32xf32>
    %c1 = arith.constant 1 : index
    %c0_13 = arith.constant 0 : index
    %c0_14 = arith.constant 0 : index
    %15 = vector.load %arg5[%c1, %c0_13, %c0_14] : memref<16x32x64xf32, #tpu.memory_space<vmem>>, vector<1x32x64xf32>
    %16 = vector.shape_cast %15 : vector<1x32x64xf32> to vector<32x64xf32>
    %cst_15 = arith.constant dense<0.000000e+00> : vector<72x64xf32>
    %17 = tpu.matmul %14, %16, %cst_15 {dimension_numbers = #tpu.dot_dimension_numbers<[1], [0], [0], [1], [0, 0, 1, 1], [], []>} : vector<72x32xf32>, vector<32x64xf32>, vector<72x64xf32> -> vector<72x64xf32>
    %18 = arith.addf %13, %17 : vector<72x64xf32>
    %19 = vector.extract_strided_slice %9 {offsets = [144, 0], sizes = [72, 32], strides = [1, 1]} : vector<1152x32xf32> to vector<72x32xf32>
    %c2 = arith.constant 2 : index
    %c0_16 = arith.constant 0 : index
    %c0_17 = arith.constant 0 : index
    %20 = vector.load %arg5[%c2, %c0_16, %c0_17] : memref<16x32x64xf32, #tpu.memory_space<vmem>>, vector<1x32x64xf32>
    %21 = vector.shape_cast %20 : vector<1x32x64xf32> to vector<32x64xf32>
    %cst_18 = arith.constant dense<0.000000e+00> : vector<72x64xf32>
    %22 = tpu.matmul %19, %21, %cst_18 {dimension_numbers = #tpu.dot_dimension_numbers<[1], [0], [0], [1], [0, 0, 1, 1], [], []>} : vector<72x32xf32>, vector<32x64xf32>, vector<72x64xf32> -> vector<72x64xf32>
    %23 = arith.addf %18, %22 : vector<72x64xf32>
    %24 = vector.extract_strided_slice %9 {offsets = [216, 0], sizes = [72, 32], strides = [1, 1]} : vector<1152x32xf32> to vector<72x32xf32>
    %c3 = arith.constant 3 : index
    %c0_19 = arith.constant 0 : index
    %c0_20 = arith.constant 0 : index
    %25 = vector.load %arg5[%c3, %c0_19, %c0_20] : memref<16x32x64xf32, #tpu.memory_space<vmem>>, vector<1x32x64xf32>
    %26 = vector.shape_cast %25 : vector<1x32x64xf32> to vector<32x64xf32>
    %cst_21 = arith.constant dense<0.000000e+00> : vector<72x64xf32>
    %27 = tpu.matmul %24, %26, %cst_21 {dimension_numbers = #tpu.dot_dimension_numbers<[1], [0], [0], [1], [0, 0, 1, 1], [], []>} : vector<72x32xf32>, vector<32x64xf32>, vector<72x64xf32> -> vector<72x64xf32>
    %28 = arith.addf %23, %27 : vector<72x64xf32>
    %29 = vector.extract_strided_slice %9 {offsets = [288, 0], sizes = [72, 32], strides = [1, 1]} : vector<1152x32xf32> to vector<72x32xf32>
    %c4 = arith.constant 4 : index
    %c0_22 = arith.constant 0 : index
    %c0_23 = arith.constant 0 : index
    %30 = vector.load %arg5[%c4, %c0_22, %c0_23] : memref<16x32x64xf32, #tpu.memory_space<vmem>>, vector<1x32x64xf32>
    %31 = vector.shape_cast %30 : vector<1x32x64xf32> to vector<32x64xf32>
    %cst_24 = arith.constant dense<0.000000e+00> : vector<72x64xf32>
    %32 = tpu.matmul %29, %31, %cst_24 {dimension_numbers = #tpu.dot_dimension_numbers<[1], [0], [0], [1], [0, 0, 1, 1], [], []>} : vector<72x32xf32>, vector<32x64xf32>, vector<72x64xf32> -> vector<72x64xf32>
    %33 = arith.addf %28, %32 : vector<72x64xf32>
    %34 = vector.extract_strided_slice %9 {offsets = [360, 0], sizes = [72, 32], strides = [1, 1]} : vector<1152x32xf32> to vector<72x32xf32>
    %c5 = arith.constant 5 : index
    %c0_25 = arith.constant 0 : index
    %c0_26 = arith.constant 0 : index
    %35 = vector.load %arg5[%c5, %c0_25, %c0_26] : memref<16x32x64xf32, #tpu.memory_space<vmem>>, vector<1x32x64xf32>
    %36 = vector.shape_cast %35 : vector<1x32x64xf32> to vector<32x64xf32>
    %cst_27 = arith.constant dense<0.000000e+00> : vector<72x64xf32>
    %37 = tpu.matmul %34, %36, %cst_27 {dimension_numbers = #tpu.dot_dimension_numbers<[1], [0], [0], [1], [0, 0, 1, 1], [], []>} : vector<72x32xf32>, vector<32x64xf32>, vector<72x64xf32> -> vector<72x64xf32>
    %38 = arith.addf %33, %37 : vector<72x64xf32>
    %39 = vector.extract_strided_slice %9 {offsets = [432, 0], sizes = [72, 32], strides = [1, 1]} : vector<1152x32xf32> to vector<72x32xf32>
    %c6 = arith.constant 6 : index
    %c0_28 = arith.constant 0 : index
    %c0_29 = arith.constant 0 : index
    %40 = vector.load %arg5[%c6, %c0_28, %c0_29] : memref<16x32x64xf32, #tpu.memory_space<vmem>>, vector<1x32x64xf32>
    %41 = vector.shape_cast %40 : vector<1x32x64xf32> to vector<32x64xf32>
    %cst_30 = arith.constant dense<0.000000e+00> : vector<72x64xf32>
    %42 = tpu.matmul %39, %41, %cst_30 {dimension_numbers = #tpu.dot_dimension_numbers<[1], [0], [0], [1], [0, 0, 1, 1], [], []>} : vector<72x32xf32>, vector<32x64xf32>, vector<72x64xf32> -> vector<72x64xf32>
    %43 = arith.addf %38, %42 : vector<72x64xf32>
    %44 = vector.extract_strided_slice %9 {offsets = [504, 0], sizes = [72, 32], strides = [1, 1]} : vector<1152x32xf32> to vector<72x32xf32>
    %c7 = arith.constant 7 : index
    %c0_31 = arith.constant 0 : index
    %c0_32 = arith.constant 0 : index
    %45 = vector.load %arg5[%c7, %c0_31, %c0_32] : memref<16x32x64xf32, #tpu.memory_space<vmem>>, vector<1x32x64xf32>
    %46 = vector.shape_cast %45 : vector<1x32x64xf32> to vector<32x64xf32>
    %cst_33 = arith.constant dense<0.000000e+00> : vector<72x64xf32>
    %47 = tpu.matmul %44, %46, %cst_33 {dimension_numbers = #tpu.dot_dimension_numbers<[1], [0], [0], [1], [0, 0, 1, 1], [], []>} : vector<72x32xf32>, vector<32x64xf32>, vector<72x64xf32> -> vector<72x64xf32>
    %48 = arith.addf %43, %47 : vector<72x64xf32>
    %49 = vector.extract_strided_slice %9 {offsets = [576, 0], sizes = [72, 32], strides = [1, 1]} : vector<1152x32xf32> to vector<72x32xf32>
    %c8 = arith.constant 8 : index
    %c0_34 = arith.constant 0 : index
    %c0_35 = arith.constant 0 : index
    %50 = vector.load %arg5[%c8, %c0_34, %c0_35] : memref<16x32x64xf32, #tpu.memory_space<vmem>>, vector<1x32x64xf32>
    %51 = vector.shape_cast %50 : vector<1x32x64xf32> to vector<32x64xf32>
    %cst_36 = arith.constant dense<0.000000e+00> : vector<72x64xf32>
    %52 = tpu.matmul %49, %51, %cst_36 {dimension_numbers = #tpu.dot_dimension_numbers<[1], [0], [0], [1], [0, 0, 1, 1], [], []>} : vector<72x32xf32>, vector<32x64xf32>, vector<72x64xf32> -> vector<72x64xf32>
    %53 = arith.addf %48, %52 : vector<72x64xf32>
    %54 = vector.extract_strided_slice %9 {offsets = [648, 0], sizes = [72, 32], strides = [1, 1]} : vector<1152x32xf32> to vector<72x32xf32>
    %c9 = arith.constant 9 : index
    %c0_37 = arith.constant 0 : index
    %c0_38 = arith.constant 0 : index
    %55 = vector.load %arg5[%c9, %c0_37, %c0_38] : memref<16x32x64xf32, #tpu.memory_space<vmem>>, vector<1x32x64xf32>
    %56 = vector.shape_cast %55 : vector<1x32x64xf32> to vector<32x64xf32>
    %cst_39 = arith.constant dense<0.000000e+00> : vector<72x64xf32>
    %57 = tpu.matmul %54, %56, %cst_39 {dimension_numbers = #tpu.dot_dimension_numbers<[1], [0], [0], [1], [0, 0, 1, 1], [], []>} : vector<72x32xf32>, vector<32x64xf32>, vector<72x64xf32> -> vector<72x64xf32>
    %58 = arith.addf %53, %57 : vector<72x64xf32>
    %59 = vector.extract_strided_slice %9 {offsets = [720, 0], sizes = [72, 32], strides = [1, 1]} : vector<1152x32xf32> to vector<72x32xf32>
    %c10 = arith.constant 10 : index
    %c0_40 = arith.constant 0 : index
    %c0_41 = arith.constant 0 : index
    %60 = vector.load %arg5[%c10, %c0_40, %c0_41] : memref<16x32x64xf32, #tpu.memory_space<vmem>>, vector<1x32x64xf32>
    %61 = vector.shape_cast %60 : vector<1x32x64xf32> to vector<32x64xf32>
    %cst_42 = arith.constant dense<0.000000e+00> : vector<72x64xf32>
    %62 = tpu.matmul %59, %61, %cst_42 {dimension_numbers = #tpu.dot_dimension_numbers<[1], [0], [0], [1], [0, 0, 1, 1], [], []>} : vector<72x32xf32>, vector<32x64xf32>, vector<72x64xf32> -> vector<72x64xf32>
    %63 = arith.addf %58, %62 : vector<72x64xf32>
    %64 = vector.extract_strided_slice %9 {offsets = [792, 0], sizes = [72, 32], strides = [1, 1]} : vector<1152x32xf32> to vector<72x32xf32>
    %c11 = arith.constant 11 : index
    %c0_43 = arith.constant 0 : index
    %c0_44 = arith.constant 0 : index
    %65 = vector.load %arg5[%c11, %c0_43, %c0_44] : memref<16x32x64xf32, #tpu.memory_space<vmem>>, vector<1x32x64xf32>
    %66 = vector.shape_cast %65 : vector<1x32x64xf32> to vector<32x64xf32>
    %cst_45 = arith.constant dense<0.000000e+00> : vector<72x64xf32>
    %67 = tpu.matmul %64, %66, %cst_45 {dimension_numbers = #tpu.dot_dimension_numbers<[1], [0], [0], [1], [0, 0, 1, 1], [], []>} : vector<72x32xf32>, vector<32x64xf32>, vector<72x64xf32> -> vector<72x64xf32>
    %68 = arith.addf %63, %67 : vector<72x64xf32>
    %69 = vector.extract_strided_slice %9 {offsets = [864, 0], sizes = [72, 32], strides = [1, 1]} : vector<1152x32xf32> to vector<72x32xf32>
    %c12 = arith.constant 12 : index
    %c0_46 = arith.constant 0 : index
    %c0_47 = arith.constant 0 : index
    %70 = vector.load %arg5[%c12, %c0_46, %c0_47] : memref<16x32x64xf32, #tpu.memory_space<vmem>>, vector<1x32x64xf32>
    %71 = vector.shape_cast %70 : vector<1x32x64xf32> to vector<32x64xf32>
    %cst_48 = arith.constant dense<0.000000e+00> : vector<72x64xf32>
    %72 = tpu.matmul %69, %71, %cst_48 {dimension_numbers = #tpu.dot_dimension_numbers<[1], [0], [0], [1], [0, 0, 1, 1], [], []>} : vector<72x32xf32>, vector<32x64xf32>, vector<72x64xf32> -> vector<72x64xf32>
    %73 = arith.addf %68, %72 : vector<72x64xf32>
    %74 = vector.extract_strided_slice %9 {offsets = [936, 0], sizes = [72, 32], strides = [1, 1]} : vector<1152x32xf32> to vector<72x32xf32>
    %c13 = arith.constant 13 : index
    %c0_49 = arith.constant 0 : index
    %c0_50 = arith.constant 0 : index
    %75 = vector.load %arg5[%c13, %c0_49, %c0_50] : memref<16x32x64xf32, #tpu.memory_space<vmem>>, vector<1x32x64xf32>
    %76 = vector.shape_cast %75 : vector<1x32x64xf32> to vector<32x64xf32>
    %cst_51 = arith.constant dense<0.000000e+00> : vector<72x64xf32>
    %77 = tpu.matmul %74, %76, %cst_51 {dimension_numbers = #tpu.dot_dimension_numbers<[1], [0], [0], [1], [0, 0, 1, 1], [], []>} : vector<72x32xf32>, vector<32x64xf32>, vector<72x64xf32> -> vector<72x64xf32>
    %78 = arith.addf %73, %77 : vector<72x64xf32>
    %79 = vector.extract_strided_slice %9 {offsets = [1008, 0], sizes = [72, 32], strides = [1, 1]} : vector<1152x32xf32> to vector<72x32xf32>
    %c14 = arith.constant 14 : index
    %c0_52 = arith.constant 0 : index
    %c0_53 = arith.constant 0 : index
    %80 = vector.load %arg5[%c14, %c0_52, %c0_53] : memref<16x32x64xf32, #tpu.memory_space<vmem>>, vector<1x32x64xf32>
    %81 = vector.shape_cast %80 : vector<1x32x64xf32> to vector<32x64xf32>
    %cst_54 = arith.constant dense<0.000000e+00> : vector<72x64xf32>
    %82 = tpu.matmul %79, %81, %cst_54 {dimension_numbers = #tpu.dot_dimension_numbers<[1], [0], [0], [1], [0, 0, 1, 1], [], []>} : vector<72x32xf32>, vector<32x64xf32>, vector<72x64xf32> -> vector<72x64xf32>
    %83 = arith.addf %78, %82 : vector<72x64xf32>
    %84 = vector.extract_strided_slice %9 {offsets = [1080, 0], sizes = [72, 32], strides = [1, 1]} : vector<1152x32xf32> to vector<72x32xf32>
    %c15 = arith.constant 15 : index
    %c0_55 = arith.constant 0 : index
    %c0_56 = arith.constant 0 : index
    %85 = vector.load %arg5[%c15, %c0_55, %c0_56] : memref<16x32x64xf32, #tpu.memory_space<vmem>>, vector<1x32x64xf32>
    %86 = vector.shape_cast %85 : vector<1x32x64xf32> to vector<32x64xf32>
    %cst_57 = arith.constant dense<0.000000e+00> : vector<72x64xf32>
    %87 = tpu.matmul %84, %86, %cst_57 {dimension_numbers = #tpu.dot_dimension_numbers<[1], [0], [0], [1], [0, 0, 1, 1], [], []>} : vector<72x32xf32>, vector<32x64xf32>, vector<72x64xf32> -> vector<72x64xf32>
    %88 = arith.addf %83, %87 : vector<72x64xf32>
    %c0_58 = arith.constant 0 : index
    %c0_59 = arith.constant 0 : index
    %89 = vector.load %arg6[%c0_58, %c0_59] : memref<1x64xf32, #tpu.memory_space<vmem>>, vector<1x64xf32>
    %90 = vector.broadcast %89 : vector<1x64xf32> to vector<72x64xf32>
    %91 = arith.addf %88, %90 : vector<72x64xf32>
    %cst_60 = arith.constant 0.000000e+00 : f32
    %92 = vector.broadcast %cst_60 : f32 to vector<72x64xf32>
    %93 = arith.maximumf %91, %92 : vector<72x64xf32>
    %c0_61 = arith.constant 0 : index
    %c0_62 = arith.constant 0 : index
    %94 = vector.load %arg7[%c0_61, %c0_62] : memref<72x72xf32, #tpu.memory_space<vmem>>, vector<72x72xf32>
    %cst_63 = arith.constant dense<0.000000e+00> : vector<72x64xf32>
    %95 = tpu.matmul %94, %93, %cst_63 {dimension_numbers = #tpu.dot_dimension_numbers<[1], [0], [0], [1], [0, 0, 1, 1], [], []>} : vector<72x72xf32>, vector<72x64xf32>, vector<72x64xf32> -> vector<72x64xf32>
    %96 = vector.extract_strided_slice %95 {offsets = [0, 0], sizes = [8, 64], strides = [1, 1]} : vector<72x64xf32> to vector<8x64xf32>
    %c0_64 = arith.constant 0 : index
    %c0_65 = arith.constant 0 : index
    %c0_66 = arith.constant 0 : index
    %97 = vector.load %arg8[%c0_64, %c0_65, %c0_66] : memref<9x64x64xf32, #tpu.memory_space<vmem>>, vector<1x64x64xf32>
    %98 = vector.shape_cast %97 : vector<1x64x64xf32> to vector<64x64xf32>
    %cst_67 = arith.constant dense<0.000000e+00> : vector<8x64xf32>
    %99 = tpu.matmul %96, %98, %cst_67 {dimension_numbers = #tpu.dot_dimension_numbers<[1], [0], [0], [1], [0, 0, 1, 1], [], []>} : vector<8x64xf32>, vector<64x64xf32>, vector<8x64xf32> -> vector<8x64xf32>
    %100 = vector.extract_strided_slice %95 {offsets = [8, 0], sizes = [8, 64], strides = [1, 1]} : vector<72x64xf32> to vector<8x64xf32>
    %c1_68 = arith.constant 1 : index
    %c0_69 = arith.constant 0 : index
    %c0_70 = arith.constant 0 : index
    %101 = vector.load %arg8[%c1_68, %c0_69, %c0_70] : memref<9x64x64xf32, #tpu.memory_space<vmem>>, vector<1x64x64xf32>
    %102 = vector.shape_cast %101 : vector<1x64x64xf32> to vector<64x64xf32>
    %cst_71 = arith.constant dense<0.000000e+00> : vector<8x64xf32>
    %103 = tpu.matmul %100, %102, %cst_71 {dimension_numbers = #tpu.dot_dimension_numbers<[1], [0], [0], [1], [0, 0, 1, 1], [], []>} : vector<8x64xf32>, vector<64x64xf32>, vector<8x64xf32> -> vector<8x64xf32>
    %104 = arith.addf %99, %103 : vector<8x64xf32>
    %105 = vector.extract_strided_slice %95 {offsets = [16, 0], sizes = [8, 64], strides = [1, 1]} : vector<72x64xf32> to vector<8x64xf32>
    %c2_72 = arith.constant 2 : index
    %c0_73 = arith.constant 0 : index
    %c0_74 = arith.constant 0 : index
    %106 = vector.load %arg8[%c2_72, %c0_73, %c0_74] : memref<9x64x64xf32, #tpu.memory_space<vmem>>, vector<1x64x64xf32>
    %107 = vector.shape_cast %106 : vector<1x64x64xf32> to vector<64x64xf32>
    %cst_75 = arith.constant dense<0.000000e+00> : vector<8x64xf32>
    %108 = tpu.matmul %105, %107, %cst_75 {dimension_numbers = #tpu.dot_dimension_numbers<[1], [0], [0], [1], [0, 0, 1, 1], [], []>} : vector<8x64xf32>, vector<64x64xf32>, vector<8x64xf32> -> vector<8x64xf32>
    %109 = arith.addf %104, %108 : vector<8x64xf32>
    %110 = vector.extract_strided_slice %95 {offsets = [24, 0], sizes = [8, 64], strides = [1, 1]} : vector<72x64xf32> to vector<8x64xf32>
    %c3_76 = arith.constant 3 : index
    %c0_77 = arith.constant 0 : index
    %c0_78 = arith.constant 0 : index
    %111 = vector.load %arg8[%c3_76, %c0_77, %c0_78] : memref<9x64x64xf32, #tpu.memory_space<vmem>>, vector<1x64x64xf32>
    %112 = vector.shape_cast %111 : vector<1x64x64xf32> to vector<64x64xf32>
    %cst_79 = arith.constant dense<0.000000e+00> : vector<8x64xf32>
    %113 = tpu.matmul %110, %112, %cst_79 {dimension_numbers = #tpu.dot_dimension_numbers<[1], [0], [0], [1], [0, 0, 1, 1], [], []>} : vector<8x64xf32>, vector<64x64xf32>, vector<8x64xf32> -> vector<8x64xf32>
    %114 = arith.addf %109, %113 : vector<8x64xf32>
    %115 = vector.extract_strided_slice %95 {offsets = [32, 0], sizes = [8, 64], strides = [1, 1]} : vector<72x64xf32> to vector<8x64xf32>
    %c4_80 = arith.constant 4 : index
    %c0_81 = arith.constant 0 : index
    %c0_82 = arith.constant 0 : index
    %116 = vector.load %arg8[%c4_80, %c0_81, %c0_82] : memref<9x64x64xf32, #tpu.memory_space<vmem>>, vector<1x64x64xf32>
    %117 = vector.shape_cast %116 : vector<1x64x64xf32> to vector<64x64xf32>
    %cst_83 = arith.constant dense<0.000000e+00> : vector<8x64xf32>
    %118 = tpu.matmul %115, %117, %cst_83 {dimension_numbers = #tpu.dot_dimension_numbers<[1], [0], [0], [1], [0, 0, 1, 1], [], []>} : vector<8x64xf32>, vector<64x64xf32>, vector<8x64xf32> -> vector<8x64xf32>
    %119 = arith.addf %114, %118 : vector<8x64xf32>
    %120 = vector.extract_strided_slice %95 {offsets = [40, 0], sizes = [8, 64], strides = [1, 1]} : vector<72x64xf32> to vector<8x64xf32>
    %c5_84 = arith.constant 5 : index
    %c0_85 = arith.constant 0 : index
    %c0_86 = arith.constant 0 : index
    %121 = vector.load %arg8[%c5_84, %c0_85, %c0_86] : memref<9x64x64xf32, #tpu.memory_space<vmem>>, vector<1x64x64xf32>
    %122 = vector.shape_cast %121 : vector<1x64x64xf32> to vector<64x64xf32>
    %cst_87 = arith.constant dense<0.000000e+00> : vector<8x64xf32>
    %123 = tpu.matmul %120, %122, %cst_87 {dimension_numbers = #tpu.dot_dimension_numbers<[1], [0], [0], [1], [0, 0, 1, 1], [], []>} : vector<8x64xf32>, vector<64x64xf32>, vector<8x64xf32> -> vector<8x64xf32>
    %124 = arith.addf %119, %123 : vector<8x64xf32>
    %125 = vector.extract_strided_slice %95 {offsets = [48, 0], sizes = [8, 64], strides = [1, 1]} : vector<72x64xf32> to vector<8x64xf32>
    %c6_88 = arith.constant 6 : index
    %c0_89 = arith.constant 0 : index
    %c0_90 = arith.constant 0 : index
    %126 = vector.load %arg8[%c6_88, %c0_89, %c0_90] : memref<9x64x64xf32, #tpu.memory_space<vmem>>, vector<1x64x64xf32>
    %127 = vector.shape_cast %126 : vector<1x64x64xf32> to vector<64x64xf32>
    %cst_91 = arith.constant dense<0.000000e+00> : vector<8x64xf32>
    %128 = tpu.matmul %125, %127, %cst_91 {dimension_numbers = #tpu.dot_dimension_numbers<[1], [0], [0], [1], [0, 0, 1, 1], [], []>} : vector<8x64xf32>, vector<64x64xf32>, vector<8x64xf32> -> vector<8x64xf32>
    %129 = arith.addf %124, %128 : vector<8x64xf32>
    %130 = vector.extract_strided_slice %95 {offsets = [56, 0], sizes = [8, 64], strides = [1, 1]} : vector<72x64xf32> to vector<8x64xf32>
    %c7_92 = arith.constant 7 : index
    %c0_93 = arith.constant 0 : index
    %c0_94 = arith.constant 0 : index
    %131 = vector.load %arg8[%c7_92, %c0_93, %c0_94] : memref<9x64x64xf32, #tpu.memory_space<vmem>>, vector<1x64x64xf32>
    %132 = vector.shape_cast %131 : vector<1x64x64xf32> to vector<64x64xf32>
    %cst_95 = arith.constant dense<0.000000e+00> : vector<8x64xf32>
    %133 = tpu.matmul %130, %132, %cst_95 {dimension_numbers = #tpu.dot_dimension_numbers<[1], [0], [0], [1], [0, 0, 1, 1], [], []>} : vector<8x64xf32>, vector<64x64xf32>, vector<8x64xf32> -> vector<8x64xf32>
    %134 = arith.addf %129, %133 : vector<8x64xf32>
    %135 = vector.extract_strided_slice %95 {offsets = [64, 0], sizes = [8, 64], strides = [1, 1]} : vector<72x64xf32> to vector<8x64xf32>
    %c8_96 = arith.constant 8 : index
    %c0_97 = arith.constant 0 : index
    %c0_98 = arith.constant 0 : index
    %136 = vector.load %arg8[%c8_96, %c0_97, %c0_98] : memref<9x64x64xf32, #tpu.memory_space<vmem>>, vector<1x64x64xf32>
    %137 = vector.shape_cast %136 : vector<1x64x64xf32> to vector<64x64xf32>
    %cst_99 = arith.constant dense<0.000000e+00> : vector<8x64xf32>
    %138 = tpu.matmul %135, %137, %cst_99 {dimension_numbers = #tpu.dot_dimension_numbers<[1], [0], [0], [1], [0, 0, 1, 1], [], []>} : vector<8x64xf32>, vector<64x64xf32>, vector<8x64xf32> -> vector<8x64xf32>
    %139 = arith.addf %134, %138 : vector<8x64xf32>
    %c0_100 = arith.constant 0 : index
    %c0_101 = arith.constant 0 : index
    %140 = vector.load %arg9[%c0_100, %c0_101] : memref<1x64xf32, #tpu.memory_space<vmem>>, vector<1x64xf32>
    %141 = vector.broadcast %140 : vector<1x64xf32> to vector<8x64xf32>
    %142 = arith.addf %139, %141 : vector<8x64xf32>
    %cst_102 = arith.constant 0.000000e+00 : f32
    %143 = vector.broadcast %cst_102 : f32 to vector<8x64xf32>
    %144 = arith.maximumf %142, %143 : vector<8x64xf32>
    %c0_103 = arith.constant 0 : index
    %c0_104 = arith.constant 0 : index
    %145 = vector.load %arg10[%c0_103, %c0_104] : memref<64x256xf32, #tpu.memory_space<vmem>>, vector<64x256xf32>
    %cst_105 = arith.constant dense<0.000000e+00> : vector<8x256xf32>
    %146 = tpu.matmul %144, %145, %cst_105 {dimension_numbers = #tpu.dot_dimension_numbers<[1], [0], [0], [1], [0, 0, 1, 1], [], []>} : vector<8x64xf32>, vector<64x256xf32>, vector<8x256xf32> -> vector<8x256xf32>
    %c0_106 = arith.constant 0 : index
    %c0_107 = arith.constant 0 : index
    %147 = vector.load %arg11[%c0_106, %c0_107] : memref<1x256xf32, #tpu.memory_space<vmem>>, vector<1x256xf32>
    %148 = vector.broadcast %147 : vector<1x256xf32> to vector<8x256xf32>
    %149 = arith.addf %146, %148 : vector<8x256xf32>
    %cst_108 = arith.constant 0.000000e+00 : f32
    %150 = vector.broadcast %cst_108 : f32 to vector<8x256xf32>
    %151 = arith.maximumf %149, %150 : vector<8x256xf32>
    %c0_109 = arith.constant 0 : index
    %c0_110 = arith.constant 0 : index
    %152 = vector.load %arg12[%c0_109, %c0_110] : memref<256x128xf32, #tpu.memory_space<vmem>>, vector<256x128xf32>
    %cst_111 = arith.constant dense<0.000000e+00> : vector<8x128xf32>
    %153 = tpu.matmul %151, %152, %cst_111 {dimension_numbers = #tpu.dot_dimension_numbers<[1], [0], [0], [1], [0, 0, 1, 1], [], []>} : vector<8x256xf32>, vector<256x128xf32>, vector<8x128xf32> -> vector<8x128xf32>
    %c0_112 = arith.constant 0 : index
    %c0_113 = arith.constant 0 : index
    %154 = vector.load %arg13[%c0_112, %c0_113] : memref<1x128xf32, #tpu.memory_space<vmem>>, vector<1x128xf32>
    %155 = vector.broadcast %154 : vector<1x128xf32> to vector<8x128xf32>
    %156 = arith.addf %153, %155 : vector<8x128xf32>
    %c0_114 = arith.constant 0 : index
    %c0_115 = arith.constant 0 : index
    %157 = vector.load %arg14[%c0_114, %c0_115] : memref<8x128xf32, #tpu.memory_space<vmem>>, vector<8x128xf32>
    tpu.vector_store %arg14[%c0_114, %c0_115], %156 {strides = array<i32>} : memref<8x128xf32, #tpu.memory_space<vmem>>, vector<8x128xf32>,
    return
  }
  func.func @transform_0(%arg0: i32) -> (i32, i32) {
    %c0_i32 = arith.constant 0 : i32
    %c0_i32_0 = arith.constant 0 : i32
    return %arg0, %c0_i32 : i32, i32
  }
  func.func @transform_1(%arg0: i32) -> (i32, i32) {
    %c0_i32 = arith.constant 0 : i32
    %c0_i32_0 = arith.constant 0 : i32
    %c0_i32_1 = arith.constant 0 : i32
    return %c0_i32, %c0_i32_0 : i32, i32
  }
  func.func @transform_2(%arg0: i32) -> (i32, i32) {
    %c0_i32 = arith.constant 0 : i32
    %c0_i32_0 = arith.constant 0 : i32
    %c0_i32_1 = arith.constant 0 : i32
    return %c0_i32, %c0_i32_0 : i32, i32
  }
  func.func @transform_3(%arg0: i32) -> (i32, i32) {
    %c0_i32 = arith.constant 0 : i32
    %c0_i32_0 = arith.constant 0 : i32
    %c0_i32_1 = arith.constant 0 : i32
    return %c0_i32, %c0_i32_0 : i32, i32
  }
  func.func @transform_4(%arg0: i32) -> (i32, i32, i32) {
    %c0_i32 = arith.constant 0 : i32
    %c0_i32_0 = arith.constant 0 : i32
    %c0_i32_1 = arith.constant 0 : i32
    %c0_i32_2 = arith.constant 0 : i32
    return %c0_i32, %c0_i32_0, %c0_i32_1 : i32, i32, i32
  }
  func.func @transform_5(%arg0: i32) -> (i32, i32) {
    %c0_i32 = arith.constant 0 : i32
    %c0_i32_0 = arith.constant 0 : i32
    %c0_i32_1 = arith.constant 0 : i32
    return %c0_i32, %c0_i32_0 : i32, i32
  }
  func.func @transform_6(%arg0: i32) -> (i32, i32) {
    %c0_i32 = arith.constant 0 : i32
    %c0_i32_0 = arith.constant 0 : i32
    %c0_i32_1 = arith.constant 0 : i32
    return %c0_i32, %c0_i32_0 : i32, i32
  }
  func.func @transform_7(%arg0: i32) -> (i32, i32, i32) {
    %c0_i32 = arith.constant 0 : i32
    %c0_i32_0 = arith.constant 0 : i32
    %c0_i32_1 = arith.constant 0 : i32
    %c0_i32_2 = arith.constant 0 : i32
    return %c0_i32, %c0_i32_0, %c0_i32_1 : i32, i32, i32
  }
  func.func @transform_8(%arg0: i32) -> (i32, i32) {
    %c0_i32 = arith.constant 0 : i32
    %c0_i32_0 = arith.constant 0 : i32
    %c0_i32_1 = arith.constant 0 : i32
    return %c0_i32, %c0_i32_0 : i32, i32
  }
  func.func @transform_9(%arg0: i32) -> (i32, i32) {
    %c0_i32 = arith.constant 0 : i32
    %c0_i32_0 = arith.constant 0 : i32
    %c0_i32_1 = arith.constant 0 : i32
    return %c0_i32, %c0_i32_0 : i32, i32
  }
  func.func @transform_10(%arg0: i32) -> (i32, i32) {
    %c0_i32 = arith.constant 0 : i32
    %c0_i32_0 = arith.constant 0 : i32
    %c0_i32_1 = arith.constant 0 : i32
    return %c0_i32, %c0_i32_0 : i32, i32
  }
  func.func @transform_11(%arg0: i32) -> (i32, i32) {
    %c0_i32 = arith.constant 0 : i32
    %c0_i32_0 = arith.constant 0 : i32
    %c0_i32_1 = arith.constant 0 : i32
    return %c0_i32, %c0_i32_0 : i32, i32
  }
  func.func @transform_12(%arg0: i32) -> (i32, i32) {
    %c0_i32 = arith.constant 0 : i32
    %c0_i32_0 = arith.constant 0 : i32
    %c0_i32_1 = arith.constant 0 : i32
    return %c0_i32, %c0_i32_0 : i32, i32
  }
  func.func @transform_13(%arg0: i32) -> (i32, i32) {
    %c0_i32 = arith.constant 0 : i32
    %c0_i32_0 = arith.constant 0 : i32
    return %arg0, %c0_i32 : i32, i32
  }
}

</mosaic_0001>

<bundles_post_ra>
// kernel: conv_dueling_dqn_forward.1
= control target key start
LH: loop header
LB: loop body
LE: loop exit
PB: predicated region body
PF: predicated region fallthrough
CT: control target
= control target key end

     0   :  { %v8460_v0 = vmov 0.0|0.0   ;;  %vm8461_vm0 = vmmov 0   ;;  %vm2815_vm1 = vcmask 261120   ;;  %vm5238_vm2 = vcmask 588800   ;;  %s12748_s1 = inlined_call_operand.vmem [shape: f32[256,32], index: 1, kind: input, shape index: {}]   ;;  %s12749_s0 = inlined_call_operand.vmem [shape: f32[512,256], index: 0, kind: input, shape index: {}]   ;;  %s12750_s2 = inlined_call_operand.vmem [shape: f32[1,32], index: 2, kind: input, shape index: {}]   ;;  %s12751_s3 = inlined_call_operand.vmem [shape: f32[1152,512], index: 3, kind: input, shape index: {}]   ;;  %s12752_s4 = inlined_call_operand.vmem [shape: f32[16,32,64], index: 4, kind: input, shape index: {}]   ;;  %s12753_s5 = inlined_call_operand.vmem [shape: f32[1,64], index: 5, kind: input, shape index: {}]   ;;  %s12754_s7 = inlined_call_operand.vmem [shape: f32[9,64,64], index: 7, kind: input, shape index: {}]   ;;  %s12755_s6 = inlined_call_operand.vmem [shape: f32[72,72], index: 6, kind: input, shape index: {}]   ;;  %s12756_s9 = inlined_call_operand.vmem [shape: f32[64,256], index: 9, kind: input, shape index: {}]   ;;  %s12757_s11 = inlined_call_operand.vmem [shape: f32[256,128], index: 11, kind: input, shape index: {}]   ;;  %s12758_s8 = inlined_call_operand.vmem [shape: f32[1,64], index: 8, kind: input, shape index: {}]   ;;  %s12759_s10 = inlined_call_operand.vmem [shape: f32[1,256], index: 10, kind: input, shape index: {}]   ;;  %s12760_s12 = inlined_call_operand.vmem [shape: f32[1,128], index: 12, kind: input, shape index: {}]   ;;  %s12761_s13 = inlined_call_operand.vmem [shape: f32[8,128], index: 13, kind: output, shape index: {}]  }
   0x1   :  { %7757 = vmatprep.subr.bf16.mxu0 %v8460_v0  ;;  %v172_v1 = vld [vmem:[%s12748_s1] sm:$0xff]  ;;  %v173_v2 = vld [vmem:[%s12748_s1 + $0x8] sm:$0xff]  ;;  %v174_v3 = vld [vmem:[%s12748_s1 + $0x10] sm:$0xff]  ;;  %8165 = vmatprep.subr.bf16.mxu1 %v8460_v0  ;;  %vm5393_vm3 = vcmask 523264  }
   0x2   :  { %v7758_v4 = vpack.c.bf16 %v173_v2, %v172_v1  ;;  %v175_v5 = vld [vmem:[%s12748_s1 + $0x18] sm:$0xff]  ;;  %v176_v7 = vld [vmem:[%s12748_s1 + $0x20] sm:$0xff]  ;;  %v177_v8 = vld [vmem:[%s12748_s1 + $0x28] sm:$0xff] }
   0x3   :  { %v7761_v6 = vpack.c.bf16 %v175_v5, %v174_v3  ;;  %v7764_v9 = vpack.c.bf16 %v177_v8, %v176_v7  ;;  %v178_v10 = vld [vmem:[%s12748_s1 + $0x30] sm:$0xff]  ;;  %v179_v11 = vld [vmem:[%s12748_s1 + $0x38] sm:$0xff]  ;;  %v45_v12 = vld [vmem:[%s12749_s0 + $0x8] sm:$0xff] }
   0x4   :  { %7759 = vmatpush1.bf16.msra.mxu0 %v7758_v4  ;;  %v7767_v13 = vpack.c.bf16 %v179_v11, %v178_v10  ;;  %275 = vmatprep.mubr.f32.mxu0 %v45_v12  ;;  %v180_v14 = vld [vmem:[%s12748_s1 + $0x40] sm:$0xff]  ;;  %v181_v15 = vld [vmem:[%s12748_s1 + $0x48] sm:$0xff]  ;;  %v182_v17 = vld [vmem:[%s12748_s1 + $0x50] sm:$0xff] }
   0x5   :  { %7760 = vmatprep.subr.bf16.mxu0 %v8460_v0  ;;  %v7770_v16 = vpack.c.bf16 %v181_v15, %v180_v14  ;;  %v183_v18 = vld [vmem:[%s12748_s1 + $0x58] sm:$0xff]  ;;  %v184_v20 = vld [vmem:[%s12748_s1 + $0x60] sm:$0xff]  ;;  %v185_v21 = vld [vmem:[%s12748_s1 + $0x68] sm:$0xff] }
   0x6   :  { %v7773_v19 = vpack.c.bf16 %v183_v18, %v182_v17  ;;  %v7776_v22 = vpack.c.bf16 %v185_v21, %v184_v20  ;;  %v186_v23 = vld [vmem:[%s12748_s1 + $0x70] sm:$0xff]  ;;  %v187_v24 = vld [vmem:[%s12748_s1 + $0x78] sm:$0xff]  ;;  %v188_v26 = vld [vmem:[%s12748_s1 + $0x80] sm:$0xff] }
   0x7   :  { %v7779_v25 = vpack.c.bf16 %v187_v24, %v186_v23  ;;  %v189_v27 = vld [vmem:[%s12748_s1 + $0x88] sm:$0xff]  ;;  %v190_v29 = vld [vmem:[%s12748_s1 + $0x90] sm:$0xff]  ;;  %v191_v30 = vld [vmem:[%s12748_s1 + $0x98] sm:$0xff] }
   0x8   :  { %7762 = vmatpush1.bf16.msra.mxu0 %v7761_v6  ;;  %v7782_v28 = vpack.c.bf16 %v189_v27, %v188_v26  ;;  %v7785_v31 = vpack.c.bf16 %v191_v30, %v190_v29  ;;  %v192_v32 = vld [vmem:[%s12748_s1 + $0xa0] sm:$0xff]  ;;  %v193_v33 = vld [vmem:[%s12748_s1 + $0xa8] sm:$0xff]  ;;  %v194_v35 = vld [vmem:[%s12748_s1 + $0xb0] sm:$0xff] }
   0x9   :  { %7763 = vmatprep.subr.bf16.mxu0 %v8460_v0  ;;  %v7788_v34 = vpack.c.bf16 %v193_v33, %v192_v32  ;;  %v195_v36 = vld [vmem:[%s12748_s1 + $0xb8] sm:$0xff]  ;;  %v196_v38 = vld [vmem:[%s12748_s1 + $0xc0] sm:$0xff]  ;;  %v197_v39 = vld [vmem:[%s12748_s1 + $0xc8] sm:$0xff] }
   0xa   :  { %v7791_v37 = vpack.c.bf16 %v195_v36, %v194_v35  ;;  %v7794_v40 = vpack.c.bf16 %v197_v39, %v196_v38  ;;  %v198_v41 = vld [vmem:[%s12748_s1 + $0xd0] sm:$0xff]  ;;  %v199_v42 = vld [vmem:[%s12748_s1 + $0xd8] sm:$0xff]  ;;  %v200_v44 = vld [vmem:[%s12748_s1 + $0xe0] sm:$0xff] }
   0xb   :  { %v7797_v43 = vpack.c.bf16 %v199_v42, %v198_v41  ;;  %v201_v45 = vld [vmem:[%s12748_s1 + $0xe8] sm:$0xff]  ;;  %v202_v47 = vld [vmem:[%s12748_s1 + $0xf0] sm:$0xff]  ;;  %v203_v48 = vld [vmem:[%s12748_s1 + $0xf8] sm:$0xff] }
   0xc   :  { %7765 = vmatpush1.bf16.msra.mxu0 %v7764_v9  ;;  %v7800_v46 = vpack.c.bf16 %v201_v45, %v200_v44  ;;  %v7803_v49 = vpack.c.bf16 %v203_v48, %v202_v47  ;;  %v44_v50 = vld [vmem:[%s12749_s0] sm:$0xff]  ;;  %v47_v51 = vld [vmem:[%s12749_s0 + $0x18] sm:$0xff]  ;;  %v46_v52 = vld [vmem:[%s12749_s0 + $0x10] sm:$0xff] }
   0xd   :  { %7766 = vmatprep.subr.bf16.mxu0 %v8460_v0  ;;  %v49_v53 = vld [vmem:[%s12749_s0 + $0x28] sm:$0xff]  ;;  %v48_v54 = vld [vmem:[%s12749_s0 + $0x20] sm:$0xff]  ;;  %v51_v55 = vld [vmem:[%s12749_s0 + $0x38] sm:$0xff] }
   0xe   :  { %v50_v56 = vld [vmem:[%s12749_s0 + $0x30] sm:$0xff]  ;;  %v53_v57 = vld [vmem:[%s12749_s0 + $0x48] sm:$0xff]  ;;  %v52_v58 = vld [vmem:[%s12749_s0 + $0x40] sm:$0xff] }
   0xf   :  { %v55_v59 = vld [vmem:[%s12749_s0 + $0x58] sm:$0xff]  ;;  %v54_v60 = vld [vmem:[%s12749_s0 + $0x50] sm:$0xff]  ;;  %v57_v61 = vld [vmem:[%s12749_s0 + $0x68] sm:$0xff] }
  0x10   :  { %7768 = vmatpush1.bf16.msra.mxu0 %v7767_v13  ;;  %v56_v62 = vld [vmem:[%s12749_s0 + $0x60] sm:$0xff]  ;;  %v59_v63 = vld [vmem:[%s12749_s0 + $0x78] sm:$0xff]  ;;  %v58_v1 = vld [vmem:[%s12749_s0 + $0x70] sm:$0xff] }
  0x11   :  { %7769 = vmatprep.subr.bf16.mxu0 %v8460_v0  ;;  %v61_v2 = vld [vmem:[%s12749_s0 + $0x88] sm:$0xff]  ;;  %v60_v3 = vld [vmem:[%s12749_s0 + $0x80] sm:$0xff]  ;;  %v63_v4 = vld [vmem:[%s12749_s0 + $0x98] sm:$0xff] }
  0x12   :  { %v62_v5 = vld [vmem:[%s12749_s0 + $0x90] sm:$0xff]  ;;  %v65_v6 = vld [vmem:[%s12749_s0 + $0xa8] sm:$0xff]  ;;  %v64_v7 = vld [vmem:[%s12749_s0 + $0xa0] sm:$0xff] }
  0x13   :  { %v67_v8 = vld [vmem:[%s12749_s0 + $0xb8] sm:$0xff]  ;;  %v66_v9 = vld [vmem:[%s12749_s0 + $0xb0] sm:$0xff]  ;;  %v69_v10 = vld [vmem:[%s12749_s0 + $0xc8] sm:$0xff] }
  0x14   :  { %7771 = vmatpush1.bf16.msra.mxu0 %v7770_v16  ;;  %v68_v11 = vld [vmem:[%s12749_s0 + $0xc0] sm:$0xff]  ;;  %v71_v12 = vld [vmem:[%s12749_s0 + $0xd8] sm:$0xff]  ;;  %v70_v13 = vld [vmem:[%s12749_s0 + $0xd0] sm:$0xff] }
  0x15   :  { %7772 = vmatprep.subr.bf16.mxu0 %v8460_v0  ;;  %v73_v14 = vld [vmem:[%s12749_s0 + $0xe8] sm:$0xff]  ;;  %v72_v15 = vld [vmem:[%s12749_s0 + $0xe0] sm:$0xff]  ;;  %v75_v16 = vld [vmem:[%s12749_s0 + $0xf8] sm:$0xff] }
  0x16   :  { %v74_v17 = vld [vmem:[%s12749_s0 + $0xf0] sm:$0xff]  ;;  %v77_v18 = vld [vmem:[%s12749_s0 + $0x108] sm:$0xff]  ;;  %v79_v20 = vld [vmem:[%s12749_s0 + $0x118] sm:$0xff] }
  0x17   :  { %v78_v21 = vld [vmem:[%s12749_s0 + $0x110] sm:$0xff]  ;;  %v80_v23 = vld [vmem:[%s12749_s0 + $0x120] sm:$0xff]  ;;  %v83_v24 = vld [vmem:[%s12749_s0 + $0x138] sm:$0xff] }
  0x18   :  { %7774 = vmatpush1.bf16.msra.mxu0 %v7773_v19  ;;  %v76_v19 = vld [vmem:[%s12749_s0 + $0x100] sm:$0xff]  ;;  %v85_v26 = vld [vmem:[%s12749_s0 + $0x148] sm:$0xff]  ;;  %v86_v29 = vld [vmem:[%s12749_s0 + $0x150] sm:$0xff] }
  0x19   :  { %7775 = vmatprep.subr.bf16.mxu0 %v8460_v0  ;;  %v84_v27 = vld [vmem:[%s12749_s0 + $0x140] sm:$0xff]  ;;  %v89_v30 = vld [vmem:[%s12749_s0 + $0x168] sm:$0xff]  ;;  %v91_v32 = vld [vmem:[%s12749_s0 + $0x178] sm:$0xff] }
  0x1a   :  { %v90_v33 = vld [vmem:[%s12749_s0 + $0x170] sm:$0xff]  ;;  %v92_v35 = vld [vmem:[%s12749_s0 + $0x180] sm:$0xff]  ;;  %v95_v36 = vld [vmem:[%s12749_s0 + $0x198] sm:$0xff] }
  0x1b   :  { %v97_v38 = vld [vmem:[%s12749_s0 + $0x1a8] sm:$0xff]  ;;  %v96_v39 = vld [vmem:[%s12749_s0 + $0x1a0] sm:$0xff]  ;;  %v98_v41 = vld [vmem:[%s12749_s0 + $0x1b0] sm:$0xff] }
  0x1c   :  { %7777 = vmatpush1.bf16.msra.mxu0 %v7776_v22  ;;  %v81_v22 = vld [vmem:[%s12749_s0 + $0x128] sm:$0xff]  ;;  %v103_v44 = vld [vmem:[%s12749_s0 + $0x1d8] sm:$0xff]  ;;  %v102_v45 = vld [vmem:[%s12749_s0 + $0x1d0] sm:$0xff] }
  0x1d   :  { %7778 = vmatprep.subr.bf16.mxu0 %v8460_v0  ;;  %v101_v42 = vld [vmem:[%s12749_s0 + $0x1c8] sm:$0xff]  ;;  %v104_v47 = vld [vmem:[%s12749_s0 + $0x1e0] sm:$0xff]  ;;  %v107_v48 = vld [vmem:[%s12749_s0 + $0x1f8] sm:$0xff] }
  0x20   :  { %7780 = vmatpush1.bf16.msra.mxu0 %v7779_v25  ;;  %v82_v25 = vld [vmem:[%s12749_s0 + $0x130] sm:$0xff] }
  0x21   :  { %7781 = vmatprep.subr.bf16.mxu0 %v8460_v0 }
  0x24   :  { %7783 = vmatpush1.bf16.msra.mxu0 %v7782_v28  ;;  %v87_v28 = vld [vmem:[%s12749_s0 + $0x158] sm:$0xff] }
  0x25   :  { %7784 = vmatprep.subr.bf16.mxu0 %v8460_v0 }
  0x28   :  { %7786 = vmatpush1.bf16.msra.mxu0 %v7785_v31  ;;  %v88_v31 = vld [vmem:[%s12749_s0 + $0x160] sm:$0xff] }
  0x29   :  { %7787 = vmatprep.subr.bf16.mxu0 %v8460_v0 }
  0x2c   :  { %7789 = vmatpush1.bf16.msra.mxu0 %v7788_v34  ;;  %v93_v34 = vld [vmem:[%s12749_s0 + $0x188] sm:$0xff] }
  0x2d   :  { %7790 = vmatprep.subr.bf16.mxu0 %v8460_v0 }
  0x30   :  { %7792 = vmatpush1.bf16.msra.mxu0 %v7791_v37  ;;  %v94_v37 = vld [vmem:[%s12749_s0 + $0x190] sm:$0xff] }
  0x31   :  { %7793 = vmatprep.subr.bf16.mxu0 %v8460_v0 }
  0x34   :  { %7795 = vmatpush1.bf16.msra.mxu0 %v7794_v40  ;;  %v99_v40 = vld [vmem:[%s12749_s0 + $0x1b8] sm:$0xff] }
  0x35   :  { %7796 = vmatprep.subr.bf16.mxu0 %v8460_v0 }
  0x38   :  { %7798 = vmatpush1.bf16.msra.mxu0 %v7797_v43  ;;  %v100_v43 = vld [vmem:[%s12749_s0 + $0x1c0] sm:$0xff] }
  0x39   :  { %7799 = vmatprep.subr.bf16.mxu0 %v8460_v0 }
  0x3c   :  { %7801 = vmatpush1.bf16.msra.mxu0 %v7800_v46  ;;  %v105_v46 = vld [vmem:[%s12749_s0 + $0x1e8] sm:$0xff] }
  0x3d   :  { %7802 = vmatprep.subr.bf16.mxu0 %v8460_v0 }
  0x40   :  { %7804 = vmatpush1.bf16.msra.mxu0 %v7803_v49  ;;  %v106_v49 = vld [vmem:[%s12749_s0 + $0x1f0] sm:$0xff] }
  0x41   :  { %7805 = vmatprep.subr.bf16.mxu0 %v8460_v0 }
  0x43   :  { %276 = vmatmul.mubr.f32.vlgmr.msra.gmra.mrb[0].mxu0 %v44_v50  ;;  %v109_v50 = vld [vmem:[%s12749_s0 + $0x208] sm:$0xff] }
  0x44   :  { %280 = vmatprep.mubr.f32.mxu0 %v47_v51  ;;  %v108_v51 = vld [vmem:[%s12749_s0 + $0x200] sm:$0xff] }
  0x47   :  { %281 = vmatmul.mubr.f32.gmra.mrb[2].mxu0 %v46_v52  ;;  %v111_v52 = vld [vmem:[%s12749_s0 + $0x218] sm:$0xff] }
  0x48   :  { %285 = vmatprep.mubr.f32.mxu0 %v49_v53  ;;  %v110_v53 = vld [vmem:[%s12749_s0 + $0x210] sm:$0xff] }
  0x4b   :  { %286 = vmatmul.mubr.f32.gmra.mrb[4].mxu0 %v48_v54  ;;  %v113_v54 = vld [vmem:[%s12749_s0 + $0x228] sm:$0xff] }
  0x4c   :  { %290 = vmatprep.mubr.f32.mxu0 %v51_v55  ;;  %v112_v55 = vld [vmem:[%s12749_s0 + $0x220] sm:$0xff] }
  0x4f   :  { %291 = vmatmul.mubr.f32.gmra.mrb[6].mxu0 %v50_v56  ;;  %v115_v56 = vld [vmem:[%s12749_s0 + $0x238] sm:$0xff] }
  0x50   :  { %295 = vmatprep.mubr.f32.mxu0 %v53_v57  ;;  %v114_v57 = vld [vmem:[%s12749_s0 + $0x230] sm:$0xff] }
  0x53   :  { %296 = vmatmul.mubr.f32.gmra.mrb[8].mxu0 %v52_v58  ;;  %v117_v58 = vld [vmem:[%s12749_s0 + $0x248] sm:$0xff] }
  0x54   :  { %300 = vmatprep.mubr.f32.mxu0 %v55_v59  ;;  %v116_v59 = vld [vmem:[%s12749_s0 + $0x240] sm:$0xff] }
  0x57   :  { %301 = vmatmul.mubr.f32.gmra.mrb[10].mxu0 %v54_v60  ;;  %v119_v60 = vld [vmem:[%s12749_s0 + $0x258] sm:$0xff] }
  0x58   :  { %305 = vmatprep.mubr.f32.mxu0 %v57_v61  ;;  %v118_v61 = vld [vmem:[%s12749_s0 + $0x250] sm:$0xff] }
  0x5b   :  { %306 = vmatmul.mubr.f32.gmra.mrb[12].mxu0 %v56_v62  ;;  %v121_v62 = vld [vmem:[%s12749_s0 + $0x268] sm:$0xff] }
  0x5c   :  { %310 = vmatprep.mubr.f32.mxu0 %v59_v63  ;;  %v120_v63 = vld [vmem:[%s12749_s0 + $0x260] sm:$0xff] }
  0x5f   :  { %311 = vmatmul.mubr.f32.gmra.mrb[14].mxu0 %v58_v1  ;;  %v123_v1 = vld [vmem:[%s12749_s0 + $0x278] sm:$0xff] }
  0x60   :  { %315 = vmatprep.mubr.f32.mxu0 %v61_v2  ;;  %v122_v2 = vld [vmem:[%s12749_s0 + $0x270] sm:$0xff] }
  0x63   :  { %316 = vmatmul.mubr.f32.gmra.mrb[16].mxu0 %v60_v3  ;;  %v125_v3 = vld [vmem:[%s12749_s0 + $0x288] sm:$0xff] }
  0x64   :  { %320 = vmatprep.mubr.f32.mxu0 %v63_v4  ;;  %v124_v4 = vld [vmem:[%s12749_s0 + $0x280] sm:$0xff] }
  0x67   :  { %321 = vmatmul.mubr.f32.gmra.mrb[18].mxu0 %v62_v5  ;;  %v127_v5 = vld [vmem:[%s12749_s0 + $0x298] sm:$0xff] }
  0x68   :  { %325 = vmatprep.mubr.f32.mxu0 %v65_v6  ;;  %v126_v6 = vld [vmem:[%s12749_s0 + $0x290] sm:$0xff] }
  0x6b   :  { %326 = vmatmul.mubr.f32.gmra.mrb[20].mxu0 %v64_v7  ;;  %v129_v7 = vld [vmem:[%s12749_s0 + $0x2a8] sm:$0xff] }
  0x6c   :  { %330 = vmatprep.mubr.f32.mxu0 %v67_v8  ;;  %v128_v8 = vld [vmem:[%s12749_s0 + $0x2a0] sm:$0xff] }
  0x6f   :  { %331 = vmatmul.mubr.f32.gmra.mrb[22].mxu0 %v66_v9  ;;  %v131_v9 = vld [vmem:[%s12749_s0 + $0x2b8] sm:$0xff] }
  0x70   :  { %335 = vmatprep.mubr.f32.mxu0 %v69_v10  ;;  %v130_v10 = vld [vmem:[%s12749_s0 + $0x2b0] sm:$0xff] }
  0x73   :  { %336 = vmatmul.mubr.f32.gmra.mrb[24].mxu0 %v68_v11  ;;  %v133_v11 = vld [vmem:[%s12749_s0 + $0x2c8] sm:$0xff] }
  0x74   :  { %340 = vmatprep.mubr.f32.mxu0 %v71_v12  ;;  %v132_v12 = vld [vmem:[%s12749_s0 + $0x2c0] sm:$0xff] }
  0x77   :  { %341 = vmatmul.mubr.f32.gmra.mrb[26].mxu0 %v70_v13  ;;  %v135_v13 = vld [vmem:[%s12749_s0 + $0x2d8] sm:$0xff] }
  0x78   :  { %345 = vmatprep.mubr.f32.mxu0 %v73_v14  ;;  %v134_v14 = vld [vmem:[%s12749_s0 + $0x2d0] sm:$0xff] }
  0x7b   :  { %346 = vmatmul.mubr.f32.gmra.mrb[28].mxu0 %v72_v15  ;;  %v8926_v15 = vld [vmem:[%s12750_s2] ss:$0 sm:$0xff] }
  0x7c   :  { %350 = vmatprep.mubr.f32.mxu0 %v75_v16 }
  0x7f   :  { %351 = vmatmul.mubr.f32.gmra.mrb[30].mxu0 %v74_v17 }
  0x80   :  { %355 = vmatprep.mubr.f32.mxu0 %v77_v18 }
  0x83   :  { %356 = vmatmul.mubr.f32.gmra.mrb[32].mxu0 %v76_v19 }
  0x84   :  { %360 = vmatprep.mubr.f32.mxu0 %v79_v20  ;;  %v713_v20 = vld [vmem:[%s12751_s3 + $0x1a8] sm:$0xff] }
  0x85   :  { %1365 = vmatprep.mubr.f32.mxu1 %v713_v20 }
  0x87   :  { %361 = vmatmul.mubr.f32.gmra.mrb[34].mxu0 %v78_v21 }
  0x88   :  { %365 = vmatprep.mubr.f32.mxu0 %v81_v22 }
  0x8b   :  { %366 = vmatmul.mubr.f32.gmra.mrb[36].mxu0 %v80_v23 }
  0x8c   :  { %370 = vmatprep.mubr.f32.mxu0 %v83_v24 }
  0x8f   :  { %371 = vmatmul.mubr.f32.gmra.mrb[38].mxu0 %v82_v25 }
  0x90   :  { %375 = vmatprep.mubr.f32.mxu0 %v85_v26 }
  0x93   :  { %376 = vmatmul.mubr.f32.gmra.mrb[40].mxu0 %v84_v27 }
  0x94   :  { %380 = vmatprep.mubr.f32.mxu0 %v87_v28 }
  0x97   :  { %381 = vmatmul.mubr.f32.gmra.mrb[42].mxu0 %v86_v29 }
  0x98   :  { %385 = vmatprep.mubr.f32.mxu0 %v89_v30 }
  0x9b   :  { %386 = vmatmul.mubr.f32.gmra.mrb[44].mxu0 %v88_v31 }
  0x9c   :  { %390 = vmatprep.mubr.f32.mxu0 %v91_v32 }
  0x9f   :  { %391 = vmatmul.mubr.f32.gmra.mrb[46].mxu0 %v90_v33 }
  0xa0   :  { %395 = vmatprep.mubr.f32.mxu0 %v93_v34  ;;  %v137_v34 = vld [vmem:[%s12749_s0 + $0x2e8] sm:$0xff] }
  0xa3   :  { %396 = vmatmul.mubr.f32.gmra.mrb[48].mxu0 %v92_v35 }
  0xa4   :  { %400 = vmatprep.mubr.f32.mxu0 %v95_v36 }
  0xa7   :  { %401 = vmatmul.mubr.f32.gmra.mrb[50].mxu0 %v94_v37 }
  0xa8   :  { %405 = vmatprep.mubr.f32.mxu0 %v97_v38  ;;  %v136_v38 = vld [vmem:[%s12749_s0 + $0x2e0] sm:$0xff] }
  0xab   :  { %406 = vmatmul.mubr.f32.gmra.mrb[52].mxu0 %v96_v39 }
  0xac   :  { %410 = vmatprep.mubr.f32.mxu0 %v99_v40  ;;  %v139_v40 = vld [vmem:[%s12749_s0 + $0x2f8] sm:$0xff] }
  0xaf   :  { %411 = vmatmul.mubr.f32.gmra.mrb[54].mxu0 %v98_v41 }
  0xb0   :  { %415 = vmatprep.mubr.f32.mxu0 %v101_v42 }
  0xb3   :  { %416 = vmatmul.mubr.f32.gmra.mrb[56].mxu0 %v100_v43 }
  0xb4   :  { %420 = vmatprep.mubr.f32.mxu0 %v103_v44  ;;  %v138_v44 = vld [vmem:[%s12749_s0 + $0x2f0] sm:$0xff] }
  0xb7   :  { %421 = vmatmul.mubr.f32.gmra.mrb[58].mxu0 %v102_v45 }
  0xb8   :  { %425 = vmatprep.mubr.f32.mxu0 %v105_v46 }
  0xbb   :  { %426 = vmatmul.mubr.f32.gmra.mrb[60].mxu0 %v104_v47 }
  0xbc   :  { %430 = vmatprep.mubr.f32.mxu0 %v107_v48 }
  0xbf   :  { %431 = vmatmul.mubr.f32.gmra.mrb[62].mxu0 %v106_v49 }
  0xc0   :  { %435 = vmatprep.mubr.f32.mxu0 %v109_v50 }
  0xc3   :  { %436 = vmatmul.mubr.f32.gmra.mrb[64].mxu0 %v108_v51 }
  0xc4   :  { %440 = vmatprep.mubr.f32.mxu0 %v111_v52 }
  0xc7   :  { %441 = vmatmul.mubr.f32.gmra.mrb[66].mxu0 %v110_v53 }
  0xc8   :  { %445 = vmatprep.mubr.f32.mxu0 %v113_v54 }
  0xcb   :  { %446 = vmatmul.mubr.f32.gmra.mrb[68].mxu0 %v112_v55 }
  0xcc   :  { %450 = vmatprep.mubr.f32.mxu0 %v115_v56 }
  0xcf   :  { %451 = vmatmul.mubr.f32.gmra.mrb[70].mxu0 %v114_v57 }
  0xd0   :  { %455 = vmatprep.mubr.f32.mxu0 %v117_v58 }
  0xd3   :  { %456 = vmatmul.mubr.f32.gmra.mrb[72].mxu0 %v116_v59 }
  0xd4   :  { %460 = vmatprep.mubr.f32.mxu0 %v119_v60 }
  0xd7   :  { %461 = vmatmul.mubr.f32.gmra.mrb[74].mxu0 %v118_v61 }
  0xd8   :  { %465 = vmatprep.mubr.f32.mxu0 %v121_v62 }
  0xdb   :  { %466 = vmatmul.mubr.f32.gmra.mrb[76].mxu0 %v120_v63 }
  0xdc   :  { %470 = vmatprep.mubr.f32.mxu0 %v123_v1 }
  0xdf   :  { %471 = vmatmul.mubr.f32.gmra.mrb[78].mxu0 %v122_v2 }
  0xe0   :  { %475 = vmatprep.mubr.f32.mxu0 %v125_v3 }
  0xe3   :  { %476 = vmatmul.mubr.f32.gmra.mrb[80].mxu0 %v124_v4 }
  0xe4   :  { %480 = vmatprep.mubr.f32.mxu0 %v127_v5 }
  0xe7   :  { %481 = vmatmul.mubr.f32.gmra.mrb[82].mxu0 %v126_v6 }
  0xe8   :  { %485 = vmatprep.mubr.f32.mxu0 %v129_v7 }
  0xeb   :  { %486 = vmatmul.mubr.f32.gmra.mrb[84].mxu0 %v128_v8 }
  0xec   :  { %490 = vmatprep.mubr.f32.mxu0 %v131_v9 }
  0xef   :  { %491 = vmatmul.mubr.f32.gmra.mrb[86].mxu0 %v130_v10 }
  0xf0   :  { %495 = vmatprep.mubr.f32.mxu0 %v133_v11  ;;  %v141_v11 = vld [vmem:[%s12749_s0 + $0x308] sm:$0xff] }
  0xf3   :  { %496 = vmatmul.mubr.f32.gmra.mrb[88].mxu0 %v132_v12 }
  0xf4   :  { %500 = vmatprep.mubr.f32.mxu0 %v135_v13 }
  0xf7   :  { %501 = vmatmul.mubr.f32.gmra.mrb[90].mxu0 %v134_v14 }
  0xf8   :  { %505 = vmatprep.mubr.f32.mxu0 %v137_v34 }
  0xfb   :  { %506 = vmatmul.mubr.f32.gmra.mrb[92].mxu0 %v136_v38 }
  0xfc   :  { %510 = vmatprep.mubr.f32.mxu0 %v139_v40 }
  0xff   :  { %511 = vmatmul.mubr.f32.gmra.mrb[94].mxu0 %v138_v44 }
 0x100   :  { %515 = vmatprep.mubr.f32.mxu0 %v141_v11 }
 0x116   :  { %v277_v16 = vpop.f32.mrb[0].mxu0 }
 0x117   :  { %v279_v17 = vpop.f32.mrb[1].mxu0  ;;  %v278_v18 = vadd.f32 %v8926_v15, %v277_v16  ;;  %v140_v16 = vld [vmem:[%s12749_s0 + $0x300] sm:$0xff] }
 0x118   :  { %516 = vmatmul.mubr.f32.gmra.mrb[96].mxu0 %v140_v16 }
 0x119   :  { %v596_v23 = vmax.f32 %v278_v18, 0.0  ;;  %v143_v18 = vld [vmem:[%s12749_s0 + $0x318] sm:$0xff] }
 0x11a   :  { %v282_v19 = vpop.f32.mrb[2].mxu0  ;;  %520 = vmatprep.mubr.f32.mxu0 %v143_v18 }
 0x11b   :  { %v283_v21 = vadd.f32 %v8926_v15, %v282_v19  ;;  %v284_v22 = vpop.f32.mrb[3].mxu0 }
 0x11c   :  { %v142_v22 = vld [vmem:[%s12749_s0 + $0x310] sm:$0xff] }
 0x11d   :  { %v597_v24 = vmax.f32 %v283_v21, 0.0  ;;  %521 = vmatmul.mubr.f32.gmra.mrb[98].mxu0 %v142_v22 }
 0x11e   :  { %v287_v25 = vpop.f32.mrb[4].mxu0 }
 0x11f   :  { %v7806_v26 = vpack.c.bf16 %v597_v24, %v596_v23  ;;  %v289_v27 = vpop.f32.mrb[5].mxu0  ;;  %v288_v28 = vadd.f32 %v8926_v15, %v287_v25 }
 0x121   :  { %7807 = vmatpush1.bf16.msra.mxu0 %v7806_v26  ;;  %8181 = vmatpush1.bf16.msra.mxu1 %v7806_v26  ;;  %v598_v32 = vmax.f32 %v288_v28, 0.0 }
 0x122   :  { %v292_v29 = vpop.f32.mrb[6].mxu0  ;;  %7808 = vmatprep.subr.bf16.mxu0 %v8460_v0  ;;  %8166 = vmatprep.subr.bf16.mxu1 %v8460_v0 }
 0x123   :  { %v293_v30 = vadd.f32 %v8926_v15, %v292_v29  ;;  %v294_v31 = vpop.f32.mrb[7].mxu0 }
 0x125   :  { %v599_v33 = vmax.f32 %v293_v30, 0.0 }
 0x126   :  { %v297_v35 = vpop.f32.mrb[8].mxu0 }
 0x127   :  { %v7809_v36 = vpack.c.bf16 %v599_v33, %v598_v32  ;;  %v299_v37 = vpop.f32.mrb[9].mxu0  ;;  %v298_v39 = vadd.f32 %v8926_v15, %v297_v35 }
 0x129   :  { %7810 = vmatpush1.bf16.msra.mxu0 %v7809_v36  ;;  %8182 = vmatpush1.bf16.msra.mxu1 %v7809_v36  ;;  %v600_v45 = vmax.f32 %v298_v39, 0.0 }
 0x12a   :  { %v302_v41 = vpop.f32.mrb[10].mxu0  ;;  %7811 = vmatprep.subr.bf16.mxu0 %v8460_v0  ;;  %8167 = vmatprep.subr.bf16.mxu1 %v8460_v0 }
 0x12b   :  { %v303_v42 = vadd.f32 %v8926_v15, %v302_v41  ;;  %v304_v43 = vpop.f32.mrb[11].mxu0 }
 0x12d   :  { %v601_v46 = vmax.f32 %v303_v42, 0.0 }
 0x12e   :  { %v307_v47 = vpop.f32.mrb[12].mxu0 }
 0x12f   :  { %v7812_v48 = vpack.c.bf16 %v601_v46, %v600_v45  ;;  %v309_v49 = vpop.f32.mrb[13].mxu0  ;;  %v308_v50 = vadd.f32 %v8926_v15, %v307_v47 }
 0x131   :  { %7813 = vmatpush1.bf16.msra.mxu0 %v7812_v48  ;;  %8183 = vmatpush1.bf16.msra.mxu1 %v7812_v48  ;;  %v602_v54 = vmax.f32 %v308_v50, 0.0 }
 0x132   :  { %v312_v51 = vpop.f32.mrb[14].mxu0  ;;  %7814 = vmatprep.subr.bf16.mxu0 %v8460_v0  ;;  %8168 = vmatprep.subr.bf16.mxu1 %v8460_v0 }
 0x133   :  { %v313_v52 = vadd.f32 %v8926_v15, %v312_v51  ;;  %v314_v53 = vpop.f32.mrb[15].mxu0 }
 0x135   :  { %v603_v55 = vmax.f32 %v313_v52, 0.0 }
 0x136   :  { %v317_v56 = vpop.f32.mrb[16].mxu0 }
 0x137   :  { %v7815_v57 = vpack.c.bf16 %v603_v55, %v602_v54  ;;  %v319_v58 = vpop.f32.mrb[17].mxu0  ;;  %v318_v59 = vadd.f32 %v8926_v15, %v317_v56  ;;  %v145_v55 = vld [vmem:[%s12749_s0 + $0x328] sm:$0xff] }
 0x138   :  { %525 = vmatprep.mubr.f32.mxu0 %v145_v55 }
 0x139   :  { %7816 = vmatpush1.bf16.msra.mxu0 %v7815_v57  ;;  %8184 = vmatpush1.bf16.msra.mxu1 %v7815_v57  ;;  %v604_v63 = vmax.f32 %v318_v59, 0.0  ;;  %v144_v57 = vld [vmem:[%s12749_s0 + $0x320] sm:$0xff] }
 0x13a   :  { %v322_v60 = vpop.f32.mrb[18].mxu0  ;;  %7817 = vmatprep.subr.bf16.mxu0 %v8460_v0  ;;  %8169 = vmatprep.subr.bf16.mxu1 %v8460_v0 }
 0x13b   :  { %v323_v61 = vadd.f32 %v8926_v15, %v322_v60  ;;  %v324_v62 = vpop.f32.mrb[19].mxu0  ;;  %526 = vmatmul.mubr.f32.gmra.mrb[100].mxu0 %v144_v57 }
 0x13d   :  { %v605_v1 = vmax.f32 %v323_v61, 0.0  ;;  %v147_v61 = vld [vmem:[%s12749_s0 + $0x338] sm:$0xff] }
 0x13e   :  { %v327_v2 = vpop.f32.mrb[20].mxu0  ;;  %530 = vmatprep.mubr.f32.mxu0 %v147_v61 }
 0x13f   :  { %v7818_v3 = vpack.c.bf16 %v605_v1, %v604_v63  ;;  %v329_v4 = vpop.f32.mrb[21].mxu0  ;;  %v328_v5 = vadd.f32 %v8926_v15, %v327_v2  ;;  %v146_v1 = vld [vmem:[%s12749_s0 + $0x330] sm:$0xff] }
 0x140   :  { %531 = vmatmul.mubr.f32.gmra.mrb[102].mxu0 %v146_v1  ;;  %v721_v1 = vld [vmem:[%s12751_s3 + $0x1e8] sm:$0xff] }
 0x141   :  { %7819 = vmatpush1.bf16.msra.mxu0 %v7818_v3  ;;  %8185 = vmatpush1.bf16.msra.mxu1 %v7818_v3  ;;  %v606_v9 = vmax.f32 %v328_v5, 0.0 }
 0x142   :  { %v332_v6 = vpop.f32.mrb[22].mxu0  ;;  %7820 = vmatprep.subr.bf16.mxu0 %v8460_v0  ;;  %8170 = vmatprep.subr.bf16.mxu1 %v8460_v0 }
 0x143   :  { %v333_v7 = vadd.f32 %v8926_v15, %v332_v6  ;;  %v334_v8 = vpop.f32.mrb[23].mxu0 }
 0x145   :  { %v607_v10 = vmax.f32 %v333_v7, 0.0 }
 0x146   :  { %v337_v12 = vpop.f32.mrb[24].mxu0 }
 0x147   :  { %v7821_v13 = vpack.c.bf16 %v607_v10, %v606_v9  ;;  %v339_v14 = vpop.f32.mrb[25].mxu0  ;;  %v338_v17 = vadd.f32 %v8926_v15, %v337_v12 }
 0x149   :  { %7822 = vmatpush1.bf16.msra.mxu0 %v7821_v13  ;;  %8186 = vmatpush1.bf16.msra.mxu1 %v7821_v13  ;;  %v608_v23 = vmax.f32 %v338_v17, 0.0 }
 0x14a   :  { %v342_v19 = vpop.f32.mrb[26].mxu0  ;;  %7823 = vmatprep.subr.bf16.mxu0 %v8460_v0  ;;  %8171 = vmatprep.subr.bf16.mxu1 %v8460_v0 }
 0x14b   :  { %v343_v20 = vadd.f32 %v8926_v15, %v342_v19  ;;  %v344_v21 = vpop.f32.mrb[27].mxu0 }
 0x14d   :  { %v609_v24 = vmax.f32 %v343_v20, 0.0 }
 0x14e   :  { %v347_v25 = vpop.f32.mrb[28].mxu0 }
 0x14f   :  { %v7824_v26 = vpack.c.bf16 %v609_v24, %v608_v23  ;;  %v349_v27 = vpop.f32.mrb[29].mxu0  ;;  %v348_v28 = vadd.f32 %v8926_v15, %v347_v25 }
 0x151   :  { %7825 = vmatpush1.bf16.msra.mxu0 %v7824_v26  ;;  %8187 = vmatpush1.bf16.msra.mxu1 %v7824_v26  ;;  %v610_v32 = vmax.f32 %v348_v28, 0.0 }
 0x152   :  { %v352_v29 = vpop.f32.mrb[30].mxu0  ;;  %7826 = vmatprep.subr.bf16.mxu0 %v8460_v0  ;;  %8172 = vmatprep.subr.bf16.mxu1 %v8460_v0 }
 0x153   :  { %v353_v30 = vadd.f32 %v8926_v15, %v352_v29  ;;  %v354_v31 = vpop.f32.mrb[31].mxu0 }
 0x155   :  { %v611_v33 = vmax.f32 %v353_v30, 0.0 }
 0x156   :  { %v357_v34 = vpop.f32.mrb[32].mxu0 }
 0x157   :  { %v7827_v35 = vpack.c.bf16 %v611_v33, %v610_v32  ;;  %v359_v36 = vpop.f32.mrb[33].mxu0  ;;  %v358_v37 = vadd.f32 %v8926_v15, %v357_v34  ;;  %v149_v33 = vld [vmem:[%s12749_s0 + $0x348] sm:$0xff] }
 0x158   :  { %535 = vmatprep.mubr.f32.mxu0 %v149_v33 }
 0x159   :  { %7828 = vmatpush1.bf16.msra.mxu0 %v7827_v35  ;;  %8188 = vmatpush1.bf16.msra.mxu1 %v7827_v35  ;;  %v612_v41 = vmax.f32 %v358_v37, 0.0  ;;  %v148_v35 = vld [vmem:[%s12749_s0 + $0x340] sm:$0xff] }
 0x15a   :  { %v362_v38 = vpop.f32.mrb[34].mxu0  ;;  %7829 = vmatprep.subr.bf16.mxu0 %v8460_v0  ;;  %8173 = vmatprep.subr.bf16.mxu1 %v8460_v0 }
 0x15b   :  { %v363_v39 = vadd.f32 %v8926_v15, %v362_v38  ;;  %v364_v40 = vpop.f32.mrb[35].mxu0  ;;  %536 = vmatmul.mubr.f32.gmra.mrb[104].mxu0 %v148_v35 }
 0x15d   :  { %v613_v42 = vmax.f32 %v363_v39, 0.0  ;;  %v151_v39 = vld [vmem:[%s12749_s0 + $0x358] sm:$0xff] }
 0x15e   :  { %v367_v43 = vpop.f32.mrb[36].mxu0  ;;  %540 = vmatprep.mubr.f32.mxu0 %v151_v39 }
 0x15f   :  { %v7830_v44 = vpack.c.bf16 %v613_v42, %v612_v41  ;;  %v369_v45 = vpop.f32.mrb[37].mxu0  ;;  %v368_v46 = vadd.f32 %v8926_v15, %v367_v43  ;;  %v150_v42 = vld [vmem:[%s12749_s0 + $0x350] sm:$0xff] }
 0x160   :  { %541 = vmatmul.mubr.f32.gmra.mrb[106].mxu0 %v150_v42 }
 0x161   :  { %7831 = vmatpush1.bf16.msra.mxu0 %v7830_v44  ;;  %8189 = vmatpush1.bf16.msra.mxu1 %v7830_v44  ;;  %v614_v50 = vmax.f32 %v368_v46, 0.0 }
 0x162   :  { %v372_v47 = vpop.f32.mrb[38].mxu0  ;;  %7832 = vmatprep.subr.bf16.mxu0 %v8460_v0  ;;  %8174 = vmatprep.subr.bf16.mxu1 %v8460_v0 }
 0x163   :  { %v373_v48 = vadd.f32 %v8926_v15, %v372_v47  ;;  %v374_v49 = vpop.f32.mrb[39].mxu0 }
 0x165   :  { %v615_v51 = vmax.f32 %v373_v48, 0.0 }
 0x166   :  { %v377_v52 = vpop.f32.mrb[40].mxu0 }
 0x167   :  { %v7833_v53 = vpack.c.bf16 %v615_v51, %v614_v50  ;;  %v379_v54 = vpop.f32.mrb[41].mxu0  ;;  %v378_v56 = vadd.f32 %v8926_v15, %v377_v52 }
 0x169   :  { %7834 = vmatpush1.bf16.msra.mxu0 %v7833_v53  ;;  %8190 = vmatpush1.bf16.msra.mxu1 %v7833_v53  ;;  %v616_v62 = vmax.f32 %v378_v56, 0.0  ;;  %v712_v56 = vld [vmem:[%s12751_s3 + $0x1a0] sm:$0xff] }
 0x16a   :  { %v382_v58 = vpop.f32.mrb[42].mxu0  ;;  %7835 = vmatprep.subr.bf16.mxu0 %v8460_v0  ;;  %8175 = vmatprep.subr.bf16.mxu1 %v8460_v0 }
 0x16b   :  { %v383_v59 = vadd.f32 %v8926_v15, %v382_v58  ;;  %v384_v60 = vpop.f32.mrb[43].mxu0  ;;  %v717_v58 = vld [vmem:[%s12751_s3 + $0x1c8] sm:$0xff] }
 0x16d   :  { %v617_v63 = vmax.f32 %v383_v59, 0.0 }
 0x16e   :  { %v387_v2 = vpop.f32.mrb[44].mxu0 }
 0x16f   :  { %v7836_v3 = vpack.c.bf16 %v617_v63, %v616_v62  ;;  %v389_v4 = vpop.f32.mrb[45].mxu0  ;;  %v388_v5 = vadd.f32 %v8926_v15, %v387_v2  ;;  %v716_v63 = vld [vmem:[%s12751_s3 + $0x1c0] sm:$0xff] }
 0x171   :  { %7837 = vmatpush1.bf16.msra.mxu0 %v7836_v3  ;;  %8191 = vmatpush1.bf16.msra.mxu1 %v7836_v3  ;;  %v618_v9 = vmax.f32 %v388_v5, 0.0 }
 0x172   :  { %v392_v6 = vpop.f32.mrb[46].mxu0  ;;  %7838 = vmatprep.subr.bf16.mxu0 %v8460_v0  ;;  %8176 = vmatprep.subr.bf16.mxu1 %v8460_v0 }
 0x173   :  { %v393_v7 = vadd.f32 %v8926_v15, %v392_v6  ;;  %v394_v8 = vpop.f32.mrb[47].mxu0  ;;  %v720_v6 = vld [vmem:[%s12751_s3 + $0x1e0] sm:$0xff] }
 0x175   :  { %v619_v10 = vmax.f32 %v393_v7, 0.0  ;;  %v725_v7 = vld [vmem:[%s12751_s3 + $0x208] sm:$0xff] }
 0x176   :  { %v397_v11 = vpop.f32.mrb[48].mxu0 }
 0x177   :  { %v7839_v12 = vpack.c.bf16 %v619_v10, %v618_v9  ;;  %v399_v13 = vpop.f32.mrb[49].mxu0  ;;  %v398_v14 = vadd.f32 %v8926_v15, %v397_v11 }
 0x179   :  { %7840 = vmatpush1.bf16.msra.mxu0 %v7839_v12  ;;  %8192 = vmatpush1.bf16.msra.mxu1 %v7839_v12  ;;  %v620_v19 = vmax.f32 %v398_v14, 0.0  ;;  %v724_v12 = vld [vmem:[%s12751_s3 + $0x200] sm:$0xff]  ;;  %v729_v14 = vld [vmem:[%s12751_s3 + $0x228] sm:$0xff] }
 0x17a   :  { %v402_v16 = vpop.f32.mrb[50].mxu0  ;;  %7841 = vmatprep.subr.bf16.mxu0 %v8460_v0  ;;  %8177 = vmatprep.subr.bf16.mxu1 %v8460_v0 }
 0x17b   :  { %v403_v17 = vadd.f32 %v8926_v15, %v402_v16  ;;  %v404_v18 = vpop.f32.mrb[51].mxu0 }
 0x17d   :  { %v621_v20 = vmax.f32 %v403_v17, 0.0 }
 0x17e   :  { %v407_v21 = vpop.f32.mrb[52].mxu0 }
 0x17f   :  { %v7842_v22 = vpack.c.bf16 %v621_v20, %v620_v19  ;;  %v409_v23 = vpop.f32.mrb[53].mxu0  ;;  %v408_v24 = vadd.f32 %v8926_v15, %v407_v21  ;;  %v153_v20 = vld [vmem:[%s12749_s0 + $0x368] sm:$0xff]  ;;  %v728_v21 = vld [vmem:[%s12751_s3 + $0x220] sm:$0xff] }
 0x180   :  { %v733_v23 = vld [vmem:[%s12751_s3 + $0x248] sm:$0xff]  ;;  %545 = vmatprep.mubr.f32.mxu0 %v153_v20 }
 0x181   :  { %7843 = vmatpush1.bf16.msra.mxu0 %v7842_v22  ;;  %8193 = vmatpush1.bf16.msra.mxu1 %v7842_v22  ;;  %v622_v28 = vmax.f32 %v408_v24, 0.0  ;;  %v152_v22 = vld [vmem:[%s12749_s0 + $0x360] sm:$0xff]  ;;  %v773_v20 = vld [vmem:[%s12751_s3 + $0x388] sm:$0xff] }
 0x182   :  { %v412_v25 = vpop.f32.mrb[54].mxu0  ;;  %7844 = vmatprep.subr.bf16.mxu0 %v8460_v0  ;;  %8178 = vmatprep.subr.bf16.mxu1 %v8460_v0 }
 0x183   :  { %v413_v26 = vadd.f32 %v8926_v15, %v412_v25  ;;  %v414_v27 = vpop.f32.mrb[55].mxu0  ;;  %546 = vmatmul.mubr.f32.gmra.mrb[108].mxu0 %v152_v22  ;;  %v777_v22 = vld [vmem:[%s12751_s3 + $0x3a8] sm:$0xff] }
 0x185   :  { %v623_v29 = vmax.f32 %v413_v26, 0.0 }
 0x186   :  { %v417_v30 = vpop.f32.mrb[56].mxu0 }
 0x187   :  { %v7845_v31 = vpack.c.bf16 %v623_v29, %v622_v28  ;;  %v419_v32 = vpop.f32.mrb[57].mxu0  ;;  %v418_v34 = vadd.f32 %v8926_v15, %v417_v30  ;;  %v155_v28 = vld [vmem:[%s12749_s0 + $0x378] sm:$0xff]  ;;  %v732_v29 = vld [vmem:[%s12751_s3 + $0x240] sm:$0xff] }
 0x188   :  { %550 = vmatprep.mubr.f32.mxu0 %v155_v28  ;;  %v737_v32 = vld [vmem:[%s12751_s3 + $0x268] sm:$0xff] }
 0x189   :  { %7846 = vmatpush1.bf16.msra.mxu0 %v7845_v31  ;;  %8194 = vmatpush1.bf16.msra.mxu1 %v7845_v31  ;;  %v624_v40 = vmax.f32 %v418_v34, 0.0  ;;  %v154_v31 = vld [vmem:[%s12749_s0 + $0x370] sm:$0xff] }
 0x18a   :  { %v422_v36 = vpop.f32.mrb[58].mxu0  ;;  %7847 = vmatprep.subr.bf16.mxu0 %v8460_v0  ;;  %8179 = vmatprep.subr.bf16.mxu1 %v8460_v0 }
 0x18b   :  { %v423_v37 = vadd.f32 %v8926_v15, %v422_v36  ;;  %v424_v38 = vpop.f32.mrb[59].mxu0  ;;  %551 = vmatmul.mubr.f32.gmra.mrb[110].mxu0 %v154_v31  ;;  %v789_v31 = vld [vmem:[%s12751_s3 + $0x408] sm:$0xff] }
 0x18c   :  { %v741_v38 = vld [vmem:[%s12751_s3 + $0x288] sm:$0xff] }
 0x18d   :  { %v625_v41 = vmax.f32 %v423_v37, 0.0  ;;  %v736_v37 = vld [vmem:[%s12751_s3 + $0x260] sm:$0xff] }
 0x18e   :  { %v427_v43 = vpop.f32.mrb[60].mxu0 }
 0x18f   :  { %v7848_v44 = vpack.c.bf16 %v625_v41, %v624_v40  ;;  %v429_v45 = vpop.f32.mrb[61].mxu0  ;;  %v428_v46 = vadd.f32 %v8926_v15, %v427_v43  ;;  %v740_v43 = vld [vmem:[%s12751_s3 + $0x280] sm:$0xff] }
 0x190   :  { %v745_v45 = vld [vmem:[%s12751_s3 + $0x2a8] sm:$0xff] }
 0x191   :  { %7849 = vmatpush1.bf16.msra.mxu0 %v7848_v44  ;;  %8195 = vmatpush1.bf16.msra.mxu1 %v7848_v44  ;;  %v626_v50 = vmax.f32 %v428_v46, 0.0 }
 0x192   :  { %v432_v47 = vpop.f32.mrb[62].mxu0  ;;  %7850 = vmatprep.subr.bf16.mxu0 %v8460_v0  ;;  %8180 = vmatprep.subr.bf16.mxu1 %v8460_v0 }
 0x193   :  { %v433_v48 = vadd.f32 %v8926_v15, %v432_v47  ;;  %v434_v49 = vpop.f32.mrb[63].mxu0 }
 0x195   :  { %v627_v51 = vmax.f32 %v433_v48, 0.0 }
 0x196   :  { %v437_v52 = vpop.f32.mrb[64].mxu0 }
 0x197   :  { %v7851_v53 = vpack.c.bf16 %v627_v51, %v626_v50  ;;  %v438_v54 = vadd.f32 %v8926_v15, %v437_v52  ;;  %v439_v55 = vpop.f32.mrb[65].mxu0  ;;  %v744_v50 = vld [vmem:[%s12751_s3 + $0x2a0] sm:$0xff]  ;;  %v749_v51 = vld [vmem:[%s12751_s3 + $0x2c8] sm:$0xff] }
 0x199   :  { %7852 = vmatpush1.bf16.msra.mxu0 %v7851_v53  ;;  %8196 = vmatpush1.bf16.msra.mxu1 %v7851_v53  ;;  %v628_v59 = vmax.f32 %v438_v54, 0.0 }
 0x19a   :  { %v442_v57 = vpop.f32.mrb[66].mxu0  ;;  %7853 = vmatprep.subr.bf16.mxu1 %v8460_v0  ;;  %7901 = vmatprep.subr.bf16.mxu0 %v8460_v0 }
 0x19b   :  { %v443_v60 = vadd.f32 %v8926_v15, %v442_v57  ;;  %v444_v61 = vpop.f32.mrb[67].mxu0 }
 0x19c   :  { %1366 = vmatmul.mubr.f32.vlgmr.msra.gmra.mrb[0].mxu1 %v712_v56  ;;  %v748_v56 = vld [vmem:[%s12751_s3 + $0x2c0] sm:$0xff] }
 0x19d   :  { %v629_v62 = vmax.f32 %v443_v60, 0.0  ;;  %1370 = vmatprep.mubr.f32.mxu1 %v717_v58  ;;  %v753_v58 = vld [vmem:[%s12751_s3 + $0x2e8] sm:$0xff] }
 0x19e   :  { %v447_v2 = vpop.f32.mrb[68].mxu0 }
 0x19f   :  { %v7854_v3 = vpack.c.bf16 %v629_v62, %v628_v59  ;;  %v448_v4 = vadd.f32 %v8926_v15, %v447_v2  ;;  %v449_v5 = vpop.f32.mrb[69].mxu0  ;;  %v752_v62 = vld [vmem:[%s12751_s3 + $0x2e0] sm:$0xff] }
 0x1a0   :  { %1371 = vmatmul.mubr.f32.gmra.mrb[2].mxu1 %v716_v63 }
 0x1a1   :  { %7855 = vmatpush1.bf16.msra.mxu1 %v7854_v3  ;;  %1375 = vmatprep.mubr.f32.mxu1 %v721_v1  ;;  %v630_v9 = vmax.f32 %v448_v4, 0.0  ;;  %v757_v1 = vld [vmem:[%s12751_s3 + $0x308] sm:$0xff]  ;;  %v756_v3 = vld [vmem:[%s12751_s3 + $0x300] sm:$0xff] }
 0x1a2   :  { %v452_v8 = vpop.f32.mrb[70].mxu0  ;;  %7856 = vmatprep.subr.bf16.mxu1 %v8460_v0 }
 0x1a3   :  { %v453_v10 = vadd.f32 %v8926_v15, %v452_v8  ;;  %v454_v11 = vpop.f32.mrb[71].mxu0 }
 0x1a4   :  { %1376 = vmatmul.mubr.f32.gmra.mrb[4].mxu1 %v720_v6 }
 0x1a5   :  { %1380 = vmatprep.mubr.f32.mxu1 %v725_v7  ;;  %v631_v13 = vmax.f32 %v453_v10, 0.0  ;;  %v761_v7 = vld [vmem:[%s12751_s3 + $0x328] sm:$0xff]  ;;  %v760_v10 = vld [vmem:[%s12751_s3 + $0x320] sm:$0xff] }
 0x1a6   :  { %v457_v16 = vpop.f32.mrb[72].mxu0 }
 0x1a7   :  { %v7857_v17 = vpack.c.bf16 %v631_v13, %v630_v9  ;;  %v458_v18 = vadd.f32 %v8926_v15, %v457_v16  ;;  %v459_v19 = vpop.f32.mrb[73].mxu0  ;;  %v157_v9 = vld [vmem:[%s12749_s0 + $0x388] sm:$0xff]  ;;  %v764_v16 = vld [vmem:[%s12751_s3 + $0x340] sm:$0xff] }
 0x1a8   :  { %1381 = vmatmul.mubr.f32.gmra.mrb[6].mxu1 %v724_v12  ;;  %555 = vmatprep.mubr.f32.mxu0 %v157_v9  ;;  %v156_v12 = vld [vmem:[%s12749_s0 + $0x380] sm:$0xff]  ;;  %v765_v13 = vld [vmem:[%s12751_s3 + $0x348] sm:$0xff] }
 0x1a9   :  { %1385 = vmatprep.mubr.f32.mxu1 %v729_v14  ;;  %7858 = vmatpush1.bf16.msra.mxu1 %v7857_v17  ;;  %v632_v25 = vmax.f32 %v458_v18, 0.0  ;;  %v159_v14 = vld [vmem:[%s12749_s0 + $0x398] sm:$0xff]  ;;  %v158_v17 = vld [vmem:[%s12749_s0 + $0x390] sm:$0xff]  ;;  %v769_v18 = vld [vmem:[%s12751_s3 + $0x368] sm:$0xff] }
 0x1aa   :  { %v462_v24 = vpop.f32.mrb[74].mxu0  ;;  %7859 = vmatprep.subr.bf16.mxu1 %v8460_v0  ;;  %556 = vmatmul.mubr.f32.gmra.mrb[112].mxu0 %v156_v12  ;;  %v768_v19 = vld [vmem:[%s12751_s3 + $0x360] sm:$0xff]  ;;  %v167_v12 = vld [vmem:[%s12749_s0 + $0x3d8] sm:$0xff] }
 0x1ab   :  { %v463_v26 = vadd.f32 %v8926_v15, %v462_v24  ;;  %v464_v27 = vpop.f32.mrb[75].mxu0  ;;  %560 = vmatprep.mubr.f32.mxu0 %v159_v14  ;;  %v781_v24 = vld [vmem:[%s12751_s3 + $0x3c8] sm:$0xff]  ;;  %v164_v9 = vld [vmem:[%s12749_s0 + $0x3c0] sm:$0xff] }
 0x1ac   :  { %1386 = vmatmul.mubr.f32.gmra.mrb[8].mxu1 %v728_v21  ;;  %v772_v21 = vld [vmem:[%s12751_s3 + $0x380] sm:$0xff] }
 0x1ad   :  { %1390 = vmatprep.mubr.f32.mxu1 %v733_v23  ;;  %v633_v30 = vmax.f32 %v463_v26, 0.0  ;;  %v776_v23 = vld [vmem:[%s12751_s3 + $0x3a0] sm:$0xff]  ;;  %v785_v26 = vld [vmem:[%s12751_s3 + $0x3e8] sm:$0xff] }
 0x1ae   :  { %v467_v33 = vpop.f32.mrb[76].mxu0  ;;  %561 = vmatmul.mubr.f32.gmra.mrb[114].mxu0 %v158_v17  ;;  %v832_v14 = vld [vmem:[%s12751_s3 + $0x560] sm:$0xff] }
 0x1af   :  { %v7860_v34 = vpack.c.bf16 %v633_v30, %v632_v25  ;;  %v468_v35 = vadd.f32 %v8926_v15, %v467_v33  ;;  %v469_v36 = vpop.f32.mrb[77].mxu0  ;;  %v780_v25 = vld [vmem:[%s12751_s3 + $0x3c0] sm:$0xff] }
 0x1b0   :  { %1391 = vmatmul.mubr.f32.gmra.mrb[10].mxu1 %v732_v29  ;;  %v784_v29 = vld [vmem:[%s12751_s3 + $0x3e0] sm:$0xff] }
 0x1b1   :  { %1395 = vmatprep.mubr.f32.mxu1 %v737_v32  ;;  %7861 = vmatpush1.bf16.msra.mxu1 %v7860_v34  ;;  %v634_v40 = vmax.f32 %v468_v35, 0.0  ;;  %v788_v33 = vld [vmem:[%s12751_s3 + $0x400] sm:$0xff] }
 0x1b2   :  { %v472_v39 = vpop.f32.mrb[78].mxu0  ;;  %7862 = vmatprep.subr.bf16.mxu1 %v8460_v0  ;;  %v836_v17 = vld [vmem:[%s12751_s3 + $0x580] sm:$0xff] }
 0x1b3   :  { %v473_v41 = vadd.f32 %v8926_v15, %v472_v39  ;;  %v474_v42 = vpop.f32.mrb[79].mxu0  ;;  %v792_v39 = vld [vmem:[%s12751_s3 + $0x420] sm:$0xff] }
 0x1b4   :  { %1396 = vmatmul.mubr.f32.gmra.mrb[12].mxu1 %v736_v37  ;;  %v793_v37 = vld [vmem:[%s12751_s3 + $0x428] sm:$0xff] }
 0x1b5   :  { %1400 = vmatprep.mubr.f32.mxu1 %v741_v38  ;;  %v635_v44 = vmax.f32 %v473_v41, 0.0  ;;  %v161_v41 = vld [vmem:[%s12749_s0 + $0x3a8] sm:$0xff] }
 0x1b6   :  { %v477_v46 = vpop.f32.mrb[80].mxu0  ;;  %v797_v42 = vld [vmem:[%s12751_s3 + $0x448] sm:$0xff]  ;;  %565 = vmatprep.mubr.f32.mxu0 %v161_v41  ;;  %v171_v41 = vld [vmem:[%s12749_s0 + $0x3f8] sm:$0xff] }
 0x1b7   :  { %v7863_v47 = vpack.c.bf16 %v635_v44, %v634_v40  ;;  %v478_v48 = vadd.f32 %v8926_v15, %v477_v46  ;;  %v479_v49 = vpop.f32.mrb[81].mxu0  ;;  %v796_v44 = vld [vmem:[%s12751_s3 + $0x440] sm:$0xff]  ;;  %v801_v46 = vld [vmem:[%s12751_s3 + $0x468] sm:$0xff] }
 0x1b8   :  { %1401 = vmatmul.mubr.f32.gmra.mrb[14].mxu1 %v740_v43  ;;  %v160_v43 = vld [vmem:[%s12749_s0 + $0x3a0] sm:$0xff]  ;;  %v805_v49 = vld [vmem:[%s12751_s3 + $0x488] sm:$0xff] }
 0x1b9   :  { %1405 = vmatprep.mubr.f32.mxu1 %v745_v45  ;;  %7864 = vmatpush1.bf16.msra.mxu1 %v7863_v47  ;;  %v636_v53 = vmax.f32 %v478_v48, 0.0  ;;  %v163_v45 = vld [vmem:[%s12749_s0 + $0x3b8] sm:$0xff]  ;;  %v162_v47 = vld [vmem:[%s12749_s0 + $0x3b0] sm:$0xff]  ;;  %v800_v48 = vld [vmem:[%s12751_s3 + $0x460] sm:$0xff] }
 0x1ba   :  { %v482_v52 = vpop.f32.mrb[82].mxu0  ;;  %7865 = vmatprep.subr.bf16.mxu1 %v8460_v0  ;;  %566 = vmatmul.mubr.f32.gmra.mrb[116].mxu0 %v160_v43  ;;  %v864_v43 = vld [vmem:[%s12751_s3 + $0x660] sm:$0xff] }
 0x1bb   :  { %v483_v54 = vadd.f32 %v8926_v15, %v482_v52  ;;  %v484_v55 = vpop.f32.mrb[83].mxu0  ;;  %570 = vmatprep.mubr.f32.mxu0 %v163_v45  ;;  %v808_v52 = vld [vmem:[%s12751_s3 + $0x4a0] sm:$0xff] }
 0x1bc   :  { %1406 = vmatmul.mubr.f32.gmra.mrb[16].mxu1 %v744_v50  ;;  %v804_v50 = vld [vmem:[%s12751_s3 + $0x480] sm:$0xff]  ;;  %v817_v55 = vld [vmem:[%s12751_s3 + $0x4e8] sm:$0xff] }
 0x1bd   :  { %1410 = vmatprep.mubr.f32.mxu1 %v749_v51  ;;  %v637_v57 = vmax.f32 %v483_v54, 0.0  ;;  %v809_v51 = vld [vmem:[%s12751_s3 + $0x4a8] sm:$0xff]  ;;  %v812_v54 = vld [vmem:[%s12751_s3 + $0x4c0] sm:$0xff] }
 0x1be   :  { %v487_v59 = vpop.f32.mrb[84].mxu0  ;;  %571 = vmatmul.mubr.f32.gmra.mrb[118].mxu0 %v162_v47  ;;  %v868_v45 = vld [vmem:[%s12751_s3 + $0x680] sm:$0xff] }
 0x1bf   :  { %v7866_v60 = vpack.c.bf16 %v637_v57, %v636_v53  ;;  %v489_v61 = vpop.f32.mrb[85].mxu0  ;;  %v488_v63 = vadd.f32 %v8926_v15, %v487_v59  ;;  %v813_v53 = vld [vmem:[%s12751_s3 + $0x4c8] sm:$0xff]  ;;  %v816_v59 = vld [vmem:[%s12751_s3 + $0x4e0] sm:$0xff] }
 0x1c0   :  { %1411 = vmatmul.mubr.f32.gmra.mrb[18].mxu1 %v748_v56  ;;  %v872_v47 = vld [vmem:[%s12751_s3 + $0x6a0] sm:$0xff] }
 0x1c1   :  { %1415 = vmatprep.mubr.f32.mxu1 %v753_v58  ;;  %7867 = vmatpush1.bf16.msra.mxu1 %v7866_v60  ;;  %v638_v4 = vmax.f32 %v488_v63, 0.0  ;;  %v821_v60 = vld [vmem:[%s12751_s3 + $0x508] sm:$0xff] }
 0x1c2   :  { %7868 = vmatprep.subr.bf16.mxu1 %v8460_v0  ;;  %v492_v2 = vpop.f32.mrb[86].mxu0 }
 0x1c3   :  { %v493_v5 = vadd.f32 %v8926_v15, %v492_v2  ;;  %v494_v6 = vpop.f32.mrb[87].mxu0  ;;  %v820_v2 = vld [vmem:[%s12751_s3 + $0x500] sm:$0xff] }
 0x1c4   :  { %1416 = vmatmul.mubr.f32.gmra.mrb[20].mxu1 %v752_v62  ;;  %v824_v6 = vld [vmem:[%s12751_s3 + $0x520] sm:$0xff] }
 0x1c5   :  { %1420 = vmatprep.mubr.f32.mxu1 %v757_v1  ;;  %v639_v8 = vmax.f32 %v493_v5, 0.0 }
 0x1c6   :  { %v497_v27 = vpop.f32.mrb[88].mxu0 }
 0x1c7   :  { %v7869_v11 = vpack.c.bf16 %v639_v8, %v638_v4  ;;  %v499_v28 = vpop.f32.mrb[89].mxu0  ;;  %v498_v30 = vadd.f32 %v8926_v15, %v497_v27  ;;  %v825_v4 = vld [vmem:[%s12751_s3 + $0x528] sm:$0xff] }
 0x1c8   :  { %1421 = vmatmul.mubr.f32.gmra.mrb[22].mxu1 %v756_v3  ;;  %v165_v8 = vld [vmem:[%s12749_s0 + $0x3c8] sm:$0xff] }
 0x1c9   :  { %1425 = vmatprep.mubr.f32.mxu1 %v761_v7  ;;  %7870 = vmatpush1.bf16.msra.mxu1 %v7869_v11  ;;  %v640_v34 = vmax.f32 %v498_v30, 0.0  ;;  %v829_v7 = vld [vmem:[%s12751_s3 + $0x548] sm:$0xff] }
 0x1ca   :  { %7871 = vmatprep.subr.bf16.mxu1 %v8460_v0  ;;  %v502_v32 = vpop.f32.mrb[90].mxu0  ;;  %575 = vmatprep.mubr.f32.mxu0 %v165_v8  ;;  %v833_v11 = vld [vmem:[%s12751_s3 + $0x568] sm:$0xff]  ;;  %v900_v8 = vld [vmem:[%s12751_s3 + $0x780] sm:$0xff] }
 0x1cb   :  { %v503_v35 = vadd.f32 %v8926_v15, %v502_v32  ;;  %v504_v36 = vpop.f32.mrb[91].mxu0  ;;  %576 = vmatmul.mubr.f32.gmra.mrb[120].mxu0 %v164_v9  ;;  %v853_v27 = vld [vmem:[%s12751_s3 + $0x608] sm:$0xff]  ;;  %v852_v32 = vld [vmem:[%s12751_s3 + $0x600] sm:$0xff] }
 0x1cc   :  { %1426 = vmatmul.mubr.f32.gmra.mrb[24].mxu1 %v760_v10  ;;  %v828_v10 = vld [vmem:[%s12751_s3 + $0x540] sm:$0xff]  ;;  %580 = vmatprep.mubr.f32.mxu0 %v167_v12  ;;  %v905_v9 = vld [vmem:[%s12751_s3 + $0x7a8] sm:$0xff] }
 0x1cd   :  { %1430 = vmatprep.mubr.f32.mxu1 %v765_v13  ;;  %v641_v38 = vmax.f32 %v503_v35, 0.0  ;;  %v166_v13 = vld [vmem:[%s12749_s0 + $0x3d0] sm:$0xff]  ;;  %v856_v36 = vld [vmem:[%s12751_s3 + $0x620] sm:$0xff] }
 0x1ce   :  { %v507_v56 = vpop.f32.mrb[92].mxu0  ;;  %v908_v12 = vld [vmem:[%s12751_s3 + $0x7c0] sm:$0xff] }
 0x1cf   :  { %v7872_v40 = vpack.c.bf16 %v641_v38, %v640_v34  ;;  %v508_v57 = vadd.f32 %v8926_v15, %v507_v56  ;;  %v509_v58 = vpop.f32.mrb[93].mxu0  ;;  %581 = vmatmul.mubr.f32.gmra.mrb[122].mxu0 %v166_v13  ;;  %v857_v34 = vld [vmem:[%s12751_s3 + $0x628] sm:$0xff]  ;;  %v168_v38 = vld [vmem:[%s12749_s0 + $0x3e0] sm:$0xff] }
 0x1d0   :  { %1431 = vmatmul.mubr.f32.gmra.mrb[26].mxu1 %v764_v16  ;;  %v837_v16 = vld [vmem:[%s12751_s3 + $0x588] sm:$0xff] }
 0x1d1   :  { %1435 = vmatprep.mubr.f32.mxu1 %v769_v18  ;;  %7873 = vmatpush1.bf16.msra.mxu1 %v7872_v40  ;;  %v642_v62 = vmax.f32 %v508_v57, 0.0  ;;  %v841_v18 = vld [vmem:[%s12751_s3 + $0x5a8] sm:$0xff] }
 0x1d2   :  { %7874 = vmatprep.subr.bf16.mxu1 %v8460_v0  ;;  %v512_v61 = vpop.f32.mrb[94].mxu0  ;;  %v865_v40 = vld [vmem:[%s12751_s3 + $0x668] sm:$0xff] }
 0x1d3   :  { %v513_v63 = vadd.f32 %v8926_v15, %v512_v61  ;;  %v514_v1 = vpop.f32.mrb[95].mxu0  ;;  %v885_v56 = vld [vmem:[%s12751_s3 + $0x708] sm:$0xff]  ;;  %v884_v61 = vld [vmem:[%s12751_s3 + $0x700] sm:$0xff] }
 0x1d4   :  { %1436 = vmatmul.mubr.f32.gmra.mrb[28].mxu1 %v768_v19  ;;  %v840_v19 = vld [vmem:[%s12751_s3 + $0x5a0] sm:$0xff]  ;;  %v913_v13 = vld [vmem:[%s12751_s3 + $0x7e8] sm:$0xff] }
 0x1d5   :  { %1440 = vmatprep.mubr.f32.mxu1 %v773_v20  ;;  %v643_v3 = vmax.f32 %v513_v63, 0.0  ;;  %v845_v20 = vld [vmem:[%s12751_s3 + $0x5c8] sm:$0xff] }
 0x1d7   :  { %v7875_v5 = vpack.c.bf16 %v643_v3, %v642_v62  ;;  %v889_v62 = vld [vmem:[%s12751_s3 + $0x728] sm:$0xff] }
 0x1d8   :  { %1441 = vmatmul.mubr.f32.gmra.mrb[30].mxu1 %v772_v21  ;;  %v844_v21 = vld [vmem:[%s12751_s3 + $0x5c0] sm:$0xff]  ;;  %v893_v3 = vld [vmem:[%s12751_s3 + $0x748] sm:$0xff] }
 0x1d9   :  { %1445 = vmatprep.mubr.f32.mxu1 %v777_v22  ;;  %7876 = vmatpush1.bf16.msra.mxu1 %v7875_v5  ;;  %v849_v22 = vld [vmem:[%s12751_s3 + $0x5e8] sm:$0xff] }
 0x1da   :  { %7877 = vmatprep.subr.bf16.mxu1 %v8460_v0  ;;  %v897_v5 = vld [vmem:[%s12751_s3 + $0x768] sm:$0xff] }
 0x1dc   :  { %1446 = vmatmul.mubr.f32.gmra.mrb[32].mxu1 %v776_v23 }
 0x1dd   :  { %1450 = vmatprep.mubr.f32.mxu1 %v781_v24 }
 0x1e0   :  { %1451 = vmatmul.mubr.f32.gmra.mrb[34].mxu1 %v780_v25 }
 0x1e1   :  { %1455 = vmatprep.mubr.f32.mxu1 %v785_v26  ;;  %v848_v26 = vld [vmem:[%s12751_s3 + $0x5e0] sm:$0xff] }
 0x1e4   :  { %1456 = vmatmul.mubr.f32.gmra.mrb[36].mxu1 %v784_v29 }
 0x1e5   :  { %1460 = vmatprep.mubr.f32.mxu1 %v789_v31 }
 0x1e8   :  { %1461 = vmatmul.mubr.f32.gmra.mrb[38].mxu1 %v788_v33 }
 0x1e9   :  { %1465 = vmatprep.mubr.f32.mxu1 %v793_v37  ;;  %v169_v37 = vld [vmem:[%s12749_s0 + $0x3e8] sm:$0xff] }
 0x1ea   :  { %585 = vmatprep.mubr.f32.mxu0 %v169_v37  ;;  %v940_v37 = vld [vmem:[%s12751_s3 + $0x8c0] sm:$0xff] }
 0x1eb   :  { %v517_v23 = vpop.f32.mrb[96].mxu0  ;;  %586 = vmatmul.mubr.f32.gmra.mrb[124].mxu0 %v168_v38  ;;  %v945_v38 = vld [vmem:[%s12751_s3 + $0x8e8] sm:$0xff] }
 0x1ec   :  { %1466 = vmatmul.mubr.f32.gmra.mrb[40].mxu1 %v792_v39  ;;  %v518_v24 = vadd.f32 %v8926_v15, %v517_v23  ;;  %v519_v25 = vpop.f32.mrb[97].mxu0  ;;  %v860_v39 = vld [vmem:[%s12751_s3 + $0x640] sm:$0xff]  ;;  %590 = vmatprep.mubr.f32.mxu0 %v171_v41 }
 0x1ed   :  { %1470 = vmatprep.mubr.f32.mxu1 %v797_v42  ;;  %v170_v42 = vld [vmem:[%s12749_s0 + $0x3f0] sm:$0xff]  ;;  %v921_v25 = vld [vmem:[%s12751_s3 + $0x828] sm:$0xff] }
 0x1ee   :  { %v644_v29 = vmax.f32 %v518_v24, 0.0  ;;  %v916_v24 = vld [vmem:[%s12751_s3 + $0x800] sm:$0xff] }
 0x1ef   :  { %591 = vmatmul.mubr.f32.gmra.mrb[126].mxu0 %v170_v42 }
 0x1f0   :  { %1471 = vmatmul.mubr.f32.gmra.mrb[42].mxu1 %v796_v44  ;;  %v522_v28 = vpop.f32.mrb[98].mxu0  ;;  %v869_v44 = vld [vmem:[%s12751_s3 + $0x688] sm:$0xff] }
 0x1f1   :  { %1475 = vmatprep.mubr.f32.mxu1 %v801_v46  ;;  %v523_v30 = vadd.f32 %v8926_v15, %v522_v28  ;;  %v524_v31 = vpop.f32.mrb[99].mxu0  ;;  %v861_v15 = vld [vmem:[%s12751_s3 + $0x648] sm:$0xff]  ;;  %v920_v28 = vld [vmem:[%s12751_s3 + $0x820] sm:$0xff] }
 0x1f2   :  { %v873_v46 = vld [vmem:[%s12751_s3 + $0x6a8] sm:$0xff] }
 0x1f3   :  { %v645_v33 = vmax.f32 %v523_v30, 0.0  ;;  %v924_v30 = vld [vmem:[%s12751_s3 + $0x840] sm:$0xff]  ;;  %v929_v31 = vld [vmem:[%s12751_s3 + $0x868] sm:$0xff] }
 0x1f4   :  { %1476 = vmatmul.mubr.f32.gmra.mrb[44].mxu1 %v800_v48  ;;  %v877_v48 = vld [vmem:[%s12751_s3 + $0x6c8] sm:$0xff] }
 0x1f5   :  { %1480 = vmatprep.mubr.f32.mxu1 %v805_v49  ;;  %v7878_v35 = vpack.c.bf16 %v645_v33, %v644_v29  ;;  %v876_v49 = vld [vmem:[%s12751_s3 + $0x6c0] sm:$0xff]  ;;  %v925_v29 = vld [vmem:[%s12751_s3 + $0x848] sm:$0xff] }
 0x1f6   :  { %v933_v33 = vld [vmem:[%s12751_s3 + $0x888] sm:$0xff] }
 0x1f7   :  { %7879 = vmatpush1.bf16.msra.mxu1 %v7878_v35  ;;  %v937_v35 = vld [vmem:[%s12751_s3 + $0x8a8] sm:$0xff] }
 0x1f8   :  { %1481 = vmatmul.mubr.f32.gmra.mrb[46].mxu1 %v804_v50  ;;  %7880 = vmatprep.subr.bf16.mxu1 %v8460_v0  ;;  %v881_v50 = vld [vmem:[%s12751_s3 + $0x6e8] sm:$0xff] }
 0x1f9   :  { %1485 = vmatprep.mubr.f32.mxu1 %v809_v51 }
 0x1fc   :  { %1486 = vmatmul.mubr.f32.gmra.mrb[48].mxu1 %v808_v52  ;;  %v9385_v52 = vld [vmem:[%s12750_s2] ss:$0 sm:$0xff] }
 0x1fd   :  { %1490 = vmatprep.mubr.f32.mxu1 %v813_v53 }
 0x200   :  { %1491 = vmatmul.mubr.f32.gmra.mrb[50].mxu1 %v812_v54 }
 0x201   :  { %1495 = vmatprep.mubr.f32.mxu1 %v817_v55  ;;  %v880_v55 = vld [vmem:[%s12751_s3 + $0x6e0] sm:$0xff] }
 0x204   :  { %1496 = vmatmul.mubr.f32.gmra.mrb[52].mxu1 %v816_v59 }
 0x205   :  { %1500 = vmatprep.mubr.f32.mxu1 %v821_v60 }
 0x208   :  { %1501 = vmatmul.mubr.f32.gmra.mrb[54].mxu1 %v820_v2  ;;  %v888_v2 = vld [vmem:[%s12751_s3 + $0x720] sm:$0xff] }
 0x209   :  { %1505 = vmatprep.mubr.f32.mxu1 %v825_v4  ;;  %v892_v4 = vld [vmem:[%s12751_s3 + $0x740] sm:$0xff] }
 0x20c   :  { %1506 = vmatmul.mubr.f32.gmra.mrb[56].mxu1 %v824_v6  ;;  %v896_v6 = vld [vmem:[%s12751_s3 + $0x760] sm:$0xff] }
 0x20d   :  { %1510 = vmatprep.mubr.f32.mxu1 %v829_v7  ;;  %v901_v7 = vld [vmem:[%s12751_s3 + $0x788] sm:$0xff] }
 0x20e   :  { %v527_v51 = vpop.f32.mrb[100].mxu0 }
 0x20f   :  { %v528_v53 = vadd.f32 %v9385_v52, %v527_v51  ;;  %v529_v54 = vpop.f32.mrb[101].mxu0 }
 0x210   :  { %1511 = vmatmul.mubr.f32.gmra.mrb[58].mxu1 %v828_v10  ;;  %v904_v10 = vld [vmem:[%s12751_s3 + $0x7a0] sm:$0xff]  ;;  %v957_v54 = vld [vmem:[%s12751_s3 + $0x948] sm:$0xff] }
 0x211   :  { %1515 = vmatprep.mubr.f32.mxu1 %v833_v11  ;;  %v646_v58 = vmax.f32 %v528_v53, 0.0  ;;  %v909_v11 = vld [vmem:[%s12751_s3 + $0x7c8] sm:$0xff]  ;;  %v952_v53 = vld [vmem:[%s12751_s3 + $0x920] sm:$0xff] }
 0x213   :  { %v532_v57 = vpop.f32.mrb[102].mxu0 }
 0x214   :  { %1516 = vmatmul.mubr.f32.gmra.mrb[60].mxu1 %v832_v14  ;;  %v533_v59 = vadd.f32 %v9385_v52, %v532_v57  ;;  %v534_v60 = vpop.f32.mrb[103].mxu0  ;;  %v960_v57 = vld [vmem:[%s12751_s3 + $0x960] sm:$0xff] }
 0x215   :  { %1520 = vmatprep.mubr.f32.mxu1 %v837_v16  ;;  %v969_v60 = vld [vmem:[%s12751_s3 + $0x9a8] sm:$0xff] }
 0x216   :  { %v647_v63 = vmax.f32 %v533_v59, 0.0  ;;  %v964_v59 = vld [vmem:[%s12751_s3 + $0x980] sm:$0xff] }
 0x218   :  { %1521 = vmatmul.mubr.f32.gmra.mrb[62].mxu1 %v836_v17  ;;  %v7881_v1 = vpack.c.bf16 %v647_v63, %v646_v58  ;;  %v965_v58 = vld [vmem:[%s12751_s3 + $0x988] sm:$0xff]  ;;  %v972_v63 = vld [vmem:[%s12751_s3 + $0x9c0] sm:$0xff] }
 0x219   :  { %1525 = vmatprep.mubr.f32.mxu1 %v841_v18  ;;  %v912_v18 = vld [vmem:[%s12751_s3 + $0x7e0] sm:$0xff] }
 0x21a   :  { %7882 = vmatpush1.bf16.msra.mxu1 %v7881_v1  ;;  %v977_v1 = vld [vmem:[%s12751_s3 + $0x9e8] sm:$0xff] }
 0x21b   :  { %7883 = vmatprep.subr.bf16.mxu1 %v8460_v0 }
 0x21c   :  { %1526 = vmatmul.mubr.f32.gmra.mrb[64].mxu1 %v840_v19  ;;  %v917_v19 = vld [vmem:[%s12751_s3 + $0x808] sm:$0xff] }
 0x21d   :  { %1530 = vmatprep.mubr.f32.mxu1 %v845_v20 }
 0x220   :  { %1531 = vmatmul.mubr.f32.gmra.mrb[66].mxu1 %v844_v21 }
 0x221   :  { %1535 = vmatprep.mubr.f32.mxu1 %v849_v22 }
 0x224   :  { %1536 = vmatmul.mubr.f32.gmra.mrb[68].mxu1 %v848_v26 }
 0x225   :  { %1540 = vmatprep.mubr.f32.mxu1 %v853_v27 }
 0x228   :  { %1541 = vmatmul.mubr.f32.gmra.mrb[70].mxu1 %v852_v32  ;;  %v928_v32 = vld [vmem:[%s12751_s3 + $0x860] sm:$0xff] }
 0x229   :  { %1545 = vmatprep.mubr.f32.mxu1 %v857_v34  ;;  %v932_v34 = vld [vmem:[%s12751_s3 + $0x880] sm:$0xff] }
 0x22c   :  { %1546 = vmatmul.mubr.f32.gmra.mrb[72].mxu1 %v856_v36  ;;  %v936_v36 = vld [vmem:[%s12751_s3 + $0x8a0] sm:$0xff] }
 0x22d   :  { %1550 = vmatprep.mubr.f32.mxu1 %v861_v15  ;;  %v941_v15 = vld [vmem:[%s12751_s3 + $0x8c8] sm:$0xff] }
 0x22e   :  { %v537_v14 = vpop.f32.mrb[104].mxu0 }
 0x22f   :  { %v538_v16 = vadd.f32 %v9385_v52, %v537_v14  ;;  %v539_v17 = vpop.f32.mrb[105].mxu0 }
 0x230   :  { %1551 = vmatmul.mubr.f32.gmra.mrb[74].mxu1 %v860_v39  ;;  %v989_v17 = vld [vmem:[%s12751_s3 + $0xa48] sm:$0xff] }
 0x231   :  { %1555 = vmatprep.mubr.f32.mxu1 %v865_v40  ;;  %v648_v21 = vmax.f32 %v538_v16, 0.0  ;;  %v944_v40 = vld [vmem:[%s12751_s3 + $0x8e0] sm:$0xff] }
 0x232   :  { %v984_v16 = vld [vmem:[%s12751_s3 + $0xa20] sm:$0xff] }
 0x233   :  { %v542_v20 = vpop.f32.mrb[106].mxu0 }
 0x234   :  { %1556 = vmatmul.mubr.f32.gmra.mrb[76].mxu1 %v864_v43  ;;  %v543_v22 = vadd.f32 %v9385_v52, %v542_v20  ;;  %v544_v23 = vpop.f32.mrb[107].mxu0  ;;  %v949_v43 = vld [vmem:[%s12751_s3 + $0x908] sm:$0xff]  ;;  %v992_v20 = vld [vmem:[%s12751_s3 + $0xa60] sm:$0xff] }
 0x235   :  { %1560 = vmatprep.mubr.f32.mxu1 %v869_v44  ;;  %v1001_v23 = vld [vmem:[%s12751_s3 + $0xaa8] sm:$0xff] }
 0x236   :  { %v649_v26 = vmax.f32 %v543_v22, 0.0  ;;  %v996_v22 = vld [vmem:[%s12751_s3 + $0xa80] sm:$0xff] }
 0x238   :  { %1561 = vmatmul.mubr.f32.gmra.mrb[78].mxu1 %v868_v45  ;;  %v7884_v27 = vpack.c.bf16 %v649_v26, %v648_v21  ;;  %v997_v21 = vld [vmem:[%s12751_s3 + $0xa88] sm:$0xff]  ;;  %v1004_v26 = vld [vmem:[%s12751_s3 + $0xac0] sm:$0xff] }
 0x239   :  { %1565 = vmatprep.mubr.f32.mxu1 %v873_v46 }
 0x23a   :  { %7885 = vmatpush1.bf16.msra.mxu1 %v7884_v27  ;;  %v1009_v27 = vld [vmem:[%s12751_s3 + $0xae8] sm:$0xff] }
 0x23b   :  { %7886 = vmatprep.subr.bf16.mxu1 %v8460_v0 }
 0x23c   :  { %1566 = vmatmul.mubr.f32.gmra.mrb[80].mxu1 %v872_v47 }
 0x23d   :  { %1570 = vmatprep.mubr.f32.mxu1 %v877_v48  ;;  %v948_v48 = vld [vmem:[%s12751_s3 + $0x900] sm:$0xff] }
 0x240   :  { %1571 = vmatmul.mubr.f32.gmra.mrb[82].mxu1 %v876_v49 }
 0x241   :  { %1575 = vmatprep.mubr.f32.mxu1 %v881_v50  ;;  %v953_v50 = vld [vmem:[%s12751_s3 + $0x928] sm:$0xff] }
 0x244   :  { %1576 = vmatmul.mubr.f32.gmra.mrb[84].mxu1 %v880_v55  ;;  %v956_v55 = vld [vmem:[%s12751_s3 + $0x940] sm:$0xff] }
 0x245   :  { %1580 = vmatprep.mubr.f32.mxu1 %v885_v56  ;;  %v961_v56 = vld [vmem:[%s12751_s3 + $0x968] sm:$0xff] }
 0x248   :  { %1581 = vmatmul.mubr.f32.gmra.mrb[86].mxu1 %v884_v61  ;;  %v968_v61 = vld [vmem:[%s12751_s3 + $0x9a0] sm:$0xff] }
 0x249   :  { %1585 = vmatprep.mubr.f32.mxu1 %v889_v62  ;;  %v973_v62 = vld [vmem:[%s12751_s3 + $0x9c8] sm:$0xff] }
 0x24c   :  { %1586 = vmatmul.mubr.f32.gmra.mrb[88].mxu1 %v888_v2 }
 0x24d   :  { %1590 = vmatprep.mubr.f32.mxu1 %v893_v3  ;;  %v976_v3 = vld [vmem:[%s12751_s3 + $0x9e0] sm:$0xff] }
 0x250   :  { %1591 = vmatmul.mubr.f32.gmra.mrb[90].mxu1 %v892_v4 }
 0x251   :  { %1595 = vmatprep.mubr.f32.mxu1 %v897_v5 }
 0x254   :  { %1596 = vmatmul.mubr.f32.gmra.mrb[92].mxu1 %v896_v6  ;;  %v981_v6 = vld [vmem:[%s12751_s3 + $0xa08] sm:$0xff] }
 0x255   :  { %1600 = vmatprep.mubr.f32.mxu1 %v901_v7 }
 0x256   :  { %v547_v39 = vpop.f32.mrb[108].mxu0 }
 0x257   :  { %v548_v41 = vadd.f32 %v9385_v52, %v547_v39  ;;  %v549_v42 = vpop.f32.mrb[109].mxu0  ;;  %v1016_v39 = vld [vmem:[%s12751_s3 + $0xb20] sm:$0xff] }
 0x258   :  { %1601 = vmatmul.mubr.f32.gmra.mrb[94].mxu1 %v900_v8  ;;  %v1020_v42 = vld [vmem:[%s12751_s3 + $0xb40] sm:$0xff] }
 0x259   :  { %1605 = vmatprep.mubr.f32.mxu1 %v905_v9  ;;  %v650_v45 = vmax.f32 %v548_v41, 0.0  ;;  %v1021_v41 = vld [vmem:[%s12751_s3 + $0xb48] sm:$0xff] }
 0x25c   :  { %1606 = vmatmul.mubr.f32.gmra.mrb[96].mxu1 %v904_v10 }
 0x25d   :  { %1610 = vmatprep.mubr.f32.mxu1 %v909_v11  ;;  %v980_v11 = vld [vmem:[%s12751_s3 + $0xa00] sm:$0xff] }
 0x25e   :  { %v552_v44 = vpop.f32.mrb[110].mxu0 }
 0x25f   :  { %v553_v46 = vadd.f32 %v9385_v52, %v552_v44  ;;  %v554_v47 = vpop.f32.mrb[111].mxu0  ;;  %v1024_v44 = vld [vmem:[%s12751_s3 + $0xb60] sm:$0xff] }
 0x260   :  { %1611 = vmatmul.mubr.f32.gmra.mrb[98].mxu1 %v908_v12  ;;  %v1033_v47 = vld [vmem:[%s12751_s3 + $0xba8] sm:$0xff] }
 0x261   :  { %1615 = vmatprep.mubr.f32.mxu1 %v913_v13  ;;  %v651_v49 = vmax.f32 %v553_v46, 0.0  ;;  %v985_v13 = vld [vmem:[%s12751_s3 + $0xa28] sm:$0xff]  ;;  %v1028_v46 = vld [vmem:[%s12751_s3 + $0xb80] sm:$0xff] }
 0x263   :  { %v7887_v51 = vpack.c.bf16 %v651_v49, %v650_v45  ;;  %v1029_v45 = vld [vmem:[%s12751_s3 + $0xb88] sm:$0xff] }
 0x264   :  { %1616 = vmatmul.mubr.f32.gmra.mrb[100].mxu1 %v912_v18  ;;  %v988_v18 = vld [vmem:[%s12751_s3 + $0xa40] sm:$0xff]  ;;  %v1037_v49 = vld [vmem:[%s12751_s3 + $0xbc8] sm:$0xff] }
 0x265   :  { %1620 = vmatprep.mubr.f32.mxu1 %v917_v19  ;;  %7888 = vmatpush1.bf16.msra.mxu1 %v7887_v51  ;;  %v993_v19 = vld [vmem:[%s12751_s3 + $0xa68] sm:$0xff] }
 0x266   :  { %7889 = vmatprep.subr.bf16.mxu1 %v8460_v0  ;;  %v1041_v51 = vld [vmem:[%s12751_s3 + $0xbe8] sm:$0xff] }
 0x268   :  { %1621 = vmatmul.mubr.f32.gmra.mrb[102].mxu1 %v916_v24  ;;  %v1000_v24 = vld [vmem:[%s12751_s3 + $0xaa0] sm:$0xff] }
 0x269   :  { %1625 = vmatprep.mubr.f32.mxu1 %v921_v25  ;;  %v1005_v25 = vld [vmem:[%s12751_s3 + $0xac8] sm:$0xff] }
 0x26c   :  { %1626 = vmatmul.mubr.f32.gmra.mrb[104].mxu1 %v920_v28 }
 0x26d   :  { %1630 = vmatprep.mubr.f32.mxu1 %v925_v29  ;;  %v1008_v29 = vld [vmem:[%s12751_s3 + $0xae0] sm:$0xff] }
 0x270   :  { %1631 = vmatmul.mubr.f32.gmra.mrb[106].mxu1 %v924_v30 }
 0x271   :  { %1635 = vmatprep.mubr.f32.mxu1 %v929_v31 }
 0x274   :  { %1636 = vmatmul.mubr.f32.gmra.mrb[108].mxu1 %v928_v32  ;;  %v1013_v32 = vld [vmem:[%s12751_s3 + $0xb08] sm:$0xff] }
 0x275   :  { %1640 = vmatprep.mubr.f32.mxu1 %v933_v33 }
 0x278   :  { %1641 = vmatmul.mubr.f32.gmra.mrb[110].mxu1 %v932_v34  ;;  %v1012_v34 = vld [vmem:[%s12751_s3 + $0xb00] sm:$0xff] }
 0x279   :  { %1645 = vmatprep.mubr.f32.mxu1 %v937_v35 }
 0x27c   :  { %1646 = vmatmul.mubr.f32.gmra.mrb[112].mxu1 %v936_v36 }
 0x27d   :  { %1650 = vmatprep.mubr.f32.mxu1 %v941_v15  ;;  %v557_v2 = vpop.f32.mrb[112].mxu0 }
 0x27e   :  { %v558_v4 = vadd.f32 %v9385_v52, %v557_v2  ;;  %v559_v5 = vpop.f32.mrb[113].mxu0  ;;  %v1048_v2 = vld [vmem:[%s12751_s3 + $0xc20] sm:$0xff] }
 0x27f   :  { %v1052_v5 = vld [vmem:[%s12751_s3 + $0xc40] sm:$0xff] }
 0x280   :  { %1651 = vmatmul.mubr.f32.gmra.mrb[114].mxu1 %v940_v37  ;;  %v652_v8 = vmax.f32 %v558_v4, 0.0  ;;  %v1017_v37 = vld [vmem:[%s12751_s3 + $0xb28] sm:$0xff] }
 0x281   :  { %1655 = vmatprep.mubr.f32.mxu1 %v945_v38  ;;  %v562_v7 = vpop.f32.mrb[114].mxu0 }
 0x282   :  { %v563_v9 = vadd.f32 %v9385_v52, %v562_v7  ;;  %v564_v10 = vpop.f32.mrb[115].mxu0  ;;  %v1056_v7 = vld [vmem:[%s12751_s3 + $0xc60] sm:$0xff] }
 0x283   :  { %v1065_v10 = vld [vmem:[%s12751_s3 + $0xca8] sm:$0xff] }
 0x284   :  { %1656 = vmatmul.mubr.f32.gmra.mrb[116].mxu1 %v944_v40  ;;  %v653_v12 = vmax.f32 %v563_v9, 0.0  ;;  %v1060_v9 = vld [vmem:[%s12751_s3 + $0xc80] sm:$0xff] }
 0x285   :  { %1660 = vmatprep.mubr.f32.mxu1 %v949_v43  ;;  %v1025_v43 = vld [vmem:[%s12751_s3 + $0xb68] sm:$0xff] }
 0x286   :  { %v7890_v14 = vpack.c.bf16 %v653_v12, %v652_v8  ;;  %v1061_v8 = vld [vmem:[%s12751_s3 + $0xc88] sm:$0xff] }
 0x287   :  { %v1069_v12 = vld [vmem:[%s12751_s3 + $0xcc8] sm:$0xff] }
 0x288   :  { %1661 = vmatmul.mubr.f32.gmra.mrb[118].mxu1 %v948_v48  ;;  %v1032_v48 = vld [vmem:[%s12751_s3 + $0xba0] sm:$0xff] }
 0x289   :  { %1665 = vmatprep.mubr.f32.mxu1 %v953_v50  ;;  %7891 = vmatpush1.bf16.msra.mxu1 %v7890_v14  ;;  %v1036_v50 = vld [vmem:[%s12751_s3 + $0xbc0] sm:$0xff]  ;;  %v1073_v14 = vld [vmem:[%s12751_s3 + $0xce8] sm:$0xff] }
 0x28a   :  { %7892 = vmatprep.subr.bf16.mxu1 %v8460_v0 }
 0x28c   :  { %1666 = vmatmul.mubr.f32.gmra.mrb[120].mxu1 %v952_v53  ;;  %v1040_v53 = vld [vmem:[%s12751_s3 + $0xbe0] sm:$0xff] }
 0x28d   :  { %1670 = vmatprep.mubr.f32.mxu1 %v957_v54  ;;  %v567_v28 = vpop.f32.mrb[116].mxu0 }
 0x28e   :  { %v568_v30 = vadd.f32 %v9385_v52, %v567_v28  ;;  %v569_v31 = vpop.f32.mrb[117].mxu0  ;;  %v1080_v28 = vld [vmem:[%s12751_s3 + $0xd20] sm:$0xff] }
 0x28f   :  { %v1084_v31 = vld [vmem:[%s12751_s3 + $0xd40] sm:$0xff] }
 0x290   :  { %1671 = vmatmul.mubr.f32.gmra.mrb[122].mxu1 %v956_v55  ;;  %v654_v35 = vmax.f32 %v568_v30, 0.0  ;;  %v1045_v55 = vld [vmem:[%s12751_s3 + $0xc08] sm:$0xff] }
 0x291   :  { %1675 = vmatprep.mubr.f32.mxu1 %v961_v56  ;;  %v572_v33 = vpop.f32.mrb[118].mxu0 }
 0x292   :  { %v573_v36 = vadd.f32 %v9385_v52, %v572_v33  ;;  %v574_v15 = vpop.f32.mrb[119].mxu0  ;;  %v1093_v33 = vld [vmem:[%s12751_s3 + $0xd88] sm:$0xff] }
 0x293   :  { %v1101_v15 = vld [vmem:[%s12751_s3 + $0xdc8] sm:$0xff] }
 0x294   :  { %1676 = vmatmul.mubr.f32.gmra.mrb[124].mxu1 %v960_v57  ;;  %v655_v38 = vmax.f32 %v573_v36, 0.0  ;;  %v1096_v36 = vld [vmem:[%s12751_s3 + $0xda0] sm:$0xff] }
 0x295   :  { %1680 = vmatprep.mubr.f32.mxu1 %v965_v58  ;;  %v1044_v58 = vld [vmem:[%s12751_s3 + $0xc00] sm:$0xff] }
 0x296   :  { %v7893_v40 = vpack.c.bf16 %v655_v38, %v654_v35  ;;  %v1097_v35 = vld [vmem:[%s12751_s3 + $0xda8] sm:$0xff] }
 0x297   :  { %v1105_v38 = vld [vmem:[%s12751_s3 + $0xde8] sm:$0xff] }
 0x298   :  { %1681 = vmatmul.mubr.f32.gmra.mrb[126].mxu1 %v964_v59 }
 0x299   :  { %1685 = vmatprep.mubr.f32.mxu1 %v969_v60  ;;  %7894 = vmatpush1.bf16.msra.mxu1 %v7893_v40  ;;  %v1049_v60 = vld [vmem:[%s12751_s3 + $0xc28] sm:$0xff] }
 0x29a   :  { %7895 = vmatprep.subr.bf16.mxu1 %v8460_v0  ;;  %v1109_v40 = vld [vmem:[%s12751_s3 + $0xe08] sm:$0xff] }
 0x29c   :  { %1686 = vmatmul.mubr.f32.gmra.mrb[128].mxu1 %v968_v61 }
 0x29d   :  { %1690 = vmatprep.mubr.f32.mxu1 %v973_v62 }
 0x29e   :  { %v577_v54 = vpop.f32.mrb[120].mxu0 }
 0x29f   :  { %v578_v56 = vadd.f32 %v9385_v52, %v577_v54  ;;  %v579_v57 = vpop.f32.mrb[121].mxu0  ;;  %v673_v54 = vld [vmem:[%s12751_s3 + $0x68] sm:$0xff] }
 0x2a0   :  { %1691 = vmatmul.mubr.f32.gmra.mrb[130].mxu1 %v972_v63  ;;  %v1125_v57 = vld [vmem:[%s12751_s3 + $0xe88] sm:$0xff] }
 0x2a1   :  { %1695 = vmatprep.mubr.f32.mxu1 %v977_v1  ;;  %v656_v61 = vmax.f32 %v578_v56, 0.0  ;;  %v1120_v56 = vld [vmem:[%s12751_s3 + $0xe60] sm:$0xff] }
 0x2a2   :  { %v582_v59 = vpop.f32.mrb[122].mxu0 }
 0x2a3   :  { %v583_v62 = vadd.f32 %v9385_v52, %v582_v59  ;;  %v584_v63 = vpop.f32.mrb[123].mxu0  ;;  %v676_v59 = vld [vmem:[%s12751_s3 + $0x80] sm:$0xff] }
 0x2a4   :  { %1696 = vmatmul.mubr.f32.gmra.mrb[132].mxu1 %v976_v3  ;;  %v1053_v3 = vld [vmem:[%s12751_s3 + $0xc48] sm:$0xff]  ;;  %v680_v63 = vld [vmem:[%s12751_s3 + $0xa0] sm:$0xff] }
 0x2a5   :  { %1700 = vmatprep.mubr.f32.mxu1 %v981_v6  ;;  %v657_v1 = vmax.f32 %v583_v62, 0.0  ;;  %v1057_v6 = vld [vmem:[%s12751_s3 + $0xc68] sm:$0xff] }
 0x2a6   :  { %v681_v62 = vld [vmem:[%s12751_s3 + $0xa8] sm:$0xff] }
 0x2a7   :  { %v7896_v4 = vpack.c.bf16 %v657_v1, %v656_v61  ;;  %v1129_v61 = vld [vmem:[%s12751_s3 + $0xea8] sm:$0xff]  ;;  %v1128_v1 = vld [vmem:[%s12751_s3 + $0xea0] sm:$0xff] }
 0x2a8   :  { %1701 = vmatmul.mubr.f32.gmra.mrb[134].mxu1 %v980_v11  ;;  %v1064_v11 = vld [vmem:[%s12751_s3 + $0xca0] sm:$0xff] }
 0x2a9   :  { %1705 = vmatprep.mubr.f32.mxu1 %v985_v13  ;;  %7897 = vmatpush1.bf16.msra.mxu1 %v7896_v4  ;;  %v1068_v13 = vld [vmem:[%s12751_s3 + $0xcc0] sm:$0xff] }
 0x2aa   :  { %7898 = vmatprep.subr.bf16.mxu1 %v8460_v0  ;;  %v684_v4 = vld [vmem:[%s12751_s3 + $0xc0] sm:$0xff] }
 0x2ac   :  { %1706 = vmatmul.mubr.f32.gmra.mrb[136].mxu1 %v984_v16  ;;  %v1072_v16 = vld [vmem:[%s12751_s3 + $0xce0] sm:$0xff] }
 0x2ad   :  { %1710 = vmatprep.mubr.f32.mxu1 %v989_v17 }
 0x2b0   :  { %1711 = vmatmul.mubr.f32.gmra.mrb[138].mxu1 %v988_v18  ;;  %v1077_v18 = vld [vmem:[%s12751_s3 + $0xd08] sm:$0xff] }
 0x2b1   :  { %1715 = vmatprep.mubr.f32.mxu1 %v993_v19 }
 0x2b4   :  { %1716 = vmatmul.mubr.f32.gmra.mrb[140].mxu1 %v992_v20 }
 0x2b5   :  { %1720 = vmatprep.mubr.f32.mxu1 %v997_v21  ;;  %v1076_v21 = vld [vmem:[%s12751_s3 + $0xd00] sm:$0xff] }
 0x2b8   :  { %1721 = vmatmul.mubr.f32.gmra.mrb[142].mxu1 %v996_v22 }
 0x2b9   :  { %1725 = vmatprep.mubr.f32.mxu1 %v1001_v23  ;;  %v1081_v23 = vld [vmem:[%s12751_s3 + $0xd28] sm:$0xff] }
 0x2bc   :  { %1726 = vmatmul.mubr.f32.gmra.mrb[144].mxu1 %v1000_v24 }
 0x2bd   :  { %1730 = vmatprep.mubr.f32.mxu1 %v1005_v25 }
 0x2be   :  { %v587_v17 = vpop.f32.mrb[124].mxu0 }
 0x2bf   :  { %v588_v19 = vadd.f32 %v9385_v52, %v587_v17  ;;  %v589_v20 = vpop.f32.mrb[125].mxu0  ;;  %v696_v17 = vld [vmem:[%s12751_s3 + $0x120] sm:$0xff] }
 0x2c0   :  { %1731 = vmatmul.mubr.f32.gmra.mrb[146].mxu1 %v1004_v26  ;;  %v701_v20 = vld [vmem:[%s12751_s3 + $0x148] sm:$0xff] }
 0x2c1   :  { %1735 = vmatprep.mubr.f32.mxu1 %v1009_v27  ;;  %v658_v24 = vmax.f32 %v588_v19, 0.0  ;;  %v1149_v19 = vld [vmem:[%s12751_s3 + $0xf48] sm:$0xff] }
 0x2c2   :  { %v592_v22 = vpop.f32.mrb[126].mxu0 }
 0x2c3   :  { %v593_v25 = vadd.f32 %v9385_v52, %v592_v22  ;;  %v594_v26 = vpop.f32.mrb[127].mxu0  ;;  %v1089_v52 = vld [vmem:[%s12751_s3 + $0xd68] sm:$0xff]  ;;  %v1148_v22 = vld [vmem:[%s12751_s3 + $0xf40] sm:$0xff] }
 0x2c4   :  { %1736 = vmatmul.mubr.f32.gmra.mrb[148].mxu1 %v1008_v29  ;;  %v1085_v29 = vld [vmem:[%s12751_s3 + $0xd48] sm:$0xff]  ;;  %v1152_v26 = vld [vmem:[%s12751_s3 + $0xf60] sm:$0xff] }
 0x2c5   :  { %1740 = vmatprep.mubr.f32.mxu1 %v1013_v32  ;;  %v659_v27 = vmax.f32 %v593_v25, 0.0  ;;  %v1088_v32 = vld [vmem:[%s12751_s3 + $0xd60] sm:$0xff] }
 0x2c6   :  { %v704_v25 = vld [vmem:[%s12751_s3 + $0x160] sm:$0xff] }
 0x2c7   :  { %v7899_v30 = vpack.c.bf16 %v659_v27, %v658_v24  ;;  %v705_v24 = vld [vmem:[%s12751_s3 + $0x168] sm:$0xff] }
 0x2c8   :  { %1741 = vmatmul.mubr.f32.gmra.mrb[150].mxu1 %v1012_v34  ;;  %v1092_v34 = vld [vmem:[%s12751_s3 + $0xd80] sm:$0xff]  ;;  %v1157_v27 = vld [vmem:[%s12751_s3 + $0xf88] sm:$0xff] }
 0x2c9   :  { %1745 = vmatprep.mubr.f32.mxu1 %v1017_v37  ;;  %7900 = vmatpush1.bf16.msra.mxu1 %v7899_v30  ;;  %v1100_v37 = vld [vmem:[%s12751_s3 + $0xdc0] sm:$0xff] }
 0x2ca   :  { %v1156_v30 = vld [vmem:[%s12751_s3 + $0xf80] sm:$0xff] }
 0x2cc   :  { %1746 = vmatmul.mubr.f32.gmra.mrb[152].mxu1 %v1016_v39  ;;  %v1104_v39 = vld [vmem:[%s12751_s3 + $0xde0] sm:$0xff] }
 0x2cd   :  { %1750 = vmatprep.mubr.f32.mxu1 %v1021_v41  ;;  %v661_v41 = vld [vmem:[%s12751_s3 + $0x8] sm:$0xff] }
 0x2ce   :  { %1300 = vmatprep.mubr.f32.mxu0 %v661_v41  ;;  %v1185_v41 = vld [vmem:[%s12751_s3 + $0x1068] sm:$0xff] }
 0x2d0   :  { %1751 = vmatmul.mubr.f32.gmra.mrb[154].mxu1 %v1020_v42  ;;  %v660_v42 = vld [vmem:[%s12751_s3] sm:$0xff] }
 0x2d1   :  { %1755 = vmatprep.mubr.f32.mxu1 %v1025_v43  ;;  %v1108_v43 = vld [vmem:[%s12751_s3 + $0xe00] sm:$0xff]  ;;  %1301 = vmatmul.mubr.f32.vlgmr.msra.gmra.mrb[128].mxu0 %v660_v42 }
 0x2d2   :  { %v1184_v42 = vld [vmem:[%s12751_s3 + $0x1060] sm:$0xff] }
 0x2d4   :  { %1756 = vmatmul.mubr.f32.gmra.mrb[156].mxu1 %v1024_v44  ;;  %v1113_v44 = vld [vmem:[%s12751_s3 + $0xe28] sm:$0xff] }
 0x2d5   :  { %1760 = vmatprep.mubr.f32.mxu1 %v1029_v45  ;;  %v665_v45 = vld [vmem:[%s12751_s3 + $0x28] sm:$0xff] }
 0x2d6   :  { %1305 = vmatprep.mubr.f32.mxu0 %v665_v45  ;;  %v1193_v45 = vld [vmem:[%s12751_s3 + $0x10a8] sm:$0xff] }
 0x2d8   :  { %1761 = vmatmul.mubr.f32.gmra.mrb[158].mxu1 %v1028_v46  ;;  %v664_v46 = vld [vmem:[%s12751_s3 + $0x20] sm:$0xff] }
 0x2d9   :  { %1765 = vmatprep.mubr.f32.mxu1 %v1033_v47  ;;  %v1112_v47 = vld [vmem:[%s12751_s3 + $0xe20] sm:$0xff]  ;;  %1306 = vmatmul.mubr.f32.gmra.mrb[130].mxu0 %v664_v46 }
 0x2da   :  { %v1192_v46 = vld [vmem:[%s12751_s3 + $0x10a0] sm:$0xff] }
 0x2dc   :  { %1766 = vmatmul.mubr.f32.gmra.mrb[160].mxu1 %v1032_v48  ;;  %v1117_v48 = vld [vmem:[%s12751_s3 + $0xe48] sm:$0xff] }
 0x2dd   :  { %1770 = vmatprep.mubr.f32.mxu1 %v1037_v49  ;;  %v669_v49 = vld [vmem:[%s12751_s3 + $0x48] sm:$0xff] }
 0x2de   :  { %1310 = vmatprep.mubr.f32.mxu0 %v669_v49  ;;  %v1201_v49 = vld [vmem:[%s12751_s3 + $0x10e8] sm:$0xff] }
 0x2e0   :  { %1771 = vmatmul.mubr.f32.gmra.mrb[162].mxu1 %v1036_v50  ;;  %v668_v50 = vld [vmem:[%s12751_s3 + $0x40] sm:$0xff] }
 0x2e1   :  { %1775 = vmatprep.mubr.f32.mxu1 %v1041_v51  ;;  %v1116_v51 = vld [vmem:[%s12751_s3 + $0xe40] sm:$0xff]  ;;  %1311 = vmatmul.mubr.f32.gmra.mrb[132].mxu0 %v668_v50 }
 0x2e2   :  { %1315 = vmatprep.mubr.f32.mxu0 %v673_v54  ;;  %v1200_v50 = vld [vmem:[%s12751_s3 + $0x10e0] sm:$0xff]  ;;  %v1209_v54 = vld [vmem:[%s12751_s3 + $0x1128] sm:$0xff] }
 0x2e4   :  { %1776 = vmatmul.mubr.f32.gmra.mrb[164].mxu1 %v1040_v53  ;;  %v1121_v53 = vld [vmem:[%s12751_s3 + $0xe68] sm:$0xff] }
 0x2e5   :  { %1780 = vmatprep.mubr.f32.mxu1 %v1045_v55  ;;  %v672_v55 = vld [vmem:[%s12751_s3 + $0x60] sm:$0xff] }
 0x2e6   :  { %1316 = vmatmul.mubr.f32.gmra.mrb[134].mxu0 %v672_v55  ;;  %v1208_v55 = vld [vmem:[%s12751_s3 + $0x1120] sm:$0xff] }
 0x2e8   :  { %1781 = vmatmul.mubr.f32.gmra.mrb[166].mxu1 %v1044_v58  ;;  %v677_v58 = vld [vmem:[%s12751_s3 + $0x88] sm:$0xff] }
 0x2e9   :  { %1785 = vmatprep.mubr.f32.mxu1 %v1049_v60  ;;  %v1124_v60 = vld [vmem:[%s12751_s3 + $0xe80] sm:$0xff]  ;;  %1320 = vmatprep.mubr.f32.mxu0 %v677_v58  ;;  %v1217_v58 = vld [vmem:[%s12751_s3 + $0x1168] sm:$0xff] }
 0x2ea   :  { %1321 = vmatmul.mubr.f32.gmra.mrb[136].mxu0 %v676_v59  ;;  %v1216_v59 = vld [vmem:[%s12751_s3 + $0x1160] sm:$0xff] }
 0x2eb   :  { %1325 = vmatprep.mubr.f32.mxu0 %v681_v62  ;;  %v1225_v62 = vld [vmem:[%s12751_s3 + $0x11a8] sm:$0xff] }
 0x2ec   :  { %1786 = vmatmul.mubr.f32.gmra.mrb[168].mxu1 %v1048_v2  ;;  %v1133_v2 = vld [vmem:[%s12751_s3 + $0xec8] sm:$0xff] }
 0x2ed   :  { %1790 = vmatprep.mubr.f32.mxu1 %v1053_v3  ;;  %v685_v3 = vld [vmem:[%s12751_s3 + $0xc8] sm:$0xff] }
 0x2ee   :  { %1326 = vmatmul.mubr.f32.gmra.mrb[138].mxu0 %v680_v63  ;;  %v1224_v63 = vld [vmem:[%s12751_s3 + $0x11a0] sm:$0xff] }
 0x2ef   :  { %1330 = vmatprep.mubr.f32.mxu0 %v685_v3 }
 0x2f0   :  { %1791 = vmatmul.mubr.f32.gmra.mrb[170].mxu1 %v1052_v5  ;;  %v1132_v5 = vld [vmem:[%s12751_s3 + $0xec0] sm:$0xff] }
 0x2f1   :  { %1795 = vmatprep.mubr.f32.mxu1 %v1057_v6  ;;  %v1137_v6 = vld [vmem:[%s12751_s3 + $0xee8] sm:$0xff] }
 0x2f2   :  { %1331 = vmatmul.mubr.f32.gmra.mrb[140].mxu0 %v684_v4  ;;  %v1228_v4 = vld [vmem:[%s12751_s3 + $0x11c0] sm:$0xff] }
 0x2f4   :  { %1796 = vmatmul.mubr.f32.gmra.mrb[172].mxu1 %v1056_v7  ;;  %v689_v7 = vld [vmem:[%s12751_s3 + $0xe8] sm:$0xff] }
 0x2f5   :  { %1800 = vmatprep.mubr.f32.mxu1 %v1061_v8  ;;  %v688_v8 = vld [vmem:[%s12751_s3 + $0xe0] sm:$0xff]  ;;  %1335 = vmatprep.mubr.f32.mxu0 %v689_v7 }
 0x2f6   :  { %1336 = vmatmul.mubr.f32.gmra.mrb[142].mxu0 %v688_v8  ;;  %v1232_v8 = vld [vmem:[%s12751_s3 + $0x11e0] sm:$0xff] }
 0x2f8   :  { %1801 = vmatmul.mubr.f32.gmra.mrb[174].mxu1 %v1060_v9  ;;  %v1136_v9 = vld [vmem:[%s12751_s3 + $0xee0] sm:$0xff] }
 0x2f9   :  { %1805 = vmatprep.mubr.f32.mxu1 %v1065_v10  ;;  %v1141_v10 = vld [vmem:[%s12751_s3 + $0xf08] sm:$0xff] }
 0x2fc   :  { %1806 = vmatmul.mubr.f32.gmra.mrb[176].mxu1 %v1064_v11  ;;  %v693_v11 = vld [vmem:[%s12751_s3 + $0x108] sm:$0xff] }
 0x2fd   :  { %1810 = vmatprep.mubr.f32.mxu1 %v1069_v12  ;;  %v692_v12 = vld [vmem:[%s12751_s3 + $0x100] sm:$0xff]  ;;  %1340 = vmatprep.mubr.f32.mxu0 %v693_v11 }
 0x2fe   :  { %1341 = vmatmul.mubr.f32.gmra.mrb[144].mxu0 %v692_v12  ;;  %v662_v12 = vld [vmem:[%s12751_s3 + $0x10] sm:$0xff] }
 0x300   :  { %1811 = vmatmul.mubr.f32.gmra.mrb[178].mxu1 %v1068_v13  ;;  %v1140_v13 = vld [vmem:[%s12751_s3 + $0xf00] sm:$0xff] }
 0x301   :  { %1815 = vmatprep.mubr.f32.mxu1 %v1073_v14  ;;  %v1145_v14 = vld [vmem:[%s12751_s3 + $0xf28] sm:$0xff] }
 0x304   :  { %1816 = vmatmul.mubr.f32.gmra.mrb[180].mxu1 %v1072_v16  ;;  %v697_v16 = vld [vmem:[%s12751_s3 + $0x128] sm:$0xff] }
 0x305   :  { %1820 = vmatprep.mubr.f32.mxu1 %v1077_v18  ;;  %v1144_v18 = vld [vmem:[%s12751_s3 + $0xf20] sm:$0xff]  ;;  %1345 = vmatprep.mubr.f32.mxu0 %v697_v16 }
 0x306   :  { %1346 = vmatmul.mubr.f32.gmra.mrb[146].mxu0 %v696_v17  ;;  %v666_v17 = vld [vmem:[%s12751_s3 + $0x30] sm:$0xff] }
 0x307   :  { %1350 = vmatprep.mubr.f32.mxu0 %v701_v20 }
 0x308   :  { %1821 = vmatmul.mubr.f32.gmra.mrb[182].mxu1 %v1076_v21  ;;  %v700_v21 = vld [vmem:[%s12751_s3 + $0x140] sm:$0xff] }
 0x309   :  { %1825 = vmatprep.mubr.f32.mxu1 %v1081_v23  ;;  %v1153_v23 = vld [vmem:[%s12751_s3 + $0xf68] sm:$0xff] }
 0x30a   :  { %1351 = vmatmul.mubr.f32.gmra.mrb[148].mxu0 %v700_v21  ;;  %v670_v21 = vld [vmem:[%s12751_s3 + $0x50] sm:$0xff] }
 0x30b   :  { %1355 = vmatprep.mubr.f32.mxu0 %v705_v24 }
 0x30c   :  { %1826 = vmatmul.mubr.f32.gmra.mrb[184].mxu1 %v1080_v28  ;;  %v709_v28 = vld [vmem:[%s12751_s3 + $0x188] sm:$0xff] }
 0x30d   :  { %1830 = vmatprep.mubr.f32.mxu1 %v1085_v29  ;;  %v708_v29 = vld [vmem:[%s12751_s3 + $0x180] sm:$0xff] }
 0x30e   :  { %1356 = vmatmul.mubr.f32.gmra.mrb[150].mxu0 %v704_v25  ;;  %v674_v25 = vld [vmem:[%s12751_s3 + $0x70] sm:$0xff] }
 0x30f   :  { %1360 = vmatprep.mubr.f32.mxu0 %v709_v28 }
 0x310   :  { %1831 = vmatmul.mubr.f32.gmra.mrb[186].mxu1 %v1084_v31  ;;  %v1161_v31 = vld [vmem:[%s12751_s3 + $0xfa8] sm:$0xff] }
 0x311   :  { %1835 = vmatprep.mubr.f32.mxu1 %v1089_v52  ;;  %v1160_v52 = vld [vmem:[%s12751_s3 + $0xfa0] sm:$0xff] }
 0x312   :  { %1361 = vmatmul.mubr.f32.gmra.mrb[152].mxu0 %v708_v29  ;;  %v678_v29 = vld [vmem:[%s12751_s3 + $0x90] sm:$0xff] }
 0x314   :  { %1836 = vmatmul.mubr.f32.gmra.mrb[188].mxu1 %v1088_v32  ;;  %v1165_v32 = vld [vmem:[%s12751_s3 + $0xfc8] sm:$0xff] }
 0x315   :  { %1840 = vmatprep.mubr.f32.mxu1 %v1093_v33  ;;  %v1164_v33 = vld [vmem:[%s12751_s3 + $0xfc0] sm:$0xff] }
 0x318   :  { %1841 = vmatmul.mubr.f32.gmra.mrb[190].mxu1 %v1092_v34  ;;  %v1169_v34 = vld [vmem:[%s12751_s3 + $0xfe8] sm:$0xff] }
 0x319   :  { %1845 = vmatprep.mubr.f32.mxu1 %v1097_v35  ;;  %v1168_v35 = vld [vmem:[%s12751_s3 + $0xfe0] sm:$0xff] }
 0x31c   :  { %1846 = vmatmul.mubr.f32.gmra.mrb[192].mxu1 %v1096_v36  ;;  %v1173_v36 = vld [vmem:[%s12751_s3 + $0x1008] sm:$0xff] }
 0x31d   :  { %1850 = vmatprep.mubr.f32.mxu1 %v1101_v15  ;;  %v1172_v15 = vld [vmem:[%s12751_s3 + $0x1000] sm:$0xff] }
 0x320   :  { %1851 = vmatmul.mubr.f32.gmra.mrb[194].mxu1 %v1100_v37  ;;  %v1177_v37 = vld [vmem:[%s12751_s3 + $0x1028] sm:$0xff] }
 0x321   :  { %1855 = vmatprep.mubr.f32.mxu1 %v1105_v38  ;;  %v1176_v38 = vld [vmem:[%s12751_s3 + $0x1020] sm:$0xff] }
 0x324   :  { %1856 = vmatmul.mubr.f32.gmra.mrb[196].mxu1 %v1104_v39  ;;  %v1181_v39 = vld [vmem:[%s12751_s3 + $0x1048] sm:$0xff] }
 0x325   :  { %1860 = vmatprep.mubr.f32.mxu1 %v1109_v40  ;;  %v1180_v40 = vld [vmem:[%s12751_s3 + $0x1040] sm:$0xff] }
 0x328   :  { %1861 = vmatmul.mubr.f32.gmra.mrb[198].mxu1 %v1108_v43  ;;  %v1189_v43 = vld [vmem:[%s12751_s3 + $0x1088] sm:$0xff] }
 0x329   :  { %1865 = vmatprep.mubr.f32.mxu1 %v1113_v44  ;;  %v1188_v44 = vld [vmem:[%s12751_s3 + $0x1080] sm:$0xff] }
 0x32c   :  { %1866 = vmatmul.mubr.f32.gmra.mrb[200].mxu1 %v1112_v47  ;;  %v1197_v47 = vld [vmem:[%s12751_s3 + $0x10c8] sm:$0xff] }
 0x32d   :  { %1870 = vmatprep.mubr.f32.mxu1 %v1117_v48  ;;  %v1196_v48 = vld [vmem:[%s12751_s3 + $0x10c0] sm:$0xff] }
 0x330   :  { %1871 = vmatmul.mubr.f32.gmra.mrb[202].mxu1 %v1116_v51  ;;  %v1205_v51 = vld [vmem:[%s12751_s3 + $0x1108] sm:$0xff] }
 0x331   :  { %1875 = vmatprep.mubr.f32.mxu1 %v1121_v53  ;;  %v1204_v53 = vld [vmem:[%s12751_s3 + $0x1100] sm:$0xff] }
 0x334   :  { %1876 = vmatmul.mubr.f32.gmra.mrb[204].mxu1 %v1120_v56  ;;  %v1213_v56 = vld [vmem:[%s12751_s3 + $0x1148] sm:$0xff] }
 0x335   :  { %1880 = vmatprep.mubr.f32.mxu1 %v1125_v57  ;;  %v1212_v57 = vld [vmem:[%s12751_s3 + $0x1140] sm:$0xff] }
 0x338   :  { %1881 = vmatmul.mubr.f32.gmra.mrb[206].mxu1 %v1124_v60  ;;  %v1221_v60 = vld [vmem:[%s12751_s3 + $0x1188] sm:$0xff] }
 0x339   :  { %1885 = vmatprep.mubr.f32.mxu1 %v1129_v61  ;;  %v1220_v61 = vld [vmem:[%s12751_s3 + $0x1180] sm:$0xff] }
 0x33c   :  { %1886 = vmatmul.mubr.f32.gmra.mrb[208].mxu1 %v1128_v1  ;;  %v1229_v1 = vld [vmem:[%s12751_s3 + $0x11c8] sm:$0xff] }
 0x33d   :  { %1890 = vmatprep.mubr.f32.mxu1 %v1133_v2 }
 0x340   :  { %1891 = vmatmul.mubr.f32.gmra.mrb[210].mxu1 %v1132_v5  ;;  %v1233_v5 = vld [vmem:[%s12751_s3 + $0x11e8] sm:$0xff] }
 0x341   :  { %1895 = vmatprep.mubr.f32.mxu1 %v1137_v6 }
 0x344   :  { %1896 = vmatmul.mubr.f32.gmra.mrb[212].mxu1 %v1136_v9  ;;  %v663_v9 = vld [vmem:[%s12751_s3 + $0x18] sm:$0xff] }
 0x345   :  { %1900 = vmatprep.mubr.f32.mxu1 %v1141_v10 }
 0x348   :  { %1901 = vmatmul.mubr.f32.gmra.mrb[214].mxu1 %v1140_v13  ;;  %v667_v13 = vld [vmem:[%s12751_s3 + $0x38] sm:$0xff] }
 0x349   :  { %1905 = vmatprep.mubr.f32.mxu1 %v1145_v14 }
 0x34c   :  { %1906 = vmatmul.mubr.f32.gmra.mrb[216].mxu1 %v1144_v18  ;;  %v671_v18 = vld [vmem:[%s12751_s3 + $0x58] sm:$0xff] }
 0x34d   :  { %1910 = vmatprep.mubr.f32.mxu1 %v1149_v19 }
 0x350   :  { %1911 = vmatmul.mubr.f32.gmra.mrb[218].mxu1 %v1148_v22  ;;  %v675_v22 = vld [vmem:[%s12751_s3 + $0x78] sm:$0xff] }
 0x351   :  { %1915 = vmatprep.mubr.f32.mxu1 %v1153_v23 }
 0x354   :  { %1916 = vmatmul.mubr.f32.gmra.mrb[220].mxu1 %v1152_v26  ;;  %v679_v26 = vld [vmem:[%s12751_s3 + $0x98] sm:$0xff] }
 0x355   :  { %1920 = vmatprep.mubr.f32.mxu1 %v1157_v27 }
 0x358   :  { %1921 = vmatmul.mubr.f32.gmra.mrb[222].mxu1 %v1156_v30  ;;  %v683_v30 = vld [vmem:[%s12751_s3 + $0xb8] sm:$0xff] }
 0x359   :  { %1925 = vmatprep.mubr.f32.mxu1 %v1161_v31 }
 0x35c   :  { %1926 = vmatmul.mubr.f32.gmra.mrb[224].mxu1 %v1160_v52 }
 0x35d   :  { %1930 = vmatprep.mubr.f32.mxu1 %v1165_v32  ;;  %v682_v32 = vld [vmem:[%s12751_s3 + $0xb0] sm:$0xff] }
 0x360   :  { %1931 = vmatmul.mubr.f32.gmra.mrb[226].mxu1 %v1164_v33  ;;  %v687_v33 = vld [vmem:[%s12751_s3 + $0xd8] sm:$0xff] }
 0x361   :  { %1935 = vmatprep.mubr.f32.mxu1 %v1169_v34 }
 0x364   :  { %1936 = vmatmul.mubr.f32.gmra.mrb[228].mxu1 %v1168_v35 }
 0x365   :  { %1940 = vmatprep.mubr.f32.mxu1 %v1173_v36  ;;  %v686_v36 = vld [vmem:[%s12751_s3 + $0xd0] sm:$0xff] }
 0x368   :  { %1941 = vmatmul.mubr.f32.gmra.mrb[230].mxu1 %v1172_v15  ;;  %v691_v15 = vld [vmem:[%s12751_s3 + $0xf8] sm:$0xff] }
 0x369   :  { %1945 = vmatprep.mubr.f32.mxu1 %v1177_v37 }
 0x36c   :  { %1946 = vmatmul.mubr.f32.gmra.mrb[232].mxu1 %v1176_v38 }
 0x36d   :  { %1950 = vmatprep.mubr.f32.mxu1 %v1181_v39  ;;  %v690_v39 = vld [vmem:[%s12751_s3 + $0xf0] sm:$0xff] }
 0x370   :  { %1951 = vmatmul.mubr.f32.gmra.mrb[234].mxu1 %v1180_v40  ;;  %v695_v40 = vld [vmem:[%s12751_s3 + $0x118] sm:$0xff] }
 0x371   :  { %1955 = vmatprep.mubr.f32.mxu1 %v1185_v41 }
 0x374   :  { %1956 = vmatmul.mubr.f32.gmra.mrb[236].mxu1 %v1184_v42 }
 0x375   :  { %1960 = vmatprep.mubr.f32.mxu1 %v1189_v43  ;;  %v694_v43 = vld [vmem:[%s12751_s3 + $0x110] sm:$0xff] }
 0x378   :  { %1961 = vmatmul.mubr.f32.gmra.mrb[238].mxu1 %v1188_v44  ;;  %v699_v44 = vld [vmem:[%s12751_s3 + $0x138] sm:$0xff] }
 0x379   :  { %1965 = vmatprep.mubr.f32.mxu1 %v1193_v45 }
 0x37c   :  { %1966 = vmatmul.mubr.f32.gmra.mrb[240].mxu1 %v1192_v46 }
 0x37d   :  { %1970 = vmatprep.mubr.f32.mxu1 %v1197_v47  ;;  %v698_v47 = vld [vmem:[%s12751_s3 + $0x130] sm:$0xff] }
 0x380   :  { %1971 = vmatmul.mubr.f32.gmra.mrb[242].mxu1 %v1196_v48  ;;  %v703_v48 = vld [vmem:[%s12751_s3 + $0x158] sm:$0xff] }
 0x381   :  { %1975 = vmatprep.mubr.f32.mxu1 %v1201_v49 }
 0x384   :  { %1976 = vmatmul.mubr.f32.gmra.mrb[244].mxu1 %v1200_v50 }
 0x385   :  { %1980 = vmatprep.mubr.f32.mxu1 %v1205_v51  ;;  %v702_v51 = vld [vmem:[%s12751_s3 + $0x150] sm:$0xff] }
 0x388   :  { %1981 = vmatmul.mubr.f32.gmra.mrb[246].mxu1 %v1204_v53  ;;  %v707_v53 = vld [vmem:[%s12751_s3 + $0x178] sm:$0xff] }
 0x389   :  { %1985 = vmatprep.mubr.f32.mxu1 %v1209_v54 }
 0x38c   :  { %1986 = vmatmul.mubr.f32.gmra.mrb[248].mxu1 %v1208_v55 }
 0x38d   :  { %1990 = vmatprep.mubr.f32.mxu1 %v1213_v56  ;;  %v706_v56 = vld [vmem:[%s12751_s3 + $0x170] sm:$0xff] }
 0x390   :  { %1991 = vmatmul.mubr.f32.gmra.mrb[250].mxu1 %v1212_v57  ;;  %v711_v57 = vld [vmem:[%s12751_s3 + $0x198] sm:$0xff] }
 0x391   :  { %1995 = vmatprep.mubr.f32.mxu1 %v1217_v58 }
 0x394   :  { %1996 = vmatmul.mubr.f32.gmra.mrb[252].mxu1 %v1216_v59 }
 0x395   :  { %2000 = vmatprep.mubr.f32.mxu1 %v1221_v60  ;;  %v710_v60 = vld [vmem:[%s12751_s3 + $0x190] sm:$0xff] }
 0x398   :  { %2001 = vmatmul.mubr.f32.gmra.mrb[254].mxu1 %v1220_v61  ;;  %v715_v61 = vld [vmem:[%s12751_s3 + $0x1b8] sm:$0xff] }
 0x399   :  { %2005 = vmatprep.mubr.f32.mxu1 %v1225_v62 }
 0x39b   :  { %v10007_v2 = vpop.f32.mrb[150].mxu1 }
 0x39c   :  { %v1744_v3 = vpop.f32.mrb[151].mxu1  ;;  %2006 = vmatmul.mubr.f32.gmra.mrb[150].mxu1 %v1224_v63 }
 0x39d   :  { %2010 = vmatprep.mubr.f32.mxu1 %v1229_v1  ;;  %v714_v1 = vld [vmem:[%s12751_s3 + $0x1b0] sm:$0xff]  ;;  %v719_v3 = vld [vmem:[%s12751_s3 + $0x1d8] sm:$0xff] }
 0x39f   :  { %v10015_v6 = vpop.f32.mrb[152].mxu1 }
 0x3a0   :  { %v1749_v7 = vpop.f32.mrb[153].mxu1  ;;  %2011 = vmatmul.mubr.f32.gmra.mrb[152].mxu1 %v1228_v4  ;;  %v718_v4 = vld [vmem:[%s12751_s3 + $0x1d0] sm:$0xff] }
 0x3a1   :  { %2015 = vmatprep.mubr.f32.mxu1 %v1233_v5  ;;  %v723_v5 = vld [vmem:[%s12751_s3 + $0x1f8] sm:$0xff]  ;;  %v722_v7 = vld [vmem:[%s12751_s3 + $0x1f0] sm:$0xff] }
 0x3a3   :  { %v10023_v10 = vpop.f32.mrb[154].mxu1 }
 0x3a4   :  { %v1754_v11 = vpop.f32.mrb[155].mxu1  ;;  %2016 = vmatmul.mubr.f32.gmra.mrb[154].mxu1 %v1232_v8  ;;  %v727_v8 = vld [vmem:[%s12751_s3 + $0x218] sm:$0xff] }
 0x3a5   :  { %2085 = vmatprep.mubr.f32.mxu1 %v663_v9  ;;  %v726_v9 = vld [vmem:[%s12751_s3 + $0x210] sm:$0xff]  ;;  %v731_v11 = vld [vmem:[%s12751_s3 + $0x238] sm:$0xff] }
 0x3a7   :  { %v10031_v14 = vpop.f32.mrb[156].mxu1 }
 0x3a8   :  { %v1759_v16 = vpop.f32.mrb[157].mxu1  ;;  %2086 = vmatmul.mubr.f32.vlgmr.msra.gmra.mrb[156].mxu1 %v662_v12  ;;  %v730_v12 = vld [vmem:[%s12751_s3 + $0x230] sm:$0xff] }
 0x3a9   :  { %2090 = vmatprep.mubr.f32.mxu1 %v667_v13  ;;  %v735_v13 = vld [vmem:[%s12751_s3 + $0x258] sm:$0xff]  ;;  %v734_v16 = vld [vmem:[%s12751_s3 + $0x250] sm:$0xff] }
 0x3ab   :  { %v10039_v19 = vpop.f32.mrb[158].mxu1 }
 0x3ac   :  { %v1764_v20 = vpop.f32.mrb[159].mxu1  ;;  %2091 = vmatmul.mubr.f32.gmra.mrb[158].mxu1 %v666_v17  ;;  %v739_v17 = vld [vmem:[%s12751_s3 + $0x278] sm:$0xff] }
 0x3ad   :  { %2095 = vmatprep.mubr.f32.mxu1 %v671_v18  ;;  %v738_v18 = vld [vmem:[%s12751_s3 + $0x270] sm:$0xff]  ;;  %v743_v20 = vld [vmem:[%s12751_s3 + $0x298] sm:$0xff] }
 0x3af   :  { %v10047_v23 = vpop.f32.mrb[160].mxu1 }
 0x3b0   :  { %v1769_v24 = vpop.f32.mrb[161].mxu1  ;;  %2096 = vmatmul.mubr.f32.gmra.mrb[160].mxu1 %v670_v21  ;;  %v742_v21 = vld [vmem:[%s12751_s3 + $0x290] sm:$0xff] }
 0x3b1   :  { %2100 = vmatprep.mubr.f32.mxu1 %v675_v22  ;;  %v747_v22 = vld [vmem:[%s12751_s3 + $0x2b8] sm:$0xff]  ;;  %v6349_v24 = vld [vmem:[%s12752_s4 + $0x20] sm:$0xff] }
 0x3b3   :  { %v10055_v27 = vpop.f32.mrb[162].mxu1 }
 0x3b4   :  { %v1774_v28 = vpop.f32.mrb[163].mxu1  ;;  %2101 = vmatmul.mubr.f32.gmra.mrb[162].mxu1 %v674_v25  ;;  %v6350_v25 = vld [vmem:[%s12752_s4 + $0x28] sm:$0xff] }
 0x3b5   :  { %2105 = vmatprep.mubr.f32.mxu1 %v679_v26  ;;  %v7902_v26 = vpack.c.bf16 %v6350_v25, %v6349_v24  ;;  %v746_v28 = vld [vmem:[%s12751_s3 + $0x2b0] sm:$0xff]  ;;  %v8462_v24 = vmov 0.0  }
 0x3b6   :  { %6989 = vmatprep.mubr.msk.f32.mxu0 %vm8461_vm0, %v8462_v24 }
 0x3b7   :  { %v10063_v31 = vpop.f32.mrb[164].mxu1  ;;  %7903 = vmatpush3.bf16.msra.mxu0 %v7902_v26  ;;  %v791_v26 = vld [vmem:[%s12751_s3 + $0x418] sm:$0xff] }
 0x3b8   :  { %v1779_v52 = vpop.f32.mrb[165].mxu1  ;;  %2106 = vmatmul.mubr.f32.gmra.mrb[164].mxu1 %v678_v29  ;;  %v10186_v29 = vpop.f32.mrb[128].mxu0  ;;  %7904 = vmatprep.subr.bf16.mxu0 %v8460_v0 }
 0x3b9   :  { %2110 = vmatprep.mubr.f32.mxu1 %v683_v30  ;;  %v751_v30 = vld [vmem:[%s12751_s3 + $0x2d8] sm:$0xff]  ;;  %v1304_v52 = vpop.f32.mrb[129].mxu0 }
 0x3bb   :  { %v10071_v34 = vpop.f32.mrb[166].mxu1 }
 0x3bc   :  { %v1784_v35 = vpop.f32.mrb[167].mxu1  ;;  %2111 = vmatmul.mubr.f32.gmra.mrb[166].mxu1 %v682_v32  ;;  %v750_v32 = vld [vmem:[%s12751_s3 + $0x2d0] sm:$0xff] }
 0x3bd   :  { %2115 = vmatprep.mubr.f32.mxu1 %v687_v33  ;;  %v10195_v33 = vpop.f32.mrb[130].mxu0  ;;  %v755_v35 = vld [vmem:[%s12751_s3 + $0x2f8] sm:$0xff] }
 0x3bf   :  { %v10079_v37 = vpop.f32.mrb[168].mxu1 }
 0x3c0   :  { %v1789_v38 = vpop.f32.mrb[169].mxu1  ;;  %2116 = vmatmul.mubr.f32.gmra.mrb[168].mxu1 %v686_v36  ;;  %v1309_v36 = vpop.f32.mrb[131].mxu0 }
 0x3c1   :  { %2120 = vmatprep.mubr.f32.mxu1 %v691_v15  ;;  %v754_v15 = vld [vmem:[%s12751_s3 + $0x2f0] sm:$0xff]  ;;  %v10203_v38 = vpop.f32.mrb[132].mxu0 }
 0x3c2   :  { %v794_v36 = vld [vmem:[%s12751_s3 + $0x430] sm:$0xff] }
 0x3c3   :  { %v10087_v41 = vpop.f32.mrb[170].mxu1 }
 0x3c4   :  { %v1794_v42 = vpop.f32.mrb[171].mxu1  ;;  %2121 = vmatmul.mubr.f32.gmra.mrb[170].mxu1 %v690_v39  ;;  %v759_v39 = vld [vmem:[%s12751_s3 + $0x318] sm:$0xff] }
 0x3c5   :  { %2125 = vmatprep.mubr.f32.mxu1 %v695_v40  ;;  %v1314_v40 = vpop.f32.mrb[133].mxu0  ;;  %v758_v42 = vld [vmem:[%s12751_s3 + $0x310] sm:$0xff] }
 0x3c7   :  { %v10095_v45 = vpop.f32.mrb[172].mxu1 }
 0x3c8   :  { %v1799_v46 = vpop.f32.mrb[173].mxu1  ;;  %2126 = vmatmul.mubr.f32.gmra.mrb[172].mxu1 %v694_v43  ;;  %v10211_v43 = vpop.f32.mrb[134].mxu0 }
 0x3c9   :  { %2130 = vmatprep.mubr.f32.mxu1 %v699_v44  ;;  %v763_v44 = vld [vmem:[%s12751_s3 + $0x338] sm:$0xff]  ;;  %v1319_v46 = vpop.f32.mrb[135].mxu0 }
 0x3ca   :  { %v802_v46 = vld [vmem:[%s12751_s3 + $0x470] sm:$0xff] }
 0x3cb   :  { %v10103_v49 = vpop.f32.mrb[174].mxu1 }
 0x3cc   :  { %v1804_v50 = vpop.f32.mrb[175].mxu1  ;;  %2131 = vmatmul.mubr.f32.gmra.mrb[174].mxu1 %v698_v47  ;;  %v762_v47 = vld [vmem:[%s12751_s3 + $0x330] sm:$0xff] }
 0x3cd   :  { %2135 = vmatprep.mubr.f32.mxu1 %v703_v48  ;;  %v10219_v48 = vpop.f32.mrb[136].mxu0  ;;  %v767_v50 = vld [vmem:[%s12751_s3 + $0x358] sm:$0xff] }
 0x3cf   :  { %v10111_v54 = vpop.f32.mrb[176].mxu1 }
 0x3d0   :  { %v1809_v55 = vpop.f32.mrb[177].mxu1  ;;  %2136 = vmatmul.mubr.f32.gmra.mrb[176].mxu1 %v702_v51  ;;  %v1324_v51 = vpop.f32.mrb[137].mxu0 }
 0x3d1   :  { %2140 = vmatprep.mubr.f32.mxu1 %v707_v53  ;;  %v766_v53 = vld [vmem:[%s12751_s3 + $0x350] sm:$0xff]  ;;  %v10227_v55 = vpop.f32.mrb[138].mxu0  ;;  %v811_v51 = vld [vmem:[%s12751_s3 + $0x4b8] sm:$0xff] }
 0x3d3   :  { %v10119_v58 = vpop.f32.mrb[178].mxu1 }
 0x3d4   :  { %v1814_v59 = vpop.f32.mrb[179].mxu1  ;;  %2141 = vmatmul.mubr.f32.gmra.mrb[178].mxu1 %v706_v56  ;;  %v771_v56 = vld [vmem:[%s12751_s3 + $0x378] sm:$0xff] }
 0x3d5   :  { %2145 = vmatprep.mubr.f32.mxu1 %v711_v57  ;;  %v1329_v57 = vpop.f32.mrb[139].mxu0  ;;  %v6351_v59 = vld [vmem:[%s12752_s4 + $0x30] sm:$0xff] }
 0x3d6   :  { %v814_v57 = vld [vmem:[%s12751_s3 + $0x4d0] sm:$0xff] }
 0x3d7   :  { %v10127_v62 = vpop.f32.mrb[180].mxu1 }
 0x3d8   :  { %v1819_v63 = vpop.f32.mrb[181].mxu1  ;;  %2146 = vmatmul.mubr.f32.gmra.mrb[180].mxu1 %v710_v60  ;;  %v6352_v60 = vld [vmem:[%s12752_s4 + $0x38] sm:$0xff] }
 0x3d9   :  { %2150 = vmatprep.mubr.f32.mxu1 %v715_v61  ;;  %v770_v61 = vld [vmem:[%s12751_s3 + $0x370] sm:$0xff]  ;;  %v7905_v63 = vpack.c.bf16 %v6352_v60, %v6351_v59  ;;  %v819_v59 = vld [vmem:[%s12751_s3 + $0x4f8] sm:$0xff] }
 0x3da   :  { %v818_v60 = vld [vmem:[%s12751_s3 + $0x4f0] sm:$0xff] }
 0x3db   :  { %7906 = vmatpush3.bf16.msra.mxu0 %v7905_v63  ;;  %v822_v63 = vld [vmem:[%s12751_s3 + $0x510] sm:$0xff] }
 0x3dc   :  { %2151 = vmatmul.mubr.f32.gmra.mrb[0].mxu1 %v714_v1  ;;  %v10241_v1 = vpop.f32.mrb[140].mxu0  ;;  %7907 = vmatprep.subr.bf16.mxu0 %v8460_v0 }
 0x3dd   :  { %2155 = vmatprep.mubr.f32.mxu1 %v719_v3  ;;  %v775_v3 = vld [vmem:[%s12751_s3 + $0x398] sm:$0xff] }
 0x3e0   :  { %2156 = vmatmul.mubr.f32.gmra.mrb[2].mxu1 %v718_v4  ;;  %v1334_v4 = vpop.f32.mrb[141].mxu0 }
 0x3e1   :  { %2160 = vmatprep.mubr.f32.mxu1 %v723_v5  ;;  %v774_v5 = vld [vmem:[%s12751_s3 + $0x390] sm:$0xff] }
 0x3e2   :  { %v826_v4 = vld [vmem:[%s12751_s3 + $0x530] sm:$0xff] }
 0x3e4   :  { %2161 = vmatmul.mubr.f32.gmra.mrb[4].mxu1 %v722_v7  ;;  %v10250_v7 = vpop.f32.mrb[142].mxu0 }
 0x3e5   :  { %2165 = vmatprep.mubr.f32.mxu1 %v727_v8  ;;  %v779_v8 = vld [vmem:[%s12751_s3 + $0x3b8] sm:$0xff] }
 0x3e8   :  { %2166 = vmatmul.mubr.f32.gmra.mrb[6].mxu1 %v726_v9  ;;  %v1339_v9 = vpop.f32.mrb[143].mxu0 }
 0x3e9   :  { %2170 = vmatprep.mubr.f32.mxu1 %v731_v11  ;;  %v778_v11 = vld [vmem:[%s12751_s3 + $0x3b0] sm:$0xff]  ;;  %v835_v9 = vld [vmem:[%s12751_s3 + $0x578] sm:$0xff] }
 0x3ec   :  { %2171 = vmatmul.mubr.f32.gmra.mrb[8].mxu1 %v730_v12  ;;  %v10258_v12 = vpop.f32.mrb[144].mxu0 }
 0x3ed   :  { %2175 = vmatprep.mubr.f32.mxu1 %v735_v13  ;;  %v783_v13 = vld [vmem:[%s12751_s3 + $0x3d8] sm:$0xff] }
 0x3f0   :  { %2176 = vmatmul.mubr.f32.gmra.mrb[10].mxu1 %v734_v16  ;;  %v1344_v16 = vpop.f32.mrb[145].mxu0 }
 0x3f1   :  { %2180 = vmatprep.mubr.f32.mxu1 %v739_v17  ;;  %v782_v17 = vld [vmem:[%s12751_s3 + $0x3d0] sm:$0xff] }
 0x3f2   :  { %v838_v16 = vld [vmem:[%s12751_s3 + $0x590] sm:$0xff] }
 0x3f4   :  { %2181 = vmatmul.mubr.f32.gmra.mrb[12].mxu1 %v738_v18  ;;  %v10266_v18 = vpop.f32.mrb[146].mxu0 }
 0x3f5   :  { %2185 = vmatprep.mubr.f32.mxu1 %v743_v20  ;;  %v787_v20 = vld [vmem:[%s12751_s3 + $0x3f8] sm:$0xff] }
 0x3f8   :  { %2186 = vmatmul.mubr.f32.gmra.mrb[14].mxu1 %v742_v21  ;;  %v1349_v21 = vpop.f32.mrb[147].mxu0 }
 0x3f9   :  { %2190 = vmatprep.mubr.f32.mxu1 %v747_v22  ;;  %v786_v22 = vld [vmem:[%s12751_s3 + $0x3f0] sm:$0xff]  ;;  %v10276_v25 = vpop.f32.mrb[148].mxu0  ;;  %v847_v21 = vld [vmem:[%s12751_s3 + $0x5d8] sm:$0xff] }
 0x3fc   :  { %2191 = vmatmul.mubr.f32.gmra.mrb[16].mxu1 %v746_v28  ;;  %v1354_v28 = vpop.f32.mrb[149].mxu0 }
 0x3fd   :  { %2195 = vmatprep.mubr.f32.mxu1 %v751_v30  ;;  %v790_v30 = vld [vmem:[%s12751_s3 + $0x410] sm:$0xff]  ;;  %v10284_v52 = vpop.f32.mrb[150].mxu0 }
 0x3fe   :  { %v850_v28 = vld [vmem:[%s12751_s3 + $0x5f0] sm:$0xff] }
 0x400   :  { %2196 = vmatmul.mubr.f32.gmra.mrb[18].mxu1 %v750_v32  ;;  %v795_v32 = vld [vmem:[%s12751_s3 + $0x438] sm:$0xff] }
 0x401   :  { %2200 = vmatprep.mubr.f32.mxu1 %v755_v35  ;;  %v1359_v35 = vpop.f32.mrb[151].mxu0 }
 0x402   :  { %v859_v35 = vld [vmem:[%s12751_s3 + $0x638] sm:$0xff] }
 0x404   :  { %2201 = vmatmul.mubr.f32.gmra.mrb[20].mxu1 %v754_v15  ;;  %v10292_v15 = vpop.f32.mrb[152].mxu0 }
 0x405   :  { %2205 = vmatprep.mubr.f32.mxu1 %v759_v39  ;;  %v799_v39 = vld [vmem:[%s12751_s3 + $0x458] sm:$0xff]  ;;  %v1364_v40 = vpop.f32.mrb[153].mxu0 }
 0x406   :  { %v862_v40 = vld [vmem:[%s12751_s3 + $0x650] sm:$0xff] }
 0x408   :  { %2206 = vmatmul.mubr.f32.gmra.mrb[22].mxu1 %v758_v42  ;;  %v798_v42 = vld [vmem:[%s12751_s3 + $0x450] sm:$0xff] }
 0x409   :  { %2210 = vmatprep.mubr.f32.mxu1 %v763_v44  ;;  %v803_v44 = vld [vmem:[%s12751_s3 + $0x478] sm:$0xff] }
 0x40c   :  { %2211 = vmatmul.mubr.f32.gmra.mrb[24].mxu1 %v762_v47  ;;  %v807_v47 = vld [vmem:[%s12751_s3 + $0x498] sm:$0xff] }
 0x40d   :  { %2215 = vmatprep.mubr.f32.mxu1 %v767_v50  ;;  %v806_v50 = vld [vmem:[%s12751_s3 + $0x490] sm:$0xff] }
 0x410   :  { %2216 = vmatmul.mubr.f32.gmra.mrb[26].mxu1 %v766_v53  ;;  %v810_v53 = vld [vmem:[%s12751_s3 + $0x4b0] sm:$0xff] }
 0x411   :  { %2220 = vmatprep.mubr.f32.mxu1 %v771_v56  ;;  %v815_v56 = vld [vmem:[%s12751_s3 + $0x4d8] sm:$0xff] }
 0x414   :  { %2221 = vmatmul.mubr.f32.gmra.mrb[28].mxu1 %v770_v61  ;;  %v823_v61 = vld [vmem:[%s12751_s3 + $0x518] sm:$0xff] }
 0x415   :  { %2225 = vmatprep.mubr.f32.mxu1 %v775_v3  ;;  %v827_v3 = vld [vmem:[%s12751_s3 + $0x538] sm:$0xff] }
 0x418   :  { %2226 = vmatmul.mubr.f32.gmra.mrb[30].mxu1 %v774_v5  ;;  %v831_v5 = vld [vmem:[%s12751_s3 + $0x558] sm:$0xff] }
 0x419   :  { %2230 = vmatprep.mubr.f32.mxu1 %v779_v8  ;;  %v830_v8 = vld [vmem:[%s12751_s3 + $0x550] sm:$0xff] }
 0x41c   :  { %2231 = vmatmul.mubr.f32.gmra.mrb[32].mxu1 %v778_v11  ;;  %v834_v11 = vld [vmem:[%s12751_s3 + $0x570] sm:$0xff] }
 0x41d   :  { %2235 = vmatprep.mubr.f32.mxu1 %v783_v13  ;;  %v839_v13 = vld [vmem:[%s12751_s3 + $0x598] sm:$0xff] }
 0x420   :  { %2236 = vmatmul.mubr.f32.gmra.mrb[34].mxu1 %v782_v17  ;;  %v843_v17 = vld [vmem:[%s12751_s3 + $0x5b8] sm:$0xff] }
 0x421   :  { %2240 = vmatprep.mubr.f32.mxu1 %v787_v20  ;;  %v842_v20 = vld [vmem:[%s12751_s3 + $0x5b0] sm:$0xff] }
 0x424   :  { %2241 = vmatmul.mubr.f32.gmra.mrb[36].mxu1 %v786_v22  ;;  %v846_v22 = vld [vmem:[%s12751_s3 + $0x5d0] sm:$0xff] }
 0x425   :  { %2245 = vmatprep.mubr.f32.mxu1 %v791_v26  ;;  %v851_v26 = vld [vmem:[%s12751_s3 + $0x5f8] sm:$0xff] }
 0x428   :  { %2246 = vmatmul.mubr.f32.gmra.mrb[38].mxu1 %v790_v30  ;;  %v855_v30 = vld [vmem:[%s12751_s3 + $0x618] sm:$0xff] }
 0x429   :  { %2250 = vmatprep.mubr.f32.mxu1 %v795_v32  ;;  %v854_v32 = vld [vmem:[%s12751_s3 + $0x610] sm:$0xff] }
 0x42c   :  { %2251 = vmatmul.mubr.f32.gmra.mrb[40].mxu1 %v794_v36  ;;  %v858_v36 = vld [vmem:[%s12751_s3 + $0x630] sm:$0xff] }
 0x42d   :  { %2255 = vmatprep.mubr.f32.mxu1 %v799_v39  ;;  %v863_v39 = vld [vmem:[%s12751_s3 + $0x658] sm:$0xff] }
 0x430   :  { %2256 = vmatmul.mubr.f32.gmra.mrb[42].mxu1 %v798_v42  ;;  %v867_v42 = vld [vmem:[%s12751_s3 + $0x678] sm:$0xff] }
 0x431   :  { %2260 = vmatprep.mubr.f32.mxu1 %v803_v44  ;;  %v866_v44 = vld [vmem:[%s12751_s3 + $0x670] sm:$0xff] }
 0x434   :  { %2261 = vmatmul.mubr.f32.gmra.mrb[44].mxu1 %v802_v46  ;;  %v871_v46 = vld [vmem:[%s12751_s3 + $0x698] sm:$0xff] }
 0x435   :  { %2265 = vmatprep.mubr.f32.mxu1 %v807_v47  ;;  %v870_v47 = vld [vmem:[%s12751_s3 + $0x690] sm:$0xff] }
 0x438   :  { %2266 = vmatmul.mubr.f32.gmra.mrb[46].mxu1 %v806_v50  ;;  %v875_v50 = vld [vmem:[%s12751_s3 + $0x6b8] sm:$0xff] }
 0x439   :  { %2270 = vmatprep.mubr.f32.mxu1 %v811_v51  ;;  %v874_v51 = vld [vmem:[%s12751_s3 + $0x6b0] sm:$0xff] }
 0x43c   :  { %2271 = vmatmul.mubr.f32.gmra.mrb[48].mxu1 %v810_v53  ;;  %v879_v53 = vld [vmem:[%s12751_s3 + $0x6d8] sm:$0xff] }
 0x43d   :  { %2275 = vmatprep.mubr.f32.mxu1 %v815_v56 }
 0x440   :  { %2276 = vmatmul.mubr.f32.gmra.mrb[50].mxu1 %v814_v57 }
 0x441   :  { %2280 = vmatprep.mubr.f32.mxu1 %v819_v59 }
 0x444   :  { %2281 = vmatmul.mubr.f32.gmra.mrb[52].mxu1 %v818_v60  ;;  %v878_v60 = vld [vmem:[%s12751_s3 + $0x6d0] sm:$0xff] }
 0x445   :  { %2285 = vmatprep.mubr.f32.mxu1 %v823_v61  ;;  %v883_v61 = vld [vmem:[%s12751_s3 + $0x6f8] sm:$0xff] }
 0x448   :  { %2286 = vmatmul.mubr.f32.gmra.mrb[54].mxu1 %v822_v63 }
 0x449   :  { %2290 = vmatprep.mubr.f32.mxu1 %v827_v3 }
 0x44c   :  { %2291 = vmatmul.mubr.f32.gmra.mrb[56].mxu1 %v826_v4 }
 0x44d   :  { %2295 = vmatprep.mubr.f32.mxu1 %v831_v5  ;;  %v887_v5 = vld [vmem:[%s12751_s3 + $0x718] sm:$0xff] }
 0x450   :  { %2296 = vmatmul.mubr.f32.gmra.mrb[58].mxu1 %v830_v8 }
 0x451   :  { %2300 = vmatprep.mubr.f32.mxu1 %v835_v9 }
 0x454   :  { %2301 = vmatmul.mubr.f32.gmra.mrb[60].mxu1 %v834_v11 }
 0x455   :  { %2305 = vmatprep.mubr.f32.mxu1 %v839_v13  ;;  %v891_v13 = vld [vmem:[%s12751_s3 + $0x738] sm:$0xff] }
 0x458   :  { %2306 = vmatmul.mubr.f32.gmra.mrb[62].mxu1 %v838_v16 }
 0x459   :  { %2310 = vmatprep.mubr.f32.mxu1 %v843_v17 }
 0x45c   :  { %2311 = vmatmul.mubr.f32.gmra.mrb[64].mxu1 %v842_v20 }
 0x45d   :  { %2315 = vmatprep.mubr.f32.mxu1 %v847_v21  ;;  %v895_v21 = vld [vmem:[%s12751_s3 + $0x758] sm:$0xff] }
 0x460   :  { %2316 = vmatmul.mubr.f32.gmra.mrb[66].mxu1 %v846_v22 }
 0x461   :  { %2320 = vmatprep.mubr.f32.mxu1 %v851_v26 }
 0x464   :  { %2321 = vmatmul.mubr.f32.gmra.mrb[68].mxu1 %v850_v28 }
 0x465   :  { %2325 = vmatprep.mubr.f32.mxu1 %v855_v30  ;;  %v899_v30 = vld [vmem:[%s12751_s3 + $0x778] sm:$0xff] }
 0x468   :  { %2326 = vmatmul.mubr.f32.gmra.mrb[70].mxu1 %v854_v32 }
 0x469   :  { %2330 = vmatprep.mubr.f32.mxu1 %v859_v35 }
 0x46c   :  { %2331 = vmatmul.mubr.f32.gmra.mrb[72].mxu1 %v858_v36 }
 0x46d   :  { %2335 = vmatprep.mubr.f32.mxu1 %v863_v39  ;;  %v903_v39 = vld [vmem:[%s12751_s3 + $0x798] sm:$0xff] }
 0x470   :  { %2336 = vmatmul.mubr.f32.gmra.mrb[74].mxu1 %v862_v40 }
 0x471   :  { %2340 = vmatprep.mubr.f32.mxu1 %v867_v42 }
 0x474   :  { %2341 = vmatmul.mubr.f32.gmra.mrb[76].mxu1 %v866_v44 }
 0x475   :  { %2345 = vmatprep.mubr.f32.mxu1 %v871_v46  ;;  %v907_v46 = vld [vmem:[%s12751_s3 + $0x7b8] sm:$0xff] }
 0x478   :  { %2346 = vmatmul.mubr.f32.gmra.mrb[78].mxu1 %v870_v47 }
 0x479   :  { %2350 = vmatprep.mubr.f32.mxu1 %v875_v50 }
 0x47b   :  { %v2087_v56 = vpop.f32.mrb[156].mxu1 }
 0x47c   :  { %v10418_v57 = vadd.f32 %v2087_v56, %v10186_v29  ;;  %v2089_v59 = vpop.f32.mrb[157].mxu1  ;;  %2351 = vmatmul.mubr.f32.gmra.mrb[80].mxu1 %v874_v51  ;;  %v882_v29 = vld [vmem:[%s12751_s3 + $0x6f0] sm:$0xff] }
 0x47d   :  { %2355 = vmatprep.mubr.f32.mxu1 %v879_v53  ;;  %v911_v53 = vld [vmem:[%s12751_s3 + $0x7d8] sm:$0xff] }
 0x47f   :  { %v2092_v63 = vpop.f32.mrb[158].mxu1 }
 0x480   :  { %v10427_v3 = vadd.f32 %v2092_v63, %v10195_v33  ;;  %v2094_v4 = vpop.f32.mrb[159].mxu1  ;;  %2356 = vmatmul.mubr.f32.gmra.mrb[82].mxu1 %v878_v60  ;;  %v886_v33 = vld [vmem:[%s12751_s3 + $0x710] sm:$0xff] }
 0x481   :  { %2360 = vmatprep.mubr.f32.mxu1 %v883_v61  ;;  %v2807_v61 = vld [vmem:[%s12752_s4 + $0x8] sm:$0xff]  ;;  %v910_v63 = vld [vmem:[%s12751_s3 + $0x7d0] sm:$0xff] }
 0x483   :  { %v2097_v8 = vpop.f32.mrb[160].mxu1 }
 0x484   :  { %v10436_v9 = vadd.f32 %v2097_v8, %v10203_v38  ;;  %v2099_v11 = vpop.f32.mrb[161].mxu1  ;;  %2361 = vmatmul.mubr.f32.gmra.mrb[84].mxu1 %v882_v29  ;;  %v890_v38 = vld [vmem:[%s12751_s3 + $0x730] sm:$0xff] }
 0x485   :  { %2365 = vmatprep.mubr.f32.mxu1 %v887_v5  ;;  %v2808_v11 = vld [vmem:[%s12752_s4 + $0x10] sm:$0xff] }
 0x487   :  { %v2102_v16 = vpop.f32.mrb[162].mxu1 }
 0x488   :  { %v10445_v17 = vadd.f32 %v2102_v16, %v10211_v43  ;;  %v2104_v20 = vpop.f32.mrb[163].mxu1  ;;  %2366 = vmatmul.mubr.f32.gmra.mrb[86].mxu1 %v886_v33  ;;  %v894_v43 = vld [vmem:[%s12751_s3 + $0x750] sm:$0xff]  ;;  %v2809_v33 = vld [vmem:[%s12752_s4 + $0x18] sm:$0xff] }
 0x489   :  { %2370 = vmatprep.mubr.f32.mxu1 %v891_v13  ;;  %v914_v13 = vld [vmem:[%s12751_s3 + $0x7f0] sm:$0xff]  ;;  %v7911_v20 = vpack.c.bf16 %v2809_v33, %v2808_v11  ;;  %v6371_v33 = vld [vmem:[%s12752_s4 + $0x40] sm:$0xff] }
 0x48b   :  { %v2107_v22 = vpop.f32.mrb[164].mxu1 }
 0x48c   :  { %v10454_v26 = vadd.f32 %v2107_v22, %v10219_v48  ;;  %v2109_v28 = vpop.f32.mrb[165].mxu1  ;;  %2371 = vmatmul.mubr.f32.gmra.mrb[88].mxu1 %v890_v38  ;;  %v898_v48 = vld [vmem:[%s12751_s3 + $0x770] sm:$0xff] }
 0x48d   :  { %2375 = vmatprep.mubr.f32.mxu1 %v895_v21  ;;  %v918_v22 = vld [vmem:[%s12751_s3 + $0x810] sm:$0xff]  ;;  %v923_v28 = vld [vmem:[%s12751_s3 + $0x838] sm:$0xff] }
 0x48f   :  { %v2112_v32 = vpop.f32.mrb[166].mxu1 }
 0x490   :  { %v10463_v35 = vadd.f32 %v2112_v32, %v10227_v55  ;;  %v2114_v36 = vpop.f32.mrb[167].mxu1  ;;  %2376 = vmatmul.mubr.f32.gmra.mrb[90].mxu1 %v894_v43  ;;  %v902_v55 = vld [vmem:[%s12751_s3 + $0x790] sm:$0xff] }
 0x491   :  { %2380 = vmatprep.mubr.f32.mxu1 %v899_v30  ;;  %v922_v32 = vld [vmem:[%s12751_s3 + $0x830] sm:$0xff]  ;;  %v927_v36 = vld [vmem:[%s12751_s3 + $0x858] sm:$0xff] }
 0x493   :  { %v2117_v40 = vpop.f32.mrb[168].mxu1 }
 0x494   :  { %v10472_v42 = vadd.f32 %v2117_v40, %v10241_v1  ;;  %v2119_v44 = vpop.f32.mrb[169].mxu1  ;;  %2381 = vmatmul.mubr.f32.gmra.mrb[92].mxu1 %v898_v48  ;;  %v906_v1 = vld [vmem:[%s12751_s3 + $0x7b0] sm:$0xff] }
 0x495   :  { %2385 = vmatprep.mubr.f32.mxu1 %v903_v39  ;;  %v926_v40 = vld [vmem:[%s12751_s3 + $0x850] sm:$0xff]  ;;  %v931_v44 = vld [vmem:[%s12751_s3 + $0x878] sm:$0xff] }
 0x497   :  { %v2122_v47 = vpop.f32.mrb[170].mxu1 }
 0x498   :  { %v10481_v50 = vadd.f32 %v2122_v47, %v10250_v7  ;;  %v2124_v51 = vpop.f32.mrb[171].mxu1  ;;  %2386 = vmatmul.mubr.f32.gmra.mrb[94].mxu1 %v902_v55  ;;  %v2806_v7 = vld [vmem:[%s12752_s4] sm:$0xff]  ;;  %v935_v47 = vld [vmem:[%s12751_s3 + $0x898] sm:$0xff] }
 0x499   :  { %2390 = vmatprep.mubr.f32.mxu1 %v907_v46  ;;  %v7908_v29 = vpack.c.bf16 %v2807_v61, %v2806_v7  ;;  %v938_v61 = vld [vmem:[%s12751_s3 + $0x8b0] sm:$0xff] }
 0x49b   :  { %v2127_v56 = vpop.f32.mrb[172].mxu1 }
 0x49c   :  { %v10490_v59 = vadd.f32 %v2127_v56, %v10258_v12  ;;  %v2129_v60 = vpop.f32.mrb[173].mxu1  ;;  %2391 = vmatmul.mubr.f32.gmra.mrb[96].mxu1 %v906_v1  ;;  %v915_v12 = vld [vmem:[%s12751_s3 + $0x7f8] sm:$0xff] }
 0x49d   :  { %2395 = vmatprep.mubr.f32.mxu1 %v911_v53  ;;  %v934_v53 = vld [vmem:[%s12751_s3 + $0x890] sm:$0xff]  ;;  %v939_v56 = vld [vmem:[%s12751_s3 + $0x8b8] sm:$0xff] }
 0x49f   :  { %v2132_v4 = vpop.f32.mrb[174].mxu1 }
 0x4a0   :  { %v2133_v5 = vadd.f32 %v2132_v4, %v10266_v18  ;;  %v2134_v8 = vpop.f32.mrb[175].mxu1  ;;  %2396 = vmatmul.mubr.f32.gmra.mrb[98].mxu1 %v910_v63  ;;  %v919_v18 = vld [vmem:[%s12751_s3 + $0x818] sm:$0xff] }
 0x4a1   :  { %2400 = vmatprep.mubr.f32.mxu1 %v915_v12  ;;  %v943_v63 = vld [vmem:[%s12751_s3 + $0x8d8] sm:$0xff] }
 0x4a2   :  { %6990 = vmatmul.mubr.msk.f32.vlgmr.msra.gmra.mrb[154].mxu0 %vm2815_vm1, %v2133_v5  ;;  %v947_v5 = vld [vmem:[%s12751_s3 + $0x8f8] sm:$0xff] }
 0x4a3   :  { %v2137_v16 = vpop.f32.mrb[176].mxu1  ;;  %6992 = vmatprep.mubr.msk.f32.mxu0 %vm8461_vm0, %v8462_v24  ;;  %7909 = vmatpush3.bf16.msra.mxu0 %v7908_v29  ;;  %v942_v29 = vld [vmem:[%s12751_s3 + $0x8d0] sm:$0xff] }
 0x4a4   :  { %v2138_v38 = vadd.f32 %v2137_v16, %v10276_v25  ;;  %v2139_v21 = vpop.f32.mrb[177].mxu1  ;;  %2401 = vmatmul.mubr.f32.gmra.mrb[100].mxu1 %v914_v13  ;;  %7910 = vmatprep.subr.bf16.mxu0 %v8460_v0  ;;  %v6372_v13 = vld [vmem:[%s12752_s4 + $0x48] sm:$0xff]  ;;  %v951_v16 = vld [vmem:[%s12751_s3 + $0x918] sm:$0xff] }
 0x4a5   :  { %2405 = vmatprep.mubr.f32.mxu1 %v919_v18  ;;  %v946_v18 = vld [vmem:[%s12751_s3 + $0x8f0] sm:$0xff] }
 0x4a6   :  { %6993 = vmatmul.mubr.msk.f32.gmra.mrb[156].mxu0 %vm2815_vm1, %v2138_v38  ;;  %v7914_v38 = vpack.c.bf16 %v6372_v13, %v6371_v33  ;;  %v987_v33 = vld [vmem:[%s12751_s3 + $0xa38] sm:$0xff] }
 0x4a7   :  { %v2142_v43 = vpop.f32.mrb[178].mxu1  ;;  %6995 = vmatprep.mubr.msk.f32.mxu0 %vm8461_vm0, %v8462_v24  ;;  %7912 = vmatpush3.bf16.msra.mxu0 %v7911_v20 }
 0x4a8   :  { %v2143_v25 = vadd.f32 %v2142_v43, %v10284_v52  ;;  %v2144_v30 = vpop.f32.mrb[179].mxu1  ;;  %2406 = vmatmul.mubr.f32.gmra.mrb[102].mxu1 %v918_v22  ;;  %7913 = vmatprep.subr.bf16.mxu0 %v8460_v0  ;;  %v6373_v22 = vld [vmem:[%s12752_s4 + $0x50] sm:$0xff] }
 0x4a9   :  { %2410 = vmatprep.mubr.f32.mxu1 %v923_v28  ;;  %v6374_v28 = vld [vmem:[%s12752_s4 + $0x58] sm:$0xff]  ;;  %v950_v43 = vld [vmem:[%s12751_s3 + $0x910] sm:$0xff] }
 0x4aa   :  { %6996 = vmatmul.mubr.msk.f32.gmra.mrb[158].mxu0 %vm2815_vm1, %v2143_v25  ;;  %v955_v25 = vld [vmem:[%s12751_s3 + $0x938] sm:$0xff] }
 0x4ab   :  { %v2147_v48 = vpop.f32.mrb[180].mxu1  ;;  %6998 = vmatprep.mubr.msk.f32.mxu0 %vm8461_vm0, %v8462_v24 }
 0x4ac   :  { %v2148_v52 = vadd.f32 %v2147_v48, %v10292_v15  ;;  %v2149_v39 = vpop.f32.mrb[181].mxu1  ;;  %2411 = vmatmul.mubr.f32.gmra.mrb[104].mxu1 %v922_v32  ;;  %v930_v15 = vld [vmem:[%s12751_s3 + $0x870] sm:$0xff]  ;;  %v7917_v32 = vpack.c.bf16 %v6374_v28, %v6373_v22  ;;  %v959_v48 = vld [vmem:[%s12751_s3 + $0x958] sm:$0xff] }
 0x4ad   :  { %2415 = vmatprep.mubr.f32.mxu1 %v927_v36  ;;  %v991_v22 = vld [vmem:[%s12751_s3 + $0xa58] sm:$0xff] }
 0x4ae   :  { %6999 = vmatmul.mubr.msk.f32.gmra.mrb[160].mxu0 %vm2815_vm1, %v2148_v52 }
 0x4af   :  { %v2152_v55 = vpop.f32.mrb[0].mxu1  ;;  %7001 = vmatprep.mubr.msk.f32.mxu0 %vm8461_vm0, %v8462_v24 }
 0x4b0   :  { %v2154_v46 = vpop.f32.mrb[1].mxu1  ;;  %2416 = vmatmul.mubr.f32.gmra.mrb[106].mxu1 %v926_v40  ;;  %v958_v40 = vld [vmem:[%s12751_s3 + $0x950] sm:$0xff] }
 0x4b1   :  { %2420 = vmatprep.mubr.f32.mxu1 %v931_v44  ;;  %v962_v46 = vld [vmem:[%s12751_s3 + $0x970] sm:$0xff] }
 0x4b2   :  { %7002 = vmatmul.mubr.msk.f32.gmra.mrb[162].mxu0 %vm2815_vm1, %v2152_v55 }
 0x4b3   :  { %v2157_v51 = vpop.f32.mrb[2].mxu1  ;;  %7004 = vmatprep.mubr.msk.f32.mxu0 %vm8461_vm0, %v8462_v24 }
 0x4b4   :  { %v2159_v1 = vpop.f32.mrb[3].mxu1  ;;  %2421 = vmatmul.mubr.f32.gmra.mrb[108].mxu1 %v930_v15 }
 0x4b5   :  { %2425 = vmatprep.mubr.f32.mxu1 %v935_v47 }
 0x4b6   :  { %7005 = vmatmul.mubr.msk.f32.gmra.mrb[164].mxu0 %vm2815_vm1, %v2157_v51  ;;  %v966_v51 = vld [vmem:[%s12751_s3 + $0x990] sm:$0xff] }
 0x4b7   :  { %v2162_v60 = vpop.f32.mrb[4].mxu1  ;;  %7007 = vmatprep.mubr.msk.f32.mxu0 %vm8461_vm0, %v8462_v24 }
 0x4b8   :  { %v2164_v7 = vpop.f32.mrb[5].mxu1  ;;  %2426 = vmatmul.mubr.f32.gmra.mrb[110].mxu1 %v934_v53 }
 0x4b9   :  { %2430 = vmatprep.mubr.f32.mxu1 %v939_v56  ;;  %v970_v56 = vld [vmem:[%s12751_s3 + $0x9b0] sm:$0xff] }
 0x4ba   :  { %7008 = vmatmul.mubr.msk.f32.gmra.mrb[166].mxu0 %vm2815_vm1, %v2162_v60 }
 0x4bb   :  { %v2167_v12 = vpop.f32.mrb[6].mxu1  ;;  %7010 = vmatprep.mubr.msk.f32.mxu0 %vm8461_vm0, %v8462_v24 }
 0x4bc   :  { %v2169_v4 = vpop.f32.mrb[7].mxu1  ;;  %2431 = vmatmul.mubr.f32.gmra.mrb[112].mxu1 %v938_v61  ;;  %v974_v61 = vld [vmem:[%s12751_s3 + $0x9d0] sm:$0xff] }
 0x4bd   :  { %2435 = vmatprep.mubr.f32.mxu1 %v943_v63  ;;  %v978_v4 = vld [vmem:[%s12751_s3 + $0x9f0] sm:$0xff] }
 0x4be   :  { %7011 = vmatmul.mubr.msk.f32.gmra.mrb[168].mxu0 %vm2815_vm1, %v2167_v12 }
 0x4bf   :  { %v2172_v8 = vpop.f32.mrb[8].mxu1  ;;  %7013 = vmatprep.mubr.msk.f32.mxu0 %vm8461_vm0, %v8462_v24 }
 0x4c0   :  { %v2174_v11 = vpop.f32.mrb[9].mxu1  ;;  %2436 = vmatmul.mubr.f32.gmra.mrb[114].mxu1 %v942_v29 }
 0x4c1   :  { %2440 = vmatprep.mubr.f32.mxu1 %v947_v5  ;;  %v6385_v11 = vld [vmem:[%s12752_s4 + $0x68] sm:$0xff] }
 0x4c2   :  { %7014 = vmatmul.mubr.msk.f32.gmra.mrb[170].mxu0 %vm2815_vm1, %v2172_v8  ;;  %v6384_v8 = vld [vmem:[%s12752_s4 + $0x60] sm:$0xff] }
 0x4c3   :  { %v10601_v20 = vpop.f32.mrb[10].mxu1  ;;  %7024 = vmatprep.mubr.msk.f32.mxu0 %vm8461_vm0, %v8462_v24 }
 0x4c4   :  { %v2179_v21 = vpop.f32.mrb[11].mxu1  ;;  %2441 = vmatmul.mubr.f32.gmra.mrb[116].mxu1 %v946_v18  ;;  %v7920_v18 = vpack.c.bf16 %v6385_v11, %v6384_v8  ;;  %v1023_v8 = vld [vmem:[%s12751_s3 + $0xb58] sm:$0xff] }
 0x4c5   :  { %2445 = vmatprep.mubr.f32.mxu1 %v951_v16  ;;  %v986_v21 = vld [vmem:[%s12751_s3 + $0xa30] sm:$0xff] }
 0x4c6   :  { %7025 = vmatmul.mubr.msk.f32.vlgmr.msra.gmra.mrb[172].mxu0 %vm2815_vm1, %v10418_v57  ;;  %v954_v57 = vld [vmem:[%s12751_s3 + $0x930] sm:$0xff] }
 0x4c7   :  { %v10619_v30 = vpop.f32.mrb[12].mxu1  ;;  %7027 = vmatprep.mubr.msk.f32.mxu0 %vm8461_vm0, %v8462_v24  ;;  %7915 = vmatpush3.bf16.msra.mxu0 %v7914_v38  ;;  %v6386_v38 = vld [vmem:[%s12752_s4 + $0x70] sm:$0xff] }
 0x4c8   :  { %v2184_v36 = vpop.f32.mrb[13].mxu1  ;;  %2446 = vmatmul.mubr.f32.gmra.mrb[118].mxu1 %v950_v43  ;;  %7916 = vmatprep.subr.bf16.mxu0 %v8460_v0 }
 0x4c9   :  { %2450 = vmatprep.mubr.f32.mxu1 %v955_v25 }
 0x4ca   :  { %7028 = vmatmul.mubr.msk.f32.gmra.mrb[174].mxu0 %vm2815_vm1, %v10427_v3  ;;  %v963_v3 = vld [vmem:[%s12751_s3 + $0x978] sm:$0xff] }
 0x4cb   :  { %v10632_v52 = vpop.f32.mrb[14].mxu1  ;;  %7030 = vmatprep.mubr.msk.f32.mxu0 %vm8461_vm0, %v8462_v24  ;;  %7918 = vmatpush3.bf16.msra.mxu0 %v7917_v32  ;;  %v995_v32 = vld [vmem:[%s12751_s3 + $0xa78] sm:$0xff] }
 0x4cc   :  { %v2189_v39 = vpop.f32.mrb[15].mxu1  ;;  %2451 = vmatmul.mubr.f32.gmra.mrb[120].mxu1 %v954_v57  ;;  %7919 = vmatprep.subr.bf16.mxu0 %v8460_v0 }
 0x4cd   :  { %2455 = vmatprep.mubr.f32.mxu1 %v959_v48  ;;  %v994_v48 = vld [vmem:[%s12751_s3 + $0xa70] sm:$0xff] }
 0x4ce   :  { %7031 = vmatmul.mubr.msk.f32.gmra.mrb[176].mxu0 %vm2815_vm1, %v10436_v9  ;;  %v967_v9 = vld [vmem:[%s12751_s3 + $0x998] sm:$0xff] }
 0x4cf   :  { %v10645_v44 = vpop.f32.mrb[16].mxu1  ;;  %7033 = vmatprep.mubr.msk.f32.mxu0 %vm8461_vm0, %v8462_v24 }
 0x4d0   :  { %v2194_v55 = vpop.f32.mrb[17].mxu1  ;;  %2456 = vmatmul.mubr.f32.gmra.mrb[122].mxu1 %v958_v40 }
 0x4d1   :  { %2460 = vmatprep.mubr.f32.mxu1 %v963_v3  ;;  %v998_v3 = vld [vmem:[%s12751_s3 + $0xa90] sm:$0xff] }
 0x4d2   :  { %7034 = vmatmul.mubr.msk.f32.gmra.mrb[178].mxu0 %vm2815_vm1, %v10445_v17  ;;  %v971_v17 = vld [vmem:[%s12751_s3 + $0x9b8] sm:$0xff] }
 0x4d3   :  { %v10657_v15 = vpop.f32.mrb[18].mxu1  ;;  %7036 = vmatprep.mubr.msk.f32.mxu0 %vm8461_vm0, %v8462_v24 }
 0x4d4   :  { %v2199_v47 = vpop.f32.mrb[19].mxu1  ;;  %2461 = vmatmul.mubr.f32.gmra.mrb[124].mxu1 %v962_v46 }
 0x4d5   :  { %2465 = vmatprep.mubr.f32.mxu1 %v967_v9  ;;  %v1002_v9 = vld [vmem:[%s12751_s3 + $0xab0] sm:$0xff] }
 0x4d6   :  { %7037 = vmatmul.mubr.msk.f32.gmra.mrb[180].mxu0 %vm2815_vm1, %v10454_v26  ;;  %v975_v26 = vld [vmem:[%s12751_s3 + $0x9d8] sm:$0xff] }
 0x4d7   :  { %v10669_v1 = vpop.f32.mrb[20].mxu1  ;;  %7039 = vmatprep.mubr.msk.f32.mxu0 %vm8461_vm0, %v8462_v24 }
 0x4d8   :  { %v2204_v53 = vpop.f32.mrb[21].mxu1  ;;  %2466 = vmatmul.mubr.f32.gmra.mrb[126].mxu1 %v966_v51 }
 0x4d9   :  { %2470 = vmatprep.mubr.f32.mxu1 %v971_v17  ;;  %v1006_v17 = vld [vmem:[%s12751_s3 + $0xad0] sm:$0xff] }
 0x4da   :  { %7040 = vmatmul.mubr.msk.f32.gmra.mrb[182].mxu0 %vm2815_vm1, %v10463_v35  ;;  %v979_v35 = vld [vmem:[%s12751_s3 + $0x9f8] sm:$0xff] }
 0x4db   :  { %v10681_v60 = vpop.f32.mrb[22].mxu1  ;;  %7042 = vmatprep.mubr.msk.f32.mxu0 %vm8461_vm0, %v8462_v24 }
 0x4dc   :  { %v2209_v7 = vpop.f32.mrb[23].mxu1  ;;  %2471 = vmatmul.mubr.f32.gmra.mrb[128].mxu1 %v970_v56 }
 0x4dd   :  { %2475 = vmatprep.mubr.f32.mxu1 %v975_v26  ;;  %v1010_v26 = vld [vmem:[%s12751_s3 + $0xaf0] sm:$0xff] }
 0x4de   :  { %7043 = vmatmul.mubr.msk.f32.gmra.mrb[184].mxu0 %vm2815_vm1, %v10472_v42  ;;  %v983_v42 = vld [vmem:[%s12751_s3 + $0xa18] sm:$0xff] }
 0x4df   :  { %v10693_v63 = vpop.f32.mrb[24].mxu1  ;;  %7045 = vmatprep.mubr.msk.f32.mxu0 %vm8461_vm0, %v8462_v24 }
 0x4e0   :  { %v2214_v12 = vpop.f32.mrb[25].mxu1  ;;  %2476 = vmatmul.mubr.f32.gmra.mrb[130].mxu1 %v974_v61 }
 0x4e1   :  { %2480 = vmatprep.mubr.f32.mxu1 %v979_v35  ;;  %v1014_v35 = vld [vmem:[%s12751_s3 + $0xb10] sm:$0xff] }
 0x4e2   :  { %7046 = vmatmul.mubr.msk.f32.gmra.mrb[186].mxu0 %vm2815_vm1, %v10481_v50  ;;  %v982_v50 = vld [vmem:[%s12751_s3 + $0xa10] sm:$0xff] }
 0x4e3   :  { %v10705_v29 = vpop.f32.mrb[26].mxu1  ;;  %7048 = vmatprep.mubr.msk.f32.mxu0 %vm8461_vm0, %v8462_v24 }
 0x4e4   :  { %v2219_v5 = vpop.f32.mrb[27].mxu1  ;;  %2481 = vmatmul.mubr.f32.gmra.mrb[132].mxu1 %v978_v4 }
 0x4e5   :  { %2485 = vmatprep.mubr.f32.mxu1 %v983_v42  ;;  %v6397_v42 = vld [vmem:[%s12752_s4 + $0x80] sm:$0xff]  ;;  %v6398_v5 = vld [vmem:[%s12752_s4 + $0x88] sm:$0xff] }
 0x4e6   :  { %7049 = vmatmul.mubr.msk.f32.gmra.mrb[188].mxu0 %vm2815_vm1, %v10490_v59  ;;  %v6387_v59 = vld [vmem:[%s12752_s4 + $0x78] sm:$0xff] }
 0x4e7   :  { %v10723_v13 = vpop.f32.mrb[28].mxu1  ;;  %7059 = vmatprep.mubr.msk.f32.mxu0 %vm8461_vm0, %v8462_v24  ;;  %v7923_v43 = vpack.c.bf16 %v6387_v59, %v6386_v38  ;;  %v1027_v38 = vld [vmem:[%s12751_s3 + $0xb78] sm:$0xff] }
 0x4e8   :  { %v2224_v16 = vpop.f32.mrb[29].mxu1  ;;  %2486 = vmatmul.mubr.f32.gmra.mrb[134].mxu1 %v982_v50  ;;  %v7926_v50 = vpack.c.bf16 %v6398_v5, %v6397_v42  ;;  %v1059_v42 = vld [vmem:[%s12751_s3 + $0xc78] sm:$0xff] }
 0x4e9   :  { %2490 = vmatprep.mubr.f32.mxu1 %v987_v33  ;;  %v1022_v16 = vld [vmem:[%s12751_s3 + $0xb50] sm:$0xff] }
 0x4ea   :  { %7060 = vmatmul.mubr.msk.f32.vlgmr.msra.gmra.mrb[190].mxu0 %vm2815_vm1, %v10601_v20  ;;  %v990_v20 = vld [vmem:[%s12751_s3 + $0xa50] sm:$0xff] }
 0x4eb   :  { %v10741_v28 = vpop.f32.mrb[30].mxu1  ;;  %7062 = vmatprep.mubr.msk.f32.mxu0 %vm8461_vm0, %v8462_v24  ;;  %7921 = vmatpush3.bf16.msra.mxu0 %v7920_v18  ;;  %v6399_v18 = vld [vmem:[%s12752_s4 + $0x90] sm:$0xff] }
 0x4ec   :  { %v2229_v25 = vpop.f32.mrb[31].mxu1  ;;  %2491 = vmatmul.mubr.f32.gmra.mrb[136].mxu1 %v986_v21  ;;  %7922 = vmatprep.subr.bf16.mxu0 %v8460_v0 }
 0x4ed   :  { %2495 = vmatprep.mubr.f32.mxu1 %v991_v22 }
 0x4ee   :  { %7063 = vmatmul.mubr.msk.f32.gmra.mrb[192].mxu0 %vm2815_vm1, %v10619_v30  ;;  %v999_v30 = vld [vmem:[%s12751_s3 + $0xa98] sm:$0xff] }
 0x4ef   :  { %v10754_v36 = vpop.f32.mrb[32].mxu1  ;;  %7065 = vmatprep.mubr.msk.f32.mxu0 %vm8461_vm0, %v8462_v24  ;;  %7924 = vmatpush3.bf16.msra.mxu0 %v7923_v43  ;;  %v1031_v43 = vld [vmem:[%s12751_s3 + $0xb98] sm:$0xff] }
 0x4f0   :  { %v2234_v57 = vpop.f32.mrb[33].mxu1  ;;  %2496 = vmatmul.mubr.f32.gmra.mrb[138].mxu1 %v990_v20  ;;  %7925 = vmatprep.subr.bf16.mxu0 %v8460_v0 }
 0x4f1   :  { %2500 = vmatprep.mubr.f32.mxu1 %v995_v32  ;;  %v1030_v32 = vld [vmem:[%s12751_s3 + $0xb90] sm:$0xff] }
 0x4f2   :  { %7066 = vmatmul.mubr.msk.f32.gmra.mrb[194].mxu0 %vm2815_vm1, %v10632_v52  ;;  %v1003_v52 = vld [vmem:[%s12751_s3 + $0xab8] sm:$0xff] }
 0x4f3   :  { %v10767_v39 = vpop.f32.mrb[34].mxu1  ;;  %7068 = vmatprep.mubr.msk.f32.mxu0 %vm8461_vm0, %v8462_v24 }
 0x4f4   :  { %v2239_v40 = vpop.f32.mrb[35].mxu1  ;;  %2501 = vmatmul.mubr.f32.gmra.mrb[140].mxu1 %v994_v48 }
 0x4f5   :  { %2505 = vmatprep.mubr.f32.mxu1 %v999_v30  ;;  %v1034_v30 = vld [vmem:[%s12751_s3 + $0xbb0] sm:$0xff] }
 0x4f6   :  { %7069 = vmatmul.mubr.msk.f32.gmra.mrb[196].mxu0 %vm2815_vm1, %v10645_v44  ;;  %v1007_v44 = vld [vmem:[%s12751_s3 + $0xad8] sm:$0xff] }
 0x4f7   :  { %v10779_v55 = vpop.f32.mrb[36].mxu1  ;;  %7071 = vmatprep.mubr.msk.f32.mxu0 %vm8461_vm0, %v8462_v24 }
 0x4f8   :  { %v2244_v46 = vpop.f32.mrb[37].mxu1  ;;  %2506 = vmatmul.mubr.f32.gmra.mrb[142].mxu1 %v998_v3 }
 0x4f9   :  { %2510 = vmatprep.mubr.f32.mxu1 %v1003_v52  ;;  %v1038_v52 = vld [vmem:[%s12751_s3 + $0xbd0] sm:$0xff] }
 0x4fa   :  { %7072 = vmatmul.mubr.msk.f32.gmra.mrb[198].mxu0 %vm2815_vm1, %v10657_v15  ;;  %v1011_v15 = vld [vmem:[%s12751_s3 + $0xaf8] sm:$0xff] }
 0x4fb   :  { %v10791_v47 = vpop.f32.mrb[38].mxu1  ;;  %7074 = vmatprep.mubr.msk.f32.mxu0 %vm8461_vm0, %v8462_v24 }
 0x4fc   :  { %v2249_v51 = vpop.f32.mrb[39].mxu1  ;;  %2511 = vmatmul.mubr.f32.gmra.mrb[144].mxu1 %v1002_v9 }
 0x4fd   :  { %2515 = vmatprep.mubr.f32.mxu1 %v1007_v44  ;;  %v1042_v44 = vld [vmem:[%s12751_s3 + $0xbf0] sm:$0xff] }
 0x4fe   :  { %7075 = vmatmul.mubr.msk.f32.gmra.mrb[200].mxu0 %vm2815_vm1, %v10669_v1  ;;  %v1015_v1 = vld [vmem:[%s12751_s3 + $0xb18] sm:$0xff] }
 0x4ff   :  { %v10803_v53 = vpop.f32.mrb[40].mxu1  ;;  %7077 = vmatprep.mubr.msk.f32.mxu0 %vm8461_vm0, %v8462_v24 }
 0x500   :  { %v2254_v56 = vpop.f32.mrb[41].mxu1  ;;  %2516 = vmatmul.mubr.f32.gmra.mrb[146].mxu1 %v1006_v17 }
 0x501   :  { %2520 = vmatprep.mubr.f32.mxu1 %v1011_v15  ;;  %v1046_v15 = vld [vmem:[%s12751_s3 + $0xc10] sm:$0xff] }
 0x502   :  { %7078 = vmatmul.mubr.msk.f32.gmra.mrb[202].mxu0 %vm2815_vm1, %v10681_v60  ;;  %v1019_v60 = vld [vmem:[%s12751_s3 + $0xb38] sm:$0xff] }
 0x503   :  { %v10815_v7 = vpop.f32.mrb[42].mxu1  ;;  %7080 = vmatprep.mubr.msk.f32.mxu0 %vm8461_vm0, %v8462_v24 }
 0x504   :  { %v2259_v61 = vpop.f32.mrb[43].mxu1  ;;  %2521 = vmatmul.mubr.f32.gmra.mrb[148].mxu1 %v1010_v26 }
 0x505   :  { %2525 = vmatprep.mubr.f32.mxu1 %v1015_v1  ;;  %v1050_v1 = vld [vmem:[%s12751_s3 + $0xc30] sm:$0xff] }
 0x506   :  { %7081 = vmatmul.mubr.msk.f32.gmra.mrb[204].mxu0 %vm2815_vm1, %v10693_v63  ;;  %v1018_v63 = vld [vmem:[%s12751_s3 + $0xb30] sm:$0xff] }
 0x507   :  { %v10827_v12 = vpop.f32.mrb[44].mxu1  ;;  %7083 = vmatprep.mubr.msk.f32.mxu0 %vm8461_vm0, %v8462_v24 }
 0x508   :  { %v2264_v4 = vpop.f32.mrb[45].mxu1  ;;  %2526 = vmatmul.mubr.f32.gmra.mrb[156].mxu1 %v1014_v35 }
 0x509   :  { %2530 = vmatprep.mubr.f32.mxu1 %v1019_v60  ;;  %v6410_v60 = vld [vmem:[%s12752_s4 + $0xa0] sm:$0xff]  ;;  %v6411_v4 = vld [vmem:[%s12752_s4 + $0xa8] sm:$0xff] }
 0x50a   :  { %7084 = vmatmul.mubr.msk.f32.gmra.mrb[206].mxu0 %vm2815_vm1, %v10705_v29  ;;  %v6400_v29 = vld [vmem:[%s12752_s4 + $0x98] sm:$0xff] }
 0x50b   :  { %v10845_v11 = vpop.f32.mrb[46].mxu1  ;;  %7094 = vmatprep.mubr.msk.f32.mxu0 %vm8461_vm0, %v8462_v24  ;;  %v7929_v21 = vpack.c.bf16 %v6400_v29, %v6399_v18  ;;  %v1063_v18 = vld [vmem:[%s12751_s3 + $0xc98] sm:$0xff] }
 0x50c   :  { %v2269_v33 = vpop.f32.mrb[47].mxu1  ;;  %2531 = vmatmul.mubr.f32.gmra.mrb[158].mxu1 %v1018_v63  ;;  %v7932_v63 = vpack.c.bf16 %v6411_v4, %v6410_v60  ;;  %v1095_v60 = vld [vmem:[%s12751_s3 + $0xd98] sm:$0xff] }
 0x50d   :  { %2535 = vmatprep.mubr.f32.mxu1 %v1023_v8  ;;  %v1058_v33 = vld [vmem:[%s12751_s3 + $0xc70] sm:$0xff] }
 0x50e   :  { %7095 = vmatmul.mubr.msk.f32.vlgmr.msra.gmra.mrb[208].mxu0 %vm2815_vm1, %v10723_v13  ;;  %v1026_v13 = vld [vmem:[%s12751_s3 + $0xb70] sm:$0xff] }
 0x50f   :  { %v10863_v59 = vpop.f32.mrb[48].mxu1  ;;  %7097 = vmatprep.mubr.msk.f32.mxu0 %vm8461_vm0, %v8462_v24  ;;  %7927 = vmatpush3.bf16.msra.mxu0 %v7926_v50  ;;  %v6412_v50 = vld [vmem:[%s12752_s4 + $0xb0] sm:$0xff] }
 0x510   :  { %v2274_v22 = vpop.f32.mrb[49].mxu1  ;;  %2536 = vmatmul.mubr.f32.gmra.mrb[160].mxu1 %v1022_v16  ;;  %7928 = vmatprep.subr.bf16.mxu0 %v8460_v0 }
 0x511   :  { %2540 = vmatprep.mubr.f32.mxu1 %v1027_v38 }
 0x512   :  { %7098 = vmatmul.mubr.msk.f32.gmra.mrb[210].mxu0 %vm2815_vm1, %v10741_v28  ;;  %v1035_v28 = vld [vmem:[%s12751_s3 + $0xbb8] sm:$0xff] }
 0x513   :  { %v10876_v25 = vpop.f32.mrb[50].mxu1  ;;  %7100 = vmatprep.mubr.msk.f32.mxu0 %vm8461_vm0, %v8462_v24  ;;  %7930 = vmatpush3.bf16.msra.mxu0 %v7929_v21  ;;  %v1067_v21 = vld [vmem:[%s12751_s3 + $0xcb8] sm:$0xff] }
 0x514   :  { %v2279_v20 = vpop.f32.mrb[51].mxu1  ;;  %2541 = vmatmul.mubr.f32.gmra.mrb[162].mxu1 %v1026_v13  ;;  %7931 = vmatprep.subr.bf16.mxu0 %v8460_v0 }
 0x515   :  { %2545 = vmatprep.mubr.f32.mxu1 %v1031_v43  ;;  %v1066_v43 = vld [vmem:[%s12751_s3 + $0xcb0] sm:$0xff] }
 0x516   :  { %7101 = vmatmul.mubr.msk.f32.gmra.mrb[212].mxu0 %vm2815_vm1, %v10754_v36  ;;  %v1039_v36 = vld [vmem:[%s12751_s3 + $0xbd8] sm:$0xff] }
 0x517   :  { %v10889_v57 = vpop.f32.mrb[52].mxu1  ;;  %7103 = vmatprep.mubr.msk.f32.mxu0 %vm8461_vm0, %v8462_v24 }
 0x518   :  { %v2284_v48 = vpop.f32.mrb[53].mxu1  ;;  %2546 = vmatmul.mubr.f32.gmra.mrb[164].mxu1 %v1030_v32 }
 0x519   :  { %2550 = vmatprep.mubr.f32.mxu1 %v1035_v28  ;;  %v1070_v28 = vld [vmem:[%s12751_s3 + $0xcd0] sm:$0xff] }
 0x51a   :  { %7104 = vmatmul.mubr.msk.f32.gmra.mrb[214].mxu0 %vm2815_vm1, %v10767_v39  ;;  %v1043_v39 = vld [vmem:[%s12751_s3 + $0xbf8] sm:$0xff] }
 0x51b   :  { %v10901_v40 = vpop.f32.mrb[54].mxu1  ;;  %7106 = vmatprep.mubr.msk.f32.mxu0 %vm8461_vm0, %v8462_v24 }
 0x51c   :  { %v2289_v3 = vpop.f32.mrb[55].mxu1  ;;  %2551 = vmatmul.mubr.f32.gmra.mrb[166].mxu1 %v1034_v30 }
 0x51d   :  { %2555 = vmatprep.mubr.f32.mxu1 %v1039_v36  ;;  %v1074_v36 = vld [vmem:[%s12751_s3 + $0xcf0] sm:$0xff] }
 0x51e   :  { %7107 = vmatmul.mubr.msk.f32.gmra.mrb[216].mxu0 %vm2815_vm1, %v10779_v55  ;;  %v1047_v55 = vld [vmem:[%s12751_s3 + $0xc18] sm:$0xff] }
 0x51f   :  { %v10913_v46 = vpop.f32.mrb[56].mxu1  ;;  %7109 = vmatprep.mubr.msk.f32.mxu0 %vm8461_vm0, %v8462_v24 }
 0x520   :  { %v2294_v9 = vpop.f32.mrb[57].mxu1  ;;  %2556 = vmatmul.mubr.f32.gmra.mrb[168].mxu1 %v1038_v52 }
 0x521   :  { %2560 = vmatprep.mubr.f32.mxu1 %v1043_v39  ;;  %v1078_v39 = vld [vmem:[%s12751_s3 + $0xd10] sm:$0xff] }
 0x522   :  { %7110 = vmatmul.mubr.msk.f32.gmra.mrb[218].mxu0 %vm2815_vm1, %v10791_v47  ;;  %v1051_v47 = vld [vmem:[%s12751_s3 + $0xc38] sm:$0xff] }
 0x523   :  { %v10925_v51 = vpop.f32.mrb[58].mxu1  ;;  %7112 = vmatprep.mubr.msk.f32.mxu0 %vm8461_vm0, %v8462_v24 }
 0x524   :  { %v2299_v17 = vpop.f32.mrb[59].mxu1  ;;  %2561 = vmatmul.mubr.f32.gmra.mrb[170].mxu1 %v1042_v44 }
 0x525   :  { %2565 = vmatprep.mubr.f32.mxu1 %v1047_v55  ;;  %v1082_v55 = vld [vmem:[%s12751_s3 + $0xd30] sm:$0xff] }
 0x526   :  { %7113 = vmatmul.mubr.msk.f32.gmra.mrb[220].mxu0 %vm2815_vm1, %v10803_v53  ;;  %v1055_v53 = vld [vmem:[%s12751_s3 + $0xc58] sm:$0xff] }
 0x527   :  { %v10937_v56 = vpop.f32.mrb[60].mxu1  ;;  %7115 = vmatprep.mubr.msk.f32.mxu0 %vm8461_vm0, %v8462_v24 }
 0x528   :  { %v2304_v26 = vpop.f32.mrb[61].mxu1  ;;  %2566 = vmatmul.mubr.f32.gmra.mrb[172].mxu1 %v1046_v15 }
 0x529   :  { %2570 = vmatprep.mubr.f32.mxu1 %v1051_v47  ;;  %v1086_v47 = vld [vmem:[%s12751_s3 + $0xd50] sm:$0xff] }
 0x52a   :  { %7116 = vmatmul.mubr.msk.f32.gmra.mrb[222].mxu0 %vm2815_vm1, %v10815_v7  ;;  %v1054_v7 = vld [vmem:[%s12751_s3 + $0xc50] sm:$0xff] }
 0x52b   :  { %v10949_v61 = vpop.f32.mrb[62].mxu1  ;;  %7118 = vmatprep.mubr.msk.f32.mxu0 %vm8461_vm0, %v8462_v24 }
 0x52c   :  { %v2309_v35 = vpop.f32.mrb[63].mxu1  ;;  %2571 = vmatmul.mubr.f32.gmra.mrb[174].mxu1 %v1050_v1 }
 0x52d   :  { %2575 = vmatprep.mubr.f32.mxu1 %v1055_v53  ;;  %v6423_v53 = vld [vmem:[%s12752_s4 + $0xc0] sm:$0xff]  ;;  %v6424_v35 = vld [vmem:[%s12752_s4 + $0xc8] sm:$0xff] }
 0x52e   :  { %7119 = vmatmul.mubr.msk.f32.gmra.mrb[224].mxu0 %vm2815_vm1, %v10827_v12  ;;  %v6413_v12 = vld [vmem:[%s12752_s4 + $0xb8] sm:$0xff] }
 0x52f   :  { %v10967_v5 = vpop.f32.mrb[64].mxu1  ;;  %7129 = vmatprep.mubr.msk.f32.mxu0 %vm8461_vm0, %v8462_v24  ;;  %v7935_v16 = vpack.c.bf16 %v6413_v12, %v6412_v50  ;;  %v1099_v50 = vld [vmem:[%s12751_s3 + $0xdb8] sm:$0xff] }
 0x530   :  { %v2314_v8 = vpop.f32.mrb[65].mxu1  ;;  %2576 = vmatmul.mubr.f32.gmra.mrb[176].mxu1 %v1054_v7  ;;  %v7938_v7 = vpack.c.bf16 %v6424_v35, %v6423_v53  ;;  %v1126_v53 = vld [vmem:[%s12751_s3 + $0xe90] sm:$0xff] }
 0x531   :  { %2580 = vmatprep.mubr.f32.mxu1 %v1059_v42  ;;  %v1094_v8 = vld [vmem:[%s12751_s3 + $0xd90] sm:$0xff] }
 0x532   :  { %7130 = vmatmul.mubr.msk.f32.vlgmr.msra.gmra.mrb[226].mxu0 %vm2815_vm1, %v10845_v11  ;;  %v1062_v11 = vld [vmem:[%s12751_s3 + $0xc90] sm:$0xff] }
 0x533   :  { %v10985_v29 = vpop.f32.mrb[66].mxu1  ;;  %7132 = vmatprep.mubr.msk.f32.mxu0 %vm8461_vm0, %v8462_v24  ;;  %7933 = vmatpush3.bf16.msra.mxu0 %v7932_v63  ;;  %v6425_v63 = vld [vmem:[%s12752_s4 + $0xd0] sm:$0xff] }
 0x534   :  { %v2319_v38 = vpop.f32.mrb[67].mxu1  ;;  %2581 = vmatmul.mubr.f32.gmra.mrb[178].mxu1 %v1058_v33  ;;  %7934 = vmatprep.subr.bf16.mxu0 %v8460_v0 }
 0x535   :  { %2585 = vmatprep.mubr.f32.mxu1 %v1063_v18 }
 0x536   :  { %7133 = vmatmul.mubr.msk.f32.gmra.mrb[228].mxu0 %vm2815_vm1, %v10863_v59  ;;  %v1071_v59 = vld [vmem:[%s12751_s3 + $0xcd8] sm:$0xff] }
 0x537   :  { %v10998_v22 = vpop.f32.mrb[68].mxu1  ;;  %7135 = vmatprep.mubr.msk.f32.mxu0 %vm8461_vm0, %v8462_v24  ;;  %7936 = vmatpush3.bf16.msra.mxu0 %v7935_v16  ;;  %v1103_v16 = vld [vmem:[%s12751_s3 + $0xdd8] sm:$0xff] }
 0x538   :  { %v2324_v13 = vpop.f32.mrb[69].mxu1  ;;  %2586 = vmatmul.mubr.f32.gmra.mrb[180].mxu1 %v1062_v11  ;;  %7937 = vmatprep.subr.bf16.mxu0 %v8460_v0 }
 0x539   :  { %2590 = vmatprep.mubr.f32.mxu1 %v1067_v21  ;;  %v1102_v21 = vld [vmem:[%s12751_s3 + $0xdd0] sm:$0xff] }
 0x53a   :  { %7136 = vmatmul.mubr.msk.f32.gmra.mrb[230].mxu0 %vm2815_vm1, %v10876_v25  ;;  %v1075_v25 = vld [vmem:[%s12751_s3 + $0xcf8] sm:$0xff] }
 0x53b   :  { %v11011_v20 = vpop.f32.mrb[70].mxu1  ;;  %7138 = vmatprep.mubr.msk.f32.mxu0 %vm8461_vm0, %v8462_v24 }
 0x53c   :  { %v2329_v32 = vpop.f32.mrb[71].mxu1  ;;  %2591 = vmatmul.mubr.f32.gmra.mrb[0].mxu1 %v1066_v43 }
 0x53d   :  { %2595 = vmatprep.mubr.f32.mxu1 %v1071_v59  ;;  %v1106_v59 = vld [vmem:[%s12751_s3 + $0xdf0] sm:$0xff] }
 0x53e   :  { %7139 = vmatmul.mubr.msk.f32.gmra.mrb[232].mxu0 %vm2815_vm1, %v10889_v57  ;;  %v1079_v57 = vld [vmem:[%s12751_s3 + $0xd18] sm:$0xff] }
 0x53f   :  { %v11023_v48 = vpop.f32.mrb[72].mxu1  ;;  %7141 = vmatprep.mubr.msk.f32.mxu0 %vm8461_vm0, %v8462_v24 }
 0x540   :  { %v2334_v30 = vpop.f32.mrb[73].mxu1  ;;  %2596 = vmatmul.mubr.f32.gmra.mrb[2].mxu1 %v1070_v28 }
 0x541   :  { %2600 = vmatprep.mubr.f32.mxu1 %v1075_v25  ;;  %v1110_v25 = vld [vmem:[%s12751_s3 + $0xe10] sm:$0xff] }
 0x542   :  { %7142 = vmatmul.mubr.msk.f32.gmra.mrb[234].mxu0 %vm2815_vm1, %v10901_v40  ;;  %v1083_v40 = vld [vmem:[%s12751_s3 + $0xd38] sm:$0xff] }
 0x543   :  { %v11035_v3 = vpop.f32.mrb[74].mxu1  ;;  %7144 = vmatprep.mubr.msk.f32.mxu0 %vm8461_vm0, %v8462_v24 }
 0x544   :  { %v2339_v52 = vpop.f32.mrb[75].mxu1  ;;  %2601 = vmatmul.mubr.f32.gmra.mrb[4].mxu1 %v1074_v36 }
 0x545   :  { %2605 = vmatprep.mubr.f32.mxu1 %v1079_v57  ;;  %v1114_v57 = vld [vmem:[%s12751_s3 + $0xe30] sm:$0xff] }
 0x546   :  { %7145 = vmatmul.mubr.msk.f32.gmra.mrb[236].mxu0 %vm2815_vm1, %v10913_v46  ;;  %v1087_v46 = vld [vmem:[%s12751_s3 + $0xd58] sm:$0xff] }
 0x547   :  { %v11047_v9 = vpop.f32.mrb[76].mxu1  ;;  %7147 = vmatprep.mubr.msk.f32.mxu0 %vm8461_vm0, %v8462_v24 }
 0x548   :  { %v2344_v44 = vpop.f32.mrb[77].mxu1  ;;  %2606 = vmatmul.mubr.f32.gmra.mrb[182].mxu1 %v1078_v39 }
 0x549   :  { %2610 = vmatprep.mubr.f32.mxu1 %v1083_v40  ;;  %v1118_v40 = vld [vmem:[%s12751_s3 + $0xe50] sm:$0xff] }
 0x54a   :  { %7148 = vmatmul.mubr.msk.f32.gmra.mrb[238].mxu0 %vm2815_vm1, %v10925_v51  ;;  %v1091_v51 = vld [vmem:[%s12751_s3 + $0xd78] sm:$0xff] }
 0x54b   :  { %v11059_v17 = vpop.f32.mrb[78].mxu1  ;;  %7150 = vmatprep.mubr.msk.f32.mxu0 %vm8461_vm0, %v8462_v24 }
 0x54c   :  { %v2349_v15 = vpop.f32.mrb[79].mxu1  ;;  %2611 = vmatmul.mubr.f32.gmra.mrb[184].mxu1 %v1082_v55 }
 0x54d   :  { %2615 = vmatprep.mubr.f32.mxu1 %v1087_v46  ;;  %v1122_v46 = vld [vmem:[%s12751_s3 + $0xe70] sm:$0xff] }
 0x54e   :  { %7151 = vmatmul.mubr.msk.f32.gmra.mrb[240].mxu0 %vm2815_vm1, %v10937_v56  ;;  %v1090_v56 = vld [vmem:[%s12751_s3 + $0xd70] sm:$0xff] }
 0x54f   :  { %v11071_v26 = vpop.f32.mrb[80].mxu1  ;;  %7153 = vmatprep.mubr.msk.f32.mxu0 %vm8461_vm0, %v8462_v24 }
 0x550   :  { %v2354_v1 = vpop.f32.mrb[81].mxu1  ;;  %2616 = vmatmul.mubr.f32.gmra.mrb[186].mxu1 %v1086_v47 }
 0x551   :  { %2620 = vmatprep.mubr.f32.mxu1 %v1091_v51  ;;  %v6436_v51 = vld [vmem:[%s12752_s4 + $0xe0] sm:$0xff]  ;;  %v6437_v1 = vld [vmem:[%s12752_s4 + $0xe8] sm:$0xff] }
 0x552   :  { %7154 = vmatmul.mubr.msk.f32.gmra.mrb[242].mxu0 %vm2815_vm1, %v10949_v61  ;;  %v6426_v61 = vld [vmem:[%s12752_s4 + $0xd8] sm:$0xff] }
 0x553   :  { %v11089_v4 = vpop.f32.mrb[82].mxu1  ;;  %7164 = vmatprep.mubr.msk.f32.mxu0 %vm8461_vm0, %v8462_v24  ;;  %v7941_v33 = vpack.c.bf16 %v6426_v61, %v6425_v63  ;;  %v6438_v63 = vld [vmem:[%s12752_s4 + $0xf0] sm:$0xff] }
 0x554   :  { %v2359_v42 = vpop.f32.mrb[83].mxu1  ;;  %2621 = vmatmul.mubr.f32.gmra.mrb[188].mxu1 %v1090_v56  ;;  %v1131_v56 = vld [vmem:[%s12751_s3 + $0xeb8] sm:$0xff] }
 0x555   :  { %2625 = vmatprep.mubr.f32.mxu1 %v1095_v60 }
 0x556   :  { %7165 = vmatmul.mubr.msk.f32.vlgmr.msra.gmra.mrb[244].mxu0 %vm2815_vm1, %v10967_v5  ;;  %v1098_v5 = vld [vmem:[%s12751_s3 + $0xdb0] sm:$0xff] }
 0x557   :  { %v11107_v12 = vpop.f32.mrb[84].mxu1  ;;  %7167 = vmatprep.mubr.msk.f32.mxu0 %vm8461_vm0, %v8462_v24  ;;  %7939 = vmatpush3.bf16.msra.mxu0 %v7938_v7  ;;  %v7944_v7 = vpack.c.bf16 %v6437_v1, %v6436_v51 }
 0x558   :  { %v2364_v18 = vpop.f32.mrb[85].mxu1  ;;  %2626 = vmatmul.mubr.f32.gmra.mrb[190].mxu1 %v1094_v8  ;;  %7940 = vmatprep.subr.bf16.mxu0 %v8460_v0  ;;  %v1130_v8 = vld [vmem:[%s12751_s3 + $0xeb0] sm:$0xff] }
 0x559   :  { %2630 = vmatprep.mubr.f32.mxu1 %v1099_v50 }
 0x55a   :  { %7168 = vmatmul.mubr.msk.f32.gmra.mrb[246].mxu0 %vm2815_vm1, %v10985_v29  ;;  %v1107_v29 = vld [vmem:[%s12751_s3 + $0xdf8] sm:$0xff] }
 0x55b   :  { %v11120_v38 = vpop.f32.mrb[86].mxu1  ;;  %7170 = vmatprep.mubr.msk.f32.mxu0 %vm8461_vm0, %v8462_v24  ;;  %7942 = vmatpush3.bf16.msra.mxu0 %v7941_v33  ;;  %v1135_v33 = vld [vmem:[%s12751_s3 + $0xed8] sm:$0xff] }
 0x55c   :  { %v2369_v11 = vpop.f32.mrb[87].mxu1  ;;  %2631 = vmatmul.mubr.f32.gmra.mrb[192].mxu1 %v1098_v5  ;;  %7943 = vmatprep.subr.bf16.mxu0 %v8460_v0 }
 0x55d   :  { %2635 = vmatprep.mubr.f32.mxu1 %v1103_v16 }
 0x55e   :  { %7171 = vmatmul.mubr.msk.f32.gmra.mrb[248].mxu0 %vm2815_vm1, %v10998_v22  ;;  %v1111_v22 = vld [vmem:[%s12751_s3 + $0xe18] sm:$0xff] }
 0x55f   :  { %v11133_v13 = vpop.f32.mrb[88].mxu1  ;;  %7173 = vmatprep.mubr.msk.f32.mxu0 %vm8461_vm0, %v8462_v24 }
 0x560   :  { %v2374_v43 = vpop.f32.mrb[89].mxu1  ;;  %2636 = vmatmul.mubr.f32.gmra.mrb[194].mxu1 %v1102_v21 }
 0x561   :  { %2640 = vmatprep.mubr.f32.mxu1 %v1107_v29  ;;  %v1139_v29 = vld [vmem:[%s12751_s3 + $0xef8] sm:$0xff] }
 0x562   :  { %7174 = vmatmul.mubr.msk.f32.gmra.mrb[250].mxu0 %vm2815_vm1, %v11011_v20  ;;  %v1115_v20 = vld [vmem:[%s12751_s3 + $0xe38] sm:$0xff] }
 0x563   :  { %v11145_v32 = vpop.f32.mrb[90].mxu1  ;;  %7176 = vmatprep.mubr.msk.f32.mxu0 %vm8461_vm0, %v8462_v24 }
 0x564   :  { %v2379_v28 = vpop.f32.mrb[91].mxu1  ;;  %2641 = vmatmul.mubr.f32.gmra.mrb[196].mxu1 %v1106_v59 }
 0x565   :  { %2645 = vmatprep.mubr.f32.mxu1 %v1111_v22 }
 0x566   :  { %7177 = vmatmul.mubr.msk.f32.gmra.mrb[252].mxu0 %vm2815_vm1, %v11023_v48  ;;  %v1119_v48 = vld [vmem:[%s12751_s3 + $0xe58] sm:$0xff] }
 0x567   :  { %v11157_v30 = vpop.f32.mrb[92].mxu1  ;;  %7179 = vmatprep.mubr.msk.f32.mxu0 %vm8461_vm0, %v8462_v24 }
 0x568   :  { %v2384_v36 = vpop.f32.mrb[93].mxu1  ;;  %2646 = vmatmul.mubr.f32.gmra.mrb[198].mxu1 %v1110_v25  ;;  %v1143_v25 = vld [vmem:[%s12751_s3 + $0xf18] sm:$0xff] }
 0x569   :  { %2650 = vmatprep.mubr.f32.mxu1 %v1115_v20 }
 0x56a   :  { %7180 = vmatmul.mubr.msk.f32.gmra.mrb[254].mxu0 %vm2815_vm1, %v11035_v3  ;;  %v1123_v3 = vld [vmem:[%s12751_s3 + $0xe78] sm:$0xff] }
 0x56b   :  { %v11169_v52 = vpop.f32.mrb[94].mxu1  ;;  %7182 = vmatprep.mubr.msk.f32.mxu0 %vm8461_vm0, %v8462_v24 }
 0x56c   :  { %v2389_v39 = vpop.f32.mrb[95].mxu1  ;;  %2651 = vmatmul.mubr.f32.gmra.mrb[200].mxu1 %v1114_v57 }
 0x56d   :  { %2655 = vmatprep.mubr.f32.mxu1 %v1119_v48  ;;  %v1142_v48 = vld [vmem:[%s12751_s3 + $0xf10] sm:$0xff] }
 0x56e   :  { %7183 = vmatmul.mubr.msk.f32.gmra.mrb[0].mxu0 %vm2815_vm1, %v11047_v9  ;;  %v1127_v9 = vld [vmem:[%s12751_s3 + $0xe98] sm:$0xff] }
 0x56f   :  { %v11181_v44 = vpop.f32.mrb[96].mxu1  ;;  %7185 = vmatprep.mubr.msk.f32.mxu0 %vm8461_vm0, %v8462_v24 }
 0x570   :  { %v2394_v55 = vpop.f32.mrb[97].mxu1  ;;  %2656 = vmatmul.mubr.f32.gmra.mrb[202].mxu1 %v1118_v40 }
 0x571   :  { %2660 = vmatprep.mubr.f32.mxu1 %v1123_v3 }
 0x572   :  { %7186 = vmatmul.mubr.msk.f32.gmra.mrb[2].mxu0 %vm2815_vm1, %v11059_v17 }
 0x573   :  { %v11193_v15 = vpop.f32.mrb[98].mxu1  ;;  %7188 = vmatprep.mubr.msk.f32.mxu0 %vm8461_vm0, %v8462_v24 }
 0x574   :  { %v2399_v47 = vpop.f32.mrb[99].mxu1  ;;  %2661 = vmatmul.mubr.f32.gmra.mrb[204].mxu1 %v1122_v46  ;;  %v1146_v46 = vld [vmem:[%s12751_s3 + $0xf30] sm:$0xff] }
 0x575   :  { %v11203_v17 = vpop.f32.mrb[154].mxu0  ;;  %2665 = vmatprep.mubr.f32.mxu1 %v1127_v9 }
 0x576   :  { %v6991_v35 = vpop.f32.mrb[155].mxu0  ;;  %7189 = vmatmul.mubr.msk.f32.gmra.mrb[4].mxu0 %vm2815_vm1, %v11071_v26  ;;  %v6439_v26 = vld [vmem:[%s12752_s4 + $0xf8] sm:$0xff] }
 0x577   :  { %v11213_v60 = vpop.f32.mrb[100].mxu1  ;;  %7199 = vmatprep.mubr.msk.f32.mxu0 %vm8461_vm0, %v8462_v24  ;;  %v7947_v5 = vpack.c.bf16 %v6439_v26, %v6438_v63  ;;  %v1154_v63 = vld [vmem:[%s12751_s3 + $0xf70] sm:$0xff] }
 0x578   :  { %v2404_v42 = vpop.f32.mrb[101].mxu1  ;;  %2666 = vmatmul.mubr.f32.gmra.mrb[206].mxu1 %v1126_v53  ;;  %v1150_v53 = vld [vmem:[%s12751_s3 + $0xf50] sm:$0xff] }
 0x579   :  { %v11223_v61 = vpop.f32.mrb[156].mxu0  ;;  %2670 = vmatprep.mubr.f32.mxu1 %v1131_v56 }
 0x57a   :  { %v6994_v50 = vpop.f32.mrb[157].mxu0  ;;  %7200 = vmatmul.mubr.msk.f32.vlgmr.msra.gmra.mrb[6].mxu0 %vm2815_vm1, %v11089_v4  ;;  %v1134_v4 = vld [vmem:[%s12751_s3 + $0xed0] sm:$0xff] }
 0x57b   :  { %v11233_v18 = vpop.f32.mrb[102].mxu1  ;;  %7202 = vmatprep.mubr.msk.f32.mxu0 %vm8461_vm0, %v8462_v24  ;;  %7945 = vmatpush3.bf16.msra.mxu0 %v7944_v7 }
 0x57c   :  { %v2409_v16 = vpop.f32.mrb[103].mxu1  ;;  %2671 = vmatmul.mubr.f32.gmra.mrb[208].mxu1 %v1130_v8  ;;  %7946 = vmatprep.subr.bf16.mxu0 %v8460_v0 }
 0x57d   :  { %v11238_v11 = vpop.f32.mrb[158].mxu0  ;;  %2675 = vmatprep.mubr.f32.mxu1 %v1135_v33 }
 0x57e   :  { %v6997_v21 = vpop.f32.mrb[159].mxu0  ;;  %7203 = vmatmul.mubr.msk.f32.gmra.mrb[8].mxu0 %vm2815_vm1, %v11107_v12  ;;  %v1138_v12 = vld [vmem:[%s12751_s3 + $0xef0] sm:$0xff] }
 0x57f   :  { %v11248_v43 = vpop.f32.mrb[104].mxu1  ;;  %7205 = vmatprep.mubr.msk.f32.mxu0 %vm8461_vm0, %v8462_v24  ;;  %7948 = vmatpush3.bf16.msra.mxu0 %v7947_v5  ;;  %v1158_v5 = vld [vmem:[%s12751_s3 + $0xf90] sm:$0xff] }
 0x580   :  { %v2414_v59 = vpop.f32.mrb[105].mxu1  ;;  %2676 = vmatmul.mubr.f32.gmra.mrb[210].mxu1 %v1134_v4  ;;  %7949 = vmatprep.subr.bf16.mxu0 %v8460_v0 }
 0x581   :  { %v11253_v22 = vpop.f32.mrb[160].mxu0  ;;  %2680 = vmatprep.mubr.f32.mxu1 %v1139_v29  ;;  %v6449_v29 = vld [vmem:[%s12752_s4 + $0x100] sm:$0xff]  ;;  %v6450_v59 = vld [vmem:[%s12752_s4 + $0x108] sm:$0xff] }
 0x582   :  { %v7000_v28 = vpop.f32.mrb[161].mxu0  ;;  %7206 = vmatmul.mubr.msk.f32.gmra.mrb[10].mxu0 %vm2815_vm1, %v11120_v38  ;;  %v1147_v38 = vld [vmem:[%s12751_s3 + $0xf38] sm:$0xff] }
 0x583   :  { %v11263_v20 = vpop.f32.mrb[106].mxu1  ;;  %7208 = vmatprep.mubr.msk.f32.mxu0 %vm8461_vm0, %v8462_v24 }
 0x584   :  { %v2419_v36 = vpop.f32.mrb[107].mxu1  ;;  %2681 = vmatmul.mubr.f32.gmra.mrb[212].mxu1 %v1138_v12  ;;  %v1162_v12 = vld [vmem:[%s12751_s3 + $0xfb0] sm:$0xff] }
 0x585   :  { %v11267_v57 = vpop.f32.mrb[162].mxu0  ;;  %2685 = vmatprep.mubr.f32.mxu1 %v1143_v25  ;;  %v1167_v36 = vld [vmem:[%s12751_s3 + $0xfd8] sm:$0xff] }
 0x586   :  { %v7003_v39 = vpop.f32.mrb[163].mxu0  ;;  %7209 = vmatmul.mubr.msk.f32.gmra.mrb[12].mxu0 %vm2815_vm1, %v11133_v13  ;;  %v1151_v13 = vld [vmem:[%s12751_s3 + $0xf58] sm:$0xff] }
 0x587   :  { %v11277_v40 = vpop.f32.mrb[108].mxu1  ;;  %7211 = vmatprep.mubr.msk.f32.mxu0 %vm8461_vm0, %v8462_v24  ;;  %v7950_v39 = vpack.c.bf16 %v6450_v59, %v6449_v29 }
 0x588   :  { %v2424_v3 = vpop.f32.mrb[109].mxu1  ;;  %2686 = vmatmul.mubr.f32.gmra.mrb[214].mxu1 %v1142_v48 }
 0x589   :  { %v11281_v55 = vpop.f32.mrb[164].mxu0  ;;  %2690 = vmatprep.mubr.f32.mxu1 %v1147_v38 }
 0x58a   :  { %v7006_v9 = vpop.f32.mrb[165].mxu0  ;;  %7212 = vmatmul.mubr.msk.f32.gmra.mrb[14].mxu0 %vm2815_vm1, %v11145_v32  ;;  %v1155_v32 = vld [vmem:[%s12751_s3 + $0xf78] sm:$0xff] }
 0x58b   :  { %v11291_v47 = vpop.f32.mrb[110].mxu1  ;;  %7214 = vmatprep.mubr.msk.f32.mxu0 %vm8461_vm0, %v8462_v24 }
 0x58c   :  { %v2429_v51 = vpop.f32.mrb[111].mxu1  ;;  %2691 = vmatmul.mubr.f32.gmra.mrb[216].mxu1 %v1146_v46  ;;  %v1166_v46 = vld [vmem:[%s12751_s3 + $0xfd0] sm:$0xff] }
 0x58d   :  { %v11295_v1 = vpop.f32.mrb[166].mxu0  ;;  %2695 = vmatprep.mubr.f32.mxu1 %v1151_v13  ;;  %v1171_v51 = vld [vmem:[%s12751_s3 + $0xff8] sm:$0xff] }
 0x58e   :  { %v7009_v35 = vpop.f32.mrb[167].mxu0  ;;  %7215 = vmatmul.mubr.msk.f32.gmra.mrb[16].mxu0 %vm2815_vm1, %v11157_v30  ;;  %v1159_v30 = vld [vmem:[%s12751_s3 + $0xf98] sm:$0xff] }
 0x58f   :  { %v11305_v56 = vpop.f32.mrb[112].mxu1  ;;  %7217 = vmatprep.mubr.msk.f32.mxu0 %vm8461_vm0, %v8462_v24 }
 0x590   :  { %v2434_v7 = vpop.f32.mrb[113].mxu1  ;;  %2696 = vmatmul.mubr.f32.gmra.mrb[218].mxu1 %v1150_v53 }
 0x591   :  { %v11309_v42 = vpop.f32.mrb[168].mxu0  ;;  %2700 = vmatprep.mubr.f32.mxu1 %v1155_v32 }
 0x592   :  { %v7012_v26 = vpop.f32.mrb[169].mxu0  ;;  %7218 = vmatmul.mubr.msk.f32.gmra.mrb[18].mxu0 %vm2815_vm1, %v11169_v52  ;;  %v1163_v52 = vld [vmem:[%s12751_s3 + $0xfb8] sm:$0xff] }
 0x593   :  { %v11319_v8 = vpop.f32.mrb[114].mxu1  ;;  %7220 = vmatprep.mubr.msk.f32.mxu0 %vm8461_vm0, %v8462_v24  ;;  %v1175_v26 = vld [vmem:[%s12751_s3 + $0x1018] sm:$0xff] }
 0x594   :  { %v2439_v50 = vpop.f32.mrb[115].mxu1  ;;  %2701 = vmatmul.mubr.f32.gmra.mrb[220].mxu1 %v1154_v63 }
 0x595   :  { %v11323_v33 = vpop.f32.mrb[170].mxu0  ;;  %2705 = vmatprep.mubr.f32.mxu1 %v1159_v30 }
 0x596   :  { %v7015_v16 = vpop.f32.mrb[171].mxu0  ;;  %7221 = vmatmul.mubr.msk.f32.gmra.mrb[20].mxu0 %vm2815_vm1, %v11181_v44 }
 0x597   :  { %v11333_v4 = vpop.f32.mrb[116].mxu1  ;;  %7223 = vmatprep.mubr.msk.f32.mxu0 %vm8461_vm0, %v8462_v24 }
 0x598   :  { %v2444_v21 = vpop.f32.mrb[117].mxu1  ;;  %2706 = vmatmul.mubr.f32.gmra.mrb[222].mxu1 %v1158_v5 }
 0x599   :  { %v3046_v44 = vpop.f32.mrb[172].mxu0  ;;  %2710 = vmatprep.mubr.f32.mxu1 %v1163_v52  ;;  %v1179_v52 = vld [vmem:[%s12751_s3 + $0x1038] sm:$0xff] }
 0x59a   :  { %v11347_v28 = vadd.f32 %v3046_v44, %v11203_v17  ;;  %v7026_v25 = vpop.f32.mrb[173].mxu0  ;;  %7224 = vmatmul.mubr.msk.f32.gmra.mrb[22].mxu0 %vm2815_vm1, %v11193_v15  ;;  %v6451_v17 = vld [vmem:[%s12752_s4 + $0x110] sm:$0xff]  ;;  %v6452_v15 = vld [vmem:[%s12752_s4 + $0x118] sm:$0xff] }
 0x59b   :  { %v11354_v48 = vpop.f32.mrb[118].mxu1  ;;  %7234 = vmatprep.mubr.msk.f32.mxu0 %vm8461_vm0, %v8462_v24  ;;  %v7953_v35 = vpack.c.bf16 %v6452_v15, %v6451_v17  ;;  %v1187_v17 = vld [vmem:[%s12751_s3 + $0x1078] sm:$0xff] }
 0x59c   :  { %v2449_v38 = vpop.f32.mrb[119].mxu1  ;;  %2711 = vmatmul.mubr.f32.gmra.mrb[224].mxu1 %v1162_v12  ;;  %v1183_v12 = vld [vmem:[%s12751_s3 + $0x1058] sm:$0xff] }
 0x59d   :  { %v3051_v3 = vpop.f32.mrb[174].mxu0  ;;  %2715 = vmatprep.mubr.f32.mxu1 %v1167_v36 }
 0x59e   :  { %v11368_v9 = vadd.f32 %v3051_v3, %v11223_v61  ;;  %v7029_v13 = vpop.f32.mrb[175].mxu0  ;;  %7235 = vmatmul.mubr.msk.f32.vlgmr.msra.gmra.mrb[24].mxu0 %vm2815_vm1, %v11213_v60  ;;  %v1170_v60 = vld [vmem:[%s12751_s3 + $0xff0] sm:$0xff] }
 0x59f   :  { %v11375_v53 = vpop.f32.mrb[120].mxu1  ;;  %7237 = vmatprep.mubr.msk.f32.mxu0 %vm8461_vm0, %v8462_v24  ;;  %7951 = vmatpush3.bf16.msra.mxu0 %v7950_v39 }
 0x5a0   :  { %v2454_v32 = vpop.f32.mrb[121].mxu1  ;;  %2716 = vmatmul.mubr.f32.gmra.mrb[226].mxu1 %v1166_v46  ;;  %7952 = vmatprep.subr.bf16.mxu0 %v8460_v0 }
 0x5a1   :  { %v3056_v61 = vpop.f32.mrb[176].mxu0  ;;  %2720 = vmatprep.mubr.f32.mxu1 %v1171_v51  ;;  %v1191_v51 = vld [vmem:[%s12751_s3 + $0x1098] sm:$0xff] }
 0x5a2   :  { %v11384_v7 = vadd.f32 %v3056_v61, %v11238_v11  ;;  %v7032_v63 = vpop.f32.mrb[177].mxu0  ;;  %7238 = vmatmul.mubr.msk.f32.gmra.mrb[26].mxu0 %vm2815_vm1, %v11233_v18  ;;  %v1174_v18 = vld [vmem:[%s12751_s3 + $0x1010] sm:$0xff] }
 0x5a3   :  { %v11391_v30 = vpop.f32.mrb[122].mxu1  ;;  %7240 = vmatprep.mubr.msk.f32.mxu0 %vm8461_vm0, %v8462_v24  ;;  %7954 = vmatpush3.bf16.msra.mxu0 %v7953_v35  ;;  %v1195_v63 = vld [vmem:[%s12751_s3 + $0x10b8] sm:$0xff] }
 0x5a4   :  { %v2459_v50 = vpop.f32.mrb[123].mxu1  ;;  %2721 = vmatmul.mubr.f32.gmra.mrb[228].mxu1 %v1170_v60  ;;  %7955 = vmatprep.subr.bf16.mxu0 %v8460_v0 }
 0x5a5   :  { %v3061_v11 = vpop.f32.mrb[178].mxu0  ;;  %2725 = vmatprep.mubr.f32.mxu1 %v1175_v26 }
 0x5a6   :  { %v11400_v5 = vadd.f32 %v3061_v11, %v11253_v22  ;;  %v7035_v16 = vpop.f32.mrb[179].mxu0  ;;  %7241 = vmatmul.mubr.msk.f32.gmra.mrb[28].mxu0 %vm2815_vm1, %v11248_v43  ;;  %v1178_v22 = vld [vmem:[%s12751_s3 + $0x1030] sm:$0xff] }
 0x5a7   :  { %v11407_v21 = vpop.f32.mrb[124].mxu1  ;;  %7243 = vmatprep.mubr.msk.f32.mxu0 %vm8461_vm0, %v8462_v24  ;;  %v1199_v16 = vld [vmem:[%s12751_s3 + $0x10d8] sm:$0xff] }
 0x5a8   :  { %v2464_v29 = vpop.f32.mrb[125].mxu1  ;;  %2726 = vmatmul.mubr.f32.gmra.mrb[230].mxu1 %v1174_v18 }
 0x5a9   :  { %v3066_v59 = vpop.f32.mrb[180].mxu0  ;;  %2730 = vmatprep.mubr.f32.mxu1 %v1179_v52 }
 0x5aa   :  { %v11415_v44 = vadd.f32 %v3066_v59, %v11267_v57  ;;  %v7038_v43 = vpop.f32.mrb[181].mxu0  ;;  %7244 = vmatmul.mubr.msk.f32.gmra.mrb[30].mxu0 %vm2815_vm1, %v11263_v20  ;;  %v1182_v57 = vld [vmem:[%s12751_s3 + $0x1050] sm:$0xff]  ;;  %v6463_v59 = vld [vmem:[%s12752_s4 + $0x128] sm:$0xff] }
 0x5ab   :  { %v11422_v25 = vpop.f32.mrb[126].mxu1  ;;  %7246 = vmatprep.mubr.msk.f32.mxu0 %vm8461_vm0, %v8462_v24 }
 0x5ac   :  { %v2469_v36 = vpop.f32.mrb[127].mxu1  ;;  %2731 = vmatmul.mubr.f32.gmra.mrb[232].mxu1 %v1178_v22  ;;  %v1198_v22 = vld [vmem:[%s12751_s3 + $0x10d0] sm:$0xff] }
 0x5ad   :  { %v3071_v39 = vpop.f32.mrb[182].mxu0  ;;  %2735 = vmatprep.mubr.f32.mxu1 %v1183_v12  ;;  %v1203_v36 = vld [vmem:[%s12751_s3 + $0x10f8] sm:$0xff] }
 0x5ae   :  { %v11430_v38 = vadd.f32 %v3071_v39, %v11281_v55  ;;  %v7041_v20 = vpop.f32.mrb[183].mxu0  ;;  %7247 = vmatmul.mubr.msk.f32.gmra.mrb[32].mxu0 %vm2815_vm1, %v11277_v40  ;;  %v1186_v55 = vld [vmem:[%s12751_s3 + $0x1070] sm:$0xff] }
 0x5af   :  { %v11437_v15 = vpop.f32.mrb[128].mxu1  ;;  %7249 = vmatprep.mubr.msk.f32.mxu0 %vm8461_vm0, %v8462_v24 }
 0x5b0   :  { %v2474_v3 = vpop.f32.mrb[129].mxu1  ;;  %2736 = vmatmul.mubr.f32.gmra.mrb[234].mxu1 %v1182_v57 }
 0x5b1   :  { %v3076_v46 = vpop.f32.mrb[184].mxu0  ;;  %2740 = vmatprep.mubr.f32.mxu1 %v1187_v17  ;;  %v1202_v3 = vld [vmem:[%s12751_s3 + $0x10f0] sm:$0xff] }
 0x5b2   :  { %v11445_v13 = vadd.f32 %v3076_v46, %v11295_v1  ;;  %v7044_v40 = vpop.f32.mrb[185].mxu0  ;;  %7250 = vmatmul.mubr.msk.f32.gmra.mrb[34].mxu0 %vm2815_vm1, %v11291_v47  ;;  %v1190_v1 = vld [vmem:[%s12751_s3 + $0x1090] sm:$0xff] }
 0x5b3   :  { %v11452_v35 = vpop.f32.mrb[130].mxu1  ;;  %7252 = vmatprep.mubr.msk.f32.mxu0 %vm8461_vm0, %v8462_v24  ;;  %v1207_v40 = vld [vmem:[%s12751_s3 + $0x1118] sm:$0xff] }
 0x5b4   :  { %v2479_v32 = vpop.f32.mrb[131].mxu1  ;;  %2741 = vmatmul.mubr.f32.gmra.mrb[236].mxu1 %v1186_v55 }
 0x5b5   :  { %v3081_v61 = vpop.f32.mrb[186].mxu0  ;;  %2745 = vmatprep.mubr.f32.mxu1 %v1191_v51 }
 0x5b6   :  { %v11460_v60 = vadd.f32 %v3081_v61, %v11309_v42  ;;  %v7047_v47 = vpop.f32.mrb[187].mxu0  ;;  %7253 = vmatmul.mubr.msk.f32.gmra.mrb[36].mxu0 %vm2815_vm1, %v11305_v56  ;;  %v1194_v42 = vld [vmem:[%s12751_s3 + $0x10b0] sm:$0xff] }
 0x5b7   :  { %v11467_v26 = vpop.f32.mrb[132].mxu1  ;;  %7255 = vmatprep.mubr.msk.f32.mxu0 %vm8461_vm0, %v8462_v24 }
 0x5b8   :  { %v2484_v50 = vpop.f32.mrb[133].mxu1  ;;  %2746 = vmatmul.mubr.f32.gmra.mrb[238].mxu1 %v1190_v1 }
 0x5b9   :  { %v3086_v11 = vpop.f32.mrb[188].mxu0  ;;  %2750 = vmatprep.mubr.f32.mxu1 %v1195_v63  ;;  %v1211_v63 = vld [vmem:[%s12751_s3 + $0x1138] sm:$0xff] }
 0x5ba   :  { %v11475_v18 = vadd.f32 %v3086_v11, %v11323_v33  ;;  %v7050_v56 = vpop.f32.mrb[189].mxu0  ;;  %7256 = vmatmul.mubr.msk.f32.gmra.mrb[38].mxu0 %vm2815_vm1, %v11319_v8  ;;  %v6462_v33 = vld [vmem:[%s12752_s4 + $0x120] sm:$0xff] }
 0x5bb   :  { %v11482_v52 = vpop.f32.mrb[134].mxu1  ;;  %7258 = vmatprep.mubr.msk.f32.mxu0 %vm8461_vm0, %v8462_v24  ;;  %v7956_v57 = vpack.c.bf16 %v6463_v59, %v6462_v33 }
 0x5bc   :  { %v2489_v29 = vpop.f32.mrb[135].mxu1  ;;  %2751 = vmatmul.mubr.f32.gmra.mrb[240].mxu1 %v1194_v42 }
 0x5bd   :  { %v3188_v8 = vpop.f32.mrb[190].mxu0  ;;  %2755 = vmatprep.mubr.f32.mxu1 %v1199_v16  ;;  %v1215_v16 = vld [vmem:[%s12751_s3 + $0x1158] sm:$0xff] }
 0x5be   :  { %v11496_v43 = vadd.f32 %v3188_v8, %v11347_v28  ;;  %v7061_v12 = vpop.f32.mrb[191].mxu0  ;;  %7259 = vmatmul.mubr.msk.f32.gmra.mrb[40].mxu0 %vm2815_vm1, %v11333_v4  ;;  %v6464_v28 = vld [vmem:[%s12752_s4 + $0x130] sm:$0xff]  ;;  %v6465_v4 = vld [vmem:[%s12752_s4 + $0x138] sm:$0xff] }
 0x5bf   :  { %v11503_v39 = vpop.f32.mrb[136].mxu1  ;;  %7269 = vmatprep.mubr.msk.f32.mxu0 %vm8461_vm0, %v8462_v24  ;;  %v7959_v32 = vpack.c.bf16 %v6465_v4, %v6464_v28  ;;  %v1223_v28 = vld [vmem:[%s12751_s3 + $0x1198] sm:$0xff] }
 0x5c0   :  { %v2494_v20 = vpop.f32.mrb[137].mxu1  ;;  %2756 = vmatmul.mubr.f32.gmra.mrb[242].mxu1 %v1198_v22  ;;  %v1219_v22 = vld [vmem:[%s12751_s3 + $0x1178] sm:$0xff] }
 0x5c1   :  { %v3193_v17 = vpop.f32.mrb[192].mxu0  ;;  %2760 = vmatprep.mubr.f32.mxu1 %v1203_v36 }
 0x5c2   :  { %v11517_v46 = vadd.f32 %v3193_v17, %v11368_v9  ;;  %v7064_v55 = vpop.f32.mrb[193].mxu0  ;;  %7270 = vmatmul.mubr.msk.f32.vlgmr.msra.gmra.mrb[42].mxu0 %vm2815_vm1, %v11354_v48  ;;  %v1206_v48 = vld [vmem:[%s12751_s3 + $0x1110] sm:$0xff] }
 0x5c3   :  { %v11524_v51 = vpop.f32.mrb[138].mxu1  ;;  %7272 = vmatprep.mubr.msk.f32.mxu0 %vm8461_vm0, %v8462_v24  ;;  %7957 = vmatpush3.bf16.msra.mxu0 %v7956_v57 }
 0x5c4   :  { %v2499_v61 = vpop.f32.mrb[139].mxu1  ;;  %2761 = vmatmul.mubr.f32.gmra.mrb[244].mxu1 %v1202_v3  ;;  %7958 = vmatprep.subr.bf16.mxu0 %v8460_v0 }
 0x5c5   :  { %v3198_v9 = vpop.f32.mrb[194].mxu0  ;;  %2765 = vmatprep.mubr.f32.mxu1 %v1207_v40  ;;  %v1227_v40 = vld [vmem:[%s12751_s3 + $0x11b8] sm:$0xff] }
 0x5c6   :  { %v11533_v1 = vadd.f32 %v3198_v9, %v11384_v7  ;;  %v7067_v47 = vpop.f32.mrb[195].mxu0  ;;  %7273 = vmatmul.mubr.msk.f32.gmra.mrb[44].mxu0 %vm2815_vm1, %v11375_v53  ;;  %v1210_v53 = vld [vmem:[%s12751_s3 + $0x1130] sm:$0xff] }
 0x5c7   :  { %v11540_v50 = vpop.f32.mrb[140].mxu1  ;;  %7275 = vmatprep.mubr.msk.f32.mxu0 %vm8461_vm0, %v8462_v24  ;;  %7960 = vmatpush3.bf16.msra.mxu0 %v7959_v32  ;;  %v1231_v47 = vld [vmem:[%s12751_s3 + $0x11d8] sm:$0xff] }
 0x5c8   :  { %v2504_v11 = vpop.f32.mrb[141].mxu1  ;;  %2766 = vmatmul.mubr.f32.gmra.mrb[246].mxu1 %v1206_v48  ;;  %7961 = vmatprep.subr.bf16.mxu0 %v8460_v0 }
 0x5c9   :  { %v3203_v7 = vpop.f32.mrb[196].mxu0  ;;  %2770 = vmatprep.mubr.f32.mxu1 %v1211_v63 }
 0x5ca   :  { %v11549_v42 = vadd.f32 %v3203_v7, %v11400_v5  ;;  %v7070_v56 = vpop.f32.mrb[197].mxu0  ;;  %7276 = vmatmul.mubr.msk.f32.gmra.mrb[46].mxu0 %vm2815_vm1, %v11391_v30  ;;  %v1214_v5 = vld [vmem:[%s12751_s3 + $0x1150] sm:$0xff] }
 0x5cb   :  { %v11556_v29 = vpop.f32.mrb[142].mxu1  ;;  %7278 = vmatprep.mubr.msk.f32.mxu0 %vm8461_vm0, %v8462_v24 }
 0x5cc   :  { %v2509_v33 = vpop.f32.mrb[143].mxu1  ;;  %2771 = vmatmul.mubr.f32.gmra.mrb[248].mxu1 %v1210_v53 }
 0x5cd   :  { %v3208_v59 = vpop.f32.mrb[198].mxu0  ;;  %2775 = vmatprep.mubr.f32.mxu1 %v1215_v16 }
 0x5ce   :  { %v11564_v8 = vadd.f32 %v3208_v59, %v11415_v44  ;;  %v7073_v30 = vpop.f32.mrb[199].mxu0  ;;  %7279 = vmatmul.mubr.msk.f32.gmra.mrb[48].mxu0 %vm2815_vm1, %v11407_v21  ;;  %v1218_v44 = vld [vmem:[%s12751_s3 + $0x1170] sm:$0xff] }
 0x5cf   :  { %v11571_v12 = vpop.f32.mrb[144].mxu1  ;;  %7281 = vmatprep.mubr.msk.f32.mxu0 %vm8461_vm0, %v8462_v24  ;;  %v1234_v30 = vld [vmem:[%s12751_s3 + $0x11f0] sm:$0xff] }
 0x5d0   :  { %v2514_v36 = vpop.f32.mrb[145].mxu1  ;;  %2776 = vmatmul.mubr.f32.gmra.mrb[250].mxu1 %v1214_v5 }
 0x5d1   :  { %v3213_v57 = vpop.f32.mrb[200].mxu0  ;;  %2780 = vmatprep.mubr.f32.mxu1 %v1219_v22 }
 0x5d2   :  { %v11579_v20 = vadd.f32 %v3213_v57, %v11430_v38  ;;  %v7076_v21 = vpop.f32.mrb[201].mxu0  ;;  %7282 = vmatmul.mubr.msk.f32.gmra.mrb[50].mxu0 %vm2815_vm1, %v11422_v25  ;;  %v1222_v38 = vld [vmem:[%s12751_s3 + $0x1190] sm:$0xff] }
 0x5d3   :  { %v11586_v4 = vpop.f32.mrb[146].mxu1  ;;  %7284 = vmatprep.mubr.msk.f32.mxu0 %vm8461_vm0, %v8462_v24 }
 0x5d4   :  { %v2519_v17 = vpop.f32.mrb[147].mxu1  ;;  %2781 = vmatmul.mubr.f32.gmra.mrb[252].mxu1 %v1218_v44 }
 0x5d5   :  { %v3218_v3 = vpop.f32.mrb[202].mxu0  ;;  %2785 = vmatprep.mubr.f32.mxu1 %v1223_v28  ;;  %v6477_v28 = vld [vmem:[%s12752_s4 + $0x150] sm:$0xff] }
 0x5d6   :  { %v11594_v55 = vadd.f32 %v3218_v3, %v11445_v13  ;;  %v7079_v25 = vpop.f32.mrb[203].mxu0  ;;  %7285 = vmatmul.mubr.msk.f32.gmra.mrb[52].mxu0 %vm2815_vm1, %v11437_v15  ;;  %v1226_v13 = vld [vmem:[%s12751_s3 + $0x11b0] sm:$0xff] }
 0x5d7   :  { %v11601_v32 = vpop.f32.mrb[148].mxu1  ;;  %7287 = vmatprep.mubr.msk.f32.mxu0 %vm8461_vm0, %v8462_v24 }
 0x5d8   :  { %v2524_v61 = vpop.f32.mrb[149].mxu1  ;;  %2786 = vmatmul.mubr.f32.gmra.mrb[254].mxu1 %v1222_v38 }
 0x5d9   :  { %v3223_v9 = vpop.f32.mrb[204].mxu0  ;;  %2790 = vmatprep.mubr.f32.mxu1 %v1227_v40 }
 0x5da   :  { %v11609_v48 = vadd.f32 %v3223_v9, %v11460_v60  ;;  %v7082_v15 = vpop.f32.mrb[205].mxu0  ;;  %7288 = vmatmul.mubr.msk.f32.gmra.mrb[54].mxu0 %vm2815_vm1, %v11452_v35  ;;  %v1230_v60 = vld [vmem:[%s12751_s3 + $0x11d0] sm:$0xff] }
 0x5db   :  { %v2527_v63 = vpop.f32.mrb[156].mxu1  ;;  %7290 = vmatprep.mubr.msk.f32.mxu0 %vm8461_vm0, %v8462_v24 }
 0x5dc   :  { %v11619_v11 = vadd.f32 %v2527_v63, %v10007_v2  ;;  %2791 = vmatmul.mubr.f32.gmra.mrb[150].mxu1 %v1226_v13  ;;  %v2529_v7 = vpop.f32.mrb[157].mxu1  ;;  %v1235_v2 = vld [vmem:[%s12751_s3 + $0x11f8] sm:$0xff] }
 0x5dd   :  { %v3228_v53 = vpop.f32.mrb[206].mxu0  ;;  %2795 = vmatprep.mubr.f32.mxu1 %v1231_v47 }
 0x5de   :  { %v11625_v35 = vadd.f32 %v3228_v53, %v11475_v18  ;;  %v7085_v56 = vpop.f32.mrb[207].mxu0  ;;  %7291 = vmatmul.mubr.msk.f32.gmra.mrb[56].mxu0 %vm2815_vm1, %v11467_v26  ;;  %v6475_v18 = vld [vmem:[%s12752_s4 + $0x140] sm:$0xff]  ;;  %v6476_v26 = vld [vmem:[%s12752_s4 + $0x148] sm:$0xff] }
 0x5df   :  { %v2532_v16 = vpop.f32.mrb[158].mxu1  ;;  %7293 = vmatprep.mubr.msk.f32.mxu0 %vm8461_vm0, %v8462_v24  ;;  %v7962_v57 = vpack.c.bf16 %v6476_v26, %v6475_v18 }
 0x5e0   :  { %v11635_v33 = vadd.f32 %v2532_v16, %v10015_v6  ;;  %2796 = vmatmul.mubr.f32.gmra.mrb[152].mxu1 %v1230_v60  ;;  %v2534_v59 = vpop.f32.mrb[159].mxu1 }
 0x5e1   :  { %v3339_v5 = vpop.f32.mrb[208].mxu0  ;;  %2800 = vmatprep.mubr.f32.mxu1 %v1235_v2 }
 0x5e2   :  { %v7096_v22 = vpop.f32.mrb[209].mxu0  ;;  %7294 = vmatmul.mubr.msk.f32.gmra.mrb[58].mxu0 %vm2815_vm1, %v11482_v52  ;;  %v11649_v6 = vadd.f32 %v3339_v5, %v11496_v43  ;;  %v6478_v52 = vld [vmem:[%s12752_s4 + $0x158] sm:$0xff] }
 0x5e3   :  { %v2537_v36 = vpop.f32.mrb[160].mxu1  ;;  %7304 = vmatprep.mubr.msk.f32.mxu0 %vm8461_vm0, %v8462_v24  ;;  %v7965_v38 = vpack.c.bf16 %v6478_v52, %v6477_v28  ;;  %v6489_v52 = vld [vmem:[%s12752_s4 + $0x168] sm:$0xff] }
 0x5e4   :  { %v11654_v44 = vadd.f32 %v2537_v36, %v10023_v10  ;;  %2801 = vmatmul.mubr.f32.gmra.mrb[154].mxu1 %v1234_v30  ;;  %v2539_v21 = vpop.f32.mrb[161].mxu1 }
 0x5e5   :  { %v3344_v43 = vpop.f32.mrb[210].mxu0 }
 0x5e6   :  { %v7099_v17 = vpop.f32.mrb[211].mxu0  ;;  %7305 = vmatmul.mubr.msk.f32.vlgmr.msra.gmra.mrb[60].mxu0 %vm2815_vm1, %v11503_v39  ;;  %v11665_v3 = vadd.f32 %v3344_v43, %v11517_v46 }
 0x5e7   :  { %v2542_v10 = vpop.f32.mrb[162].mxu1  ;;  %7307 = vmatprep.mubr.msk.f32.mxu0 %vm8461_vm0, %v8462_v24  ;;  %7963 = vmatpush3.bf16.msra.mxu0 %v7962_v57 }
 0x5e8   :  { %v11670_v25 = vadd.f32 %v2542_v10, %v10031_v14  ;;  %v2544_v40 = vpop.f32.mrb[163].mxu1  ;;  %7964 = vmatprep.subr.bf16.mxu0 %v8460_v0 }
 0x5e9   :  { %v3349_v61 = vpop.f32.mrb[212].mxu0  ;;  %v6490_v40 = vld [vmem:[%s12752_s4 + $0x170] sm:$0xff] }
 0x5ea   :  { %v7102_v9 = vpop.f32.mrb[213].mxu0  ;;  %7308 = vmatmul.mubr.msk.f32.gmra.mrb[62].mxu0 %vm2815_vm1, %v11524_v51  ;;  %v11676_v39 = vadd.f32 %v3349_v61, %v11533_v1 }
 0x5eb   :  { %v2547_v46 = vpop.f32.mrb[164].mxu1  ;;  %7310 = vmatprep.mubr.msk.f32.mxu0 %vm8461_vm0, %v8462_v24  ;;  %7966 = vmatpush3.bf16.msra.mxu0 %v7965_v38 }
 0x5ec   :  { %v11681_v13 = vadd.f32 %v2547_v46, %v10039_v19  ;;  %v2549_v14 = vpop.f32.mrb[165].mxu1  ;;  %7967 = vmatprep.subr.bf16.mxu0 %v8460_v0 }
 0x5ed   :  { %v3354_v15 = vpop.f32.mrb[214].mxu0 }
 0x5ee   :  { %v7105_v47 = vpop.f32.mrb[215].mxu0  ;;  %7311 = vmatmul.mubr.msk.f32.gmra.mrb[64].mxu0 %vm2815_vm1, %v11540_v50  ;;  %v11687_v51 = vadd.f32 %v3354_v15, %v11549_v42 }
 0x5ef   :  { %v2552_v1 = vpop.f32.mrb[166].mxu1  ;;  %7313 = vmatprep.mubr.msk.f32.mxu0 %vm8461_vm0, %v8462_v24 }
 0x5f0   :  { %v11692_v63 = vadd.f32 %v2552_v1, %v10047_v23  ;;  %v2554_v19 = vpop.f32.mrb[167].mxu1 }
 0x5f1   :  { %v3359_v7 = vpop.f32.mrb[216].mxu0 }
 0x5f2   :  { %v7108_v53 = vpop.f32.mrb[217].mxu0  ;;  %7314 = vmatmul.mubr.msk.f32.gmra.mrb[66].mxu0 %vm2815_vm1, %v11556_v29  ;;  %v11697_v60 = vadd.f32 %v3359_v7, %v11564_v8 }
 0x5f3   :  { %v2557_v50 = vpop.f32.mrb[168].mxu1  ;;  %7316 = vmatprep.mubr.msk.f32.mxu0 %vm8461_vm0, %v8462_v24 }
 0x5f4   :  { %v11702_v42 = vadd.f32 %v2557_v50, %v10055_v27  ;;  %v2559_v56 = vpop.f32.mrb[169].mxu1 }
 0x5f5   :  { %v3364_v2 = vpop.f32.mrb[218].mxu0 }
 0x5f6   :  { %v7111_v23 = vpop.f32.mrb[219].mxu0  ;;  %7317 = vmatmul.mubr.msk.f32.gmra.mrb[68].mxu0 %vm2815_vm1, %v11571_v12  ;;  %v11707_v16 = vadd.f32 %v3364_v2, %v11579_v20 }
 0x5f7   :  { %v2562_v29 = vpop.f32.mrb[170].mxu1  ;;  %7319 = vmatprep.mubr.msk.f32.mxu0 %vm8461_vm0, %v8462_v24 }
 0x5f8   :  { %v11712_v8 = vadd.f32 %v2562_v29, %v10063_v31  ;;  %v2564_v59 = vpop.f32.mrb[171].mxu1 }
 0x5f9   :  { %v3369_v18 = vpop.f32.mrb[220].mxu0 }
 0x5fa   :  { %v7114_v27 = vpop.f32.mrb[221].mxu0  ;;  %7320 = vmatmul.mubr.msk.f32.gmra.mrb[70].mxu0 %vm2815_vm1, %v11586_v4  ;;  %v11717_v26 = vadd.f32 %v3369_v18, %v11594_v55 }
 0x5fb   :  { %v2567_v12 = vpop.f32.mrb[172].mxu1  ;;  %7322 = vmatprep.mubr.msk.f32.mxu0 %vm8461_vm0, %v8462_v24 }
 0x5fc   :  { %v11722_v20 = vadd.f32 %v2567_v12, %v10071_v34  ;;  %v2569_v5 = vpop.f32.mrb[173].mxu1 }
 0x5fd   :  { %v3374_v30 = vpop.f32.mrb[222].mxu0 }
 0x5fe   :  { %v7117_v31 = vpop.f32.mrb[223].mxu0  ;;  %7323 = vmatmul.mubr.msk.f32.gmra.mrb[72].mxu0 %vm2815_vm1, %v11601_v32  ;;  %v11727_v22 = vadd.f32 %v3374_v30, %v11609_v48 }
 0x5ff   :  { %v2572_v4 = vpop.f32.mrb[174].mxu1  ;;  %7325 = vmatprep.mubr.msk.f32.mxu0 %vm8461_vm0, %v8462_v24 }
 0x600   :  { %v11732_v55 = vadd.f32 %v2572_v4, %v10079_v37  ;;  %v2574_v36 = vpop.f32.mrb[175].mxu1  ;;  %v6488_v37 = vld [vmem:[%s12752_s4 + $0x160] sm:$0xff] }
 0x601   :  { %v3379_v57 = vpop.f32.mrb[224].mxu0 }
 0x602   :  { %v7120_v34 = vpop.f32.mrb[225].mxu0  ;;  %7326 = vmatmul.mubr.msk.f32.gmra.mrb[74].mxu0 %vm2815_vm1, %v11619_v11  ;;  %v11737_v21 = vadd.f32 %v3379_v57, %v11625_v35 }
 0x603   :  { %v2577_v32 = vpop.f32.mrb[176].mxu1  ;;  %7328 = vmatprep.mubr.msk.f32.mxu0 %vm8461_vm0, %v8462_v24  ;;  %v6501_v34 = vld [vmem:[%s12752_s4 + $0x180] sm:$0xff] }
 0x604   :  { %v11742_v48 = vadd.f32 %v2577_v32, %v10087_v41  ;;  %v2579_v28 = vpop.f32.mrb[177].mxu1  ;;  %v7968_v41 = vpack.c.bf16 %v6489_v52, %v6488_v37  ;;  %v6502_v32 = vld [vmem:[%s12752_s4 + $0x188] sm:$0xff] }
 0x605   :  { %v3490_v11 = vpop.f32.mrb[226].mxu0  ;;  %v7974_v52 = vpack.c.bf16 %v6502_v32, %v6501_v34 }
 0x606   :  { %v11751_v35 = vadd.f32 %v3490_v11, %v11649_v6  ;;  %v7131_v43 = vpop.f32.mrb[227].mxu0  ;;  %7329 = vmatmul.mubr.msk.f32.gmra.mrb[76].mxu0 %vm2815_vm1, %v11635_v33  ;;  %v6491_v6 = vld [vmem:[%s12752_s4 + $0x178] sm:$0xff] }
 0x607   :  { %v2582_v17 = vpop.f32.mrb[178].mxu1  ;;  %7339 = vmatprep.mubr.msk.f32.mxu0 %vm8461_vm0, %v8462_v24  ;;  %v6503_v43 = vld [vmem:[%s12752_s4 + $0x190] sm:$0xff] }
 0x608   :  { %v11758_v10 = vadd.f32 %v2582_v17, %v10095_v45  ;;  %v2584_v38 = vpop.f32.mrb[179].mxu1  ;;  %v7971_v45 = vpack.c.bf16 %v6491_v6, %v6490_v40 }
 0x609   :  { %v3495_v61 = vpop.f32.mrb[228].mxu0 }
 0x60a   :  { %v11767_v33 = vadd.f32 %v3495_v61, %v11665_v3  ;;  %v7134_v9 = vpop.f32.mrb[229].mxu0  ;;  %7340 = vmatmul.mubr.msk.f32.vlgmr.msra.gmra.mrb[78].mxu0 %vm2815_vm1, %v11654_v44 }
 0x60b   :  { %v2587_v46 = vpop.f32.mrb[180].mxu1  ;;  %7342 = vmatprep.mubr.msk.f32.mxu0 %vm8461_vm0, %v8462_v24  ;;  %7969 = vmatpush3.bf16.msra.mxu0 %v7968_v41 }
 0x60c   :  { %v11774_v14 = vadd.f32 %v2587_v46, %v10103_v49  ;;  %v2589_v15 = vpop.f32.mrb[181].mxu1  ;;  %7970 = vmatprep.subr.bf16.mxu0 %v8460_v0 }
 0x60d   :  { %v3500_v47 = vpop.f32.mrb[230].mxu0 }
 0x60e   :  { %v11778_v3 = vadd.f32 %v3500_v47, %v11676_v39  ;;  %v7137_v1 = vpop.f32.mrb[231].mxu0  ;;  %7343 = vmatmul.mubr.msk.f32.gmra.mrb[80].mxu0 %vm2815_vm1, %v11670_v25 }
 0x60f   :  { %v2592_v44 = vpop.f32.mrb[0].mxu1  ;;  %7345 = vmatprep.mubr.msk.f32.mxu0 %vm8461_vm0, %v8462_v24  ;;  %7972 = vmatpush3.bf16.msra.mxu0 %v7971_v45 }
 0x610   :  { %v11785_v19 = vadd.f32 %v2592_v44, %v10111_v54  ;;  %v2594_v49 = vpop.f32.mrb[1].mxu1  ;;  %7973 = vmatprep.subr.bf16.mxu0 %v8460_v0 }
 0x611   :  { %v3505_v7 = vpop.f32.mrb[232].mxu0 }
 0x612   :  { %v11789_v53 = vadd.f32 %v3505_v7, %v11687_v51  ;;  %v7140_v39 = vpop.f32.mrb[233].mxu0  ;;  %7346 = vmatmul.mubr.msk.f32.gmra.mrb[82].mxu0 %vm2815_vm1, %v11681_v13 }
 0x613   :  { %v2597_v25 = vpop.f32.mrb[2].mxu1  ;;  %7348 = vmatprep.mubr.msk.f32.mxu0 %vm8461_vm0, %v8462_v24 }
 0x614   :  { %v11796_v50 = vadd.f32 %v2597_v25, %v10119_v58  ;;  %v2599_v54 = vpop.f32.mrb[3].mxu1 }
 0x615   :  { %v3510_v56 = vpop.f32.mrb[234].mxu0 }
 0x616   :  { %v11799_v2 = vadd.f32 %v3510_v56, %v11697_v60  ;;  %v7143_v23 = vpop.f32.mrb[235].mxu0  ;;  %7349 = vmatmul.mubr.msk.f32.gmra.mrb[84].mxu0 %vm2815_vm1, %v11692_v63 }
 0x617   :  { %v2602_v51 = vpop.f32.mrb[4].mxu1  ;;  %7351 = vmatprep.mubr.msk.f32.mxu0 %vm8461_vm0, %v8462_v24 }
 0x618   :  { %v11806_v13 = vadd.f32 %v2602_v51, %v10127_v62  ;;  %v2604_v29 = vpop.f32.mrb[5].mxu1 }
 0x619   :  { %v3515_v59 = vpop.f32.mrb[236].mxu0 }
 0x61a   :  { %v11809_v58 = vadd.f32 %v3515_v59, %v11707_v16  ;;  %v7146_v18 = vpop.f32.mrb[237].mxu0  ;;  %7352 = vmatmul.mubr.msk.f32.gmra.mrb[86].mxu0 %vm2815_vm1, %v11702_v42 }
 0x61b   :  { %v11813_v60 = vpop.f32.mrb[182].mxu1  ;;  %7354 = vmatprep.mubr.msk.f32.mxu0 %vm8461_vm0, %v8462_v24 }
 0x61c   :  { %v2609_v63 = vpop.f32.mrb[183].mxu1 }
 0x61d   :  { %v3520_v27 = vpop.f32.mrb[238].mxu0 }
 0x61e   :  { %v11818_v12 = vadd.f32 %v3520_v27, %v11717_v26  ;;  %v7149_v62 = vpop.f32.mrb[239].mxu0  ;;  %7355 = vmatmul.mubr.msk.f32.gmra.mrb[88].mxu0 %vm2815_vm1, %v11712_v8 }
 0x61f   :  { %v11822_v16 = vpop.f32.mrb[184].mxu1  ;;  %7357 = vmatprep.mubr.msk.f32.mxu0 %vm8461_vm0, %v8462_v24 }
 0x620   :  { %v2614_v42 = vpop.f32.mrb[185].mxu1 }
 0x621   :  { %v3525_v5 = vpop.f32.mrb[240].mxu0  ;;  %v6514_v42 = vld [vmem:[%s12752_s4 + $0x1a0] sm:$0xff] }
 0x622   :  { %v11827_v30 = vadd.f32 %v3525_v5, %v11727_v22  ;;  %v7152_v31 = vpop.f32.mrb[241].mxu0  ;;  %7358 = vmatmul.mubr.msk.f32.gmra.mrb[90].mxu0 %vm2815_vm1, %v11722_v20  ;;  %v6515_v5 = vld [vmem:[%s12752_s4 + $0x1a8] sm:$0xff] }
 0x623   :  { %v11831_v26 = vpop.f32.mrb[186].mxu1  ;;  %7360 = vmatprep.mubr.msk.f32.mxu0 %vm8461_vm0, %v8462_v24 }
 0x624   :  { %v2619_v8 = vpop.f32.mrb[187].mxu1 }
 0x625   :  { %v3530_v4 = vpop.f32.mrb[242].mxu0 }
 0x626   :  { %v11836_v36 = vadd.f32 %v3530_v4, %v11737_v21  ;;  %v7155_v57 = vpop.f32.mrb[243].mxu0  ;;  %7361 = vmatmul.mubr.msk.f32.gmra.mrb[92].mxu0 %vm2815_vm1, %v11732_v55  ;;  %v7980_v4 = vpack.c.bf16 %v6515_v5, %v6514_v42 }
 0x627   :  { %v11840_v22 = vpop.f32.mrb[188].mxu1  ;;  %7363 = vmatprep.mubr.msk.f32.mxu0 %vm8461_vm0, %v8462_v24  ;;  %v6516_v57 = vld [vmem:[%s12752_s4 + $0x1b0] sm:$0xff] }
 0x628   :  { %v2624_v20 = vpop.f32.mrb[189].mxu1 }
 0x629   :  { %v3641_v21 = vpop.f32.mrb[244].mxu0  ;;  %v6517_v20 = vld [vmem:[%s12752_s4 + $0x1b8] sm:$0xff] }
 0x62a   :  { %v11851_v28 = vadd.f32 %v3641_v21, %v11751_v35  ;;  %v7166_v37 = vpop.f32.mrb[245].mxu0  ;;  %7364 = vmatmul.mubr.msk.f32.gmra.mrb[94].mxu0 %vm2815_vm1, %v11742_v48  ;;  %v6504_v35 = vld [vmem:[%s12752_s4 + $0x198] sm:$0xff] }
 0x62b   :  { %v11855_v55 = vpop.f32.mrb[190].mxu1  ;;  %7374 = vmatprep.mubr.msk.f32.mxu0 %vm8461_vm0, %v8462_v24  ;;  %v7977_v40 = vpack.c.bf16 %v6504_v35, %v6503_v43 }
 0x62c   :  { %v2629_v11 = vpop.f32.mrb[191].mxu1 }
 0x62d   :  { %v3646_v17 = vpop.f32.mrb[246].mxu0 }
 0x62e   :  { %v11866_v41 = vadd.f32 %v3646_v17, %v11767_v33  ;;  %v7169_v48 = vpop.f32.mrb[247].mxu0  ;;  %7375 = vmatmul.mubr.msk.f32.vlgmr.msra.gmra.mrb[96].mxu0 %vm2815_vm1, %v11758_v10 }
 0x62f   :  { %v11870_v38 = vpop.f32.mrb[192].mxu1  ;;  %7377 = vmatprep.mubr.msk.f32.mxu0 %vm8461_vm0, %v8462_v24  ;;  %7975 = vmatpush3.bf16.msra.mxu0 %v7974_v52 }
 0x630   :  { %v2634_v6 = vpop.f32.mrb[193].mxu1  ;;  %7976 = vmatprep.subr.bf16.mxu0 %v8460_v0 }
 0x631   :  { %v3651_v61 = vpop.f32.mrb[248].mxu0 }
 0x632   :  { %v11876_v9 = vadd.f32 %v3651_v61, %v11778_v3  ;;  %v7172_v33 = vpop.f32.mrb[249].mxu0  ;;  %7378 = vmatmul.mubr.msk.f32.gmra.mrb[98].mxu0 %vm2815_vm1, %v11774_v14 }
 0x633   :  { %v11880_v46 = vpop.f32.mrb[194].mxu1  ;;  %7380 = vmatprep.mubr.msk.f32.mxu0 %vm8461_vm0, %v8462_v24  ;;  %7978 = vmatpush3.bf16.msra.mxu0 %v7977_v40 }
 0x634   :  { %v2639_v10 = vpop.f32.mrb[195].mxu1  ;;  %7979 = vmatprep.subr.bf16.mxu0 %v8460_v0 }
 0x635   :  { %v3656_v45 = vpop.f32.mrb[250].mxu0 }
 0x636   :  { %v11886_v15 = vadd.f32 %v3656_v45, %v11789_v53  ;;  %v7175_v47 = vpop.f32.mrb[251].mxu0  ;;  %7381 = vmatmul.mubr.msk.f32.gmra.mrb[100].mxu0 %vm2815_vm1, %v11785_v19 }
 0x637   :  { %v11890_v3 = vpop.f32.mrb[196].mxu1  ;;  %7383 = vmatprep.mubr.msk.f32.mxu0 %vm8461_vm0, %v8462_v24 }
 0x638   :  { %v2644_v14 = vpop.f32.mrb[197].mxu1 }
 0x639   :  { %v3661_v1 = vpop.f32.mrb[252].mxu0 }
 0x63a   :  { %v11895_v44 = vadd.f32 %v3661_v1, %v11799_v2  ;;  %v7178_v49 = vpop.f32.mrb[253].mxu0  ;;  %7384 = vmatmul.mubr.msk.f32.gmra.mrb[102].mxu0 %vm2815_vm1, %v11796_v50 }
 0x63b   :  { %v11899_v7 = vpop.f32.mrb[198].mxu1  ;;  %7386 = vmatprep.mubr.msk.f32.mxu0 %vm8461_vm0, %v8462_v24 }
 0x63c   :  { %v2649_v19 = vpop.f32.mrb[199].mxu1 }
 0x63d   :  { %v3666_v53 = vpop.f32.mrb[254].mxu0 }
 0x63e   :  { %v11904_v39 = vadd.f32 %v3666_v53, %v11809_v58  ;;  %v7181_v25 = vpop.f32.mrb[255].mxu0  ;;  %7387 = vmatmul.mubr.msk.f32.gmra.mrb[104].mxu0 %vm2815_vm1, %v11806_v13 }
 0x63f   :  { %v11908_v54 = vpop.f32.mrb[200].mxu1  ;;  %7389 = vmatprep.mubr.msk.f32.mxu0 %vm8461_vm0, %v8462_v24 }
 0x640   :  { %v2654_v50 = vpop.f32.mrb[201].mxu1 }
 0x641   :  { %v3671_v56 = vpop.f32.mrb[0].mxu0 }
 0x642   :  { %v11913_v2 = vadd.f32 %v3671_v56, %v11818_v12  ;;  %v7184_v23 = vpop.f32.mrb[1].mxu0  ;;  %7390 = vmatmul.mubr.msk.f32.gmra.mrb[106].mxu0 %vm2815_vm1, %v11813_v60 }
 0x643   :  { %v11917_v51 = vpop.f32.mrb[202].mxu1  ;;  %7392 = vmatprep.mubr.msk.f32.mxu0 %vm8461_vm0, %v8462_v24 }
 0x644   :  { %v2659_v13 = vpop.f32.mrb[203].mxu1 }
 0x645   :  { %v3676_v29 = vpop.f32.mrb[2].mxu0  ;;  %v6527_v13 = vld [vmem:[%s12752_s4 + $0x1c0] sm:$0xff] }
 0x646   :  { %v11922_v59 = vadd.f32 %v3676_v29, %v11827_v30  ;;  %v7187_v58 = vpop.f32.mrb[3].mxu0  ;;  %7393 = vmatmul.mubr.msk.f32.gmra.mrb[108].mxu0 %vm2815_vm1, %v11822_v16  ;;  %v6528_v29 = vld [vmem:[%s12752_s4 + $0x1c8] sm:$0xff] }
 0x647   :  { %v11926_v18 = vpop.f32.mrb[204].mxu1  ;;  %7395 = vmatprep.mubr.msk.f32.mxu0 %vm8461_vm0, %v8462_v24 }
 0x648   :  { %v2664_v60 = vpop.f32.mrb[205].mxu1 }
 0x649   :  { %v3681_v63 = vpop.f32.mrb[4].mxu0 }
 0x64a   :  { %v11931_v27 = vadd.f32 %v3681_v63, %v11836_v36  ;;  %v7190_v12 = vpop.f32.mrb[5].mxu0  ;;  %7396 = vmatmul.mubr.msk.f32.gmra.mrb[110].mxu0 %vm2815_vm1, %v11831_v26  ;;  %v7986_v63 = vpack.c.bf16 %v6528_v29, %v6527_v13 }
 0x64b   :  { %v11935_v62 = vpop.f32.mrb[206].mxu1  ;;  %7398 = vmatprep.mubr.msk.f32.mxu0 %vm8461_vm0, %v8462_v24  ;;  %v6529_v12 = vld [vmem:[%s12752_s4 + $0x1d0] sm:$0xff] }
 0x64c   :  { %v2669_v16 = vpop.f32.mrb[207].mxu1 }
 0x64d   :  { %v3792_v30 = vpop.f32.mrb[6].mxu0  ;;  %v6530_v16 = vld [vmem:[%s12752_s4 + $0x1d8] sm:$0xff] }
 0x64e   :  { %v11946_v31 = vadd.f32 %v3792_v30, %v11851_v28  ;;  %v7201_v8 = vpop.f32.mrb[7].mxu0  ;;  %7399 = vmatmul.mubr.msk.f32.gmra.mrb[112].mxu0 %vm2815_vm1, %v11840_v22  ;;  %v7983_v28 = vpack.c.bf16 %v6517_v20, %v6516_v57 }
 0x64f   :  { %v11950_v26 = vpop.f32.mrb[208].mxu1  ;;  %7409 = vmatprep.mubr.msk.f32.mxu0 %vm8461_vm0, %v8462_v24 }
 0x650   :  { %v2674_v36 = vpop.f32.mrb[209].mxu1 }
 0x651   :  { %v3797_v34 = vpop.f32.mrb[8].mxu0 }
 0x652   :  { %v11961_v32 = vadd.f32 %v3797_v34, %v11866_v41  ;;  %v7204_v22 = vpop.f32.mrb[9].mxu0  ;;  %7410 = vmatmul.mubr.msk.f32.vlgmr.msra.gmra.mrb[114].mxu0 %vm2815_vm1, %v11855_v55 }
 0x653   :  { %v11965_v21 = vpop.f32.mrb[210].mxu1  ;;  %7412 = vmatprep.mubr.msk.f32.mxu0 %vm8461_vm0, %v8462_v24  ;;  %7981 = vmatpush3.bf16.msra.mxu0 %v7980_v4 }
 0x654   :  { %v2679_v37 = vpop.f32.mrb[211].mxu1  ;;  %7982 = vmatprep.subr.bf16.mxu0 %v8460_v0 }
 0x655   :  { %v3802_v52 = vpop.f32.mrb[10].mxu0 }
 0x656   :  { %v11971_v11 = vadd.f32 %v3802_v52, %v11876_v9  ;;  %v7207_v43 = vpop.f32.mrb[11].mxu0  ;;  %7413 = vmatmul.mubr.msk.f32.gmra.mrb[116].mxu0 %vm2815_vm1, %v11870_v38 }
 0x657   :  { %v11975_v35 = vpop.f32.mrb[212].mxu1  ;;  %7415 = vmatprep.mubr.msk.f32.mxu0 %vm8461_vm0, %v8462_v24  ;;  %7984 = vmatpush3.bf16.msra.mxu0 %v7983_v28 }
 0x658   :  { %v2684_v55 = vpop.f32.mrb[213].mxu1  ;;  %7985 = vmatprep.subr.bf16.mxu0 %v8460_v0 }
 0x659   :  { %v3807_v17 = vpop.f32.mrb[12].mxu0 }
 0x65a   :  { %v11981_v41 = vadd.f32 %v3807_v17, %v11886_v15  ;;  %v7210_v48 = vpop.f32.mrb[13].mxu0  ;;  %7416 = vmatmul.mubr.msk.f32.gmra.mrb[118].mxu0 %vm2815_vm1, %v11880_v46 }
 0x65b   :  { %v11985_v40 = vpop.f32.mrb[214].mxu1  ;;  %7418 = vmatprep.mubr.msk.f32.mxu0 %vm8461_vm0, %v8462_v24 }
 0x65c   :  { %v2689_v38 = vpop.f32.mrb[215].mxu1 }
 0x65d   :  { %v3812_v6 = vpop.f32.mrb[14].mxu0 }
 0x65e   :  { %v11990_v61 = vadd.f32 %v3812_v6, %v11895_v44  ;;  %v7213_v9 = vpop.f32.mrb[15].mxu0  ;;  %7419 = vmatmul.mubr.msk.f32.gmra.mrb[120].mxu0 %vm2815_vm1, %v11890_v3 }
 0x65f   :  { %v11994_v33 = vpop.f32.mrb[216].mxu1  ;;  %7421 = vmatprep.mubr.msk.f32.mxu0 %vm8461_vm0, %v8462_v24 }
 0x660   :  { %v2694_v46 = vpop.f32.mrb[217].mxu1 }
 0x661   :  { %v3817_v10 = vpop.f32.mrb[16].mxu0 }
 0x662   :  { %v11999_v45 = vadd.f32 %v3817_v10, %v11904_v39  ;;  %v7216_v15 = vpop.f32.mrb[17].mxu0  ;;  %7422 = vmatmul.mubr.msk.f32.gmra.mrb[122].mxu0 %vm2815_vm1, %v11899_v7 }
 0x663   :  { %v12003_v47 = vpop.f32.mrb[218].mxu1  ;;  %7424 = vmatprep.mubr.msk.f32.mxu0 %vm8461_vm0, %v8462_v24 }
 0x664   :  { %v2699_v3 = vpop.f32.mrb[219].mxu1 }
 0x665   :  { %v3822_v14 = vpop.f32.mrb[18].mxu0 }
 0x666   :  { %v12008_v1 = vadd.f32 %v3822_v14, %v11913_v2  ;;  %v7219_v44 = vpop.f32.mrb[19].mxu0  ;;  %7425 = vmatmul.mubr.msk.f32.gmra.mrb[124].mxu0 %vm2815_vm1, %v11908_v54 }
 0x667   :  { %v12012_v49 = vpop.f32.mrb[220].mxu1  ;;  %7427 = vmatprep.mubr.msk.f32.mxu0 %vm8461_vm0, %v8462_v24 }
 0x668   :  { %v2704_v7 = vpop.f32.mrb[221].mxu1 }
 0x669   :  { %v3827_v19 = vpop.f32.mrb[20].mxu0  ;;  %v6540_v7 = vld [vmem:[%s12752_s4 + $0x1e0] sm:$0xff] }
 0x66a   :  { %v12017_v53 = vadd.f32 %v3827_v19, %v11922_v59  ;;  %v7222_v39 = vpop.f32.mrb[21].mxu0  ;;  %7428 = vmatmul.mubr.msk.f32.gmra.mrb[126].mxu0 %vm2815_vm1, %v11917_v51  ;;  %v6541_v19 = vld [vmem:[%s12752_s4 + $0x1e8] sm:$0xff] }
 0x66b   :  { %v12021_v25 = vpop.f32.mrb[222].mxu1  ;;  %7430 = vmatprep.mubr.msk.f32.mxu0 %vm8461_vm0, %v8462_v24 }
 0x66c   :  { %v2709_v54 = vpop.f32.mrb[223].mxu1 }
 0x66d   :  { %v3832_v50 = vpop.f32.mrb[22].mxu0 }
 0x66e   :  { %v12026_v56 = vadd.f32 %v3832_v50, %v11931_v27  ;;  %v7225_v2 = vpop.f32.mrb[23].mxu0  ;;  %7431 = vmatmul.mubr.msk.f32.gmra.mrb[128].mxu0 %vm2815_vm1, %v11926_v18  ;;  %v7992_v50 = vpack.c.bf16 %v6541_v19, %v6540_v7 }
 0x66f   :  { %v12030_v23 = vpop.f32.mrb[224].mxu1  ;;  %7433 = vmatprep.mubr.msk.f32.mxu0 %vm8461_vm0, %v8462_v24  ;;  %v6542_v2 = vld [vmem:[%s12752_s4 + $0x1f0] sm:$0xff] }
 0x670   :  { %v2714_v51 = vpop.f32.mrb[225].mxu1 }
 0x671   :  { %v3943_v59 = vpop.f32.mrb[24].mxu0  ;;  %v6543_v51 = vld [vmem:[%s12752_s4 + $0x1f8] sm:$0xff] }
 0x672   :  { %v12041_v58 = vadd.f32 %v3943_v59, %v11946_v31  ;;  %v7236_v60 = vpop.f32.mrb[25].mxu0  ;;  %7434 = vmatmul.mubr.msk.f32.gmra.mrb[130].mxu0 %vm2815_vm1, %v11935_v62  ;;  %v7989_v31 = vpack.c.bf16 %v6530_v16, %v6529_v12 }
 0x673   :  { %v12045_v18 = vpop.f32.mrb[226].mxu1  ;;  %7444 = vmatprep.mubr.msk.f32.mxu0 %vm8461_vm0, %v8462_v24 }
 0x674   :  { %v2719_v27 = vpop.f32.mrb[227].mxu1 }
 0x675   :  { %v3948_v42 = vpop.f32.mrb[26].mxu0 }
 0x676   :  { %v12056_v5 = vadd.f32 %v3948_v42, %v11961_v32  ;;  %v7239_v62 = vpop.f32.mrb[27].mxu0  ;;  %7445 = vmatmul.mubr.msk.f32.vlgmr.msra.gmra.mrb[132].mxu0 %vm2815_vm1, %v11950_v26 }
 0x677   :  { %v12060_v30 = vpop.f32.mrb[228].mxu1  ;;  %7447 = vmatprep.mubr.msk.f32.mxu0 %vm8461_vm0, %v8462_v24  ;;  %7987 = vmatpush3.bf16.msra.mxu0 %v7986_v63 }
 0x678   :  { %v2724_v8 = vpop.f32.mrb[229].mxu1  ;;  %7988 = vmatprep.subr.bf16.mxu0 %v8460_v0 }
 0x679   :  { %v3953_v4 = vpop.f32.mrb[28].mxu0 }
 0x67a   :  { %v12066_v36 = vadd.f32 %v3953_v4, %v11971_v11  ;;  %v7242_v57 = vpop.f32.mrb[29].mxu0  ;;  %7448 = vmatmul.mubr.msk.f32.gmra.mrb[134].mxu0 %vm2815_vm1, %v11965_v21 }
 0x67b   :  { %v12070_v20 = vpop.f32.mrb[230].mxu1  ;;  %7450 = vmatprep.mubr.msk.f32.mxu0 %vm8461_vm0, %v8462_v24  ;;  %7990 = vmatpush3.bf16.msra.mxu0 %v7989_v31 }
 0x67c   :  { %v2729_v26 = vpop.f32.mrb[231].mxu1  ;;  %7991 = vmatprep.subr.bf16.mxu0 %v8460_v0 }
 0x67d   :  { %v3958_v34 = vpop.f32.mrb[30].mxu0 }
 0x67e   :  { %v12076_v32 = vadd.f32 %v3958_v34, %v11981_v41  ;;  %v7245_v22 = vpop.f32.mrb[31].mxu0  ;;  %7451 = vmatmul.mubr.msk.f32.gmra.mrb[136].mxu0 %vm2815_vm1, %v11975_v35 }
 0x67f   :  { %v12080_v28 = vpop.f32.mrb[232].mxu1  ;;  %7453 = vmatprep.mubr.msk.f32.mxu0 %vm8461_vm0, %v8462_v24 }
 0x680   :  { %v2734_v21 = vpop.f32.mrb[233].mxu1 }
 0x681   :  { %v3963_v37 = vpop.f32.mrb[32].mxu0 }
 0x682   :  { %v12085_v52 = vadd.f32 %v3963_v37, %v11990_v61  ;;  %v7248_v11 = vpop.f32.mrb[33].mxu0  ;;  %7454 = vmatmul.mubr.msk.f32.gmra.mrb[138].mxu0 %vm2815_vm1, %v11985_v40 }
 0x683   :  { %v12089_v43 = vpop.f32.mrb[234].mxu1  ;;  %7456 = vmatprep.mubr.msk.f32.mxu0 %vm8461_vm0, %v8462_v24 }
 0x684   :  { %v2739_v35 = vpop.f32.mrb[235].mxu1 }
 0x685   :  { %v3968_v55 = vpop.f32.mrb[34].mxu0 }
 0x686   :  { %v12094_v17 = vadd.f32 %v3968_v55, %v11999_v45  ;;  %v7251_v41 = vpop.f32.mrb[35].mxu0  ;;  %7457 = vmatmul.mubr.msk.f32.gmra.mrb[140].mxu0 %vm2815_vm1, %v11994_v33 }
 0x687   :  { %v12098_v48 = vpop.f32.mrb[236].mxu1  ;;  %7459 = vmatprep.mubr.msk.f32.mxu0 %vm8461_vm0, %v8462_v24 }
 0x688   :  { %v2744_v40 = vpop.f32.mrb[237].mxu1 }
 0x689   :  { %v3973_v38 = vpop.f32.mrb[36].mxu0 }
 0x68a   :  { %v12103_v6 = vadd.f32 %v3973_v38, %v12008_v1  ;;  %v7254_v61 = vpop.f32.mrb[37].mxu0  ;;  %7460 = vmatmul.mubr.msk.f32.gmra.mrb[142].mxu0 %vm2815_vm1, %v12003_v47 }
 0x68b   :  { %v12107_v9 = vpop.f32.mrb[238].mxu1  ;;  %7462 = vmatprep.mubr.msk.f32.mxu0 %vm8461_vm0, %v8462_v24 }
 0x68c   :  { %v2749_v33 = vpop.f32.mrb[239].mxu1 }
 0x68d   :  { %v3978_v46 = vpop.f32.mrb[38].mxu0 }
 0x68e   :  { %v12112_v10 = vadd.f32 %v3978_v46, %v12017_v53  ;;  %v7257_v45 = vpop.f32.mrb[39].mxu0  ;;  %7463 = vmatmul.mubr.msk.f32.gmra.mrb[144].mxu0 %vm2815_vm1, %v12012_v49 }
 0x68f   :  { %v12116_v15 = vpop.f32.mrb[240].mxu1  ;;  %7465 = vmatprep.mubr.msk.f32.mxu0 %vm8461_vm0, %v8462_v24 }
 0x690   :  { %v2754_v47 = vpop.f32.mrb[241].mxu1 }
 0x691   :  { %v3983_v3 = vpop.f32.mrb[40].mxu0 }
 0x692   :  { %v12121_v14 = vadd.f32 %v3983_v3, %v12026_v56  ;;  %v7260_v1 = vpop.f32.mrb[41].mxu0  ;;  %7466 = vmatmul.mubr.msk.f32.gmra.mrb[146].mxu0 %vm2815_vm1, %v12021_v25 }
 0x693   :  { %v12125_v44 = vpop.f32.mrb[242].mxu1  ;;  %7468 = vmatprep.mubr.msk.f32.mxu0 %vm8461_vm0, %v8462_v24 }
 0x694   :  { %v2759_v49 = vpop.f32.mrb[243].mxu1 }
 0x695   :  { %v4094_v53 = vpop.f32.mrb[42].mxu0 }
 0x696   :  { %v12136_v39 = vadd.f32 %v4094_v53, %v12041_v58  ;;  %v7271_v54 = vpop.f32.mrb[43].mxu0  ;;  %7469 = vmatmul.mubr.msk.f32.gmra.mrb[148].mxu0 %vm2815_vm1, %v12030_v23  ;;  %v7995_v58 = vpack.c.bf16 %v6543_v51, %v6542_v2 }
 0x697   :  { %v12140_v25 = vpop.f32.mrb[244].mxu1  ;;  %7479 = vmatprep.mubr.msk.f32.mxu0 %vm8461_vm0, %v8462_v24 }
 0x698   :  { %v2764_v56 = vpop.f32.mrb[245].mxu1 }
 0x699   :  { %v4099_v13 = vpop.f32.mrb[44].mxu0 }
 0x69a   :  { %v12151_v29 = vadd.f32 %v4099_v13, %v12056_v5  ;;  %v7274_v23 = vpop.f32.mrb[45].mxu0  ;;  %7480 = vmatmul.mubr.msk.f32.vlgmr.msra.gmra.mrb[150].mxu0 %vm2815_vm1, %v12045_v18 }
 0x69b   :  { %v12155_v59 = vpop.f32.mrb[246].mxu1  ;;  %7482 = vmatprep.mubr.msk.f32.mxu0 %vm8461_vm0, %v8462_v24  ;;  %7993 = vmatpush3.bf16.msra.mxu0 %v7992_v50 }
 0x69c   :  { %v2769_v60 = vpop.f32.mrb[247].mxu1  ;;  %7994 = vmatprep.subr.bf16.mxu0 %v8460_v0 }
 0x69d   :  { %v4104_v63 = vpop.f32.mrb[46].mxu0 }
 0x69e   :  { %v4140_v27 = vadd.f32 %v4104_v63, %v12066_v36  ;;  %v7277_v12 = vpop.f32.mrb[47].mxu0  ;;  %7483 = vmatmul.mubr.msk.f32.gmra.mrb[152].mxu0 %vm2815_vm1, %v12060_v30 }
 0x69f   :  { %v12163_v16 = vpop.f32.mrb[248].mxu1  ;;  %7485 = vmatprep.mubr.msk.f32.mxu0 %vm8461_vm0, %v8462_v24  ;;  %7996 = vmatpush3.bf16.msra.mxu0 %v7995_v58 }
 0x6a0   :  { %v2774_v18 = vpop.f32.mrb[249].mxu1  ;;  %7997 = vmatprep.subr.bf16.mxu0 %v8460_v0 }
 0x6a1   :  { %v4109_v42 = vpop.f32.mrb[48].mxu0 }
 0x6a2   :  { %v4141_v5 = vadd.f32 %v4109_v42, %v12076_v32  ;;  %v7280_v62 = vpop.f32.mrb[49].mxu0  ;;  %7486 = vmatmul.mubr.msk.f32.gmra.mrb[154].mxu0 %vm2815_vm1, %v12070_v20 }
 0x6a3   :  { %v2777_v31 = vpop.f32.mrb[250].mxu1  ;;  %7488 = vmatprep.mubr.msk.f32.mxu0 %vm8461_vm0, %v8462_v24 }
 0x6a4   :  { %v2779_v30 = vpop.f32.mrb[251].mxu1 }
 0x6a5   :  { %v4114_v8 = vpop.f32.mrb[50].mxu0 }
 0x6a6   :  { %v4142_v4 = vadd.f32 %v4114_v8, %v12085_v52  ;;  %v7283_v36 = vpop.f32.mrb[51].mxu0  ;;  %7489 = vmatmul.mubr.msk.f32.gmra.mrb[156].mxu0 %vm2815_vm1, %v12080_v28 }
 0x6a7   :  { %v2782_v57 = vpop.f32.mrb[252].mxu1  ;;  %7491 = vmatprep.mubr.msk.f32.mxu0 %vm8461_vm0, %v8462_v24 }
 0x6a8   :  { %v2784_v26 = vpop.f32.mrb[253].mxu1 }
 0x6a9   :  { %v4119_v34 = vpop.f32.mrb[52].mxu0 }
 0x6aa   :  { %v4143_v20 = vadd.f32 %v4119_v34, %v12094_v17  ;;  %v7286_v32 = vpop.f32.mrb[53].mxu0  ;;  %7492 = vmatmul.mubr.msk.f32.gmra.mrb[158].mxu0 %vm2815_vm1, %v12089_v43 }
 0x6ab   :  { %v2787_v22 = vpop.f32.mrb[254].mxu1  ;;  %7494 = vmatprep.mubr.msk.f32.mxu0 %vm8461_vm0, %v8462_v24 }
 0x6ac   :  { %v2789_v21 = vpop.f32.mrb[255].mxu1 }
 0x6ad   :  { %v4124_v37 = vpop.f32.mrb[54].mxu0 }
 0x6ae   :  { %v4144_v28 = vadd.f32 %v4124_v37, %v12103_v6  ;;  %v7289_v52 = vpop.f32.mrb[55].mxu0  ;;  %7495 = vmatmul.mubr.msk.f32.gmra.mrb[160].mxu0 %vm2815_vm1, %v12098_v48 }
 0x6af   :  { %v2792_v11 = vpop.f32.mrb[150].mxu1  ;;  %7497 = vmatprep.mubr.msk.f32.mxu0 %vm8461_vm0, %v8462_v24 }
 0x6b0   :  { %v2794_v35 = vpop.f32.mrb[151].mxu1 }
 0x6b1   :  { %v4129_v55 = vpop.f32.mrb[56].mxu0 }
 0x6b2   :  { %v4145_v43 = vadd.f32 %v4129_v55, %v12112_v10  ;;  %v7292_v17 = vpop.f32.mrb[57].mxu0  ;;  %7498 = vmatmul.mubr.msk.f32.gmra.mrb[162].mxu0 %vm2815_vm1, %v12107_v9 }
 0x6b3   :  { %v2797_v41 = vpop.f32.mrb[152].mxu1  ;;  %7500 = vmatprep.mubr.msk.f32.mxu0 %vm8461_vm0, %v8462_v24 }
 0x6b4   :  { %v2799_v40 = vpop.f32.mrb[153].mxu1 }
 0x6b5   :  { %v4134_v38 = vpop.f32.mrb[58].mxu0 }
 0x6b6   :  { %v4146_v48 = vadd.f32 %v4134_v38, %v12121_v14  ;;  %v7295_v6 = vpop.f32.mrb[59].mxu0  ;;  %7501 = vmatmul.mubr.msk.f32.gmra.mrb[164].mxu0 %vm2815_vm1, %v12116_v15 }
 0x6b7   :  { %v2802_v61 = vpop.f32.mrb[154].mxu1  ;;  %7503 = vmatprep.mubr.msk.f32.mxu0 %vm8461_vm0, %v8462_v24 }
 0x6b8   :  { %v2804_v33 = vpop.f32.mrb[155].mxu1 }
 0x6b9   :  { %v4245_v46 = vpop.f32.mrb[60].mxu0 }
 0x6ba   :  { %v4289_v9 = vadd.f32 %v4245_v46, %v12136_v39  ;;  %v7306_v10 = vpop.f32.mrb[61].mxu0  ;;  %7504 = vmatmul.mubr.msk.f32.gmra.mrb[166].mxu0 %vm2815_vm1, %v12125_v44 }
 0x6bb   :  { %7514 = vmatprep.mubr.msk.f32.mxu0 %vm8461_vm0, %v8462_v24 }
 0x6bd   :  { %v4250_v45 = vpop.f32.mrb[62].mxu0 }
 0x6be   :  { %v4290_v47 = vadd.f32 %v4250_v45, %v12151_v29  ;;  %v7309_v3 = vpop.f32.mrb[63].mxu0  ;;  %7515 = vmatmul.mubr.msk.f32.vlgmr.msra.gmra.mrb[168].mxu0 %vm2815_vm1, %v12140_v25 }
 0x6bf   :  { %7517 = vmatprep.mubr.msk.f32.mxu0 %vm8461_vm0, %v8462_v24 }
 0x6c1   :  { %v4255_v15 = vpop.f32.mrb[64].mxu0 }
 0x6c2   :  { %v4291_v14 = vadd.f32 %v4255_v15, %v4140_v27  ;;  %v7312_v1 = vpop.f32.mrb[65].mxu0  ;;  %7518 = vmatmul.mubr.msk.f32.gmra.mrb[170].mxu0 %vm2815_vm1, %v12155_v59 }
 0x6c3   :  { %7520 = vmatprep.mubr.msk.f32.mxu0 %vm8461_vm0, %v8462_v24 }
 0x6c5   :  { %v4260_v44 = vpop.f32.mrb[66].mxu0 }
 0x6c6   :  { %v4292_v49 = vadd.f32 %v4260_v44, %v4141_v5  ;;  %v7315_v7 = vpop.f32.mrb[67].mxu0  ;;  %7521 = vmatmul.mubr.msk.f32.gmra.mrb[172].mxu0 %vm2815_vm1, %v12163_v16 }
 0x6c7   :  { %7523 = vmatprep.mubr.msk.f32.mxu0 %vm8461_vm0, %v8462_v24 }
 0x6c9   :  { %v4265_v19 = vpop.f32.mrb[68].mxu0 }
 0x6ca   :  { %v4293_v53 = vadd.f32 %v4265_v19, %v4142_v4  ;;  %v7318_v39 = vpop.f32.mrb[69].mxu0  ;;  %7524 = vmatmul.mubr.msk.f32.gmra.mrb[174].mxu0 %vm2815_vm1, %v2777_v31 }
 0x6cb   :  { %7526 = vmatprep.mubr.msk.f32.mxu0 %vm8461_vm0, %v8462_v24 }
 0x6cd   :  { %v4270_v54 = vpop.f32.mrb[70].mxu0 }
 0x6ce   :  { %v4294_v25 = vadd.f32 %v4270_v54, %v4143_v20  ;;  %v7321_v50 = vpop.f32.mrb[71].mxu0  ;;  %7527 = vmatmul.mubr.msk.f32.gmra.mrb[176].mxu0 %vm2815_vm1, %v2782_v57 }
 0x6cf   :  { %7529 = vmatprep.mubr.msk.f32.mxu0 %vm8461_vm0, %v8462_v24 }
 0x6d1   :  { %v4275_v56 = vpop.f32.mrb[72].mxu0 }
 0x6d2   :  { %v4295_v2 = vadd.f32 %v4275_v56, %v4144_v28  ;;  %v7324_v51 = vpop.f32.mrb[73].mxu0  ;;  %7530 = vmatmul.mubr.msk.f32.gmra.mrb[178].mxu0 %vm2815_vm1, %v2787_v22 }
 0x6d3   :  { %7532 = vmatprep.mubr.msk.f32.mxu0 %vm8461_vm0, %v8462_v24 }
 0x6d5   :  { %v4280_v13 = vpop.f32.mrb[74].mxu0 }
 0x6d6   :  { %v4296_v29 = vadd.f32 %v4280_v13, %v4145_v43  ;;  %v7327_v23 = vpop.f32.mrb[75].mxu0  ;;  %7533 = vmatmul.mubr.msk.f32.gmra.mrb[180].mxu0 %vm2815_vm1, %v2792_v11 }
 0x6d7   :  { %7535 = vmatprep.mubr.msk.f32.mxu0 %vm8461_vm0, %v8462_v24 }
 0x6d9   :  { %v4285_v59 = vpop.f32.mrb[76].mxu0 }
 0x6da   :  { %v4297_v58 = vadd.f32 %v4285_v59, %v4146_v48  ;;  %v7330_v60 = vpop.f32.mrb[77].mxu0  ;;  %7536 = vmatmul.mubr.msk.f32.gmra.mrb[182].mxu0 %vm2815_vm1, %v2797_v41 }
 0x6db   :  { %7538 = vmatprep.mubr.msk.f32.mxu0 %vm8461_vm0, %v8462_v24 }
 0x6dd   :  { %v4396_v63 = vpop.f32.mrb[78].mxu0 }
 0x6de   :  { %v4440_v27 = vadd.f32 %v4396_v63, %v4289_v9  ;;  %v7341_v12 = vpop.f32.mrb[79].mxu0  ;;  %7539 = vmatmul.mubr.msk.f32.gmra.mrb[184].mxu0 %vm2815_vm1, %v2802_v61 }
 0x6df   :  { %7559 = vmatprep.mubr.msk.f32.mxu0 %vm8461_vm0, %v8462_v24 }
 0x6e1   :  { %v4401_v16 = vpop.f32.mrb[80].mxu0 }
 0x6e2   :  { %v4441_v18 = vadd.f32 %v4401_v16, %v4290_v47  ;;  %v7344_v42 = vpop.f32.mrb[81].mxu0 }
 0x6e5   :  { %v4406_v5 = vpop.f32.mrb[82].mxu0 }
 0x6e6   :  { %v4442_v62 = vadd.f32 %v4406_v5, %v4291_v14  ;;  %v7347_v31 = vpop.f32.mrb[83].mxu0 }
 0x6e9   :  { %v4411_v30 = vpop.f32.mrb[84].mxu0 }
 0x6ea   :  { %v4443_v8 = vadd.f32 %v4411_v30, %v4292_v49  ;;  %v7350_v4 = vpop.f32.mrb[85].mxu0 }
 0x6ed   :  { %v4416_v36 = vpop.f32.mrb[86].mxu0 }
 0x6ee   :  { %v4444_v57 = vadd.f32 %v4416_v36, %v4293_v53  ;;  %v7353_v26 = vpop.f32.mrb[87].mxu0 }
 0x6f1   :  { %v4421_v34 = vpop.f32.mrb[88].mxu0 }
 0x6f2   :  { %v4445_v20 = vadd.f32 %v4421_v34, %v4294_v25  ;;  %v7356_v32 = vpop.f32.mrb[89].mxu0 }
 0x6f5   :  { %v4426_v22 = vpop.f32.mrb[90].mxu0 }
 0x6f6   :  { %v4446_v21 = vadd.f32 %v4426_v22, %v4295_v2  ;;  %v7359_v37 = vpop.f32.mrb[91].mxu0 }
 0x6f9   :  { %v4431_v28 = vpop.f32.mrb[92].mxu0 }
 0x6fa   :  { %v4447_v52 = vadd.f32 %v4431_v28, %v4296_v29  ;;  %v7362_v11 = vpop.f32.mrb[93].mxu0 }
 0x6fd   :  { %v4436_v35 = vpop.f32.mrb[94].mxu0 }
 0x6fe   :  { %v4448_v55 = vadd.f32 %v4436_v35, %v4297_v58  ;;  %v7365_v43 = vpop.f32.mrb[95].mxu0 }
 0x701   :  { %v4547_v17 = vpop.f32.mrb[96].mxu0 }
 0x702   :  { %v4591_v41 = vadd.f32 %v4547_v17, %v4440_v27  ;;  %v7376_v40 = vpop.f32.mrb[97].mxu0 }
 0x705   :  { %v4552_v38 = vpop.f32.mrb[98].mxu0 }
 0x706   :  { %v4592_v48 = vadd.f32 %v4552_v38, %v4441_v18  ;;  %v7379_v6 = vpop.f32.mrb[99].mxu0 }
 0x709   :  { %v4557_v61 = vpop.f32.mrb[100].mxu0 }
 0x70a   :  { %v4593_v33 = vadd.f32 %v4557_v61, %v4442_v62  ;;  %v7382_v46 = vpop.f32.mrb[101].mxu0 }
 0x70d   :  { %v4562_v9 = vpop.f32.mrb[102].mxu0 }
 0x70e   :  { %v4594_v10 = vadd.f32 %v4562_v9, %v4443_v8  ;;  %v7385_v45 = vpop.f32.mrb[103].mxu0 }
 0x711   :  { %v4567_v47 = vpop.f32.mrb[104].mxu0 }
 0x712   :  { %v4595_v3 = vadd.f32 %v4567_v47, %v4444_v57  ;;  %v7388_v15 = vpop.f32.mrb[105].mxu0 }
 0x715   :  { %v4572_v14 = vpop.f32.mrb[106].mxu0 }
 0x716   :  { %v4596_v1 = vadd.f32 %v4572_v14, %v4445_v20  ;;  %v7391_v44 = vpop.f32.mrb[107].mxu0 }
 0x719   :  { %v4577_v49 = vpop.f32.mrb[108].mxu0 }
 0x71a   :  { %v4597_v7 = vadd.f32 %v4577_v49, %v4446_v21  ;;  %v7394_v19 = vpop.f32.mrb[109].mxu0 }
 0x71d   :  { %v4582_v53 = vpop.f32.mrb[110].mxu0 }
 0x71e   :  { %v4598_v39 = vadd.f32 %v4582_v53, %v4447_v52  ;;  %v7397_v54 = vpop.f32.mrb[111].mxu0 }
 0x721   :  { %v4587_v25 = vpop.f32.mrb[112].mxu0 }
 0x722   :  { %v4599_v50 = vadd.f32 %v4587_v25, %v4448_v55  ;;  %v7400_v56 = vpop.f32.mrb[113].mxu0 }
 0x725   :  { %v4698_v2 = vpop.f32.mrb[114].mxu0 }
 0x726   :  { %v4742_v51 = vadd.f32 %v4698_v2, %v4591_v41  ;;  %v7411_v13 = vpop.f32.mrb[115].mxu0 }
 0x729   :  { %v4703_v29 = vpop.f32.mrb[116].mxu0 }
 0x72a   :  { %v4743_v23 = vadd.f32 %v4703_v29, %v4592_v48  ;;  %v7414_v59 = vpop.f32.mrb[117].mxu0 }
 0x72d   :  { %v4708_v58 = vpop.f32.mrb[118].mxu0 }
 0x72e   :  { %v4744_v60 = vadd.f32 %v4708_v58, %v4593_v33  ;;  %v7417_v63 = vpop.f32.mrb[119].mxu0 }
 0x731   :  { %v4713_v27 = vpop.f32.mrb[120].mxu0 }
 0x732   :  { %v4745_v12 = vadd.f32 %v4713_v27, %v4594_v10  ;;  %v7420_v16 = vpop.f32.mrb[121].mxu0 }
 0x735   :  { %v4718_v18 = vpop.f32.mrb[122].mxu0 }
 0x736   :  { %v4746_v42 = vadd.f32 %v4718_v18, %v4595_v3  ;;  %v7423_v5 = vpop.f32.mrb[123].mxu0 }
 0x739   :  { %v4723_v62 = vpop.f32.mrb[124].mxu0 }
 0x73a   :  { %v4747_v31 = vadd.f32 %v4723_v62, %v4596_v1  ;;  %v7426_v30 = vpop.f32.mrb[125].mxu0 }
 0x73d   :  { %v4728_v8 = vpop.f32.mrb[126].mxu0 }
 0x73e   :  { %v4748_v4 = vadd.f32 %v4728_v8, %v4597_v7  ;;  %v7429_v36 = vpop.f32.mrb[127].mxu0 }
 0x741   :  { %v4733_v57 = vpop.f32.mrb[128].mxu0 }
 0x742   :  { %v4749_v26 = vadd.f32 %v4733_v57, %v4598_v39  ;;  %v7432_v34 = vpop.f32.mrb[129].mxu0 }
 0x745   :  { %v4738_v20 = vpop.f32.mrb[130].mxu0 }
 0x746   :  { %v4750_v32 = vadd.f32 %v4738_v20, %v4599_v50  ;;  %v7435_v22 = vpop.f32.mrb[131].mxu0 }
 0x749   :  { %v4849_v21 = vpop.f32.mrb[132].mxu0 }
 0x74a   :  { %v4893_v37 = vadd.f32 %v4849_v21, %v4742_v51  ;;  %v7446_v28 = vpop.f32.mrb[133].mxu0 }
 0x74d   :  { %v4854_v52 = vpop.f32.mrb[134].mxu0 }
 0x74e   :  { %v4894_v11 = vadd.f32 %v4854_v52, %v4743_v23  ;;  %v7449_v35 = vpop.f32.mrb[135].mxu0 }
 0x751   :  { %v4859_v55 = vpop.f32.mrb[136].mxu0 }
 0x752   :  { %v4895_v43 = vadd.f32 %v4859_v55, %v4744_v60  ;;  %v7452_v17 = vpop.f32.mrb[137].mxu0 }
 0x755   :  { %v4864_v41 = vpop.f32.mrb[138].mxu0 }
 0x756   :  { %v4896_v40 = vadd.f32 %v4864_v41, %v4745_v12  ;;  %v7455_v38 = vpop.f32.mrb[139].mxu0 }
 0x759   :  { %v4869_v48 = vpop.f32.mrb[140].mxu0 }
 0x75a   :  { %v4897_v6 = vadd.f32 %v4869_v48, %v4746_v42  ;;  %v7458_v61 = vpop.f32.mrb[141].mxu0 }
 0x75d   :  { %v4874_v33 = vpop.f32.mrb[142].mxu0 }
 0x75e   :  { %v4898_v46 = vadd.f32 %v4874_v33, %v4747_v31  ;;  %v7461_v9 = vpop.f32.mrb[143].mxu0 }
 0x761   :  { %v4879_v10 = vpop.f32.mrb[144].mxu0 }
 0x762   :  { %v4899_v45 = vadd.f32 %v4879_v10, %v4748_v4  ;;  %v7464_v47 = vpop.f32.mrb[145].mxu0 }
 0x765   :  { %v4884_v3 = vpop.f32.mrb[146].mxu0 }
 0x766   :  { %v4900_v15 = vadd.f32 %v4884_v3, %v4749_v26  ;;  %v7467_v14 = vpop.f32.mrb[147].mxu0  ;;  %v6553_v26 = vld [vmem:[%s12753_s5] ss:$0 sm:$0xff] }
 0x769   :  { %v4889_v1 = vpop.f32.mrb[148].mxu0 }
 0x76a   :  { %v4901_v44 = vadd.f32 %v4889_v1, %v4750_v32  ;;  %v7470_v49 = vpop.f32.mrb[149].mxu0 }
 0x76d   :  { %v5000_v7 = vpop.f32.mrb[150].mxu0 }
 0x76e   :  { %v5044_v19 = vadd.f32 %v5000_v7, %v4893_v37  ;;  %v7481_v53 = vpop.f32.mrb[151].mxu0 }
 0x771   :  { %v5005_v39 = vpop.f32.mrb[152].mxu0 }
 0x772   :  { %v5045_v54 = vadd.f32 %v5005_v39, %v4894_v11  ;;  %v7484_v25 = vpop.f32.mrb[153].mxu0 }
 0x775   :  { %v5010_v50 = vpop.f32.mrb[154].mxu0 }
 0x776   :  { %v5046_v56 = vadd.f32 %v5010_v50, %v4895_v43  ;;  %v7487_v2 = vpop.f32.mrb[155].mxu0 }
 0x779   :  { %v5015_v51 = vpop.f32.mrb[156].mxu0 }
 0x77a   :  { %v5047_v13 = vadd.f32 %v5015_v51, %v4896_v40  ;;  %v7490_v29 = vpop.f32.mrb[157].mxu0 }
 0x77d   :  { %v5020_v23 = vpop.f32.mrb[158].mxu0 }
 0x77e   :  { %v5048_v59 = vadd.f32 %v5020_v23, %v4897_v6  ;;  %v7493_v58 = vpop.f32.mrb[159].mxu0 }
 0x77f   :  { %v6563_v58 = vld [vmem:[%s12754_s7 + $0x40] sm:$0xff] }
 0x781   :  { %v5025_v60 = vpop.f32.mrb[160].mxu0 }
 0x782   :  { %v5049_v63 = vadd.f32 %v5025_v60, %v4898_v46  ;;  %v7496_v27 = vpop.f32.mrb[161].mxu0  ;;  %v6564_v60 = vld [vmem:[%s12754_s7 + $0x48] sm:$0xff] }
 0x783   :  { %v5229_v27 = vld [vmem:[%s12755_s6] sm:$0xff] }
 0x785   :  { %v5030_v12 = vpop.f32.mrb[162].mxu0 }
 0x786   :  { %v5050_v16 = vadd.f32 %v5030_v12, %v4899_v45  ;;  %v7499_v18 = vpop.f32.mrb[163].mxu0  ;;  %v8010_v12 = vpack.c.bf16 %v6564_v60, %v6563_v58  ;;  %v6582_v58 = vld [vmem:[%s12754_s7 + $0xc0] sm:$0xff]  ;;  %v6583_v60 = vld [vmem:[%s12754_s7 + $0xc8] sm:$0xff] }
 0x787   :  { %v6566_v18 = vld [vmem:[%s12754_s7 + $0x58] sm:$0xff] }
 0x789   :  { %v5035_v42 = vpop.f32.mrb[164].mxu0 }
 0x78a   :  { %v5051_v5 = vadd.f32 %v5035_v42, %v4900_v15  ;;  %v7502_v62 = vpop.f32.mrb[165].mxu0  ;;  %v5230_v42 = vld [vmem:[%s12755_s6 + $0x8] sm:$0xff] }
 0x78b   :  { %v6567_v62 = vld [vmem:[%s12754_s7 + $0x60] sm:$0xff] }
 0x78d   :  { %v5040_v31 = vpop.f32.mrb[166].mxu0 }
 0x78e   :  { %v5052_v30 = vadd.f32 %v5040_v31, %v4901_v44  ;;  %v7505_v8 = vpop.f32.mrb[167].mxu0  ;;  %v6568_v31 = vld [vmem:[%s12754_s7 + $0x68] sm:$0xff] }
 0x78f   :  { %v8016_v8 = vpack.c.bf16 %v6568_v31, %v6567_v62  ;;  %v6587_v62 = vld [vmem:[%s12754_s7 + $0xe8] sm:$0xff] }
 0x791   :  { %v5151_v4 = vpop.f32.mrb[168].mxu0 }
 0x792   :  { %v5195_v36 = vadd.f32 %v5151_v4, %v5044_v19  ;;  %v7516_v57 = vpop.f32.mrb[169].mxu0  ;;  %v6569_v4 = vld [vmem:[%s12754_s7 + $0x70] sm:$0xff] }
 0x793   :  { %v5232_v57 = vld [vmem:[%s12755_s6 + $0x18] sm:$0xff] }
 0x794   :  { %v5211_v20 = vadd.f32 %v6553_v26, %v5195_v36  ;;  %v6570_v36 = vld [vmem:[%s12754_s7 + $0x78] sm:$0xff] }
 0x795   :  { %v5156_v34 = vpop.f32.mrb[170].mxu0 }
 0x796   :  { %v5196_v32 = vadd.f32 %v5156_v34, %v5045_v54  ;;  %v7519_v22 = vpop.f32.mrb[171].mxu0  ;;  %v5220_v28 = vmax.f32 %v5211_v20, 0.0  ;;  %v5233_v34 = vld [vmem:[%s12755_s6 + $0x20] sm:$0xff]  ;;  %v5234_v20 = vld [vmem:[%s12755_s6 + $0x28] sm:$0xff] }
 0x797   :  { %v5236_v22 = vld [vmem:[%s12755_s6 + $0x38] sm:$0xff] }
 0x798   :  { %v5212_v21 = vadd.f32 %v6553_v26, %v5196_v32  ;;  %v5235_v32 = vld [vmem:[%s12755_s6 + $0x30] sm:$0xff] }
 0x799   :  { %v5161_v37 = vpop.f32.mrb[172].mxu0 }
 0x79a   :  { %v5221_v52 = vmax.f32 %v5212_v21, 0.0  ;;  %v5197_v11 = vadd.f32 %v5161_v37, %v5046_v56  ;;  %v7522_v35 = vpop.f32.mrb[173].mxu0  ;;  %v5237_v21 = vld [vmem:[%s12755_s6 + $0x40] sm:$0xff] }
 0x79b   :  { %v5376_v37 = vld [vmem:[%s12754_s7] sm:$0xff] }
 0x79c   :  { %v7998_v55 = vpack.c.bf16 %v5221_v52, %v5220_v28  ;;  %v5213_v17 = vadd.f32 %v6553_v26, %v5197_v11  ;;  %v5377_v28 = vld [vmem:[%s12754_s7 + $0x8] sm:$0xff] }
 0x79d   :  { %v5166_v43 = vpop.f32.mrb[174].mxu0  ;;  %v8022_v35 = vpack.c.bf16 %v5377_v28, %v5376_v37  ;;  %v6597_v28 = vld [vmem:[%s12754_s7 + $0x130] sm:$0xff] }
 0x79e   :  { %v5198_v41 = vadd.f32 %v5166_v43, %v5047_v13  ;;  %v7525_v40 = vpop.f32.mrb[175].mxu0  ;;  %7999 = vmatpush3.bf16.msra.mxu0 %v7998_v55  ;;  %v5222_v6 = vmax.f32 %v5213_v17, 0.0  ;;  %v5378_v55 = vld [vmem:[%s12754_s7 + $0x10] sm:$0xff]  ;;  %v5379_v43 = vld [vmem:[%s12754_s7 + $0x18] sm:$0xff] }
 0x79f   :  { %8000 = vmatprep.subr.bf16.mxu0 %v8460_v0  ;;  %v8025_v40 = vpack.c.bf16 %v5379_v43, %v5378_v55  ;;  %v6601_v55 = vld [vmem:[%s12754_s7 + $0x148] sm:$0xff] }
 0x7a0   :  { %v5214_v38 = vadd.f32 %v6553_v26, %v5198_v41 }
 0x7a1   :  { %v5171_v48 = vpop.f32.mrb[176].mxu0 }
 0x7a2   :  { %v5223_v61 = vmax.f32 %v5214_v38, 0.0  ;;  %v5199_v33 = vadd.f32 %v5171_v48, %v5048_v59  ;;  %v7528_v46 = vpop.f32.mrb[177].mxu0  ;;  %v5380_v38 = vld [vmem:[%s12754_s7 + $0x20] sm:$0xff]  ;;  %v5381_v48 = vld [vmem:[%s12754_s7 + $0x28] sm:$0xff] }
 0x7a3   :  { %v5382_v46 = vld [vmem:[%s12754_s7 + $0x30] sm:$0xff] }
 0x7a4   :  { %v8001_v9 = vpack.c.bf16 %v5223_v61, %v5222_v6  ;;  %v5215_v45 = vadd.f32 %v6553_v26, %v5199_v33  ;;  %v8028_v33 = vpack.c.bf16 %v5381_v48, %v5380_v38  ;;  %v6604_v38 = vld [vmem:[%s12754_s7 + $0x160] sm:$0xff]  ;;  %v6605_v48 = vld [vmem:[%s12754_s7 + $0x168] sm:$0xff] }
 0x7a5   :  { %v5176_v10 = vpop.f32.mrb[178].mxu0 }
 0x7a6   :  { %v5200_v47 = vadd.f32 %v5176_v10, %v5049_v63  ;;  %v7531_v3 = vpop.f32.mrb[179].mxu0  ;;  %8002 = vmatpush3.bf16.msra.mxu0 %v8001_v9  ;;  %v5224_v1 = vmax.f32 %v5215_v45, 0.0  ;;  %v5383_v9 = vld [vmem:[%s12754_s7 + $0x38] sm:$0xff] }
 0x7a7   :  { %8003 = vmatprep.subr.bf16.mxu0 %v8460_v0  ;;  %v6573_v3 = vld [vmem:[%s12754_s7 + $0x80] sm:$0xff] }
 0x7a8   :  { %v5216_v15 = vadd.f32 %v6553_v26, %v5200_v47  ;;  %v8031_v47 = vpack.c.bf16 %v5383_v9, %v5382_v46  ;;  %v6609_v9 = vld [vmem:[%s12754_s7 + $0x180] sm:$0xff] }
 0x7a9   :  { %v5181_v14 = vpop.f32.mrb[180].mxu0 }
 0x7aa   :  { %v5225_v44 = vmax.f32 %v5216_v15, 0.0  ;;  %v5201_v49 = vadd.f32 %v5181_v14, %v5050_v16  ;;  %v7534_v7 = vpop.f32.mrb[181].mxu0  ;;  %v6565_v16 = vld [vmem:[%s12754_s7 + $0x50] sm:$0xff]  ;;  %v6574_v15 = vld [vmem:[%s12754_s7 + $0x88] sm:$0xff] }
 0x7ab   :  { %v6576_v7 = vld [vmem:[%s12754_s7 + $0x98] sm:$0xff] }
 0x7ac   :  { %v8004_v19 = vpack.c.bf16 %v5225_v44, %v5224_v1  ;;  %v5217_v39 = vadd.f32 %v6553_v26, %v5201_v49  ;;  %v8034_v44 = vpack.c.bf16 %v6574_v15, %v6573_v3  ;;  %v6575_v49 = vld [vmem:[%s12754_s7 + $0x90] sm:$0xff]  ;;  %v6612_v3 = vld [vmem:[%s12754_s7 + $0x198] sm:$0xff] }
 0x7ad   :  { %v5186_v53 = vpop.f32.mrb[182].mxu0 }
 0x7ae   :  { %v5202_v54 = vadd.f32 %v5186_v53, %v5051_v5  ;;  %v7537_v25 = vpop.f32.mrb[183].mxu0  ;;  %8005 = vmatpush3.bf16.msra.mxu0 %v8004_v19  ;;  %v5226_v2 = vmax.f32 %v5217_v39, 0.0  ;;  %v8013_v5 = vpack.c.bf16 %v6566_v18, %v6565_v16  ;;  %v8037_v39 = vpack.c.bf16 %v6576_v7, %v6575_v49  ;;  %v6584_v16 = vld [vmem:[%s12754_s7 + $0xd0] sm:$0xff]  ;;  %v6585_v18 = vld [vmem:[%s12754_s7 + $0xd8] sm:$0xff] }
 0x7af   :  { %8006 = vmatprep.subr.bf16.mxu0 %v8460_v0  ;;  %v6578_v25 = vld [vmem:[%s12754_s7 + $0xa8] sm:$0xff]  ;;  %v6615_v49 = vld [vmem:[%s12754_s7 + $0x1b0] sm:$0xff]  ;;  %v6616_v7 = vld [vmem:[%s12754_s7 + $0x1b8] sm:$0xff] }
 0x7b0   :  { %v5218_v50 = vadd.f32 %v6553_v26, %v5202_v54  ;;  %v6577_v54 = vld [vmem:[%s12754_s7 + $0xa0] sm:$0xff] }
 0x7b1   :  { %v5191_v56 = vpop.f32.mrb[184].mxu0 }
 0x7b2   :  { %v5227_v51 = vmax.f32 %v5218_v50, 0.0  ;;  %v5203_v13 = vadd.f32 %v5191_v56, %v5052_v30  ;;  %v7540_v29 = vpop.f32.mrb[185].mxu0  ;;  %v5231_v30 = vld [vmem:[%s12755_s6 + $0x10] sm:$0xff] }
 0x7b4   :  { %v8007_v23 = vpack.c.bf16 %v5227_v51, %v5226_v2  ;;  %v5219_v59 = vadd.f32 %v6553_v26, %v5203_v13  ;;  %v8019_v26 = vpack.c.bf16 %v6570_v36, %v6569_v4  ;;  %v8040_v2 = vpack.c.bf16 %v6578_v25, %v6577_v54  ;;  %v6579_v51 = vld [vmem:[%s12754_s7 + $0xb0] sm:$0xff]  ;;  %v6580_v13 = vld [vmem:[%s12754_s7 + $0xb8] sm:$0xff]  ;;  %v6591_v36 = vld [vmem:[%s12754_s7 + $0x100] sm:$0xff] }
 0x7b5   :  { %v6620_v25 = vld [vmem:[%s12754_s7 + $0x1d0] sm:$0xff] }
 0x7b6   :  { %8008 = vmatpush3.bf16.msra.mxu0 %v8007_v23  ;;  %v5228_v63 = vmax.f32 %v5219_v59, 0.0  ;;  %v8043_v59 = vpack.c.bf16 %v6580_v13, %v6579_v51  ;;  %v6622_v51 = vld [vmem:[%s12754_s7 + $0x1e0] sm:$0xff]  ;;  %v6623_v13 = vld [vmem:[%s12754_s7 + $0x1e8] sm:$0xff] }
 0x7b7   :  { %7557 = vmatprep.subr.mxu0 %v8462_v24 }
 0x7ba   :  { %7558 = vmatpush3.msra.mxu0 %v5228_v63 }
 0x7bb   :  { %7560 = vmatmul.mubr.msk.f32.vlgmr.msra.gmra.mrb[186].mxu0 %vm5238_vm2, %v5229_v27  ;;  %8009 = vmatprep.subr.bf16.mxu0 %v8460_v0 }
 0x7bc   :  { %7562 = vmatprep.mubr.msk.f32.mxu0 %vm8461_vm0, %v8462_v24  ;;  %8011 = vmatpush3.bf16.msra.mxu0 %v8010_v12  ;;  %v8046_v12 = vpack.c.bf16 %v6583_v60, %v6582_v58  ;;  %v6627_v60 = vld [vmem:[%s12754_s7 + $0x200] sm:$0xff] }
 0x7bd   :  { %8012 = vmatprep.subr.bf16.mxu0 %v8460_v0 }
 0x7bf   :  { %7563 = vmatmul.mubr.msk.f32.gmra.mrb[188].mxu0 %vm5238_vm2, %v5230_v42  ;;  %v8049_v42 = vpack.c.bf16 %v6585_v18, %v6584_v16  ;;  %v6629_v16 = vld [vmem:[%s12754_s7 + $0x210] sm:$0xff]  ;;  %v6630_v18 = vld [vmem:[%s12754_s7 + $0x218] sm:$0xff] }
 0x7c0   :  { %7565 = vmatprep.mubr.msk.f32.mxu0 %vm8461_vm0, %v8462_v24  ;;  %8014 = vmatpush3.bf16.msra.mxu0 %v8013_v5  ;;  %v6586_v5 = vld [vmem:[%s12754_s7 + $0xe0] sm:$0xff] }
 0x7c1   :  { %8015 = vmatprep.subr.bf16.mxu0 %v8460_v0  ;;  %v8052_v31 = vpack.c.bf16 %v6587_v62, %v6586_v5  ;;  %v6631_v5 = vld [vmem:[%s12754_s7 + $0x220] sm:$0xff]  ;;  %v6632_v62 = vld [vmem:[%s12754_s7 + $0x228] sm:$0xff] }
 0x7c3   :  { %7566 = vmatmul.mubr.msk.f32.gmra.mrb[190].mxu0 %vm5238_vm2, %v5231_v30  ;;  %v6588_v30 = vld [vmem:[%s12754_s7 + $0xf0] sm:$0xff] }
 0x7c4   :  { %7568 = vmatprep.mubr.msk.f32.mxu0 %vm8461_vm0, %v8462_v24  ;;  %8017 = vmatpush3.bf16.msra.mxu0 %v8016_v8  ;;  %v6589_v8 = vld [vmem:[%s12754_s7 + $0xf8] sm:$0xff] }
 0x7c5   :  { %8018 = vmatprep.subr.bf16.mxu0 %v8460_v0  ;;  %v8055_v4 = vpack.c.bf16 %v6589_v8, %v6588_v30  ;;  %v6634_v30 = vld [vmem:[%s12754_s7 + $0x238] sm:$0xff] }
 0x7c7   :  { %7569 = vmatmul.mubr.msk.f32.gmra.mrb[192].mxu0 %vm5238_vm2, %v5232_v57  ;;  %v6592_v57 = vld [vmem:[%s12754_s7 + $0x108] sm:$0xff] }
 0x7c8   :  { %7571 = vmatprep.mubr.msk.f32.mxu0 %vm8461_vm0, %v8462_v24  ;;  %8020 = vmatpush3.bf16.msra.mxu0 %v8019_v26  ;;  %v8058_v26 = vpack.c.bf16 %v6592_v57, %v6591_v36  ;;  %v6133_v36 = vld [vmem:[%s12756_s9 + $0x18] sm:$0xff]  ;;  %v6130_v57 = vld [vmem:[%s12756_s9] sm:$0xff] }
 0x7c9   :  { %8021 = vmatprep.subr.bf16.mxu0 %v8460_v0 }
 0x7cb   :  { %7572 = vmatmul.mubr.msk.f32.gmra.mrb[194].mxu0 %vm5238_vm2, %v5233_v34  ;;  %v6593_v34 = vld [vmem:[%s12754_s7 + $0x110] sm:$0xff] }
 0x7cc   :  { %7574 = vmatprep.mubr.msk.f32.mxu0 %vm8461_vm0, %v8462_v24 }
 0x7cf   :  { %7575 = vmatmul.mubr.msk.f32.gmra.mrb[196].mxu0 %vm5238_vm2, %v5234_v20  ;;  %v6594_v20 = vld [vmem:[%s12754_s7 + $0x118] sm:$0xff] }
 0x7d0   :  { %7577 = vmatprep.mubr.msk.f32.mxu0 %vm8461_vm0, %v8462_v24 }
 0x7d3   :  { %7578 = vmatmul.mubr.msk.f32.gmra.mrb[198].mxu0 %vm5238_vm2, %v5235_v32  ;;  %v8061_v32 = vpack.c.bf16 %v6594_v20, %v6593_v34 }
 0x7d4   :  { %7580 = vmatprep.mubr.msk.f32.mxu0 %vm8461_vm0, %v8462_v24 }
 0x7d7   :  { %7581 = vmatmul.mubr.msk.f32.gmra.mrb[200].mxu0 %vm5238_vm2, %v5236_v22  ;;  %v6595_v22 = vld [vmem:[%s12754_s7 + $0x120] sm:$0xff] }
 0x7d8   :  { %7583 = vmatprep.mubr.msk.f32.mxu0 %vm8461_vm0, %v8462_v24 }
 0x7db   :  { %7584 = vmatmul.mubr.msk.f32.gmra.mrb[202].mxu0 %vm5238_vm2, %v5237_v21  ;;  %v6596_v21 = vld [vmem:[%s12754_s7 + $0x128] sm:$0xff] }
 0x7dc   :  { %7602 = vmatprep.mubr.msk.f32.mxu0 %vm8461_vm0, %v8462_v24  ;;  %v8064_v37 = vpack.c.bf16 %v6596_v21, %v6595_v22  ;;  %v6136_v22 = vld [vmem:[%s12756_s9 + $0x30] sm:$0xff]  ;;  %v6139_v21 = vld [vmem:[%s12756_s9 + $0x48] sm:$0xff] }
 0x88e   :  { %v5332_v52 = vpop.f32.mrb[186].mxu0 }
 0x88f   :  { %v7561_v11 = vpop.f32.mrb[187].mxu0 }
 0x892   :  { %v5337_v17 = vpop.f32.mrb[188].mxu0 }
 0x893   :  { %7603 = vmatmul.mubr.msk.f32.vlgmr.msra.gmra.mrb[204].mxu0 %vm5393_vm3, %v5337_v17  ;;  %v7564_v41 = vpop.f32.mrb[189].mxu0  ;;  %v6602_v17 = vld [vmem:[%s12754_s7 + $0x150] sm:$0xff] }
 0x894   :  { %8023 = vmatpush3.bf16.msra.mxu0 %v8022_v35  ;;  %7621 = vmatprep.mubr.msk.f32.mxu0 %vm8461_vm0, %v8462_v24  ;;  %v6600_v35 = vld [vmem:[%s12754_s7 + $0x140] sm:$0xff]  ;;  %v6603_v41 = vld [vmem:[%s12754_s7 + $0x158] sm:$0xff] }
 0x895   :  { %8024 = vmatprep.subr.bf16.mxu0 %v8460_v0  ;;  %v8070_v43 = vpack.c.bf16 %v6601_v55, %v6600_v35  ;;  %v6140_v35 = vld [vmem:[%s12756_s9 + $0x50] sm:$0xff] }
 0x896   :  { %v5342_v6 = vpop.f32.mrb[190].mxu0 }
 0x897   :  { %v7567_v61 = vpop.f32.mrb[191].mxu0 }
 0x898   :  { %8026 = vmatpush3.bf16.msra.mxu0 %v8025_v40  ;;  %v8073_v40 = vpack.c.bf16 %v6603_v41, %v6602_v17  ;;  %v6606_v61 = vld [vmem:[%s12754_s7 + $0x170] sm:$0xff]  ;;  %v6143_v17 = vld [vmem:[%s12756_s9 + $0x68] sm:$0xff]  ;;  %v6145_v41 = vld [vmem:[%s12756_s9 + $0x78] sm:$0xff] }
 0x899   :  { %8027 = vmatprep.subr.bf16.mxu0 %v8460_v0 }
 0x89a   :  { %v12353_v10 = vpop.f32.mrb[192].mxu0 }
 0x89b   :  { %v7570_v45 = vpop.f32.mrb[193].mxu0 }
 0x89c   :  { %8029 = vmatpush3.bf16.msra.mxu0 %v8028_v33  ;;  %v6607_v33 = vld [vmem:[%s12754_s7 + $0x178] sm:$0xff] }
 0x89d   :  { %8030 = vmatprep.subr.bf16.mxu0 %v8460_v0  ;;  %v8079_v46 = vpack.c.bf16 %v6607_v33, %v6606_v61  ;;  %v6250_v33 = vld [vmem:[%s12757_s11 + $0x80] sm:$0xff] }
 0x89e   :  { %v12362_v14 = vpop.f32.mrb[194].mxu0 }
 0x89f   :  { %v7573_v1 = vpop.f32.mrb[195].mxu0 }
 0x8a0   :  { %8032 = vmatpush3.bf16.msra.mxu0 %v8031_v47  ;;  %v6611_v47 = vld [vmem:[%s12754_s7 + $0x190] sm:$0xff]  ;;  %v6614_v1 = vld [vmem:[%s12754_s7 + $0x1a8] sm:$0xff] }
 0x8a1   :  { %8033 = vmatprep.subr.bf16.mxu0 %v8460_v0  ;;  %v8085_v15 = vpack.c.bf16 %v6612_v3, %v6611_v47 }
 0x8a2   :  { %v12371_v19 = vpop.f32.mrb[196].mxu0 }
 0x8a3   :  { %7622 = vmatmul.mubr.msk.f32.vlgmr.msra.gmra.mrb[206].mxu0 %vm5393_vm3, %v5332_v52  ;;  %v7576_v53 = vpop.f32.mrb[197].mxu0  ;;  %v6598_v52 = vld [vmem:[%s12754_s7 + $0x138] sm:$0xff] }
 0x8a4   :  { %8035 = vmatpush3.bf16.msra.mxu0 %v8034_v44  ;;  %7640 = vmatprep.mubr.msk.f32.mxu0 %vm8461_vm0, %v8462_v24  ;;  %v8067_v11 = vpack.c.bf16 %v6598_v52, %v6597_v28  ;;  %v6618_v53 = vld [vmem:[%s12754_s7 + $0x1c0] sm:$0xff] }
 0x8a5   :  { %8036 = vmatprep.subr.bf16.mxu0 %v8460_v0 }
 0x8a6   :  { %v12383_v50 = vpop.f32.mrb[198].mxu0 }
 0x8a7   :  { %v7579_v56 = vpop.f32.mrb[199].mxu0 }
 0x8a8   :  { %8038 = vmatpush3.bf16.msra.mxu0 %v8037_v39  ;;  %v6619_v39 = vld [vmem:[%s12754_s7 + $0x1c8] sm:$0xff]  ;;  %v6621_v56 = vld [vmem:[%s12754_s7 + $0x1d8] sm:$0xff] }
 0x8a9   :  { %8039 = vmatprep.subr.bf16.mxu0 %v8460_v0  ;;  %v8094_v54 = vpack.c.bf16 %v6619_v39, %v6618_v53 }
 0x8aa   :  { %v12392_v29 = vpop.f32.mrb[200].mxu0 }
 0x8ab   :  { %v7582_v23 = vpop.f32.mrb[201].mxu0 }
 0x8ac   :  { %8041 = vmatpush3.bf16.msra.mxu0 %v8040_v2  ;;  %v8097_v2 = vpack.c.bf16 %v6621_v56, %v6620_v25  ;;  %v8100_v23 = vpack.c.bf16 %v6623_v13, %v6622_v51 }
 0x8ad   :  { %8042 = vmatprep.subr.bf16.mxu0 %v8460_v0 }
 0x8ae   :  { %v12401_v63 = vpop.f32.mrb[202].mxu0 }
 0x8af   :  { %v7585_v27 = vpop.f32.mrb[203].mxu0 }
 0x8b0   :  { %8044 = vmatpush3.bf16.msra.mxu0 %v8043_v59  ;;  %v6625_v59 = vld [vmem:[%s12754_s7 + $0x1f8] sm:$0xff]  ;;  %v6628_v27 = vld [vmem:[%s12754_s7 + $0x208] sm:$0xff] }
 0x8b1   :  { %8045 = vmatprep.subr.bf16.mxu0 %v8460_v0 }
 0x8b3   :  { %7641 = vmatmul.mubr.msk.f32.vlgmr.msra.gmra.mrb[208].mxu0 %vm5393_vm3, %v5342_v6  ;;  %v8076_v6 = vpack.c.bf16 %v6605_v48, %v6604_v38  ;;  %v8129_v38 = vpack.c.bf16 %v6145_v41, %v6143_v17  ;;  %v6142_v48 = vld [vmem:[%s12756_s9 + $0x60] sm:$0xff]  ;;  %v6261_v17 = vld [vmem:[%s12757_s11 + $0xd8] sm:$0xff] }
 0x8b4   :  { %8047 = vmatpush3.bf16.msra.mxu0 %v8046_v12  ;;  %7659 = vmatprep.mubr.msk.f32.mxu0 %vm8461_vm0, %v8462_v24  ;;  %v8106_v12 = vpack.c.bf16 %v6628_v27, %v6627_v60 }
 0x8b5   :  { %8048 = vmatprep.subr.bf16.mxu0 %v8460_v0 }
 0x8b8   :  { %8050 = vmatpush3.bf16.msra.mxu0 %v8049_v42  ;;  %v8109_v42 = vpack.c.bf16 %v6630_v18, %v6629_v16  ;;  %v6235_v16 = vld [vmem:[%s12757_s11 + $0x8] sm:$0xff]  ;;  %v6252_v18 = vld [vmem:[%s12757_s11 + $0x90] sm:$0xff] }
 0x8b9   :  { %8051 = vmatprep.subr.bf16.mxu0 %v8460_v0 }
 0x8bc   :  { %8053 = vmatpush3.bf16.msra.mxu0 %v8052_v31  ;;  %v8112_v31 = vpack.c.bf16 %v6632_v62, %v6631_v5 }
 0x8bd   :  { %8054 = vmatprep.subr.bf16.mxu0 %v8460_v0 }
 0x8c0   :  { %8056 = vmatpush3.bf16.msra.mxu0 %v8055_v4  ;;  %v6131_v4 = vld [vmem:[%s12756_s9 + $0x8] sm:$0xff] }
 0x8c1   :  { %8057 = vmatprep.subr.bf16.mxu0 %v8460_v0 }
 0x8c3   :  { %7660 = vmatmul.mubr.msk.f32.vlgmr.msra.gmra.mrb[210].mxu0 %vm5393_vm3, %v12353_v10  ;;  %v6610_v10 = vld [vmem:[%s12754_s7 + $0x188] sm:$0xff] }
 0x8c4   :  { %8059 = vmatpush3.bf16.msra.mxu0 %v8058_v26  ;;  %7678 = vmatprep.mubr.msk.f32.mxu0 %vm8461_vm0, %v8462_v24  ;;  %v8082_v45 = vpack.c.bf16 %v6610_v10, %v6609_v9  ;;  %v8117_v26 = vpack.c.bf16 %v6133_v36, %v6131_v4  ;;  %v6254_v4 = vld [vmem:[%s12757_s11 + $0xa0] sm:$0xff]  ;;  %v6255_v36 = vld [vmem:[%s12757_s11 + $0xa8] sm:$0xff] }
 0x8c5   :  { %8060 = vmatprep.subr.bf16.mxu0 %v8460_v0 }
 0x8c8   :  { %8062 = vmatpush3.bf16.msra.mxu0 %v8061_v32  ;;  %v6134_v32 = vld [vmem:[%s12756_s9 + $0x20] sm:$0xff] }
 0x8c9   :  { %8063 = vmatprep.subr.bf16.mxu0 %v8460_v0  ;;  %v8123_v28 = vpack.c.bf16 %v6136_v22, %v6134_v32  ;;  %v6240_v22 = vld [vmem:[%s12757_s11 + $0x30] sm:$0xff] }
 0x8cc   :  { %8065 = vmatpush3.bf16.msra.mxu0 %v8064_v37  ;;  %v6141_v37 = vld [vmem:[%s12756_s9 + $0x58] sm:$0xff] }
 0x8cd   :  { %8066 = vmatprep.subr.bf16.mxu0 %v8460_v0  ;;  %v8125_v52 = vpack.c.bf16 %v6141_v37, %v6139_v21  ;;  %v6241_v21 = vld [vmem:[%s12757_s11 + $0x38] sm:$0xff]  ;;  %v6258_v37 = vld [vmem:[%s12757_s11 + $0xc0] sm:$0xff] }
 0x8d0   :  { %8068 = vmatpush3.bf16.msra.mxu0 %v8067_v11  ;;  %v6138_v11 = vld [vmem:[%s12756_s9 + $0x40] sm:$0xff] }
 0x8d1   :  { %8069 = vmatprep.subr.bf16.mxu0 %v8460_v0  ;;  %v8127_v55 = vpack.c.bf16 %v6140_v35, %v6138_v11  ;;  %v6242_v35 = vld [vmem:[%s12757_s11 + $0x40] sm:$0xff] }
 0x8d3   :  { %7679 = vmatmul.mubr.msk.f32.vlgmr.msra.gmra.mrb[212].mxu0 %vm5393_vm3, %v12362_v14  ;;  %v6613_v14 = vld [vmem:[%s12754_s7 + $0x1a0] sm:$0xff] }
 0x8d4   :  { %8071 = vmatpush3.bf16.msra.mxu0 %v8070_v43  ;;  %7697 = vmatprep.mubr.msk.f32.mxu0 %vm8461_vm0, %v8462_v24  ;;  %v8088_v44 = vpack.c.bf16 %v6614_v1, %v6613_v14 }
 0x8d5   :  { %8072 = vmatprep.subr.bf16.mxu0 %v8460_v0 }
 0x8d8   :  { %8074 = vmatpush3.bf16.msra.mxu0 %v8073_v40 }
 0x8d9   :  { %8075 = vmatprep.subr.bf16.mxu0 %v8460_v0 }
 0x8dc   :  { %8077 = vmatpush3.bf16.msra.mxu0 %v8076_v6  ;;  %v6144_v6 = vld [vmem:[%s12756_s9 + $0x70] sm:$0xff] }
 0x8dd   :  { %8078 = vmatprep.subr.bf16.mxu0 %v8460_v0  ;;  %v8131_v61 = vpack.c.bf16 %v6144_v6, %v6142_v48  ;;  %v6245_v48 = vld [vmem:[%s12757_s11 + $0x58] sm:$0xff]  ;;  %v6262_v6 = vld [vmem:[%s12757_s11 + $0xe0] sm:$0xff] }
 0x8e0   :  { %8080 = vmatpush3.bf16.msra.mxu0 %v8079_v46  ;;  %v6251_v46 = vld [vmem:[%s12757_s11 + $0x88] sm:$0xff] }
 0x8e1   :  { %8081 = vmatprep.subr.bf16.mxu0 %v8460_v0  ;;  %v8133_v9 = vpack.c.bf16 %v6251_v46, %v6250_v33 }
 0x8e3   :  { %7698 = vmatmul.mubr.msk.f32.vlgmr.msra.gmra.mrb[214].mxu0 %vm5393_vm3, %v12371_v19  ;;  %v8091_v19 = vpack.c.bf16 %v6616_v7, %v6615_v49 }
 0x8e4   :  { %8083 = vmatpush3.bf16.msra.mxu0 %v8082_v45  ;;  %7716 = vmatprep.mubr.msk.f32.mxu0 %vm8461_vm0, %v8462_v24 }
 0x8e5   :  { %8084 = vmatprep.subr.bf16.mxu0 %v8460_v0 }
 0x8e8   :  { %8086 = vmatpush3.bf16.msra.mxu0 %v8085_v15 }
 0x8e9   :  { %8087 = vmatprep.subr.bf16.mxu0 %v8460_v0 }
 0x8ec   :  { %8089 = vmatpush3.bf16.msra.mxu0 %v8088_v44 }
 0x8ed   :  { %8090 = vmatprep.subr.bf16.mxu0 %v8460_v0 }
 0x8f0   :  { %8092 = vmatpush3.bf16.msra.mxu0 %v8091_v19 }
 0x8f1   :  { %8093 = vmatprep.subr.bf16.mxu0 %v8460_v0 }
 0x8f3   :  { %7717 = vmatmul.mubr.msk.f32.vlgmr.msra.gmra.mrb[216].mxu0 %vm5393_vm3, %v12383_v50  ;;  %v6624_v50 = vld [vmem:[%s12754_s7 + $0x1f0] sm:$0xff] }
 0x8f4   :  { %8095 = vmatpush3.bf16.msra.mxu0 %v8094_v54  ;;  %7735 = vmatprep.mubr.msk.f32.mxu0 %vm8461_vm0, %v8462_v24  ;;  %v8103_v58 = vpack.c.bf16 %v6625_v59, %v6624_v50 }
 0x8f5   :  { %8096 = vmatprep.subr.bf16.mxu0 %v8460_v0 }
 0x8f8   :  { %8098 = vmatpush3.bf16.msra.mxu0 %v8097_v2 }
 0x8f9   :  { %8099 = vmatprep.subr.bf16.mxu0 %v8460_v0 }
 0x8fc   :  { %8101 = vmatpush3.bf16.msra.mxu0 %v8100_v23 }
 0x8fd   :  { %8102 = vmatprep.subr.bf16.mxu0 %v8460_v0 }
 0x900   :  { %8104 = vmatpush3.bf16.msra.mxu0 %v8103_v58  ;;  %v6636_v58 = vld [vmem:[%s12758_s8] ss:$0 sm:$0xff] }
 0x901   :  { %8105 = vmatprep.subr.bf16.mxu0 %v8460_v0 }
 0x903   :  { %7736 = vmatmul.mubr.msk.f32.vlgmr.msra.gmra.mrb[218].mxu0 %vm5393_vm3, %v12392_v29  ;;  %v6633_v29 = vld [vmem:[%s12754_s7 + $0x230] sm:$0xff] }
 0x904   :  { %8107 = vmatpush3.bf16.msra.mxu0 %v8106_v12  ;;  %7754 = vmatprep.mubr.msk.f32.mxu0 %vm8461_vm0, %v8462_v24  ;;  %v8115_v8 = vpack.c.bf16 %v6634_v30, %v6633_v29  ;;  %v6234_v12 = vld [vmem:[%s12757_s11] sm:$0xff]  ;;  %v6236_v30 = vld [vmem:[%s12757_s11 + $0x10] sm:$0xff] }
 0x905   :  { %8108 = vmatprep.subr.bf16.mxu0 %v8460_v0  ;;  %v8135_v62 = vpack.c.bf16 %v6235_v16, %v6234_v12 }
 0x908   :  { %8110 = vmatpush3.bf16.msra.mxu0 %v8109_v42  ;;  %v6253_v42 = vld [vmem:[%s12757_s11 + $0x98] sm:$0xff] }
 0x909   :  { %8111 = vmatprep.subr.bf16.mxu0 %v8460_v0  ;;  %v8137_v29 = vpack.c.bf16 %v6253_v42, %v6252_v18 }
 0x90c   :  { %8113 = vmatpush3.bf16.msra.mxu0 %v8112_v31 }
 0x90d   :  { %8114 = vmatprep.subr.bf16.mxu0 %v8460_v0  ;;  %v6132_v0 = vld [vmem:[%s12756_s9 + $0x10] sm:$0xff] }
 0x90e   :  { %v8119_v34 = vpack.c.bf16 %v6132_v0, %v6130_v57  ;;  %v6238_v0 = vld [vmem:[%s12757_s11 + $0x20] sm:$0xff] }
 0x910   :  { %8116 = vmatpush3.bf16.msra.mxu0 %v8115_v8  ;;  %v6237_v8 = vld [vmem:[%s12757_s11 + $0x18] sm:$0xff] }
 0x911   :  { %8118 = vmatprep.subr.bf16.mxu0 %v8117_v26  ;;  %v8139_v57 = vpack.c.bf16 %v6237_v8, %v6236_v30  ;;  %v8141_v26 = vpack.c.bf16 %v6255_v36, %v6254_v4 }
 0x913   :  { %7755 = vmatmul.mubr.msk.f32.vlgmr.msra.gmra.mrb[220].mxu0 %vm5393_vm3, %v12401_v63  ;;  %v6137_v63 = vld [vmem:[%s12756_s9 + $0x38] sm:$0xff] }
 0x914   :  { %6225 = vmatprep.mubr.f32.mxu0 %v8462_v24  ;;  %v6135_v24 = vld [vmem:[%s12756_s9 + $0x28] sm:$0xff]  ;;  %8120 = vmatpush1.bf16.msra.mxu0 %v8119_v34  ;;  %v6257_v34 = vld [vmem:[%s12757_s11 + $0xb8] sm:$0xff] }
 0x915   :  { %v8121_v20 = vpack.c.bf16 %v6137_v63, %v6135_v24  ;;  %v6239_v24 = vld [vmem:[%s12757_s11 + $0x28] sm:$0xff]  ;;  %v6256_v63 = vld [vmem:[%s12757_s11 + $0xb0] sm:$0xff] }
 0x916   :  { %v8145_v32 = vpack.c.bf16 %v6257_v34, %v6256_v63 }
 0x917   :  { %8122 = vmatprep.subr.bf16.mxu0 %v8121_v20  ;;  %v8143_v20 = vpack.c.bf16 %v6239_v24, %v6238_v0 }
 0x918   :  { %8124 = vmatpush1.bf16.msra.mxu0 %v8123_v28  ;;  %v6259_v28 = vld [vmem:[%s12757_s11 + $0xc8] sm:$0xff] }
 0x919   :  { %8126 = vmatprep.subr.bf16.mxu0 %v8125_v52  ;;  %v8147_v52 = vpack.c.bf16 %v6241_v21, %v6240_v22  ;;  %v8149_v11 = vpack.c.bf16 %v6259_v28, %v6258_v37 }
 0x91c   :  { %8128 = vmatpush1.bf16.msra.mxu0 %v8127_v55  ;;  %v6243_v55 = vld [vmem:[%s12757_s11 + $0x48] sm:$0xff] }
 0x91d   :  { %8130 = vmatprep.subr.bf16.mxu0 %v8129_v38  ;;  %v8151_v41 = vpack.c.bf16 %v6243_v55, %v6242_v35  ;;  %v6244_v38 = vld [vmem:[%s12757_s11 + $0x50] sm:$0xff] }
 0x91e   :  { %v8155_v33 = vpack.c.bf16 %v6245_v48, %v6244_v38 }
 0x920   :  { %8132 = vmatpush1.bf16.msra.mxu0 %v8131_v61  ;;  %v6263_v61 = vld [vmem:[%s12757_s11 + $0xe8] sm:$0xff] }
 0x921   :  { %8134 = vmatprep.subr.bf16.mxu0 %v8133_v9  ;;  %v8157_v46 = vpack.c.bf16 %v6263_v61, %v6262_v6  ;;  %v6246_v9 = vld [vmem:[%s12757_s11 + $0x60] sm:$0xff] }
 0x966   :  { %v5463_v43 = vpop.f32.mrb[204].mxu0 }
 0x967   :  { %v7604_v40 = vpop.f32.mrb[205].mxu0 }
 0x976   :  { %v5536_v10 = vpop.f32.mrb[206].mxu0 }
 0x977   :  { %v5537_v45 = vadd.f32 %v5536_v10, %v5463_v43  ;;  %v7623_v47 = vpop.f32.mrb[207].mxu0  ;;  %v6260_v43 = vld [vmem:[%s12757_s11 + $0xd0] sm:$0xff]  ;;  %v6247_v10 = vld [vmem:[%s12757_s11 + $0x68] sm:$0xff] }
 0x978   :  { %v8153_v40 = vpack.c.bf16 %v6261_v17, %v6260_v43  ;;  %v6264_v47 = vld [vmem:[%s12757_s11 + $0xf0] sm:$0xff] }
 0x986   :  { %v5618_v3 = vpop.f32.mrb[208].mxu0 }
 0x987   :  { %v5622_v15 = vadd.f32 %v5618_v3, %v5537_v45  ;;  %v7642_v14 = vpop.f32.mrb[209].mxu0  ;;  %v8159_v45 = vpack.c.bf16 %v6247_v10, %v6246_v9  ;;  %v6265_v3 = vld [vmem:[%s12757_s11 + $0xf8] sm:$0xff] }
 0x988   :  { %v6248_v14 = vld [vmem:[%s12757_s11 + $0x70] sm:$0xff] }
 0x996   :  { %v5701_v1 = vpop.f32.mrb[210].mxu0 }
 0x997   :  { %v5705_v44 = vadd.f32 %v5701_v1, %v5622_v15  ;;  %v7661_v49 = vpop.f32.mrb[211].mxu0  ;;  %v8161_v15 = vpack.c.bf16 %v6265_v3, %v6264_v47  ;;  %v6249_v1 = vld [vmem:[%s12757_s11 + $0x78] sm:$0xff] }
 0x998   :  { %v6148_v49 = vlaneseq }
 0x9a6   :  { %v5784_v7 = vpop.f32.mrb[212].mxu0 }
 0x9a7   :  { %v5788_v19 = vadd.f32 %v5784_v7, %v5705_v44  ;;  %v7680_v53 = vpop.f32.mrb[213].mxu0  ;;  %v8163_v44 = vpack.c.bf16 %v6249_v1, %v6248_v14  ;;  %v6149_v7 = vshrl.u32 %v6148_v49, 7 }
 0x9a8   :  { %v6146_v53 = vld [vmem:[%s12759_s10] sm:$0x3] }
 0x9b6   :  { %v5867_v39 = vpop.f32.mrb[214].mxu0 }
 0x9b7   :  { %v5871_v54 = vadd.f32 %v5867_v39, %v5788_v19  ;;  %v7699_v25 = vpop.f32.mrb[215].mxu0  ;;  %v6150_v19 = vsub.s32 0, %v6149_v7  ;;  %v6154_v39 = vsub.s32 1, %v6149_v7 }
 0x9b9   :  { %v6155_v25 = vrot.slane %v6146_v53, %v6154_v39 }
 0x9c6   :  { %v5950_v56 = vpop.f32.mrb[216].mxu0 }
 0x9c7   :  { %v5954_v2 = vadd.f32 %v5950_v56, %v5871_v54  ;;  %v7718_v51 = vpop.f32.mrb[217].mxu0  ;;  %v6151_v54 = vrot.slane %v6146_v53, %v6150_v19 }
 0x9d6   :  { %v6033_v13 = vpop.f32.mrb[218].mxu0 }
 0x9d7   :  { %v6037_v23 = vadd.f32 %v6033_v13, %v5954_v2  ;;  %v7737_v50 = vpop.f32.mrb[219].mxu0 }
 0x9e6   :  { %v6116_v59 = vpop.f32.mrb[220].mxu0 }
 0x9e7   :  { %v6120_v60 = vadd.f32 %v6116_v59, %v6037_v23  ;;  %v7756_v27 = vpop.f32.mrb[221].mxu0 }
 0x9e9   :  { %v6128_v5 = vadd.f32 %v6636_v58, %v6120_v60  ;;  %v6638_v58 = vld [vmem:[%s12760_s12] ss:$0 sm:$0xff] }
 0x9eb   :  { %v6129_v31 = vmax.f32 %v6128_v5, 0.0 }
 0x9ed   :  { %6637 = vmatmul.mubr.msk.f32.vlgmr.msra.gmra.mrb[222].mxu0 %vm5393_vm3, %v6129_v31 }
 0x9ee   :  { %8136 = vmatpush3.bf16.msra.mxu0 %v8135_v62 }
 0x9ef   :  { %8138 = vmatprep.subr.bf16.mxu0 %v8137_v29 }
 0x9f2   :  { %8140 = vmatpush3.bf16.msra.mxu0 %v8139_v57 }
 0x9f3   :  { %8142 = vmatprep.subr.bf16.mxu0 %v8141_v26 }
 0x9f6   :  { %8144 = vmatpush3.bf16.msra.mxu0 %v8143_v20 }
 0x9f7   :  { %8146 = vmatprep.subr.bf16.mxu0 %v8145_v32 }
 0x9fa   :  { %8148 = vmatpush3.bf16.msra.mxu0 %v8147_v52 }
 0x9fb   :  { %8150 = vmatprep.subr.bf16.mxu0 %v8149_v11 }
 0x9fe   :  { %8152 = vmatpush3.bf16.msra.mxu0 %v8151_v41 }
 0x9ff   :  { %8154 = vmatprep.subr.bf16.mxu0 %v8153_v40 }
 0xa02   :  { %8156 = vmatpush3.bf16.msra.mxu0 %v8155_v33 }
 0xa03   :  { %8158 = vmatprep.subr.bf16.mxu0 %v8157_v46 }
 0xa06   :  { %8160 = vmatpush3.bf16.msra.mxu0 %v8159_v45 }
 0xa07   :  { %8162 = vmatprep.subr.bf16.mxu0 %v8161_v15 }
 0xa0a   :  { %8164 = vmatpush3.bf16.msra.mxu0 %v8163_v44 }
 0xac0   :  { %v6227_v56 = vpop.f32.mrb[222].mxu0 }
 0xac1   :  { %v6228_v2 = vadd.f32 %v6227_v56, %v6151_v54  ;;  %v6229_v51 = vpop.f32.mrb[223].mxu0 }
 0xac2   :  { %v6230_v13 = vadd.f32 %v6229_v51, %v6155_v25 }
 0xac3   :  { %v6232_v50 = vmax.f32 %v6228_v2, 0.0 }
 0xac4   :  { %v6233_v23 = vmax.f32 %v6230_v13, 0.0 }
 0xac6   :  { %6337 = vmatprep.mubr.f32.mxu0 %v6233_v23 }
 0xac7   :  { %6338 = vmatmul.mubr.f32.vlgmr.msra.gmra.mrb[224].mxu0 %v6232_v50 }
 0xb9a   :  { %v6978_v59 = vpop.f32.mrb[224].mxu0 }
 0xb9b   :  { %v6979_v60 = vpop.f32.mrb[225].mxu0 }
 0xb9c   :  { %v6980_v27 = vadd.f32 %v6979_v60, %v6978_v59 }
 0xb9e   :  { %v6340_v12 = vadd.f32 %v6980_v27, %v6638_v58 }
 0xba0   :  { %6343 = vst [vmem:[%s12761_s13] sm:$0xff] %v6340_v12 }

</bundles_post_ra>
